<compile_context>
chip_gen: v6e
topology: v6e:2x2x1
jax: 0.10.0
libtpu: 0.0.40
codegen_flags: <defaults>
</compile_context>

<pallas_src>
import functools
import math

import jax
import jax.numpy as jnp
from jax.experimental import pallas as pl
from jax.experimental.pallas import tpu as pltpu


def _make_cgd_head_kernel(p_k_list, T, k, M, B, tb, rows_pad, eps=1e-5):
    """Builds the fused CGD-head kernel body (all sizes static via closure)."""
    n_p = len(p_k_list)
    nb = B // tb
    inv_T = 1.0 / float(T)
    inv_sqrt_np = 1.0 / math.sqrt(float(n_p))   # ||concat of unit-norm blocks||_F

    int_ps = [int(p) for p in p_k_list if float(p).is_integer() and float(p) >= 1.0]
    max_int_p = max(int_ps) if int_ps else 1

    def kernel(x_ref, w_ref, ba_ref, aux_ref, z_ref, g_all):
        i = pl.program_id(0)

        # Zero the (sublane-padded) GD scratch once so padding rows that flow
        # through the combined matmul are deterministic (their outputs are
        # discarded anyway).
        @pl.when(i == 0)
        def _init():
            g_all[...] = jnp.zeros_like(g_all)

        # ----------------- GD phase: one pass over the x block ---------------
        x = x_ref[...]                       # [tb, 49, 2048] f32, channels on lanes
        ax = jnp.abs(x)
        pows = {1: ax}                       # shared multiply chain for |x|^n
        for n in range(2, max_int_p + 1):
            pows[n] = pows[n - 1] * ax

        if nb > 1:
            row_off = pl.multiple_of(i * tb, tb)

        for j, p in enumerate(p_k_list):
            pf = float(p)
            if pf.is_integer() and pf >= 1.0:
                pw = pows[int(pf)]
            else:
                pw = jnp.power(ax, pf)       # generic fallback (not hit for int p)
            s = jnp.sum(pw, axis=1)          # [tb, 2048] spatial (sublane) reduce
            if pf == 1.0:
                g = s
            elif pf == 2.0:
                g = jnp.sqrt(s)
            else:
                g = s ** (1.0 / pf)
            if nb > 1:
                g_all[pl.ds(j * rows_pad + row_off, tb), :] = g
            else:
                g_all[j * rows_pad:j * rows_pad + tb, :] = g

        # ------- finalize: BN + one combined MXU matmul + normalizations -----
        @pl.when(i == pl.num_programs(0) - 1)
        def _finalize():
            # BatchNorm1d(2048), training-mode batch stats, gamma=1 / beta=0
            # (module defaults at init).
            # TODO(synk): trained affine params / eval-mode running stats are
            # not plumbed through.
            g0 = g_all[0:B, :]
            mean = jnp.mean(g0, axis=0, keepdims=True)
            var = jnp.mean((g0 - mean) ** 2, axis=0, keepdims=True)
            bn = (g0 - mean) * jax.lax.rsqrt(var + eps)
            g_all[n_p * rows_pad:n_p * rows_pad + B, :] = bn

            # Single MXU call for every FC: rows = [g_0; ...; g_{n_p-1}; bn]
            # (B valid rows per group, padded to rows_pad), cols =
            # [W_r0 | ... | W_r{n_p-1} | W_a]  (n_p*k + M <= 128 lanes).
            lhs = g_all[...]                                  # [(n_p+1)*rows_pad, 2048]
            y_all = jnp.dot(lhs, w_ref[...],
                            preferred_element_type=jnp.float32)

            for j in range(n_p):
                y = y_all[j * rows_pad:j * rows_pad + B, j * k:(j + 1) * k]
                # per-Ranking Frobenius norm over the full batch; the outer
                # concat norm is the constant sqrt(n_p).
                scale = jax.lax.rsqrt(jnp.sum(y * y)) * inv_sqrt_np
                z_ref[:, j * k:(j + 1) * k] = y * scale

            aux = y_all[n_p * rows_pad:n_p * rows_pad + B,
                        n_p * k:n_p * k + M]
            aux_ref[...] = (aux + ba_ref[...]) * inv_T

    return kernel


@functools.partial(jax.jit, static_argnames=("p_k_list", "T"))
def cgd_head(feat_nchw, wr_t, wa_t, ba, *, p_k_list, T):
    """feat_nchw: [B,2048,7,7]; wr_t: [n_p,2048,k]; wa_t: [2048,M]; ba: [M] or [1,M]."""
    B, C, H, W = feat_nchw.shape
    S = H * W
    assert C == 2048 and S == 49, "CGD head hard-codes 2048 x 49 features"
    n_p = len(p_k_list)
    k = wr_t.shape[-1]
    M = wa_t.shape[-1]
    assert n_p * k + M <= 128, "combined FC output must fit one 128-lane tile"

    # NCHW -> [B, 2048, 49] (torch .view) -> [B, 49, 2048]: channels on the
    # 128-lane axis, spatial on sublanes so the p-norm is a cheap sublane sum.
    # TODO(synk): this transpose is a separate XLA op (extra HBM round trip);
    # folding it into the input DMA (allow_input_fusion) or emitting NSC
    # features from the backbone would cut x's HBM traffic ~3x.
    x = jnp.transpose(feat_nchw.reshape(B, C, S), (0, 2, 1)).astype(jnp.float32)

    # One combined RHS: [2048, n_p*k + M] = [W_r0 | ... | W_r{n_p-1} | W_a].
    w_comb = jnp.concatenate(
        [wr_t[j] for j in range(n_p)] + [wa_t], axis=1).astype(jnp.float32)
    ba2 = ba.reshape(1, M).astype(jnp.float32)

    # Batch tiling: blocks of 8 samples when possible (per-step working set,
    # incl. double buffering, stays well under every generation's scoped VMEM);
    # otherwise a single block (e.g. the tiny demo batch).
    tb = 8 if (B % 8 == 0 and B > 8) else B
    nb = B // tb
    rows_pad = ((B + 7) // 8) * 8            # sublane-aligned rows per g group

    kernel = _make_cgd_head_kernel(p_k_list, T, k, M, B, tb, rows_pad)

    grid_spec = pltpu.PrefetchScalarGridSpec(
        num_scalar_prefetch=0,
        grid=(nb,),
        in_specs=[
            pl.BlockSpec((tb, S, C), lambda i: (i, 0, 0)),       # x block (pipelined)
            pl.BlockSpec((C, n_p * k + M), lambda i: (0, 0)),    # weights (resident)
            pl.BlockSpec((1, M), lambda i: (0, 0)),              # bias (resident)
        ],
        out_specs=(
            pl.BlockSpec((B, M), lambda i: (0, 0)),              # aux (written at last step)
            pl.BlockSpec((B, n_p * k), lambda i: (0, 0)),        # z   (written at last step)
        ),
        scratch_shapes=[pltpu.VMEM(((n_p + 1) * rows_pad, C), jnp.float32)],
    )

    aux, z = pl.pallas_call(
        kernel,
        out_shape=(jax.ShapeDtypeStruct((B, M), jnp.float32),
                   jax.ShapeDtypeStruct((B, n_p * k), jnp.float32)),
        grid_spec=grid_spec,
        compiler_params=pltpu.CompilerParams(
            # The batch axis carries the GD->scratch reduction and the final
            # batch-coupled stats, so it must run sequentially.
            # TODO(synk): v7x megacore would need a two-phase (per-core partial
            # BN/norm stats) split before marking this axis "parallel".
            dimension_semantics=("arbitrary",),
            vmem_limit_bytes=64 * 1024 * 1024,
        ),
    )(x, w_comb, ba2)
    return aux, z


def cgd_head_ref(feat_nchw, wr_t, wa_t, ba, p_k_list, T, eps=1e-5):
    """Pure-JAX reference mirroring the PyTorch forward."""
    B = feat_nchw.shape[0]
    x = feat_nchw.reshape(B, 2048, 49)
    gs = [jnp.sum(jnp.abs(x) ** p, axis=2) ** (1.0 / p) for p in p_k_list]
    ys = []
    for i, g in enumerate(gs):
        y = jnp.dot(g, wr_t[i], preferred_element_type=jnp.float32)
        ys.append(y / jnp.sqrt(jnp.sum(y * y)))
    z = jnp.concatenate(ys, axis=1)
    z = z / jnp.sqrt(jnp.sum(z * z))
    g0 = gs[0]
    mean = jnp.mean(g0, axis=0, keepdims=True)
    var = jnp.mean((g0 - mean) ** 2, axis=0, keepdims=True)
    bn = (g0 - mean) / jnp.sqrt(var + eps)
    aux = (jnp.dot(bn, wa_t, preferred_element_type=jnp.float32)
           + ba.reshape(1, -1)) / T
    return aux, z


if __name__ == "__main__":
    # Small, deterministic config.
    B, k, M = 2, 8, 16
    T = 2.0
    p_k_list = (1.0, 2.0, 3.0)
    n_p = len(p_k_list)

    key = jax.random.PRNGKey(0)
    k_feat, k_wr, k_wa, k_ba = jax.random.split(key, 4)

    # Backbone output feature map (NCHW), stand-in for ResNet50(x).
    feat = jax.random.normal(k_feat, (B, 2048, 7, 7), dtype=jnp.float32)

    # Deterministic parameter init (shapes from the PyTorch module).
    wr = 0.02 * jax.random.normal(k_wr, (n_p, k, 2048), dtype=jnp.float32)  # Linear(2048,k), no bias
    wa = 0.02 * jax.random.normal(k_wa, (M, 2048), dtype=jnp.float32)       # Linear(2048,M) weight
    ba = 0.02 * jax.random.normal(k_ba, (M,), dtype=jnp.float32)            # Linear(2048,M) bias

    wr_t = jnp.transpose(wr, (0, 2, 1))        # [n_p, 2048, k]
    wa_t = jnp.transpose(wa, (1, 0))           # [2048, M]

    aux, z = cgd_head(feat, wr_t, wa_t, ba, p_k_list=p_k_list, T=T)
    aux, z = jax.block_until_ready(aux), jax.block_until_ready(z)

    aux_ref, z_ref = cgd_head_ref(feat, wr_t, wa_t, ba, p_k_list, T)

    assert aux.shape == (B, M) and z.shape == (B, n_p * k)
    assert jnp.allclose(aux, aux_ref, rtol=2e-3, atol=2e-3), "aux mismatch"
    assert jnp.allclose(z, z_ref, rtol=2e-3, atol=2e-3), "z mismatch"

    print("KERNEL_OK")
</pallas_src>

<mosaic_0001>
module attributes {stable_mosaic.version = 11 : i64} {
  func.func @kernel(%arg0: i32, %arg1: memref<2x49x2048xf32, #tpu.memory_space<vmem>>, %arg2: memref<2048x40xf32, #tpu.memory_space<vmem>>, %arg3: memref<1x16xf32, #tpu.memory_space<vmem>>, %arg4: memref<2x16xf32, #tpu.memory_space<vmem>>, %arg5: memref<2x24xf32, #tpu.memory_space<vmem>>, %arg6: memref<32x2048xf32, #tpu.memory_space<vmem>>) attributes {dimension_semantics = [#tpu.dimension_semantics<arbitrary>], iteration_bounds = array<i64: 1>, scalar_prefetch = 0 : i64, scratch_operands = 1 : i64, tpu.core_type = #tpu.core_type<tc>, window_params = [{transform_indices = @transform_0, window_bounds = array<i64: 2, 49, 2048>}, {pipeline_mode = #tpu.pipeline_mode<synchronous>, transform_indices = @transform_1, window_bounds = array<i64: 2048, 40>}, {pipeline_mode = #tpu.pipeline_mode<synchronous>, transform_indices = @transform_2, window_bounds = array<i64: 1, 16>}, {pipeline_mode = #tpu.pipeline_mode<synchronous>, transform_indices = @transform_3, window_bounds = array<i64: 2, 16>}, {pipeline_mode = #tpu.pipeline_mode<synchronous>, transform_indices = @transform_4, window_bounds = array<i64: 2, 24>}]} {
    %c0_i32 = arith.constant 0 : i32
    %0 = arith.cmpi eq, %arg0, %c0_i32 : i32
    %1 = arith.extui %0 : i1 to i32
    %c0_i32_0 = arith.constant 0 : i32
    %2 = arith.cmpi ne, %1, %c0_i32_0 : i32
    scf.if %2 {
      %cst_12 = arith.constant 0.000000e+00 : f32
      %19 = vector.broadcast %cst_12 : f32 to vector<32x2048xf32>
      %c0_13 = arith.constant 0 : index
      %c0_14 = arith.constant 0 : index
      %20 = vector.load %arg6[%c0_13, %c0_14] : memref<32x2048xf32, #tpu.memory_space<vmem>>, vector<32x2048xf32>
      tpu.vector_store %arg6[%c0_13, %c0_14], %19 {strides = array<i32>} : memref<32x2048xf32, #tpu.memory_space<vmem>>, vector<32x2048xf32>,
    } else {
    }
    %c0 = arith.constant 0 : index
    %c0_1 = arith.constant 0 : index
    %c0_2 = arith.constant 0 : index
    %3 = vector.load %arg1[%c0, %c0_1, %c0_2] : memref<2x49x2048xf32, #tpu.memory_space<vmem>>, vector<2x49x2048xf32>
    %4 = math.absf %3 : vector<2x49x2048xf32>
    %5 = arith.mulf %4, %4 : vector<2x49x2048xf32>
    %6 = arith.mulf %5, %4 : vector<2x49x2048xf32>
    %cst = arith.constant dense<0.000000e+00> : vector<2x2048xf32>
    %7 = vector.multi_reduction <add>, %4, %cst [1] : vector<2x49x2048xf32> to vector<2x2048xf32>
    %c0_3 = arith.constant 0 : index
    %c0_4 = arith.constant 0 : index
    %8 = vector.load %arg6[%c0_3, %c0_4] : memref<32x2048xf32, #tpu.memory_space<vmem>>, vector<2x2048xf32>
    tpu.vector_store %arg6[%c0_3, %c0_4], %7 {strides = array<i32>} : memref<32x2048xf32, #tpu.memory_space<vmem>>, vector<2x2048xf32>,
    %cst_5 = arith.constant dense<0.000000e+00> : vector<2x2048xf32>
    %9 = vector.multi_reduction <add>, %5, %cst_5 [1] : vector<2x49x2048xf32> to vector<2x2048xf32>
    %10 = math.sqrt %9 : vector<2x2048xf32>
    %c8 = arith.constant 8 : index
    %c0_6 = arith.constant 0 : index
    %11 = vector.load %arg6[%c8, %c0_6] : memref<32x2048xf32, #tpu.memory_space<vmem>>, vector<2x2048xf32>
    tpu.vector_store %arg6[%c8, %c0_6], %10 {strides = array<i32>} : memref<32x2048xf32, #tpu.memory_space<vmem>>, vector<2x2048xf32>,
    %cst_7 = arith.constant dense<0.000000e+00> : vector<2x2048xf32>
    %12 = vector.multi_reduction <add>, %6, %cst_7 [1] : vector<2x49x2048xf32> to vector<2x2048xf32>
    %cst_8 = arith.constant 0.333333343 : f32
    %13 = vector.broadcast %cst_8 : f32 to vector<2x2048xf32>
    %14 = math.powf %12, %13 : vector<2x2048xf32>
    %c16 = arith.constant 16 : index
    %c0_9 = arith.constant 0 : index
    %15 = vector.load %arg6[%c16, %c0_9] : memref<32x2048xf32, #tpu.memory_space<vmem>>, vector<2x2048xf32>
    tpu.vector_store %arg6[%c16, %c0_9], %14 {strides = array<i32>} : memref<32x2048xf32, #tpu.memory_space<vmem>>, vector<2x2048xf32>,
    %c0_i32_10 = arith.constant 0 : i32
    %16 = arith.cmpi eq, %arg0, %c0_i32_10 : i32
    %17 = arith.extui %16 : i1 to i32
    %c0_i32_11 = arith.constant 0 : i32
    %18 = arith.cmpi ne, %17, %c0_i32_11 : i32
    scf.if %18 {
      %c0_12 = arith.constant 0 : index
      %c0_13 = arith.constant 0 : index
      %19 = vector.load %arg6[%c0_12, %c0_13] : memref<32x2048xf32, #tpu.memory_space<vmem>>, vector<2x2048xf32>
      %cst_14 = arith.constant dense<0.000000e+00> : vector<2048xf32>
      %20 = vector.multi_reduction <add>, %19, %cst_14 [0] : vector<2x2048xf32> to vector<2048xf32>
      %21 = vector.shape_cast %20 : vector<2048xf32> to vector<1x2048xf32>
      %cst_15 = arith.constant 2.000000e+00 : f32
      %22 = vector.broadcast %cst_15 : f32 to vector<1x2048xf32>
      %23 = arith.divf %21, %22 : vector<1x2048xf32>
      %24 = vector.broadcast %23 : vector<1x2048xf32> to vector<2x2048xf32>
      %25 = arith.subf %19, %24 : vector<2x2048xf32>
      %26 = arith.mulf %25, %25 : vector<2x2048xf32>
      %cst_16 = arith.constant dense<0.000000e+00> : vector<2048xf32>
      %27 = vector.multi_reduction <add>, %26, %cst_16 [0] : vector<2x2048xf32> to vector<2048xf32>
      %28 = vector.shape_cast %27 : vector<2048xf32> to vector<1x2048xf32>
      %cst_17 = arith.constant 2.000000e+00 : f32
      %29 = vector.broadcast %cst_17 : f32 to vector<1x2048xf32>
      %30 = arith.divf %28, %29 : vector<1x2048xf32>
      %31 = vector.broadcast %23 : vector<1x2048xf32> to vector<2x2048xf32>
      %32 = arith.subf %19, %31 : vector<2x2048xf32>
      %cst_18 = arith.constant 9.99999974E-6 : f32
      %33 = vector.broadcast %cst_18 : f32 to vector<1x2048xf32>
      %34 = arith.addf %30, %33 : vector<1x2048xf32>
      %35 = math.rsqrt %34 : vector<1x2048xf32>
      %36 = vector.broadcast %35 : vector<1x2048xf32> to vector<2x2048xf32>
      %37 = arith.mulf %32, %36 : vector<2x2048xf32>
      %c24 = arith.constant 24 : index
      %c0_19 = arith.constant 0 : index
      %38 = vector.load %arg6[%c24, %c0_19] : memref<32x2048xf32, #tpu.memory_space<vmem>>, vector<2x2048xf32>
      tpu.vector_store %arg6[%c24, %c0_19], %37 {strides = array<i32>} : memref<32x2048xf32, #tpu.memory_space<vmem>>, vector<2x2048xf32>,
      %c0_20 = arith.constant 0 : index
      %c0_21 = arith.constant 0 : index
      %39 = vector.load %arg6[%c0_20, %c0_21] : memref<32x2048xf32, #tpu.memory_space<vmem>>, vector<32x2048xf32>
      %c0_22 = arith.constant 0 : index
      %c0_23 = arith.constant 0 : index
      %40 = vector.load %arg2[%c0_22, %c0_23] : memref<2048x40xf32, #tpu.memory_space<vmem>>, vector<2048x40xf32>
      %cst_24 = arith.constant dense<0.000000e+00> : vector<32x40xf32>
      %41 = tpu.matmul %39, %40, %cst_24 {dimension_numbers = #tpu.dot_dimension_numbers<[1], [0], [0], [1], [0, 0, 1, 1], [], []>} : vector<32x2048xf32>, vector<2048x40xf32>, vector<32x40xf32> -> vector<32x40xf32>
      %42 = vector.extract_strided_slice %41 {offsets = [0, 0], sizes = [2, 8], strides = [1, 1]} : vector<32x40xf32> to vector<2x8xf32>
      %43 = arith.mulf %42, %42 : vector<2x8xf32>
      %44 = vector.shape_cast %43 : vector<2x8xf32> to vector<1x2x8xf32>
      %cst_25 = arith.constant dense<0.000000e+00> : vector<1xf32>
      %45 = vector.multi_reduction <add>, %44, %cst_25 [1, 2] : vector<1x2x8xf32> to vector<1xf32>
      %46 = vector.shape_cast %45 : vector<1xf32> to vector<1x1x1xf32>
      %47 = vector.extract %46[0, 0, 0] : f32 from vector<1x1x1xf32>
      %48 = math.rsqrt %47 : f32
      %cst_26 = arith.constant 0.577350259 : f32
      %49 = arith.mulf %48, %cst_26 : f32
      %50 = vector.broadcast %49 : f32 to vector<2x8xf32>
      %51 = arith.mulf %42, %50 : vector<2x8xf32>
      %c0_27 = arith.constant 0 : index
      %c0_28 = arith.constant 0 : index
      %52 = vector.load %arg5[%c0_27, %c0_28] : memref<2x24xf32, #tpu.memory_space<vmem>>, vector<2x8xf32>
      tpu.vector_store %arg5[%c0_27, %c0_28], %51 {strides = array<i32>} : memref<2x24xf32, #tpu.memory_space<vmem>>, vector<2x8xf32>,
      %53 = vector.extract_strided_slice %41 {offsets = [8, 8], sizes = [2, 8], strides = [1, 1]} : vector<32x40xf32> to vector<2x8xf32>
      %54 = arith.mulf %53, %53 : vector<2x8xf32>
      %55 = vector.shape_cast %54 : vector<2x8xf32> to vector<1x2x8xf32>
      %cst_29 = arith.constant dense<0.000000e+00> : vector<1xf32>
      %56 = vector.multi_reduction <add>, %55, %cst_29 [1, 2] : vector<1x2x8xf32> to vector<1xf32>
      %57 = vector.shape_cast %56 : vector<1xf32> to vector<1x1x1xf32>
      %58 = vector.extract %57[0, 0, 0] : f32 from vector<1x1x1xf32>
      %59 = math.rsqrt %58 : f32
      %cst_30 = arith.constant 0.577350259 : f32
      %60 = arith.mulf %59, %cst_30 : f32
      %61 = vector.broadcast %60 : f32 to vector<2x8xf32>
      %62 = arith.mulf %53, %61 : vector<2x8xf32>
      %c0_31 = arith.constant 0 : index
      %c8_32 = arith.constant 8 : index
      %63 = vector.load %arg5[%c0_31, %c8_32] : memref<2x24xf32, #tpu.memory_space<vmem>>, vector<2x8xf32>
      tpu.vector_store %arg5[%c0_31, %c8_32], %62 {strides = array<i32>} : memref<2x24xf32, #tpu.memory_space<vmem>>, vector<2x8xf32>,
      %64 = vector.extract_strided_slice %41 {offsets = [16, 16], sizes = [2, 8], strides = [1, 1]} : vector<32x40xf32> to vector<2x8xf32>
      %65 = arith.mulf %64, %64 : vector<2x8xf32>
      %66 = vector.shape_cast %65 : vector<2x8xf32> to vector<1x2x8xf32>
      %cst_33 = arith.constant dense<0.000000e+00> : vector<1xf32>
      %67 = vector.multi_reduction <add>, %66, %cst_33 [1, 2] : vector<1x2x8xf32> to vector<1xf32>
      %68 = vector.shape_cast %67 : vector<1xf32> to vector<1x1x1xf32>
      %69 = vector.extract %68[0, 0, 0] : f32 from vector<1x1x1xf32>
      %70 = math.rsqrt %69 : f32
      %cst_34 = arith.constant 0.577350259 : f32
      %71 = arith.mulf %70, %cst_34 : f32
      %72 = vector.broadcast %71 : f32 to vector<2x8xf32>
      %73 = arith.mulf %64, %72 : vector<2x8xf32>
      %c0_35 = arith.constant 0 : index
      %c16_36 = arith.constant 16 : index
      %74 = vector.load %arg5[%c0_35, %c16_36] : memref<2x24xf32, #tpu.memory_space<vmem>>, vector<2x8xf32>
      tpu.vector_store %arg5[%c0_35, %c16_36], %73 {strides = array<i32>} : memref<2x24xf32, #tpu.memory_space<vmem>>, vector<2x8xf32>,
      %75 = vector.extract_strided_slice %41 {offsets = [24, 24], sizes = [2, 16], strides = [1, 1]} : vector<32x40xf32> to vector<2x16xf32>
      %c0_37 = arith.constant 0 : index
      %c0_38 = arith.constant 0 : index
      %76 = vector.load %arg3[%c0_37, %c0_38] : memref<1x16xf32, #tpu.memory_space<vmem>>, vector<1x16xf32>
      %77 = vector.broadcast %76 : vector<1x16xf32> to vector<2x16xf32>
      %78 = arith.addf %75, %77 : vector<2x16xf32>
      %cst_39 = arith.constant 5.000000e-01 : f32
      %79 = vector.broadcast %cst_39 : f32 to vector<2x16xf32>
      %80 = arith.mulf %78, %79 : vector<2x16xf32>
      %c0_40 = arith.constant 0 : index
      %c0_41 = arith.constant 0 : index
      %81 = vector.load %arg4[%c0_40, %c0_41] : memref<2x16xf32, #tpu.memory_space<vmem>>, vector<2x16xf32>
      tpu.vector_store %arg4[%c0_40, %c0_41], %80 {strides = array<i32>} : memref<2x16xf32, #tpu.memory_space<vmem>>, vector<2x16xf32>,
    } else {
    }
    return
  }
  func.func @transform_0(%arg0: i32) -> (i32, i32, i32) {
    %c0_i32 = arith.constant 0 : i32
    %c0_i32_0 = arith.constant 0 : i32
    %c0_i32_1 = arith.constant 0 : i32
    return %arg0, %c0_i32, %c0_i32_0 : i32, i32, i32
  }
  func.func @transform_1(%arg0: i32) -> (i32, i32) {
    %c0_i32 = arith.constant 0 : i32
    %c0_i32_0 = arith.constant 0 : i32
    %c0_i32_1 = arith.constant 0 : i32
    return %c0_i32, %c0_i32_0 : i32, i32
  }
  func.func @transform_2(%arg0: i32) -> (i32, i32) {
    %c0_i32 = arith.constant 0 : i32
    %c0_i32_0 = arith.constant 0 : i32
    %c0_i32_1 = arith.constant 0 : i32
    return %c0_i32, %c0_i32_0 : i32, i32
  }
  func.func @transform_3(%arg0: i32) -> (i32, i32) {
    %c0_i32 = arith.constant 0 : i32
    %c0_i32_0 = arith.constant 0 : i32
    %c0_i32_1 = arith.constant 0 : i32
    return %c0_i32, %c0_i32_0 : i32, i32
  }
  func.func @transform_4(%arg0: i32) -> (i32, i32) {
    %c0_i32 = arith.constant 0 : i32
    %c0_i32_0 = arith.constant 0 : i32
    %c0_i32_1 = arith.constant 0 : i32
    return %c0_i32, %c0_i32_0 : i32, i32
  }
}

</mosaic_0001>

<bundles_post_ra>
// kernel: cgd_head.1
= control target key start
LH: loop header
LB: loop body
LE: loop exit
PB: predicated region body
PF: predicated region fallthrough
CT: control target
= control target key end

     0   :  { %10 = vsyncpa [#allocation4], 0  ;;  %v5433_v6 = vmov 0.0   ;;  %vm10219_vm0 = vcmask 1040384   ;;  %vm10220_vm1 = vcmask 1041409   ;;  %s10214_s0 = inlined_call_operand.vmem [shape: f32[2,49,2048], index: 0, kind: input, shape index: {}]   ;;  %s10215_s1 = inlined_call_operand.vmem [shape: f32[2048,40], index: 1, kind: input, shape index: {}]   ;;  %s10216_s2 = inlined_call_operand.vmem [shape: f32[1,16], index: 2, kind: input, shape index: {}]   ;;  %s10217_s3 = inlined_call_operand.hbm [shape: f32[2,16], index: 3, kind: output, shape index: {0}]   ;;  %s10218_s4 = inlined_call_operand.hbm [shape: f32[2,24], index: 4, kind: output, shape index: {1}]  }
   0x1   :  { %v3196_v0 = vld [vmem:[%s10215_s1 + $0xf8] sm:$0xff]  ;;  %v5484_v4 = vld [vmem:[%s10215_s1 + $0xf0] sm:$0xff]  ;;  %23 = vst [vmem:[#allocation2 + $0x1b0] sm:$0xff] %v5433_v6  ;;  %22 = vst [vmem:[#allocation2 + $0xb0] sm:$0xff] %v5433_v6 }
   0x2   :  { %v3228_v1 = vld [vmem:[%s10215_s1 + $0x1f8] sm:$0xff]  ;;  %4212 = vmatprep.subr.mxu0 %v3196_v0  ;;  %v5489_v5 = vld [vmem:[%s10215_s1 + $0x1f0] sm:$0xff]  ;;  %24 = vst [vmem:[#allocation2 + $0xd8] sm:$0xff] %v5433_v6  ;;  %25 = vst [vmem:[#allocation2 + $0x18] sm:$0xff] %v5433_v6 }
   0x3   :  { %v5474_v2 = vld [vmem:[%s10215_s1 + $0x78] sm:$0xff]  ;;  %4256 = vmatprep.subr.mxu1 %v3228_v1  ;;  %26 = vst [vmem:[#allocation2 + $0x50] sm:$0xff] %v5433_v6  ;;  %27 = vst [vmem:[#allocation2 + $0x168] sm:$0xff] %v5433_v6  ;;  %v3179_v7 = vld [vmem:[%s10215_s1 + $0x70] sm:$0xff] }
   0x4   :  { %v5479_v3 = vld [vmem:[%s10215_s1 + $0x178] sm:$0xff]  ;;  %28 = vst [vmem:[#allocation2 + $0x130] sm:$0xff] %v5433_v6  ;;  %29 = vst [vmem:[#allocation2 + $0x48] sm:$0xff] %v5433_v6  ;;  %4213 = vmatpush3.msra.mxu0 %v5474_v2  ;;  %v3211_v8 = vld [vmem:[%s10215_s1 + $0x170] sm:$0xff] }
   0x5   :  { %30 = vst [vmem:[#allocation2 + $0x180] sm:$0xff] %v5433_v6  ;;  %31 = vst [vmem:[#allocation2 + $0x110] sm:$0xff] %v5433_v6  ;;  %4257 = vmatpush3.msra.mxu1 %v5479_v3  ;;  %v3194_v9 = vld [vmem:[%s10215_s1 + $0xe8] sm:$0xff]  ;;  %4214 = vmatprep.subr.mxu0 %v5484_v4  ;;  %v3193_v13 = vld [vmem:[%s10215_s1 + $0xe0] sm:$0xff] }
   0x6   :  { %32 = vst [vmem:[#allocation2 + $0x118] sm:$0xff] %v5433_v6  ;;  %33 = vst [vmem:[#allocation2 + $0x98] sm:$0xff] %v5433_v6  ;;  %4258 = vmatprep.subr.mxu1 %v5489_v5  ;;  %v3226_v10 = vld [vmem:[%s10215_s1 + $0x1e8] sm:$0xff]  ;;  %4215 = vmatpush3.msra.mxu0 %v3179_v7  ;;  %v3225_v14 = vld [vmem:[%s10215_s1 + $0x1e0] sm:$0xff] }
   0x7   :  { %34 = vst [vmem:[#allocation2 + $0x120] sm:$0xff] %v5433_v6  ;;  %35 = vst [vmem:[#allocation2 + $0x150] sm:$0xff] %v5433_v6  ;;  %v3178_v11 = vld [vmem:[%s10215_s1 + $0x68] sm:$0xff]  ;;  %4259 = vmatpush3.msra.mxu1 %v3211_v8  ;;  %4216 = vmatprep.subr.mxu0 %v3194_v9  ;;  %v3177_v15 = vld [vmem:[%s10215_s1 + $0x60] sm:$0xff] }
   0x8   :  { %36 = vst [vmem:[#allocation2 + $0x108] sm:$0xff] %v5433_v6  ;;  %37 = vst [vmem:[#allocation2 + $0x60] sm:$0xff] %v5433_v6  ;;  %v3210_v12 = vld [vmem:[%s10215_s1 + $0x168] sm:$0xff]  ;;  %4260 = vmatprep.subr.mxu1 %v3226_v10  ;;  %v3209_v16 = vld [vmem:[%s10215_s1 + $0x160] sm:$0xff]  ;;  %4217 = vmatpush3.msra.mxu0 %v3178_v11 }
   0x9   :  { %38 = vst [vmem:[#allocation2 + $0xe0] sm:$0xff] %v5433_v6  ;;  %39 = vst [vmem:[#allocation2 + $0x188] sm:$0xff] %v5433_v6  ;;  %4261 = vmatpush3.msra.mxu1 %v3210_v12  ;;  %v3192_v17 = vld [vmem:[%s10215_s1 + $0xd8] sm:$0xff]  ;;  %4218 = vmatprep.subr.mxu0 %v3193_v13  ;;  %v3191_v21 = vld [vmem:[%s10215_s1 + $0xd0] sm:$0xff] }
   0xa   :  { %40 = vst [vmem:[#allocation2 + $0x138] sm:$0xff] %v5433_v6  ;;  %41 = vst [vmem:[#allocation2 + $0x140] sm:$0xff] %v5433_v6  ;;  %v3224_v18 = vld [vmem:[%s10215_s1 + $0x1d8] sm:$0xff]  ;;  %4262 = vmatprep.subr.mxu1 %v3225_v14  ;;  %4219 = vmatpush3.msra.mxu0 %v3177_v15  ;;  %v3223_v22 = vld [vmem:[%s10215_s1 + $0x1d0] sm:$0xff] }
   0xb   :  { %42 = vst [vmem:[#allocation2 + $0x80] sm:$0xff] %v5433_v6  ;;  %43 = vst [vmem:[#allocation2 + $0x1a8] sm:$0xff] %v5433_v6  ;;  %v3176_v19 = vld [vmem:[%s10215_s1 + $0x58] sm:$0xff]  ;;  %4263 = vmatpush3.msra.mxu1 %v3209_v16  ;;  %4220 = vmatprep.subr.mxu0 %v3192_v17  ;;  %v3175_v23 = vld [vmem:[%s10215_s1 + $0x50] sm:$0xff] }
   0xc   :  { %44 = vst [vmem:[#allocation2 + $0x1b8] sm:$0xff] %v5433_v6  ;;  %45 = vst [vmem:[#allocation2 + $0x28] sm:$0xff] %v5433_v6  ;;  %v3208_v20 = vld [vmem:[%s10215_s1 + $0x158] sm:$0xff]  ;;  %4264 = vmatprep.subr.mxu1 %v3224_v18  ;;  %v3207_v24 = vld [vmem:[%s10215_s1 + $0x150] sm:$0xff]  ;;  %4221 = vmatpush3.msra.mxu0 %v3176_v19 }
   0xd   :  { %46 = vst [vmem:[#allocation2 + $0x1e8] sm:$0xff] %v5433_v6  ;;  %47 = vst [vmem:[#allocation2 + $0xf8] sm:$0xff] %v5433_v6  ;;  %4265 = vmatpush3.msra.mxu1 %v3208_v20  ;;  %v3190_v25 = vld [vmem:[%s10215_s1 + $0xc8] sm:$0xff]  ;;  %4222 = vmatprep.subr.mxu0 %v3191_v21  ;;  %v3189_v29 = vld [vmem:[%s10215_s1 + $0xc0] sm:$0xff] }
   0xe   :  { %48 = vst [vmem:[#allocation2 + $0x160] sm:$0xff] %v5433_v6  ;;  %49 = vst [vmem:[#allocation2 + $0x30] sm:$0xff] %v5433_v6  ;;  %v3222_v26 = vld [vmem:[%s10215_s1 + $0x1c8] sm:$0xff]  ;;  %4266 = vmatprep.subr.mxu1 %v3223_v22  ;;  %4223 = vmatpush3.msra.mxu0 %v3175_v23  ;;  %v3221_v30 = vld [vmem:[%s10215_s1 + $0x1c0] sm:$0xff] }
   0xf   :  { %50 = vst [vmem:[#allocation2 + $0x1e0] sm:$0xff] %v5433_v6  ;;  %51 = vst [vmem:[#allocation2] sm:$0xff] %v5433_v6  ;;  %v3174_v27 = vld [vmem:[%s10215_s1 + $0x48] sm:$0xff]  ;;  %4267 = vmatpush3.msra.mxu1 %v3207_v24  ;;  %4224 = vmatprep.subr.mxu0 %v3190_v25  ;;  %v3173_v31 = vld [vmem:[%s10215_s1 + $0x40] sm:$0xff] }
  0x10   :  { %52 = vst [vmem:[#allocation2 + $0xf0] sm:$0xff] %v5433_v6  ;;  %53 = vst [vmem:[#allocation2 + $0x8] sm:$0xff] %v5433_v6  ;;  %v3206_v28 = vld [vmem:[%s10215_s1 + $0x148] sm:$0xff]  ;;  %4268 = vmatprep.subr.mxu1 %v3222_v26  ;;  %v3205_v32 = vld [vmem:[%s10215_s1 + $0x140] sm:$0xff]  ;;  %4225 = vmatpush3.msra.mxu0 %v3174_v27 }
  0x11   :  { %54 = vst [vmem:[#allocation2 + $0x148] sm:$0xff] %v5433_v6  ;;  %55 = vst [vmem:[#allocation2 + $0x1d0] sm:$0xff] %v5433_v6  ;;  %4269 = vmatpush3.msra.mxu1 %v3206_v28  ;;  %v3188_v33 = vld [vmem:[%s10215_s1 + $0xb8] sm:$0xff]  ;;  %4226 = vmatprep.subr.mxu0 %v3189_v29  ;;  %v3187_v37 = vld [vmem:[%s10215_s1 + $0xb0] sm:$0xff] }
  0x12   :  { %56 = vst [vmem:[#allocation2 + $0x100] sm:$0xff] %v5433_v6  ;;  %57 = vst [vmem:[#allocation2 + $0xc8] sm:$0xff] %v5433_v6  ;;  %v3220_v34 = vld [vmem:[%s10215_s1 + $0x1b8] sm:$0xff]  ;;  %4270 = vmatprep.subr.mxu1 %v3221_v30  ;;  %4227 = vmatpush3.msra.mxu0 %v3173_v31  ;;  %v3219_v38 = vld [vmem:[%s10215_s1 + $0x1b0] sm:$0xff] }
  0x13   :  { %58 = vst [vmem:[#allocation2 + $0x40] sm:$0xff] %v5433_v6  ;;  %59 = vst [vmem:[#allocation2 + $0x1f8] sm:$0xff] %v5433_v6  ;;  %v3172_v35 = vld [vmem:[%s10215_s1 + $0x38] sm:$0xff]  ;;  %4271 = vmatpush3.msra.mxu1 %v3205_v32  ;;  %4228 = vmatprep.subr.mxu0 %v3188_v33  ;;  %v3171_v39 = vld [vmem:[%s10215_s1 + $0x30] sm:$0xff] }
  0x14   :  { %60 = vst [vmem:[#allocation2 + $0x20] sm:$0xff] %v5433_v6  ;;  %61 = vst [vmem:[#allocation2 + $0x128] sm:$0xff] %v5433_v6  ;;  %v3204_v36 = vld [vmem:[%s10215_s1 + $0x138] sm:$0xff]  ;;  %4272 = vmatprep.subr.mxu1 %v3220_v34  ;;  %v3203_v40 = vld [vmem:[%s10215_s1 + $0x130] sm:$0xff]  ;;  %4229 = vmatpush3.msra.mxu0 %v3172_v35 }
  0x15   :  { %62 = vst [vmem:[#allocation2 + $0x1a0] sm:$0xff] %v5433_v6  ;;  %63 = vst [vmem:[#allocation2 + $0x1f0] sm:$0xff] %v5433_v6  ;;  %v3186_v41 = vld [vmem:[%s10215_s1 + $0xa8] sm:$0xff]  ;;  %4273 = vmatpush3.msra.mxu1 %v3204_v36  ;;  %4230 = vmatprep.subr.mxu0 %v3187_v37  ;;  %v3185_v45 = vld [vmem:[%s10215_s1 + $0xa0] sm:$0xff] }
  0x16   :  { %64 = vst [vmem:[#allocation2 + $0xe8] sm:$0xff] %v5433_v6  ;;  %65 = vst [vmem:[#allocation2 + $0x78] sm:$0xff] %v5433_v6  ;;  %v3218_v42 = vld [vmem:[%s10215_s1 + $0x1a8] sm:$0xff]  ;;  %4274 = vmatprep.subr.mxu1 %v3219_v38  ;;  %v3217_v46 = vld [vmem:[%s10215_s1 + $0x1a0] sm:$0xff]  ;;  %4231 = vmatpush3.msra.mxu0 %v3171_v39 }
  0x17   :  { %66 = vst [vmem:[#allocation2 + $0x70] sm:$0xff] %v5433_v6  ;;  %67 = vst [vmem:[#allocation2 + $0x90] sm:$0xff] %v5433_v6  ;;  %v3170_v43 = vld [vmem:[%s10215_s1 + $0x28] sm:$0xff]  ;;  %v3169_v47 = vld [vmem:[%s10215_s1 + $0x20] sm:$0xff]  ;;  %4275 = vmatpush3.msra.mxu1 %v3203_v40  ;;  %4232 = vmatprep.subr.mxu0 %v3186_v41 }
  0x18   :  { %68 = vst [vmem:[#allocation2 + $0x1d8] sm:$0xff] %v5433_v6  ;;  %69 = vst [vmem:[#allocation2 + $0xd0] sm:$0xff] %v5433_v6  ;;  %v3202_v44 = vld [vmem:[%s10215_s1 + $0x128] sm:$0xff]  ;;  %v3201_v48 = vld [vmem:[%s10215_s1 + $0x120] sm:$0xff]  ;;  %4276 = vmatprep.subr.mxu1 %v3218_v42  ;;  %4233 = vmatpush3.msra.mxu0 %v3170_v43 }
  0x19   :  { %70 = vst [vmem:[#allocation2 + $0xb8] sm:$0xff] %v5433_v6  ;;  %71 = vst [vmem:[#allocation2 + $0x88] sm:$0xff] %v5433_v6  ;;  %v3184_v49 = vld [vmem:[%s10215_s1 + $0x98] sm:$0xff]  ;;  %v87_v52 = vld [vmem:[%s10214_s0 + $0x8] sm:$0xff]  ;;  %4277 = vmatpush3.msra.mxu1 %v3202_v44  ;;  %4234 = vmatprep.subr.mxu0 %v3185_v45 }
  0x1a   :  { %72 = vst [vmem:[#allocation2 + $0xa8] sm:$0xff] %v5433_v6  ;;  %73 = vst [vmem:[#allocation2 + $0x1c8] sm:$0xff] %v5433_v6  ;;  %v3216_v50 = vld [vmem:[%s10215_s1 + $0x198] sm:$0xff]  ;;  %v103_v53 = vld [vmem:[%s10214_s0 + $0x88] sm:$0xff]  ;;  %4278 = vmatprep.subr.mxu1 %v3217_v46  ;;  %v5724_v62 = vand.u32 2147483647, %v87_v52  ;;  %4235 = vmatpush3.msra.mxu0 %v3169_v47 }
  0x1b   :  { %74 = vst [vmem:[#allocation2 + $0x170] sm:$0xff] %v5433_v6  ;;  %75 = vst [vmem:[#allocation2 + $0x178] sm:$0xff] %v5433_v6  ;;  %v3168_v51 = vld [vmem:[%s10215_s1 + $0x18] sm:$0xff]  ;;  %v3183_v55 = vld [vmem:[%s10215_s1 + $0x90] sm:$0xff]  ;;  %4279 = vmatpush3.msra.mxu1 %v3201_v48  ;;  %v327_v4 = vand.u32 2147483647, %v103_v53  ;;  %4236 = vmatprep.subr.mxu0 %v3184_v49 }
  0x1c   :  { %76 = vst [vmem:[#allocation2 + $0x68] sm:$0xff] %v5433_v6  ;;  %77 = vst [vmem:[#allocation2 + $0x190] sm:$0xff] %v5433_v6  ;;  %v3200_v54 = vld [vmem:[%s10215_s1 + $0x118] sm:$0xff]  ;;  %v3215_v56 = vld [vmem:[%s10215_s1 + $0x190] sm:$0xff]  ;;  %4280 = vmatprep.subr.mxu1 %v3216_v50  ;;  %4237 = vmatpush3.msra.mxu0 %v3168_v51  ;;  %v535_v16 = vmul.f32 %v5724_v62, %v5724_v62 }
  0x1d   :  { %78 = vst [vmem:[#allocation2 + $0x198] sm:$0xff] %v5433_v6  ;;  %79 = vst [vmem:[#allocation2 + $0x38] sm:$0xff] %v5433_v6  ;;  %v3167_v57 = vld [vmem:[%s10215_s1 + $0x10] sm:$0xff]  ;;  %v119_v59 = vld [vmem:[%s10214_s0 + $0x108] sm:$0xff]  ;;  %4281 = vmatpush3.msra.mxu1 %v3200_v54  ;;  %4238 = vmatprep.subr.mxu0 %v3183_v55  ;;  %v551_v20 = vmul.f32 %v327_v4, %v327_v4  ;;  %v996_v24 = vadd.f32 %v327_v4, %v5724_v62 }
  0x1e   :  { %80 = vst [vmem:[#allocation2 + $0xc0] sm:$0xff] %v5433_v6  ;;  %81 = vst [vmem:[#allocation2 + $0x1c0] sm:$0xff] %v5433_v6  ;;  %v3199_v58 = vld [vmem:[%s10215_s1 + $0x110] sm:$0xff]  ;;  %v135_v60 = vld [vmem:[%s10214_s0 + $0x188] sm:$0xff]  ;;  %v343_v15 = vand.u32 2147483647, %v119_v59  ;;  %4282 = vmatprep.subr.mxu1 %v3215_v56  ;;  %4239 = vmatpush3.msra.mxu0 %v3167_v57  ;;  %v759_v45 = vmul.f32 %v535_v16, %v5724_v62 }
  0x1f   :  { %82 = vst [vmem:[#allocation2 + $0x158] sm:$0xff] %v5433_v6  ;;  %83 = vst [vmem:[#allocation2 + $0x10] sm:$0xff] %v5433_v6  ;;  %v151_v61 = vld [vmem:[%s10214_s0 + $0x208] sm:$0xff]  ;;  %v3181_v10 = vld [vmem:[%s10215_s1 + $0x80] sm:$0xff]  ;;  %v359_v17 = vand.u32 2147483647, %v135_v60  ;;  %4283 = vmatpush3.msra.mxu1 %v3199_v58  ;;  %v775_v46 = vmul.f32 %v551_v20, %v327_v4  ;;  %v1493_v57 = vadd.f32 %v551_v20, %v535_v16 }
  0x20   :  { %84 = vst [vmem:[#allocation2 + $0x58] sm:$0xff] %v5433_v6  ;;  %85 = vst [vmem:[#allocation2 + $0xa0] sm:$0xff] %v5433_v6  ;;  %v3182_v63 = vld [vmem:[%s10215_s1 + $0x88] sm:$0xff]  ;;  %v3213_v11 = vld [vmem:[%s10215_s1 + $0x180] sm:$0xff]  ;;  %v375_v18 = vand.u32 2147483647, %v151_v61  ;;  %v567_v28 = vmul.f32 %v343_v15, %v343_v15  ;;  %v997_v53 = vadd.f32 %v996_v24, %v343_v15 }
  0x21   :  { %v3214_v0 = vld [vmem:[%s10215_s1 + $0x188] sm:$0xff]  ;;  %4240 = vmatprep.subr.mxu0 %v3182_v63  ;;  %v3165_v25 = vld [vmem:[%s10215_s1] sm:$0xff]  ;;  %v583_v29 = vmul.f32 %v359_v17, %v359_v17  ;;  %v2213_v62 = vadd.f32 %v775_v46, %v759_v45  ;;  %v3260_v24 = vld [vmem:[%s10215_s1 + $0x2f8] sm:$0xff] }
  0x22   :  { %v167_v1 = vld [vmem:[%s10214_s0 + $0x288] sm:$0xff]  ;;  %4284 = vmatprep.subr.mxu1 %v3214_v0  ;;  %v3197_v34 = vld [vmem:[%s10215_s1 + $0x100] sm:$0xff]  ;;  %v599_v36 = vmul.f32 %v375_v18, %v375_v18  ;;  %v791_v47 = vmul.f32 %v567_v28, %v343_v15  ;;  %v998_v60 = vadd.f32 %v997_v53, %v359_v17  ;;  %v1494_v0 = vadd.f32 %v1493_v57, %v567_v28  ;;  %v265_v53 = vld [vmem:[%s10214_s0 + $0x598] sm:$0xff] }
  0x23   :  { %v183_v2 = vld [vmem:[%s10214_s0 + $0x308] sm:$0x1]  ;;  %v5773_v19 = vand.u32 2147483647, %v167_v1  ;;  %v807_v51 = vmul.f32 %v583_v29, %v359_v17 }
  0x24   :  { %v199_v3 = vld [vmem:[%s10214_s0 + $0x388] sm:$0xff]  ;;  %v407_v21 = vand.u32 2147483647, %v183_v2  ;;  %v823_v52 = vmul.f32 %v599_v36, %v375_v18  ;;  %v999_v4 = vadd.f32 %v998_v60, %v375_v18 }
  0x25   :  { %v3166_v5 = vld [vmem:[%s10215_s1 + $0x8] sm:$0xff]  ;;  %v423_v22 = vand.u32 2147483647, %v199_v3  ;;  %v615_v37 = vmul.f32 %v5773_v19, %v5773_v19 }
  0x26   :  { %v3198_v6 = vld [vmem:[%s10215_s1 + $0x108] sm:$0xff]  ;;  %4241 = vmatpush3.msra.mxu0 %v3166_v5  ;;  %v631_v38 = vmul.f32 %v407_v21, %v407_v21  ;;  %v1001_v42 = vsel %vm10219_vm0, %v407_v21, 0.0 }
  0x27   :  { %v215_v7 = vld [vmem:[%s10214_s0 + $0x408] sm:$0xff]  ;;  %4285 = vmatpush3.msra.mxu1 %v3198_v6  ;;  %v647_v32 = vmul.f32 %v423_v22, %v423_v22  ;;  %4242 = vmatprep.subr.mxu0 %v3181_v10  ;;  %v839_v55 = vmul.f32 %v615_v37, %v5773_v19  ;;  %v2214_v6 = vadd.f32 %v2213_v62, %v791_v47  ;;  %v217_v47 = vld [vmem:[%s10214_s0 + $0x418] sm:$0xff] }
  0x28   :  { %v231_v8 = vld [vmem:[%s10214_s0 + $0x488] sm:$0xff]  ;;  %v439_v23 = vand.u32 2147483647, %v215_v7  ;;  %4286 = vmatprep.subr.mxu1 %v3213_v11  ;;  %4243 = vmatpush3.msra.mxu0 %v3165_v25  ;;  %v855_v59 = vmul.f32 %v631_v38, %v407_v21  ;;  %v1498_v16 = vsel %vm10219_vm0, %v631_v38, 0.0 }
  0x29   :  { %v247_v9 = vld [vmem:[%s10214_s0 + $0x508] sm:$0xff]  ;;  %v455_v26 = vand.u32 2147483647, %v231_v8  ;;  %4287 = vmatpush3.msra.mxu1 %v3197_v34  ;;  %v871_v48 = vmul.f32 %v647_v32, %v423_v22  ;;  %v1495_v8 = vadd.f32 %v1494_v0, %v583_v29  ;;  %v89_v29 = vld [vmem:[%s10214_s0 + $0x18] sm:$0xff]  ;;  %4300 = vmatprep.subr.mxu0 %v3260_v24 }
  0x2a   :  { %v263_v12 = vld [vmem:[%s10214_s0 + $0x588] sm:$0xff]  ;;  %v471_v27 = vand.u32 2147483647, %v247_v9  ;;  %v663_v33 = vmul.f32 %v439_v23, %v439_v23  ;;  %v1204_v54 = vadd.f32 %v439_v23, %v423_v22 }
  0x2b   :  { %v279_v13 = vld [vmem:[%s10214_s0 + $0x608] sm:$0xff]  ;;  %v487_v30 = vand.u32 2147483647, %v263_v12  ;;  %v679_v39 = vmul.f32 %v455_v26, %v455_v26  ;;  %v1000_v12 = vadd.f32 %v999_v4, %v5773_v19  ;;  %v1496_v15 = vadd.f32 %v1495_v8, %v599_v36  ;;  %v3292_v19 = vld [vmem:[%s10215_s1 + $0x3f8] sm:$0xff] }
  0x2c   :  { %v295_v14 = vld [vmem:[%s10214_s0 + $0x688] sm:$0x1]  ;;  %v503_v35 = vand.u32 2147483647, %v279_v13  ;;  %v695_v40 = vmul.f32 %v471_v27, %v471_v27  ;;  %v887_v49 = vmul.f32 %v663_v33, %v439_v23  ;;  %v1701_v58 = vadd.f32 %v663_v33, %v647_v32  ;;  %4344 = vmatprep.subr.mxu1 %v3292_v19  ;;  %v137_v36 = vld [vmem:[%s10214_s0 + $0x198] sm:$0xff] }
  0x2d   :  { %v519_v31 = vand.u32 2147483647, %v295_v14  ;;  %v711_v41 = vmul.f32 %v487_v30, %v487_v30  ;;  %v903_v56 = vmul.f32 %v679_v39, %v455_v26  ;;  %v1205_v61 = vadd.f32 %v1204_v54, %v455_v26  ;;  %v297_v54 = vld [vmem:[%s10214_s0 + $0x698] sm:$0x1] }
  0x2e   :  { %v727_v43 = vmul.f32 %v503_v35, %v503_v35  ;;  %v919_v63 = vmul.f32 %v695_v40, %v471_v27  ;;  %v1702_v1 = vadd.f32 %v1701_v58, %v679_v39  ;;  %v2421_v2 = vadd.f32 %v887_v49, %v871_v48  ;;  %v233_v48 = vld [vmem:[%s10214_s0 + $0x498] sm:$0xff] }
  0x2f   :  { %v743_v44 = vmul.f32 %v519_v31, %v519_v31  ;;  %v1209_v50 = vsel %vm10219_vm0, %v519_v31, 0.0  ;;  %v935_v3 = vmul.f32 %v711_v41, %v487_v30  ;;  %v1206_v5 = vadd.f32 %v1205_v61, %v471_v27  ;;  %v249_v49 = vld [vmem:[%s10214_s0 + $0x518] sm:$0xff] }
  0x30   :  { %v951_v7 = vmul.f32 %v727_v43, %v503_v35  ;;  %v1703_v9 = vadd.f32 %v1702_v1, %v695_v40  ;;  %v2422_v10 = vadd.f32 %v2421_v2, %v903_v56  ;;  %v2215_v14 = vadd.f32 %v2214_v6, %v807_v51 }
  0x31   :  { %v967_v11 = vmul.f32 %v743_v44, %v519_v31  ;;  %v1207_v13 = vadd.f32 %v1206_v5, %v487_v30  ;;  %v1002_v21 = vadd.f32 %v1001_v42, %v1000_v12  ;;  %v1706_v18 = vsel %vm10219_vm0, %v743_v44, 0.0  ;;  %v105_v30 = vld [vmem:[%s10214_s0 + $0x98] sm:$0xff] }
  0x32   :  { %v1704_v17 = vadd.f32 %v1703_v9, %v711_v41  ;;  %v2423_v20 = vadd.f32 %v2422_v10, %v919_v63  ;;  %v2216_v23 = vadd.f32 %v2215_v14, %v823_v52  ;;  %v1497_v25 = vadd.f32 %v1496_v15, %v615_v37  ;;  %v153_v37 = vld [vmem:[%s10214_s0 + $0x218] sm:$0xff] }
  0x33   :  { %v1208_v22 = vadd.f32 %v1207_v13, %v503_v35  ;;  %v2218_v27 = vsel %vm10219_vm0, %v855_v59, 0.0  ;;  %v1003_v31 = vrot.slane %v1002_v21, 4  ;;  %v2426_v34 = vsel %vm10219_vm0, %v967_v11, 0.0  ;;  %v121_v35 = vld [vmem:[%s10214_s0 + $0x118] sm:$0xff] }
  0x34   :  { %v1705_v26 = vadd.f32 %v1704_v17, %v727_v43  ;;  %v2424_v28 = vadd.f32 %v2423_v20, %v935_v3  ;;  %v2217_v33 = vadd.f32 %v2216_v23, %v839_v55  ;;  %v1499_v38 = vadd.f32 %v1498_v16, %v1497_v25  ;;  %v169_v41 = vld [vmem:[%s10214_s0 + $0x298] sm:$0xff] }
  0x35   :  { %v1210_v32 = vadd.f32 %v1209_v50, %v1208_v22  ;;  %v185_v42 = vld [vmem:[%s10214_s0 + $0x318] sm:$0x1]  ;;  %v1004_v44 = vadd.f32 %v1003_v31, %v1002_v21  ;;  %v313_v50 = vand.u32 2147483647, %v89_v29  ;;  %v329_v55 = vand.u32 2147483647, %v105_v30 }
  0x36   :  { %v5814_v39 = vadd.f32 %v1706_v18, %v1705_v26  ;;  %v2425_v40 = vadd.f32 %v2424_v28, %v951_v7  ;;  %v201_v43 = vld [vmem:[%s10214_s0 + $0x398] sm:$0xff]  ;;  %v5825_v46 = vadd.f32 %v2218_v27, %v2217_v33  ;;  %v1500_v51 = vrot.slane %v1499_v38, 4 }
  0x37   :  { %v1211_v45 = vrot.slane %v1210_v32, 4  ;;  %v345_v56 = vand.u32 2147483647, %v121_v35  ;;  %v1005_v57 = vrot.slane %v1004_v44, 2  ;;  %v281_v59 = vld [vmem:[%s10214_s0 + $0x618] sm:$0xff]  ;;  %v537_v13 = vmul.f32 %v313_v50, %v313_v50 }
  0x38   :  { %v5836_v52 = vadd.f32 %v2426_v34, %v2425_v40  ;;  %v361_v60 = vand.u32 2147483647, %v137_v36  ;;  %v5847_v61 = vand.u32 2147483647, %v153_v37  ;;  %v5849_v62 = vand.u32 2147483647, %v169_v41 }
  0x39   :  { %v1212_v58 = vadd.f32 %v1211_v45, %v1210_v32  ;;  %v409_v63 = vand.u32 2147483647, %v185_v42  ;;  %v425_v0 = vand.u32 2147483647, %v201_v43  ;;  %v1006_v1 = vadd.f32 %v1005_v57, %v1004_v44 }
  0x3a   :  { %v1708_v3 = vrot.slane %v5814_v39, 4  ;;  %v441_v4 = vand.u32 2147483647, %v217_v47  ;;  %v5852_v5 = vadd.f32 %v1500_v51, %v1499_v38  ;;  %v457_v6 = vand.u32 2147483647, %v233_v48 }
  0x3b   :  { %v1213_v2 = vrot.slane %v1212_v58, 2  ;;  %v473_v7 = vand.u32 2147483647, %v249_v49  ;;  %v489_v8 = vand.u32 2147483647, %v265_v53  ;;  %v1007_v9 = vrot.slane %v1006_v1, 1 }
  0x3c   :  { %v5854_v11 = vand.u32 2147483647, %v281_v59  ;;  %v521_v12 = vand.u32 2147483647, %v297_v54  ;;  %v553_v14 = vmul.f32 %v329_v55, %v329_v55  ;;  %v569_v15 = vmul.f32 %v345_v56, %v345_v56 }
  0x3d   :  { %v1214_v10 = vadd.f32 %v1213_v2, %v1212_v58  ;;  %v585_v16 = vmul.f32 %v361_v60, %v361_v60  ;;  %v1008_v17 = vadd.f32 %v1007_v9, %v1006_v1  ;;  %v649_v21 = vmul.f32 %v425_v0, %v425_v0 }
  0x3e   :  { %v665_v22 = vmul.f32 %v441_v4, %v441_v4  ;;  %v601_v18 = vmul.f32 %v5847_v61, %v5847_v61  ;;  %v617_v23 = vmul.f32 %v5849_v62, %v5849_v62  ;;  %v633_v24 = vmul.f32 %v409_v63, %v409_v63 }
  0x3f   :  { %v1215_v20 = vrot.slane %v1214_v10, 1  ;;  %v681_v19 = vmul.f32 %v457_v6, %v457_v6  ;;  %v697_v26 = vmul.f32 %v473_v7, %v473_v7  ;;  %v713_v27 = vmul.f32 %v489_v8, %v489_v8 }
  0x40   :  { %v729_v28 = vmul.f32 %v5854_v11, %v5854_v11  ;;  %v745_v29 = vmul.f32 %v521_v12, %v521_v12  ;;  %v761_v30 = vmul.f32 %v537_v13, %v313_v50  ;;  %v777_v31 = vmul.f32 %v553_v14, %v329_v55 }
  0x41   :  { %v1216_v25 = vadd.f32 %v1215_v20, %v1214_v10  ;;  %v793_v32 = vmul.f32 %v569_v15, %v345_v56  ;;  %v809_v34 = vmul.f32 %v585_v16, %v361_v60  ;;  %v873_v35 = vmul.f32 %v649_v21, %v425_v0 }
  0x42   :  { %v889_v36 = vmul.f32 %v665_v22, %v441_v4  ;;  %v825_v37 = vmul.f32 %v601_v18, %v5847_v61  ;;  %v841_v38 = vmul.f32 %v617_v23, %v5849_v62  ;;  %v857_v40 = vmul.f32 %v633_v24, %v409_v63 }
  0x43   :  { %v1433_v33 = vsel %vm10220_vm1, %v1216_v25, %v1008_v17  ;;  %v1022_v41 = vadd.f32 %v329_v55, %v313_v50  ;;  %v905_v42 = vmul.f32 %v681_v19, %v457_v6  ;;  %v921_v43 = vmul.f32 %v697_v26, %v473_v7 }
  0x44   :  { %1465 = vst [vmem:[#allocation2 + $0x1b0] sm:$0x3] %v1433_v33  ;;  %v1230_v44 = vadd.f32 %v441_v4, %v425_v0  ;;  %v1519_v45 = vadd.f32 %v553_v14, %v537_v13  ;;  %v937_v47 = vmul.f32 %v713_v27, %v489_v8  ;;  %v1727_v49 = vadd.f32 %v665_v22, %v649_v21 }
  0x45   :  { %v1023_v48 = vadd.f32 %v1022_v41, %v345_v56  ;;  %v2239_v51 = vadd.f32 %v777_v31, %v761_v30  ;;  %v953_v53 = vmul.f32 %v729_v28, %v5854_v11  ;;  %v2447_v58 = vadd.f32 %v889_v36, %v873_v35 }
  0x46   :  { %v1231_v54 = vadd.f32 %v1230_v44, %v457_v6  ;;  %v1520_v57 = vadd.f32 %v1519_v45, %v569_v15 }
  0x47   :  { %11 = vsyncpa [#allocation6], 0  ;;  %v969_v59 = vmul.f32 %v745_v29, %v521_v12  ;;  %v1024_v1 = vadd.f32 %v1023_v48, %v361_v60  ;;  %v1728_v2 = vadd.f32 %v1727_v49, %v681_v19  ;;  %v2240_v9 = vadd.f32 %v2239_v51, %v793_v32  ;;  %v150_v33 = vld [vmem:[%s10214_s0 + $0x200] sm:$0xff]  ;;  %s5435_s10 = smov 24   ;;  %s5437_s11 = smov 112  }
  0x48   :  { %v1027_v50 = vsel %vm10219_vm0, %v409_v63, 0.0  ;;  %v1232_v55 = vadd.f32 %v1231_v54, %v473_v7  ;;  %v1521_v10 = vadd.f32 %v1520_v57, %v585_v16  ;;  %v2448_v0 = vadd.f32 %v2447_v58, %v905_v42  ;;  %v182_v35 = vld [vmem:[%s10214_s0 + $0x300] sm:$0x1]  ;;  %s5438_s18 = smov [#allocation3]  }
  0x49   :  { %v1025_v4 = vadd.f32 %v1024_v1, %v5847_v61  ;;  %v1235_v56 = vsel %vm10219_vm0, %v521_v12, 0.0  ;;  %v1729_v13 = vadd.f32 %v1728_v2, %v697_v26  ;;  %v2241_v14 = vadd.f32 %v2240_v9, %v809_v34  ;;  %v166_v34 = vld [vmem:[%s10214_s0 + $0x280] sm:$0xff]  ;;  %s4189_s19 = sshll.u32 %s5438_s18, 4  ;;  %s4190_s19 = int_to_ptr.vmem [resolvable:$true] %s4189_s19 }
  0x4a   :  { %v1233_v6 = vadd.f32 %v1232_v55, %v489_v8  ;;  %v1522_v15 = vadd.f32 %v1521_v10, %v601_v18  ;;  %v1524_v20 = vsel %vm10219_vm0, %v633_v24, 0.0  ;;  %v2449_v21 = vadd.f32 %v2448_v0, %v921_v43  ;;  %v86_v24 = vld [vmem:[%s10214_s0] sm:$0xff]  ;;  %s5389_s20 = scalar_lea.vmem %s4190_s19, 32  ;;  %p5394_p1 = scmp.lt.s32.totalorder %s4190_s19, %s4190_s19 }
  0x4b   :  { %v3102_v17 = vld [vmem:[#allocation2 + $0x1b0] sm:$0xff]  ;;  %v1026_v60 = vadd.f32 %v1025_v4, %v5849_v62  ;;  %v1730_v22 = vadd.f32 %v1729_v13, %v713_v27  ;;  %v1732_v63 = vsel %vm10219_vm0, %v745_v29, 0.0  ;;  %v2242_v7 = vadd.f32 %v2241_v14, %v825_v37  ;;  %v214_v41 = vld [vmem:[%s10214_s0 + $0x400] sm:$0xff]  ;;  %p5390_p0 = scmp.ne.s32.totalorder %s4190_s19, %s5389_s20  ;;  %p5395_p2 = scmp.lt.s32.totalorder %s5389_s20, %s5389_s20 }
  0x4c   :  { %3485 = vmatprep.mubr.f32.mxu0 %v3102_v17  ;;  %v1234_v16 = vadd.f32 %v1233_v6, %v5854_v11  ;;  %v1523_v61 = vadd.f32 %v1522_v15, %v617_v23  ;;  %v2244_v12 = vsel %vm10219_vm0, %v857_v40, 0.0  ;;  %v2450_v19 = vadd.f32 %v2449_v21, %v937_v47  ;;  %v102_v11 = vld [vmem:[%s10214_s0 + $0x80] sm:$0xff] }
  0x4d   :  { %v1028_v25 = vadd.f32 %v1027_v50, %v1026_v60  ;;  %v1731_v26 = vadd.f32 %v1730_v22, %v729_v28  ;;  %v2243_v8 = vadd.f32 %v2242_v7, %v841_v38  ;;  %v2452_v18 = vsel %vm10219_vm0, %v969_v59, 0.0  ;;  %v118_v23 = vld [vmem:[%s10214_s0 + $0x100] sm:$0xff]  ;;  %p5396_p3 = por %p5395_p2, %p5394_p1 }
  0x4e   :  { %v1236_v62 = vadd.f32 %v1235_v56, %v1234_v16  ;;  %v1525_v27 = vadd.f32 %v1524_v20, %v1523_v61  ;;  %v2451_v30 = vadd.f32 %v2450_v19, %v953_v53  ;;  %v134_v28 = vld [vmem:[%s10214_s0 + $0x180] sm:$0xff]  ;;  %v5901_v36 = vadd.f32 %v1708_v3, %v5814_v39 }
  0x4f   :  { %v1029_v29 = vrot.slane %v1028_v25, 4  ;;  %v1733_v31 = vadd.f32 %v1732_v63, %v1731_v26  ;;  %v5887_v32 = vadd.f32 %v2244_v12, %v2243_v8  ;;  %v198_v40 = vld [vmem:[%s10214_s0 + $0x380] sm:$0xff]  ;;  %v1502_v43 = vrot.slane %v5852_v5, 2  ;;  %p5397_p4 = pnand %p5396_p3, %p5390_p0 }
  0x50   :  { %v1237_v37 = vrot.slane %v1236_v62, 4  ;;  %v5903_v38 = vadd.f32 %v2452_v18, %v2451_v30  ;;  %v230_v42 = vld [vmem:[%s10214_s0 + $0x480] sm:$0xff]  ;;  %v1526_v39 = vrot.slane %v1525_v27, 4  ;;  %v310_v48 = vand.u32 2147483647, %v86_v24 }
  0x51   :  { %v1030_v44 = vadd.f32 %v1029_v29, %v1028_v25  ;;  %v246_v3 = vld [vmem:[%s10214_s0 + $0x500] sm:$0xff]  ;;  %v326_v51 = vand.u32 2147483647, %v102_v11  ;;  %v342_v53 = vand.u32 2147483647, %v118_v23  ;;  %v1734_v58 = vrot.slane %v1733_v31, 4 }
  0x52   :  { %v262_v45 = vld [vmem:[%s10214_s0 + $0x580] sm:$0xff]  ;;  %v1238_v49 = vadd.f32 %v1237_v37, %v1236_v62  ;;  %v358_v54 = vand.u32 2147483647, %v134_v28  ;;  %v5924_v59 = vand.u32 2147483647, %v150_v33  ;;  %v1710_v2 = vrot.slane %v5901_v36, 2 }
  0x53   :  { %v278_v47 = vld [vmem:[%s10214_s0 + $0x600] sm:$0xff]  ;;  %v1031_v57 = vrot.slane %v1030_v44, 2  ;;  %v5926_v1 = vand.u32 2147483647, %v166_v34  ;;  %v406_v50 = vand.u32 2147483647, %v182_v35  ;;  %v5929_v0 = vadd.f32 %v1526_v39, %v1525_v27 }
  0x54   :  { %v1239_v9 = vrot.slane %v1238_v49, 2  ;;  %v422_v55 = vand.u32 2147483647, %v198_v40  ;;  %v294_v4 = vld [vmem:[%s10214_s0 + $0x680] sm:$0x1]  ;;  %v5938_v21 = vadd.f32 %v1734_v58, %v1733_v31  ;;  %v534_v60 = vmul.f32 %v310_v48, %v310_v48 }
  0x55   :  { %v1032_v10 = vadd.f32 %v1031_v57, %v1030_v44  ;;  %v438_v56 = vand.u32 2147483647, %v214_v41  ;;  %v454_v13 = vand.u32 2147483647, %v230_v42  ;;  %v470_v17 = vand.u32 2147483647, %v246_v3 }
  0x56   :  { %v1240_v14 = vadd.f32 %v1239_v9, %v1238_v49  ;;  %v5934_v6 = vand.u32 2147483647, %v262_v45  ;;  %v5936_v15 = vand.u32 2147483647, %v278_v47  ;;  %v550_v22 = vmul.f32 %v326_v51, %v326_v51 }
  0x57   :  { %v1033_v20 = vrot.slane %v1032_v10, 1  ;;  %v518_v7 = vand.u32 2147483647, %v294_v4  ;;  %v646_v16 = vmul.f32 %v422_v55, %v422_v55  ;;  %v662_v61 = vmul.f32 %v438_v56, %v438_v56 }
  0x58   :  { %v1241_v63 = vrot.slane %v1240_v14, 1  ;;  %v566_v25 = vmul.f32 %v342_v53, %v342_v53  ;;  %v582_v26 = vmul.f32 %v358_v54, %v358_v54  ;;  %v598_v18 = vmul.f32 %v5924_v59, %v5924_v59 }
  0x59   :  { %v1034_v12 = vadd.f32 %v1033_v20, %v1032_v10  ;;  %v614_v24 = vmul.f32 %v5926_v1, %v5926_v1  ;;  %v678_v62 = vmul.f32 %v454_v13, %v454_v13  ;;  %v630_v27 = vmul.f32 %v406_v50, %v406_v50 }
  0x5a   :  { %v1242_v8 = vadd.f32 %v1241_v63, %v1240_v14  ;;  %v694_v30 = vmul.f32 %v470_v17, %v470_v17  ;;  %v758_v11 = vmul.f32 %v534_v60, %v310_v48  ;;  %v774_v23 = vmul.f32 %v550_v22, %v326_v51 }
  0x5b   :  { %v710_v29 = vmul.f32 %v5934_v6, %v5934_v6  ;;  %v870_v31 = vmul.f32 %v646_v16, %v422_v55  ;;  %v886_v33 = vmul.f32 %v662_v61, %v438_v56  ;;  %v726_v34 = vmul.f32 %v5936_v15, %v5936_v15 }
  0x5c   :  { %v1435_v28 = vsel %vm10220_vm1, %v1242_v8, %v1034_v12  ;;  %v790_v35 = vmul.f32 %v566_v25, %v342_v53  ;;  %v982_v37 = vadd.f32 %v326_v51, %v310_v48  ;;  %v1191_v40 = vadd.f32 %v438_v56, %v422_v55 }
  0x5d   :  { %1467 = vst [vmem:[#allocation2 + $0x18] sm:$0x3] %v1435_v28  ;;  %v742_v41 = vmul.f32 %v518_v7, %v518_v7  ;;  %v902_v42 = vmul.f32 %v678_v62, %v454_v13  ;;  %v1480_v44 = vadd.f32 %v550_v22, %v534_v60  ;;  %v1688_v39 = vadd.f32 %v662_v61, %v646_v16 }
  0x5e   :  { %v806_v3 = vmul.f32 %v582_v26, %v358_v54  ;;  %v983_v45 = vadd.f32 %v982_v37, %v342_v53  ;;  %v1192_v47 = vadd.f32 %v1191_v40, %v454_v13  ;;  %v2200_v49 = vadd.f32 %v774_v23, %v758_v11 }
  0x5f   :  { %v822_v57 = vmul.f32 %v598_v18, %v5924_v59  ;;  %v1481_v58 = vadd.f32 %v1480_v44, %v566_v25  ;;  %v1689_v9 = vadd.f32 %v1688_v39, %v678_v62  ;;  %v2408_v10 = vadd.f32 %v886_v33, %v870_v31  ;;  %v152_v33 = vld [vmem:[%s10214_s0 + $0x210] sm:$0xff] }
  0x60   :  { %v854_v4 = vmul.f32 %v630_v27, %v406_v50  ;;  %v984_v14 = vadd.f32 %v983_v45, %v358_v54  ;;  %v1193_v20 = vadd.f32 %v1192_v47, %v470_v17  ;;  %v2201_v63 = vadd.f32 %v2200_v49, %v790_v35  ;;  %v232_v45 = vld [vmem:[%s10214_s0 + $0x490] sm:$0xff] }
  0x61   :  { %v918_v12 = vmul.f32 %v694_v30, %v470_v17  ;;  %v1482_v48 = vadd.f32 %v1481_v58, %v582_v26  ;;  %v1690_v51 = vadd.f32 %v1689_v9, %v694_v30  ;;  %v2409_v55 = vadd.f32 %v2408_v10, %v902_v42  ;;  %v200_v42 = vld [vmem:[%s10214_s0 + $0x390] sm:$0xff] }
  0x62   :  { %v966_v56 = vmul.f32 %v742_v41, %v518_v7  ;;  %v985_v60 = vadd.f32 %v984_v14, %v5924_v59  ;;  %v988_v53 = vsel %vm10219_vm0, %v406_v50, 0.0  ;;  %v1194_v13 = vadd.f32 %v1193_v20, %v5934_v6  ;;  %v248_v47 = vld [vmem:[%s10214_s0 + $0x510] sm:$0xff] }
  0x63   :  { %v1196_v16 = vsel %vm10219_vm0, %v518_v7, 0.0  ;;  %v1483_v61 = vadd.f32 %v1482_v48, %v598_v18  ;;  %v1691_v25 = vadd.f32 %v1690_v51, %v710_v29  ;;  %v2202_v8 = vadd.f32 %v2201_v63, %v806_v3  ;;  %v88_v7 = vld [vmem:[%s10214_s0 + $0x10] sm:$0xff] }
  0x64   :  { %v3104_v22 = vld [vmem:[#allocation2 + $0x18] sm:$0xff]  ;;  %v986_v54 = vadd.f32 %v985_v60, %v5926_v1  ;;  %v1195_v17 = vadd.f32 %v1194_v13, %v5936_v15  ;;  %v1485_v26 = vsel %vm10219_vm0, %v630_v27, 0.0  ;;  %v1693_v62 = vsel %vm10219_vm0, %v742_v41, 0.0  ;;  %v104_v18 = vld [vmem:[%s10214_s0 + $0x90] sm:$0xff] }
  0x65   :  { %3570 = vmatprep.mubr.f32.mxu1 %v3104_v22  ;;  %v934_v59 = vmul.f32 %v710_v29, %v5934_v6  ;;  %v1484_v50 = vadd.f32 %v1483_v61, %v614_v24  ;;  %v1692_v30 = vadd.f32 %v1691_v25, %v726_v34  ;;  %v2410_v11 = vadd.f32 %v2409_v55, %v918_v12  ;;  %v120_v6 = vld [vmem:[%s10214_s0 + $0x110] sm:$0xff] }
  0x66   :  { %v838_v28 = vmul.f32 %v614_v24, %v5926_v1  ;;  %v989_v27 = vadd.f32 %v988_v53, %v986_v54  ;;  %v1197_v31 = vadd.f32 %v1196_v16, %v1195_v17  ;;  %v136_v29 = vld [vmem:[%s10214_s0 + $0x190] sm:$0xff]  ;;  %v950_v35 = vmul.f32 %v726_v34, %v5936_v15 }
  0x67   :  { %v1486_v37 = vadd.f32 %v1485_v26, %v1484_v50  ;;  %v1694_v40 = vadd.f32 %v1693_v62, %v1692_v30  ;;  %v2203_v41 = vadd.f32 %v2202_v8, %v822_v57  ;;  %v168_v1 = vld [vmem:[%s10214_s0 + $0x290] sm:$0xff]  ;;  %v5988_v3 = vsel %vm10219_vm0, %v854_v4, 0.0 }
  0x68   :  { %v184_v24 = vld [vmem:[%s10214_s0 + $0x310] sm:$0x1]  ;;  %v990_v44 = vrot.slane %v989_v27, 4  ;;  %v1198_v39 = vrot.slane %v1197_v31, 4  ;;  %v5991_v15 = vsel %vm10219_vm0, %v966_v56, 0.0  ;;  %v2411_v49 = vadd.f32 %v2410_v11, %v934_v59 }
  0x69   :  { %v216_v34 = vld [vmem:[%s10214_s0 + $0x410] sm:$0xff]  ;;  %v312_v57 = vand.u32 2147483647, %v88_v7  ;;  %v328_v58 = vand.u32 2147483647, %v104_v18  ;;  %v1487_v48 = vrot.slane %v1486_v37, 4  ;;  %v6010_v55 = vadd.f32 %v2203_v41, %v838_v28 }
  0x6a   :  { %v344_v9 = vand.u32 2147483647, %v120_v6  ;;  %v991_v10 = vadd.f32 %v990_v44, %v989_v27  ;;  %v1199_v4 = vadd.f32 %v1198_v39, %v1197_v31  ;;  %v264_v14 = vld [vmem:[%s10214_s0 + $0x590] sm:$0xff]  ;;  %v360_v63 = vand.u32 2147483647, %v136_v29 }
  0x6b   :  { %v280_v20 = vld [vmem:[%s10214_s0 + $0x610] sm:$0xff]  ;;  %v6008_v12 = vand.u32 2147483647, %v152_v33  ;;  %v1695_v51 = vrot.slane %v1694_v40, 4  ;;  %v6015_v60 = vand.u32 2147483647, %v168_v1  ;;  %v6019_v61 = vadd.f32 %v2411_v49, %v950_v35 }
  0x6c   :  { %v296_v56 = vld [vmem:[%s10214_s0 + $0x690] sm:$0x1]  ;;  %v992_v53 = vrot.slane %v991_v10, 2  ;;  %v1200_v13 = vrot.slane %v1199_v4, 2  ;;  %v6017_v22 = vand.u32 2147483647, %v184_v24  ;;  %v6025_v50 = vadd.f32 %v1487_v48, %v1486_v37 }
  0x6d   :  { %v424_v16 = vand.u32 2147483647, %v200_v42  ;;  %v440_v25 = vand.u32 2147483647, %v216_v34  ;;  %v456_v8 = vand.u32 2147483647, %v232_v45  ;;  %v6027_v30 = vadd.f32 %v1695_v51, %v1694_v40 }
  0x6e   :  { %v472_v54 = vand.u32 2147483647, %v248_v47  ;;  %v993_v17 = vadd.f32 %v992_v53, %v991_v10  ;;  %v1201_v26 = vadd.f32 %v1200_v13, %v1199_v4  ;;  %v6021_v62 = vand.u32 2147483647, %v264_v14 }
  0x6f   :  { %v6023_v59 = vand.u32 2147483647, %v280_v20  ;;  %v6029_v11 = vand.u32 2147483647, %v296_v56  ;;  %v536_v7 = vmul.f32 %v312_v57, %v312_v57  ;;  %v552_v27 = vmul.f32 %v328_v58, %v328_v58 }
  0x70   :  { %v994_v18 = vrot.slane %v993_v17, 1  ;;  %v1202_v28 = vrot.slane %v1201_v26, 1  ;;  %v568_v31 = vmul.f32 %v344_v9, %v344_v9  ;;  %v584_v6 = vmul.f32 %v360_v63, %v360_v63 }
  0x71   :  { %v600_v29 = vmul.f32 %v6008_v12, %v6008_v12  ;;  %v6035_v33 = vmul.f32 %v6015_v60, %v6015_v60  ;;  %v6039_v35 = vmul.f32 %v6017_v22, %v6017_v22  ;;  %v648_v41 = vmul.f32 %v424_v16, %v424_v16 }
  0x72   :  { %v995_v37 = vadd.f32 %v994_v18, %v993_v17  ;;  %v1203_v40 = vadd.f32 %v1202_v28, %v1201_v26  ;;  %v664_v1 = vmul.f32 %v440_v25, %v440_v25  ;;  %v680_v24 = vmul.f32 %v456_v8, %v456_v8 }
  0x73   :  { %v696_v42 = vmul.f32 %v472_v54, %v472_v54  ;;  %v6043_v44 = vmul.f32 %v6021_v62, %v6021_v62  ;;  %v6047_v39 = vmul.f32 %v6023_v59, %v6023_v59  ;;  %v6052_v45 = vmul.f32 %v6029_v11, %v6029_v11 }
  0x74   :  { %v1432_v34 = vsel %vm10220_vm1, %v1203_v40, %v995_v37  ;;  %v760_v47 = vmul.f32 %v536_v7, %v312_v57  ;;  %v776_v49 = vmul.f32 %v552_v27, %v328_v58  ;;  %v792_v10 = vmul.f32 %v568_v31, %v344_v9 }
  0x75   :  { %1464 = vst [vmem:[#allocation2 + $0xb0] sm:$0x3] %v1432_v34  ;;  %v6054_v4 = vmul.f32 %v584_v6, %v360_v63  ;;  %v1009_v14 = vadd.f32 %v328_v58, %v312_v57  ;;  %v1217_v20 = vadd.f32 %v440_v25, %v424_v16  ;;  %v6057_v48 = vmul.f32 %v600_v29, %v6008_v12 }
  0x76   :  { %v872_v51 = vmul.f32 %v648_v41, %v424_v16  ;;  %v1506_v56 = vadd.f32 %v552_v27, %v536_v7  ;;  %v1714_v53 = vadd.f32 %v664_v1, %v648_v41  ;;  %v888_v13 = vmul.f32 %v664_v1, %v440_v25 }
  0x77   :  { %v904_v17 = vmul.f32 %v680_v24, %v456_v8  ;;  %v1010_v26 = vadd.f32 %v1009_v14, %v344_v9  ;;  %v1218_v18 = vadd.f32 %v1217_v20, %v456_v8  ;;  %v920_v28 = vmul.f32 %v696_v42, %v472_v54 }
  0x78   :  { %v1014_v37 = vsel %vm10219_vm0, %v6017_v22, 0.0  ;;  %v1507_v40 = vadd.f32 %v1506_v56, %v568_v31  ;;  %v1715_v34 = vadd.f32 %v1714_v53, %v680_v24  ;;  %v1222_v57 = vsel %vm10219_vm0, %v6029_v11, 0.0  ;;  %v3242_v53 = vld [vmem:[%s10215_s1 + $0x268] sm:$0xff] }
  0x79   :  { %v1011_v23 = vadd.f32 %v1010_v26, %v360_v63  ;;  %v1219_v19 = vadd.f32 %v1218_v18, %v472_v54  ;;  %v1503_v58 = vadd.f32 %v1502_v43, %v5852_v5  ;;  %v2226_v7 = vadd.f32 %v776_v49, %v760_v47  ;;  %v3244_v54 = vld [vmem:[%s10215_s1 + $0x278] sm:$0xff]  ;;  %v3258_v49 = vld [vmem:[%s10215_s1 + $0x2e8] sm:$0xff] }
  0x7a   :  { %v1508_v16 = vadd.f32 %v1507_v40, %v584_v6  ;;  %v1716_v25 = vadd.f32 %v1715_v34, %v696_v42  ;;  %v1711_v9 = vadd.f32 %v1710_v2, %v5901_v36  ;;  %v2434_v63 = vadd.f32 %v888_v13, %v872_v51  ;;  %v3259_v36 = vld [vmem:[%s10215_s1 + $0x2f0] sm:$0xff] }
  0x7b   :  { %v1012_v8 = vadd.f32 %v1011_v23, %v6008_v12  ;;  %v1220_v27 = vadd.f32 %v1219_v19, %v6021_v62  ;;  %v1504_v31 = vrot.slane %v1503_v58, 1  ;;  %v1511_v5 = vsel %vm10219_vm0, %v6039_v35, 0.0  ;;  %v3243_v6 = vld [vmem:[%s10215_s1 + $0x270] sm:$0xff] }
  0x7c   :  { %v3101_v41 = vld [vmem:[#allocation2 + $0xb0] sm:$0xff]  ;;  %v1509_v1 = vadd.f32 %v1508_v16, %v600_v29  ;;  %v1717_v43 = vadd.f32 %v1716_v25, %v6043_v44  ;;  %v1712_v2 = vrot.slane %v1711_v9, 1  ;;  %v1719_v12 = vsel %vm10219_vm0, %v6052_v45, 0.0 }
  0x7d   :  { %3486 = vmatmul.mubr.f32.vlgmr.msra.gmra.mxu0 %v3101_v41  ;;  %v1013_v19 = vadd.f32 %v1012_v8, %v6015_v60  ;;  %v1221_v23 = vadd.f32 %v1220_v27, %v6023_v59  ;;  %v6087_v29 = vadd.f32 %v1504_v31, %v1503_v58  ;;  %v2227_v47 = vadd.f32 %v2226_v7, %v792_v10  ;;  %v3255_v25 = vld [vmem:[%s10215_s1 + $0x2d0] sm:$0xff] }
  0x7e   :  { %v1510_v24 = vadd.f32 %v1509_v1, %v6035_v33  ;;  %v1718_v42 = vadd.f32 %v1717_v43, %v6047_v39  ;;  %4301 = vmatpush3.msra.mxu0 %v3244_v54  ;;  %v6094_v14 = vadd.f32 %v1712_v2, %v1711_v9  ;;  %v2435_v56 = vadd.f32 %v2434_v63, %v904_v17  ;;  %v3257_v17 = vld [vmem:[%s10215_s1 + $0x2e0] sm:$0xff]  ;;  %v3239_v63 = vld [vmem:[%s10215_s1 + $0x250] sm:$0xff]  ;;  %v3238_v2 = vld [vmem:[%s10215_s1 + $0x248] sm:$0xff] }
  0x7f   :  { %v1015_v20 = vadd.f32 %v1014_v37, %v1013_v19  ;;  %v1223_v51 = vadd.f32 %v1222_v57, %v1221_v23  ;;  %4302 = vmatprep.subr.mxu0 %v3259_v36  ;;  %5159 = vrsqrt.f32 %v6087_v29  ;;  %v6102_v10 = vmul.f32 %v6035_v33, %v6015_v60 }
  0x80   :  { %v856_v13 = vmul.f32 %v6039_v35, %v6017_v22  ;;  %v1512_v26 = vadd.f32 %v1511_v5, %v1510_v24  ;;  %v1720_v18 = vadd.f32 %v1719_v12, %v1718_v42  ;;  %4303 = vmatpush3.msra.mxu0 %v3243_v6  ;;  %v936_v37 = vmul.f32 %v6043_v44, %v6021_v62  ;;  %v3241_v22 = vld [vmem:[%s10215_s1 + $0x260] sm:$0xff]  ;;  %v3256_v62 = vld [vmem:[%s10215_s1 + $0x2d8] sm:$0xff] }
  0x81   :  { %v6113_v40 = vmul.f32 %v6047_v39, %v6023_v59  ;;  %v1016_v34 = vrot.slane %v1015_v20, 4  ;;  %v1224_v60 = vrot.slane %v1223_v51, 4  ;;  %4304 = vmatprep.subr.mxu0 %v3258_v49  ;;  %v6120_v33 = vmul.f32 %v6052_v45, %v6029_v11  ;;  %v3240_v11 = vld [vmem:[%s10215_s1 + $0x258] sm:$0xff]  ;;  %v3253_v12 = vld [vmem:[%s10215_s1 + $0x2c0] sm:$0xff] }
  0x82   :  { %v1513_v35 = vrot.slane %v1512_v26, 4  ;;  %v1721_v57 = vrot.slane %v1720_v18, 4  ;;  %4305 = vmatpush3.msra.mxu0 %v3242_v53  ;;  %5161 = vrsqrt.f32 %v6094_v14  ;;  %v2228_v39 = vadd.f32 %v2227_v47, %v6054_v4 }
  0x83   :  { %v1017_v59 = vadd.f32 %v1016_v34, %v1015_v20  ;;  %v1225_v44 = vadd.f32 %v1224_v60, %v1223_v51  ;;  %v2436_v58 = vadd.f32 %v2435_v56, %v920_v28  ;;  %4306 = vmatprep.subr.mxu0 %v3257_v17  ;;  %v10250_v7 = vrot.slane %v5929_v0, 2  ;;  %v3236_v60 = vld [vmem:[%s10215_s1 + $0x238] sm:$0xff] }
  0x84   :  { %v1514_v45 = vadd.f32 %v1513_v35, %v1512_v26  ;;  %v1722_v16 = vadd.f32 %v1721_v57, %v1720_v18  ;;  %4307 = vmatpush3.msra.mxu0 %v3241_v22  ;;  %v10251_v4 = vrot.slane %v5938_v21, 2  ;;  %v1489_v54 = vrot.slane %v6025_v50, 2  ;;  %v3252_v18 = vld [vmem:[%s10215_s1 + $0x2b8] sm:$0xff] }
  0x85   :  { %v1529_v9 = vadd.f32 %v10250_v7, %v5929_v0  ;;  %v1018_v8 = vrot.slane %v1017_v59, 2  ;;  %v1226_v27 = vrot.slane %v1225_v44, 2  ;;  %4308 = vmatprep.subr.mxu0 %v3256_v62  ;;  %v1697_v31 = vrot.slane %v6027_v30, 2  ;;  %v3254_v0 = vld [vmem:[%s10215_s1 + $0x2c8] sm:$0xff] }
  0x86   :  { %v1737_v28 = vadd.f32 %v10251_v4, %v5938_v21  ;;  %4309 = vmatpush3.msra.mxu0 %v3240_v11  ;;  %v1515_v5 = vrot.slane %v1514_v45, 2  ;;  %v1723_v21 = vrot.slane %v1722_v16, 2  ;;  %v1490_v19 = vadd.f32 %v1489_v54, %v6025_v50  ;;  %v3237_v50 = vld [vmem:[%s10215_s1 + $0x240] sm:$0xff] }
  0x87   :  { %v1530_v41 = vrot.slane %v1529_v9, 1  ;;  %v1019_v43 = vadd.f32 %v1018_v8, %v1017_v59  ;;  %v1227_v36 = vadd.f32 %v1226_v27, %v1225_v44  ;;  %4310 = vmatprep.subr.mxu0 %v3255_v25  ;;  %v1698_v23 = vadd.f32 %v1697_v31, %v6027_v30  ;;  %v3233_v54 = vld [vmem:[%s10215_s1 + $0x220] sm:$0xff] }
  0x88   :  { %v1738_v1 = vrot.slane %v1737_v28, 1  ;;  %4311 = vmatpush3.msra.mxu0 %v3239_v63  ;;  %v1516_v42 = vadd.f32 %v1515_v5, %v1514_v45  ;;  %v1724_v47 = vadd.f32 %v1723_v21, %v1722_v16  ;;  %v1491_v51 = vrot.slane %v1490_v19, 1  ;;  %v3250_v16 = vld [vmem:[%s10215_s1 + $0x2a8] sm:$0xff]  ;;  %v3232_v5 = vld [vmem:[%s10215_s1 + $0x218] sm:$0xff] }
  0x89   :  { %v6155_v6 = vadd.f32 %v1530_v41, %v1529_v9  ;;  %v1020_v49 = vrot.slane %v1019_v43, 1  ;;  %v1228_v20 = vrot.slane %v1227_v36, 1  ;;  %4312 = vmatprep.subr.mxu0 %v3254_v0  ;;  %v1699_v30 = vrot.slane %v1698_v23, 1  ;;  %v3248_v0 = vld [vmem:[%s10215_s1 + $0x298] sm:$0xff] }
  0x8a   :  { %v6157_v24 = vadd.f32 %v1738_v1, %v1737_v28  ;;  %v2229_v56 = vadd.f32 %v2228_v39, %v6057_v48  ;;  %v6164_v53 = vsel %vm10219_vm0, %v856_v13, 0.0  ;;  %v2437_v26 = vadd.f32 %v2436_v58, %v936_v37  ;;  %4313 = vmatpush3.msra.mxu0 %v3238_v2  ;;  %v3251_v37 = vld [vmem:[%s10215_s1 + $0x2b0] sm:$0xff]  ;;  %v3249_v28 = vld [vmem:[%s10215_s1 + $0x2a0] sm:$0xff]  ;;  %v3276_v21 = vld [vmem:[%s10215_s1 + $0x378] sm:$0xff] }
  0x8b   :  { %5163 = vrsqrt.f32 %v6155_v6  ;;  %v1021_v17 = vadd.f32 %v1020_v49, %v1019_v43  ;;  %v1229_v34 = vadd.f32 %v1228_v20, %v1227_v36  ;;  %4314 = vmatprep.subr.mxu0 %v3253_v12  ;;  %vm1905_vm2 = vcmp.eq.f32.partialorder %v6087_v29, inf  ;;  %v3235_v39 = vld [vmem:[%s10215_s1 + $0x230] sm:$0xff] }
  0x8c   :  { %5165 = vrsqrt.f32 %v6157_v24  ;;  %v5160_v48 = vpop.eup %5159  ;;  %4315 = vmatpush3.msra.mxu0 %v3237_v50  ;;  %vm1907_vm3 = vcmp.eq.f32.partialorder %v6087_v29, 0.0  ;;  %v1908_v13 = vand.u32 2147483648, %v6087_v29  ;;  %v6180_v22 = vadd.f32 %v1491_v51, %v1490_v19  ;;  %v3247_v2 = vld [vmem:[%s10215_s1 + $0x290] sm:$0xff] }
  0x8d   :  { %v6182_v35 = vadd.f32 %v1699_v30, %v1698_v23  ;;  %v1434_v57 = vsel %vm10220_vm1, %v1229_v34, %v1021_v17  ;;  %4316 = vmatprep.subr.mxu0 %v3252_v18  ;;  %v1904_v62 = vmul.f32 %v5160_v48, %v6087_v29  ;;  %v1517_v59 = vrot.slane %v1516_v42, 1  ;;  %v3291_v23 = vld [vmem:[%s10215_s1 + $0x3f0] sm:$0xff]  ;;  %v3290_v30 = vld [vmem:[%s10215_s1 + $0x3e8] sm:$0xff] }
  0x8e   :  { %v1725_v44 = vrot.slane %v1724_v47, 1  ;;  %1466 = vst [vmem:[#allocation2 + $0xd8] sm:$0x3] %v1434_v57  ;;  %v6190_v58 = vadd.f32 %v2229_v56, %v6102_v10  ;;  %v6193_v11 = vadd.f32 %v2437_v26, %v6113_v40  ;;  %v6197_v45 = vsel %vm10219_vm0, %v6120_v33, 0.0  ;;  %4317 = vmatpush3.msra.mxu0 %v3236_v60  ;;  %v3234_v33 = vld [vmem:[%s10215_s1 + $0x228] sm:$0xff]  ;;  %v3275_v49 = vld [vmem:[%s10215_s1 + $0x370] sm:$0xff] }
  0x8f   :  { %5167 = vrsqrt.f32 %v6180_v22  ;;  %v5162_v25 = vpop.eup %5161  ;;  %v1906_v10 = vsel %vm1905_vm2, %v6087_v29, %v1904_v62  ;;  %vm2017_vm4 = vcmp.eq.f32.partialorder %v6094_v14, inf  ;;  %v2020_v40 = vand.u32 2147483648, %v6094_v14  ;;  %4318 = vmatprep.subr.mxu0 %v3251_v37  ;;  %v3274_v17 = vld [vmem:[%s10215_s1 + $0x368] sm:$0xff]  ;;  %v3273_v62 = vld [vmem:[%s10215_s1 + $0x360] sm:$0xff] }
  0x90   :  { %5169 = vrsqrt.f32 %v6182_v35  ;;  %v1909_v7 = vsel %vm1907_vm3, %v1908_v13, %v1906_v10  ;;  %v2016_v9 = vmul.f32 %v5162_v25, %v6094_v14  ;;  %vm2019_vm5 = vcmp.eq.f32.partialorder %v6094_v14, 0.0  ;;  %4319 = vmatpush3.msra.mxu0 %v3235_v39  ;;  %v3289_v13 = vld [vmem:[%s10215_s1 + $0x3e0] sm:$0xff]  ;;  %v3288_v10 = vld [vmem:[%s10215_s1 + $0x3d8] sm:$0xff] }
  0x91   :  { %v6216_v4 = vadd.f32 %v1517_v59, %v1516_v42  ;;  %v6221_v8 = vadd.f32 %v1725_v44, %v1724_v47  ;;  %4320 = vmatprep.subr.mxu0 %v3250_v16  ;;  %v2220_v27 = vrot.slane %v5825_v46, 4  ;;  %v2428_v63 = vrot.slane %v5836_v52, 4 }
  0x92   :  { %v2246_v29 = vrot.slane %v5887_v32, 4  ;;  %v2018_v31 = vsel %vm2017_vm4, %v6094_v14, %v2016_v9  ;;  %vm1919_vm6 = vcmp.eq.f32.partialorder %v6155_v6, inf  ;;  %vm1921_vm7 = vcmp.eq.f32.partialorder %v6155_v6, 0.0  ;;  %4321 = vmatpush3.msra.mxu0 %v3234_v33 }
  0x93   :  { %5171 = vrsqrt.f32 %v6216_v4  ;;  %v2021_v41 = vsel %vm2019_vm5, %v2020_v40, %v2018_v31  ;;  %v1922_v1 = vand.u32 2147483648, %v6155_v6  ;;  %vm2031_vm8 = vcmp.eq.f32.partialorder %v6157_v24, inf  ;;  %4322 = vmatprep.subr.mxu0 %v3249_v28  ;;  %v3229_v28 = vld [vmem:[%s10215_s1 + $0x200] sm:$0xff] }
  0x94   :  { %5173 = vrsqrt.f32 %v6221_v8  ;;  %v2153_v43 = vsel %vm10220_vm1, %v2021_v41, %v1909_v7  ;;  %vm2033_vm9 = vcmp.eq.f32.partialorder %v6157_v24, 0.0  ;;  %v2034_v14 = vand.u32 2147483648, %v6157_v24  ;;  %4323 = vmatpush3.msra.mxu0 %v3233_v54  ;;  %v3287_v41 = vld [vmem:[%s10215_s1 + $0x3d0] sm:$0xff] }
  0x95   :  { %v2221_v36 = vadd.f32 %v2220_v27, %v5825_v46  ;;  %v3103_v19 = vld [vmem:[#allocation2 + $0xd8] sm:$0xff]  ;;  %2185 = vst [vmem:[#allocation2 + $0x188] sm:$0x3] %v2153_v43  ;;  %vm1898_vm10 = vcmp.eq.f32.partialorder %v6180_v22, inf  ;;  %v2429_v12 = vadd.f32 %v2428_v63, %v5836_v52  ;;  %v2247_v42 = vadd.f32 %v2246_v29, %v5887_v32  ;;  %4324 = vmatprep.subr.mxu0 %v3248_v0  ;;  %v3231_v46 = vld [vmem:[%s10215_s1 + $0x210] sm:$0xff]  ;;  %v3246_v32 = vld [vmem:[%s10215_s1 + $0x288] sm:$0xff] }
  0x96   :  { %v2454_v47 = vrot.slane %v5903_v38, 4  ;;  %3571 = vmatmul.mubr.f32.vlgmr.msra.gmra.mxu1 %v3103_v19  ;;  %vm1900_vm11 = vcmp.eq.f32.partialorder %v6180_v22, 0.0  ;;  %v1901_v20 = vand.u32 2147483648, %v6180_v22  ;;  %v6273_v52 = vadd.f32 %v5988_v3, %v6010_v55  ;;  %4325 = vmatpush3.msra.mxu0 %v3232_v5  ;;  %v3230_v3 = vld [vmem:[%s10215_s1 + $0x208] sm:$0xff]  ;;  %v3272_v63 = vld [vmem:[%s10215_s1 + $0x358] sm:$0xff] }
  0x97   :  { %v2222_v50 = vrot.slane %v2221_v36, 2  ;;  %4345 = vmatpush3.msra.mxu1 %v3276_v21  ;;  %vm2010_vm12 = vcmp.eq.f32.partialorder %v6182_v35, inf  ;;  %v2430_v56 = vrot.slane %v2429_v12, 2  ;;  %v2248_v26 = vrot.slane %v2247_v42, 2  ;;  %4326 = vmatprep.subr.mxu0 %v3247_v2  ;;  %v3271_v21 = vld [vmem:[%s10215_s1 + $0x350] sm:$0xff] }
  0x98   :  { %v5164_v51 = vpop.eup %5163  ;;  %v6283_v18 = vadd.f32 %v2454_v47, %v5903_v38  ;;  %4346 = vmatprep.subr.mxu1 %v3291_v23  ;;  %vm2012_vm13 = vcmp.eq.f32.partialorder %v6182_v35, 0.0  ;;  %v2013_v60 = vand.u32 2147483648, %v6182_v35  ;;  %4327 = vmatpush3.msra.mxu0 %v3231_v46  ;;  %v3245_v38 = vld [vmem:[%s10215_s1 + $0x280] sm:$0xff]  ;;  %vm1912_vm14 = vcmp.eq.f32.partialorder %v6216_v4, inf  ;;  %v3270_v46 = vld [vmem:[%s10215_s1 + $0x348] sm:$0xff] }
  0x99   :  { %v5166_v55 = vpop.eup %5165  ;;  %v1918_v34 = vmul.f32 %v5164_v51, %v6155_v6  ;;  %v2223_v48 = vadd.f32 %v2222_v50, %v2221_v36  ;;  %4347 = vmatpush3.msra.mxu1 %v3275_v49  ;;  %vm1914_vm15 = vcmp.eq.f32.partialorder %v6216_v4, 0.0  ;;  %v2431_v57 = vadd.f32 %v2430_v56, %v2429_v12  ;;  %4328 = vmatprep.subr.mxu0 %v3246_v32  ;;  %v3285_v50 = vld [vmem:[%s10215_s1 + $0x3c0] sm:$0xff]  ;;  %v3324_v51 = vld [vmem:[%s10215_s1 + $0x4f8] sm:$0xff] }
  0x9a   :  { %v2030_v37 = vmul.f32 %v5166_v55, %v6157_v24  ;;  %4348 = vmatprep.subr.mxu1 %v3290_v30  ;;  %v6309_v39 = vadd.f32 %v2248_v26, %v2247_v42  ;;  %v2207_v16 = vrot.slane %v6273_v52, 4  ;;  %4329 = vmatpush3.msra.mxu0 %v3230_v3  ;;  %v2456_v9 = vrot.slane %v6283_v18, 2  ;;  %v3269_v30 = vld [vmem:[%s10215_s1 + $0x340] sm:$0xff] }
  0x9b   :  { %v1920_v59 = vsel %vm1919_vm6, %v6155_v6, %v1918_v34  ;;  %v2224_v44 = vrot.slane %v2223_v48, 1  ;;  %4349 = vmatpush3.msra.mxu1 %v3274_v17  ;;  %v2432_v7 = vrot.slane %v2431_v57, 1  ;;  %4330 = vmatprep.subr.mxu0 %v3245_v38  ;;  %v1915_v31 = vand.u32 2147483648, %v6216_v4  ;;  %v3283_v38 = vld [vmem:[%s10215_s1 + $0x3b0] sm:$0xff] }
  0x9c   :  { %v5168_v25 = vpop.eup %5167  ;;  %v1923_v40 = vsel %vm1921_vm7, %v1922_v1, %v1920_v59  ;;  %v2032_v33 = vsel %vm2031_vm8, %v6157_v24, %v2030_v37  ;;  %4350 = vmatprep.subr.mxu1 %v3289_v13  ;;  %v3118_v6 = vld [vmem:[#allocation2 + $0x188] sm:$0xff]  ;;  %vm2024_vm2 = vcmp.eq.f32.partialorder %v6221_v8, inf  ;;  %v2414_v24 = vadd.f32 %v5991_v15, %v6019_v61  ;;  %4331 = vmatpush3.msra.mxu0 %v3229_v28  ;;  %v3265_v28 = vld [vmem:[%s10215_s1 + $0x320] sm:$0xff] }
  0x9d   :  { %v5170_v27 = vpop.eup %5169  ;;  %v2035_v29 = vsel %vm2033_vm9, %v2034_v14, %v2032_v33  ;;  %v1897_v54 = vmul.f32 %v5168_v25, %v6180_v22  ;;  %v6335_v0 = vadd.f32 %v2224_v44, %v2223_v48  ;;  %4351 = vmatpush3.msra.mxu1 %v3273_v62  ;;  %3490 = vmatprep.mubr.f32.mxu0 %v3118_v6  ;;  %v3286_v15 = vld [vmem:[%s10215_s1 + $0x3c8] sm:$0xff]  ;;  %v2250_v12 = vrot.slane %v6309_v39, 1 }
  0x9e   :  { %v2155_v1 = vsel %vm10220_vm1, %v2035_v29, %v1923_v40  ;;  %v2009_v5 = vmul.f32 %v5170_v27, %v6182_v35  ;;  %4352 = vmatprep.subr.mxu1 %v3288_v10  ;;  %v6351_v14 = vadd.f32 %v2432_v7, %v2431_v57  ;;  %v2208_v2 = vadd.f32 %v2207_v16, %v6273_v52  ;;  %v3282_v16 = vld [vmem:[%s10215_s1 + $0x3a8] sm:$0xff]  ;;  %v3281_v10 = vld [vmem:[%s10215_s1 + $0x3a0] sm:$0xff]  ;;  %v6445_v27 = vld [vmem:[#allocation2 + $0x1b0] sm:$0x3] }
  0x9f   :  { %2187 = vst [vmem:[#allocation2 + $0x140] sm:$0x3] %v2155_v1  ;;  %v1899_v43 = vsel %vm1898_vm10, %v6180_v22, %v1897_v54  ;;  %v6354_v36 = vand.u32 2147483647, %v6335_v0  ;;  %4353 = vmatpush3.msra.mxu1 %v3272_v63  ;;  %v2457_v42 = vadd.f32 %v2456_v9, %v6283_v18  ;;  %vm2026_vm3 = vcmp.eq.f32.partialorder %v6221_v8, 0.0  ;;  %4388 = vmatprep.subr.mxu0 %v3324_v51  ;;  %v3280_v63 = vld [vmem:[%s10215_s1 + $0x398] sm:$0xff] }
  0xa0   :  { %v5172_v19 = vpop.eup %5171  ;;  %v1902_v61 = vsel %vm1900_vm11, %v1901_v20, %v1899_v43  ;;  %v2011_v23 = vsel %vm2010_vm12, %v6182_v35, %v2009_v5  ;;  %4354 = vmatprep.subr.mxu1 %v3287_v41  ;;  %v2027_v20 = vand.u32 2147483648, %v6221_v8  ;;  %v2232_v35 = vadd.f32 %v6164_v53, %v6190_v58  ;;  %v3284_v53 = vld [vmem:[%s10215_s1 + $0x3b8] sm:$0xff]  ;;  %v3261_v51 = vld [vmem:[%s10215_s1 + $0x300] sm:$0xff] }
  0xa1   :  { %v5174_v47 = vpop.eup %5173  ;;  %v2014_v49 = vsel %vm2012_vm13, %v2013_v60, %v2011_v23  ;;  %v1911_v22 = vmul.f32 %v5172_v19, %v6216_v4  ;;  %5175 = vlog2.f32 %v6354_v36  ;;  %4355 = vmatpush3.msra.mxu1 %v3271_v21  ;;  %v6395_v26 = vand.u32 2147483647, %v6351_v14  ;;  %v3268_v60 = vld [vmem:[%s10215_s1 + $0x338] sm:$0xff] }
  0xa2   :  { %v2152_v52 = vsel %vm10220_vm1, %v2014_v49, %v1902_v61  ;;  %v2023_v32 = vmul.f32 %v5174_v47, %v6221_v8  ;;  %4356 = vmatprep.subr.mxu1 %v3286_v15  ;;  %v2209_v18 = vrot.slane %v2208_v2, 2  ;;  %v2415_v3 = vrot.slane %v2414_v24, 4  ;;  %v3264_v41 = vld [vmem:[%s10215_s1 + $0x318] sm:$0xff]  ;;  %v3263_v15 = vld [vmem:[%s10215_s1 + $0x310] sm:$0xff] }
  0xa3   :  { %2184 = vst [vmem:[#allocation2 + $0xe0] sm:$0x3] %v2152_v52  ;;  %v1913_v56 = vsel %vm1912_vm14, %v6216_v4, %v1911_v22  ;;  %4357 = vmatpush3.msra.mxu1 %v3270_v46  ;;  %v6406_v17 = vadd.f32 %v2250_v12, %v6309_v39  ;;  %v2458_v34 = vrot.slane %v2457_v42, 1  ;;  %5177 = vlog2.f32 %v6395_v26  ;;  %v6460_v43 = vld [vmem:[#allocation2 + $0x18] sm:$0x3]  ;;  %v3262_v22 = vld [vmem:[%s10215_s1 + $0x308] sm:$0xff] }
  0xa4   :  { %v1916_v58 = vsel %vm1914_vm15, %v1915_v31, %v1913_v56  ;;  %v2025_v55 = vsel %vm2024_vm2, %v6221_v8, %v2023_v32  ;;  %4358 = vmatprep.subr.mxu1 %v3285_v50  ;;  %v2440_v57 = vadd.f32 %v6197_v45, %v6193_v11  ;;  %v3267_v8 = vld [vmem:[%s10215_s1 + $0x330] sm:$0xff]  ;;  %v2210_v59 = vadd.f32 %v2209_v18, %v2208_v2  ;;  %v3266_v45 = vld [vmem:[%s10215_s1 + $0x328] sm:$0xff]  ;;  %v3277_v52 = vld [vmem:[%s10215_s1 + $0x380] sm:$0xff] }
  0xa5   :  { %v2028_v48 = vsel %vm2026_vm3, %v2027_v20, %v2025_v55  ;;  %4359 = vmatpush3.msra.mxu1 %v3269_v30  ;;  %v6418_v37 = vadd.f32 %v2458_v34, %v2457_v42  ;;  %v6426_v62 = vand.u32 2147483647, %v6406_v17  ;;  %v2416_v44 = vadd.f32 %v2415_v3, %v2414_v24  ;;  %v3279_v24 = vld [vmem:[%s10215_s1 + $0x390] sm:$0xff]  ;;  %v3278_v42 = vld [vmem:[%s10215_s1 + $0x388] sm:$0xff] }
  0xa6   :  { %v3120_v4 = vld [vmem:[#allocation2 + $0x140] sm:$0xff]  ;;  %v2154_v13 = vsel %vm10220_vm1, %v2028_v48, %v1916_v58  ;;  %4360 = vmatprep.subr.mxu1 %v3284_v53  ;;  %v2233_v39 = vrot.slane %v2232_v35, 4  ;;  %v2211_v40 = vrot.slane %v2210_v59, 1  ;;  %v2441_v9 = vrot.slane %v2440_v57, 4  ;;  %v6479_v50 = vld [vmem:[#allocation2 + $0xb0] sm:$0x3] }
  0xa7   :  { %3575 = vmatprep.mubr.f32.mxu1 %v3120_v4  ;;  %2186 = vst [vmem:[#allocation2 + $0x138] sm:$0x3] %v2154_v13  ;;  %4361 = vmatpush3.msra.mxu1 %v3268_v60  ;;  %v6432_v11 = vand.u32 2147483647, %v6418_v37  ;;  %5179 = vlog2.f32 %v6426_v62  ;;  %v2417_v33 = vrot.slane %v2416_v44, 2  ;;  %vm10232_vm4 = vcmask 1041408  }
  0xa8   :  { %4362 = vmatprep.subr.mxu1 %v3283_v38  ;;  %v2234_v7 = vadd.f32 %v2233_v39, %v2232_v35  ;;  %v6450_v6 = vadd.f32 %v2211_v40, %v2210_v59  ;;  %v2442_v31 = vadd.f32 %v2441_v9, %v2440_v57  ;;  %v2755_v21 = vsel %vm10232_vm4, %v6445_v27, 0.0  ;;  %v6490_v53 = vld [vmem:[#allocation2 + $0xd8] sm:$0x3] }
  0xa9   :  { %4363 = vmatpush3.msra.mxu1 %v3267_v8  ;;  %5181 = vlog2.f32 %v6432_v11  ;;  %v2418_v29 = vadd.f32 %v2417_v33, %v2416_v44  ;;  %v2756_v46 = vrot.slane %v2755_v21, 4  ;;  %v2769_v49 = vsel %vm10232_vm4, %v6460_v43, 0.0  ;;  %v3356_v58 = vld [vmem:[%s10215_s1 + $0x5f8] sm:$0xff]  ;;  %v91_v33 = vld [vmem:[%s10214_s0 + $0x28] sm:$0xff] }
  0xaa   :  { %v3117_v25 = vld [vmem:[#allocation2 + $0xe0] sm:$0xff]  ;;  %4364 = vmatprep.subr.mxu1 %v3282_v16  ;;  %v2235_v54 = vrot.slane %v2234_v7, 2  ;;  %v6466_v61 = vand.u32 2147483647, %v6450_v6  ;;  %v2443_v12 = vrot.slane %v2442_v31, 2  ;;  %v2770_v3 = vrot.slane %v2769_v49, 4 }
  0xab   :  { %3491 = vmatmul.mubr.f32.gmra.mxu0 %v3117_v25  ;;  %4365 = vmatpush3.msra.mxu1 %v3266_v45  ;;  %v2419_v19 = vrot.slane %v2418_v29, 1  ;;  %v2757_v18 = vadd.f32 %v2756_v46, %v2755_v21  ;;  %v2748_v55 = vsel %vm10232_vm4, %v6479_v50, 0.0  ;;  %v2762_v57 = vsel %vm10232_vm4, %v6490_v53, 0.0 }
  0xac   :  { %4366 = vmatprep.subr.mxu1 %v3281_v10  ;;  %v2236_v23 = vadd.f32 %v2235_v54, %v2234_v7  ;;  %v2444_v56 = vadd.f32 %v2443_v12, %v2442_v31  ;;  %vm4583_vm5 = vcmp.lt.f32.partialorder %v6335_v0, 0.0  ;;  %v2771_v44 = vadd.f32 %v2770_v3, %v2769_v49  ;;  %v107_v54 = vld [vmem:[%s10214_s0 + $0xa8] sm:$0xff] }
  0xad   :  { %4367 = vmatpush3.msra.mxu1 %v3265_v28  ;;  %v6471_v47 = vadd.f32 %v2419_v19, %v2418_v29  ;;  %v2758_v4 = vrot.slane %v2757_v18, 2  ;;  %vm4582_vm6 = vcmp.eq.f32.partialorder %v6335_v0, 0.0  ;;  %v2749_v45 = vrot.slane %v2748_v55, 4 }
  0xae   :  { %v5176_v1 = vpop.eup %5175  ;;  %v3119_v5 = vld [vmem:[#allocation2 + $0x138] sm:$0xff]  ;;  %4368 = vmatprep.subr.mxu1 %v3280_v63  ;;  %v2237_v30 = vrot.slane %v2236_v23, 1  ;;  %v2445_v48 = vrot.slane %v2444_v56, 1  ;;  %v4588_v25 = vand.u32 2147483648, %v6335_v0  ;;  %v2763_v40 = vrot.slane %v2762_v57, 4 }
  0xaf   :  { %3576 = vmatmul.mubr.f32.gmra.mxu1 %v3119_v5  ;;  %v4589_v2 = vmul.f32 0.33333334, %v5176_v1  ;;  %v6485_v35 = vand.u32 2147483647, %v6471_v47  ;;  %v2759_v16 = vadd.f32 %v2758_v4, %v2757_v18  ;;  %vm4585_vm7 = vcmp.eq.f32.partialorder %v6354_v36, inf }
  0xb0   :  { %4369 = vmatpush3.msra.mxu1 %v3264_v41  ;;  %v5178_v20 = vpop.eup %5177  ;;  %v6498_v60 = vadd.f32 %v2237_v30, %v2236_v23  ;;  %v6503_v59 = vadd.f32 %v2445_v48, %v2444_v56  ;;  %vm4592_vm8 = vweird.f32 %v6354_v36  ;;  %vm4594_vm9 = vcmp.eq.f32.partialorder %v6354_v36, 0.0 }
  0xb1   :  { %5183 = vpow2.f32 %v4589_v2  ;;  %4370 = vmatprep.subr.mxu1 %v3279_v24  ;;  %v4877_v32 = vmul.f32 0.33333334, %v5178_v20  ;;  %vm4871_vm10 = vcmp.lt.f32.partialorder %v6351_v14, 0.0  ;;  %v4876_v7 = vand.u32 2147483648, %v6351_v14 }
  0xb2   :  { %5185 = vlog2.f32 %v6466_v61  ;;  %4371 = vmatpush3.msra.mxu1 %v3263_v15  ;;  %v6507_v39 = vand.u32 2147483647, %v6498_v60  ;;  %v6511_v10 = vand.u32 2147483647, %v6503_v59  ;;  %vm4880_vm11 = vweird.f32 %v6395_v26 }
  0xb3   :  { %4372 = vmatprep.subr.mxu1 %v3278_v42  ;;  %5187 = vpow2.f32 %v4877_v32  ;;  %vm4882_vm12 = vcmp.eq.f32.partialorder %v6395_v26, 0.0  ;;  %vm4870_vm13 = vcmp.eq.f32.partialorder %v6351_v14, 0.0  ;;  %v4624_v9 = vand.u32 2147483648, %v6406_v17 }
  0xb4   :  { %4373 = vmatpush3.msra.mxu1 %v3262_v22  ;;  %v5180_v34 = vpop.eup %5179  ;;  %5189 = vlog2.f32 %v6485_v35  ;;  %v2760_v28 = vrot.slane %v2759_v16, 1  ;;  %v2772_v63 = vrot.slane %v2771_v44, 2  ;;  %v2750_v29 = vadd.f32 %v2749_v45, %v2748_v55 }
  0xb5   :  { %4374 = vmatprep.subr.mxu1 %v3277_v52  ;;  %v4625_v13 = vmul.f32 0.33333334, %v5180_v34  ;;  %vm4873_vm14 = vcmp.eq.f32.partialorder %v6395_v26, inf  ;;  %vm4628_vm15 = vweird.f32 %v6426_v62  ;;  %v4912_v41 = vand.u32 2147483648, %v6418_v37 }
  0xb6   :  { %4375 = vmatpush3.msra.mxu1 %v3261_v51  ;;  %v5182_v38 = vpop.eup %5181  ;;  %v2764_v1 = vadd.f32 %v2763_v40, %v2762_v57  ;;  %v6533_v5 = vand.u32 2147483647, %v91_v33  ;;  %v2761_v2 = vadd.f32 %v2760_v28, %v2759_v16  ;;  %v2773_v19 = vadd.f32 %v2772_v63, %v2771_v44 }
  0xb7   :  { %4432 = vmatprep.subr.mxu1 %v3356_v58  ;;  %v4913_v8 = vmul.f32 0.33333334, %v5182_v38  ;;  %5191 = vpow2.f32 %v4625_v13  ;;  %v2751_v15 = vrot.slane %v2750_v29, 2  ;;  %v4570_v23 = vand.u32 2147483648, %v6450_v6 }
  0xb8   :  { %v2765_v42 = vrot.slane %v2764_v1, 2  ;;  %v6540_v46 = vand.u32 2147483647, %v107_v54  ;;  %vm4618_vm2 = vcmp.eq.f32.partialorder %v6406_v17, 0.0  ;;  %vm4907_vm3 = vcmp.lt.f32.partialorder %v6418_v37, 0.0 }
  0xb9   :  { %5193 = vpow2.f32 %v4913_v8  ;;  %v2862_v22 = vmul.f32 0.5, %v2761_v2  ;;  %v2774_v20 = vrot.slane %v2773_v19, 1  ;;  %v2752_v52 = vadd.f32 %v2751_v15, %v2750_v29 }
  0xba   :  { %5195 = vlog2.f32 %v6507_v39  ;;  %vm4621_vm1 = vcmp.eq.f32.partialorder %v6426_v62, inf  ;;  %vm4906_vm0 = vcmp.eq.f32.partialorder %v6418_v37, 0.0  ;;  %v4858_v30 = vand.u32 2147483648, %v6471_v47 }
  0xbb   :  { %5197 = vlog2.f32 %v6511_v10  ;;  %v2766_v56 = vadd.f32 %v2765_v42, %v2764_v1  ;;  %v6556_v55 = vsub.f32 %v6445_v27, %v2862_v22  ;;  %v2775_v34 = vadd.f32 %v2774_v20, %v2773_v19 }
  0xbc   :  { %v2753_v38 = vrot.slane %v2752_v52, 1 }
  0xbd   :  { %v2767_v13 = vrot.slane %v2766_v56, 1  ;;  %v2894_v44 = vmul.f32 %v6556_v55, %v6556_v55  ;;  %v2864_v16 = vmul.f32 0.5, %v2775_v34 }
  0xbe   :  { %v5184_v31 = vpop.eup %5183 }
  0xbf   :  { %v5186_v24 = vpop.eup %5185  ;;  %v4591_v21 = vor.u32 %v5184_v31, %v4588_v25  ;;  %v2916_v28 = vsel %vm10232_vm4, %v2894_v44, 0.0  ;;  %v6576_v63 = vsub.f32 %v6460_v43, %v2864_v16 }
  0xc0   :  { %v4571_v12 = vmul.f32 0.33333334, %v5186_v24  ;;  %v5188_v32 = vpop.eup %5187  ;;  %v2917_v31 = vrot.slane %v2916_v28, 4 }
  0xc1   :  { %v4593_v49 = vsel %vm4592_vm8, %v6335_v0, %v4591_v21  ;;  %v5190_v18 = vpop.eup %5189  ;;  %v4879_v58 = vor.u32 %v5188_v32, %v4876_v7  ;;  %vm4909_vm8 = vcmp.eq.f32.partialorder %v6432_v11, inf  ;;  %v2754_v0 = vadd.f32 %v2753_v38, %v2752_v52 }
  0xc2   :  { %v4596_v51 = vsel %vm4594_vm9, %v4588_v25, %v4593_v49  ;;  %5199 = vpow2.f32 %v4571_v12  ;;  %v4859_v4 = vmul.f32 0.33333334, %v5190_v18  ;;  %v2768_v25 = vadd.f32 %v2767_v13, %v2766_v56 }
  0xc3   :  { %v4597_v3 = vsel %vm4583_vm5, nan, %v4596_v51  ;;  %v4881_v8 = vsel %vm4880_vm11, %v6351_v14, %v4879_v58  ;;  %vm4574_vm5 = vweird.f32 %v6466_v61  ;;  %v2861_v1 = vmul.f32 0.5, %v2754_v0 }
  0xc4   :  { %v4598_v48 = vsel %vm4582_vm6, 0.0, %v4597_v3  ;;  %v5192_v27 = vpop.eup %5191  ;;  %v4884_v45 = vsel %vm4882_vm12, %v4876_v7, %v4881_v8  ;;  %5201 = vpow2.f32 %v4859_v4  ;;  %vm4576_vm6 = vcmp.eq.f32.partialorder %v6466_v61, 0.0  ;;  %v123_v8 = vld [vmem:[%s10214_s0 + $0x128] sm:$0xff] }
  0xc5   :  { %v4599_v57 = vsel %vm4585_vm7, inf, %v4598_v48  ;;  %v4885_v36 = vsel %vm4871_vm10, nan, %v4884_v45  ;;  %v4627_v33 = vor.u32 %v5192_v27, %v4624_v9  ;;  %vm4565_vm7 = vcmp.lt.f32.partialorder %v6450_v6, 0.0 }
  0xc6   :  { %v5194_v40 = vpop.eup %5193  ;;  %v4886_v7 = vsel %vm4870_vm13, 0.0, %v4885_v36  ;;  %v2896_v14 = vmul.f32 %v6576_v63, %v6576_v63  ;;  %vm10252_vm9 = vcmask 1041409   ;;  %vm10253_vm10 = vcmp.eq.f32.partialorder %v6426_v62, 0.0 }
  0xc7   :  { %v5196_v29 = vpop.eup %5195  ;;  %v4915_v54 = vor.u32 %v5194_v40, %v4912_v41  ;;  %v4887_v21 = vsel %vm4873_vm14, inf, %v4886_v7  ;;  %v4629_v43 = vsel %vm4628_vm15, %v6406_v17, %v4627_v33  ;;  %vm10254_vm11 = vweird.f32 %v6432_v11  ;;  %v139_v33 = vld [vmem:[%s10214_s0 + $0x1a8] sm:$0xff] }
  0xc8   :  { %v5198_v24 = vpop.eup %5197  ;;  %v4607_v2 = vmul.f32 0.33333334, %v5196_v29  ;;  %v2681_v19 = vsel %vm10252_vm9, %v4887_v21, %v4599_v57  ;;  %v4632_v15 = vsel %vm10253_vm10, %v4624_v9, %v4629_v43  ;;  %vm4564_vm12 = vcmp.eq.f32.partialorder %v6450_v6, 0.0  ;;  %v171_v43 = vld [vmem:[%s10214_s0 + $0x2a8] sm:$0xff] }
  0xc9   :  { %v4917_v26 = vsel %vm10254_vm11, %v6418_v37, %v4915_v54  ;;  %v4895_v12 = vmul.f32 0.33333334, %v5198_v24  ;;  %2713 = vst [vmem:[#allocation2 + $0x1d0] sm:$0x3] %v2681_v19  ;;  %vm10255_vm13 = vcmp.lt.f32.partialorder %v6406_v17, 0.0  ;;  %vm10256_vm14 = vcmp.eq.f32.partialorder %v6432_v11, 0.0 }
  0xca   :  { %v4633_v42 = vsel %vm10255_vm13, nan, %v4632_v15  ;;  %v4920_v49 = vsel %vm10256_vm14, %v4912_v41, %v4917_v26  ;;  %vm4862_vm15 = vweird.f32 %v6485_v35  ;;  %5203 = vpow2.f32 %v4607_v2 }
  0xcb   :  { %v2918_v9 = vadd.f32 %v2917_v31, %v2916_v28  ;;  %v4634_v22 = vsel %vm4618_vm2, 0.0, %v4633_v42  ;;  %v4921_v20 = vsel %vm4907_vm3, nan, %v4920_v49  ;;  %5205 = vpow2.f32 %v4895_v12  ;;  %v155_v28 = vld [vmem:[%s10214_s0 + $0x228] sm:$0xff] }
  0xcc   :  { %v2930_v52 = vsel %vm10232_vm4, %v2896_v14, 0.0  ;;  %v4635_v32 = vsel %vm4621_vm1, inf, %v4634_v22  ;;  %v4922_v51 = vsel %vm4906_vm0, 0.0, %v4921_v20  ;;  %vm4567_vm9 = vcmp.eq.f32.partialorder %v6466_v61, inf }
  0xcd   :  { %vm4853_vm10 = vcmp.lt.f32.partialorder %v6471_v47, 0.0  ;;  %v2919_v41 = vrot.slane %v2918_v9, 2  ;;  %v2931_v56 = vrot.slane %v2930_v52, 4  ;;  %v4923_v17 = vsel %vm4909_vm8, inf, %v4922_v51 }
  0xce   :  { %vm4852_vm2 = vcmp.eq.f32.partialorder %v6471_v47, 0.0  ;;  %vm4864_vm3 = vcmp.eq.f32.partialorder %v6485_v35, 0.0  ;;  %v6623_v18 = vsub.f32 %v6479_v50, %v2861_v1  ;;  %v2863_v62 = vmul.f32 0.5, %v2768_v25 }
  0xcf   :  { %v5200_v3 = vpop.eup %5199  ;;  %vm10257_vm1 = vcmask 1041409   ;;  %vm4855_vm0 = vcmp.eq.f32.partialorder %v6485_v35, inf  ;;  %v4606_v58 = vand.u32 2147483648, %v6498_v60  ;;  %v2920_v34 = vadd.f32 %v2919_v41, %v2918_v9 }
  0xd0   :  { %v2683_v37 = vsel %vm10257_vm1, %v4923_v17, %v4635_v32  ;;  %v2932_v48 = vadd.f32 %v2931_v56, %v2930_v52  ;;  %v4573_v11 = vor.u32 %v5200_v3, %v4570_v23  ;;  %vm4610_vm8 = vweird.f32 %v6507_v39  ;;  %v3134_v44 = vld [vmem:[#allocation2 + $0x1d0] sm:$0xff] }
  0xd1   :  { %2715 = vst [vmem:[#allocation2 + $0xc8] sm:$0x3] %v2683_v37  ;;  %v2893_v50 = vmul.f32 %v6623_v18, %v6623_v18  ;;  %v6634_v4 = vsub.f32 %v6490_v53, %v2863_v62  ;;  %vm4612_vm11 = vcmp.eq.f32.partialorder %v6507_v39, 0.0  ;;  %v4894_v38 = vand.u32 2147483648, %v6503_v59  ;;  %v5202_v45 = vpop.eup %5201  ;;  %3495 = vmatprep.mubr.f32.mxu0 %v3134_v44  ;;  %v187_v37 = vld [vmem:[%s10214_s0 + $0x328] sm:$0x1] }
  0xd2   :  { %v2921_v13 = vrot.slane %v2920_v34, 1  ;;  %v2933_v57 = vrot.slane %v2932_v48, 2  ;;  %v4575_v16 = vsel %vm4574_vm5, %v6450_v6, %v4573_v11  ;;  %vm4601_vm14 = vcmp.lt.f32.partialorder %v6498_v60, 0.0  ;;  %v219_v44 = vld [vmem:[%s10214_s0 + $0x428] sm:$0xff] }
  0xd3   :  { %vm4900_vm1 = vcmp.eq.f32.partialorder %v6511_v10, 0.0  ;;  %v2909_v53 = vsel %vm10232_vm4, %v2893_v50, 0.0  ;;  %v2895_v27 = vmul.f32 %v6634_v4, %v6634_v4  ;;  %v4578_v0 = vsel %vm4576_vm6, %v4570_v23, %v4575_v16 }
  0xd4   :  { %v2922_v25 = vadd.f32 %v2921_v13, %v2920_v34  ;;  %v2934_v40 = vadd.f32 %v2933_v57, %v2932_v48  ;;  %v2910_v36 = vrot.slane %v2909_v53, 4  ;;  %v4579_v29 = vsel %vm4565_vm7, nan, %v4578_v0 }
  0xd5   :  { %v4861_v23 = vor.u32 %v5202_v45, %v4858_v30  ;;  %vm4603_vm6 = vcmp.eq.f32.partialorder %v6507_v39, inf  ;;  %vm4888_vm5 = vcmp.eq.f32.partialorder %v6503_v59, 0.0  ;;  %v2923_v7 = vsel %vm10232_vm4, %v2895_v27, 0.0 }
  0xd6   :  { %v6669_v54 = vand.u32 2147483647, %v123_v8  ;;  %v4580_v31 = vsel %vm4564_vm12, 0.0, %v4579_v29  ;;  %vm4891_vm13 = vcmp.eq.f32.partialorder %v6511_v10, inf  ;;  %v3022_v1 = vmul.f32 0.5, %v2922_v25  ;;  %v203_v8 = vld [vmem:[%s10214_s0 + $0x3a8] sm:$0xff] }
  0xd7   :  { %v2935_v24 = vrot.slane %v2934_v40, 1  ;;  %v2911_v21 = vadd.f32 %v2910_v36, %v2909_v53  ;;  %v4863_v2 = vsel %vm4862_vm15, %v6471_v47, %v4861_v23  ;;  %v2924_v14 = vrot.slane %v2923_v7, 4  ;;  %v5204_v9 = vpop.eup %5203  ;;  %v235_v53 = vld [vmem:[%s10214_s0 + $0x4a8] sm:$0xff] }
  0xd8   :  { %v6680_v19 = vand.u32 2147483647, %v139_v33  ;;  %v6682_v15 = vand.u32 2147483647, %v155_v28  ;;  %v3136_v6 = vld [vmem:[#allocation2 + $0xc8] sm:$0xff]  ;;  %v4866_v26 = vsel %vm4864_vm3, %v4858_v30, %v4863_v2  ;;  %v4581_v22 = vsel %vm4567_vm9, inf, %v4580_v31  ;;  %v5206_v51 = vpop.eup %5205 }
  0xd9   :  { %v3038_v12 = vadd.f32 1e-05, %v3022_v1  ;;  %v2936_v42 = vadd.f32 %v2935_v24, %v2934_v40  ;;  %v2912_v49 = vrot.slane %v2911_v21, 2  ;;  %3580 = vmatprep.mubr.f32.mxu1 %v3136_v6  ;;  %v4867_v20 = vsel %vm4853_vm10, nan, %v4866_v26  ;;  %v251_v36 = vld [vmem:[%s10214_s0 + $0x528] sm:$0xff] }
  0xda   :  { %v2925_v52 = vadd.f32 %v2924_v14, %v2923_v7  ;;  %v6692_v32 = vand.u32 2147483647, %v171_v43  ;;  %v4868_v41 = vsel %vm4852_vm2, 0.0, %v4867_v20  ;;  %v4609_v30 = vor.u32 %v5204_v9, %v4606_v58  ;;  %v283_v33 = vld [vmem:[%s10214_s0 + $0x628] sm:$0xff] }
  0xdb   :  { %5207 = vrsqrt.f32 %v3038_v12  ;;  %v3024_v56 = vmul.f32 0.5, %v2936_v42  ;;  %v4869_v17 = vsel %vm4855_vm0, inf, %v4868_v41  ;;  %v4897_v61 = vor.u32 %v5206_v51, %v4894_v38  ;;  %v299_v24 = vld [vmem:[%s10214_s0 + $0x6a8] sm:$0x1] }
  0xdc   :  { %v2913_v62 = vadd.f32 %v2912_v49, %v2911_v21  ;;  %v2926_v3 = vrot.slane %v2925_v52, 2  ;;  %vm10258_vm7 = vcmask 1041409   ;;  %v4611_v34 = vsel %vm4610_vm8, %v6498_v60, %v4609_v30 }
  0xdd   :  { %v2680_v47 = vsel %vm10258_vm7, %v4869_v17, %v4581_v22  ;;  %v3040_v48 = vadd.f32 1e-05, %v3024_v56  ;;  %v6711_v35 = vmul.f32 %v6533_v5, %v6533_v5  ;;  %v4614_v11 = vsel %vm4612_vm11, %v4606_v58, %v4611_v34  ;;  %vm10262_vm10 = vmmov %vm10258_vm7 }
  0xde   :  { %2712 = vst [vmem:[#allocation2 + $0x148] sm:$0x3] %v2680_v47  ;;  %vm10259_vm12 = vweird.f32 %v6511_v10  ;;  %v2914_v13 = vrot.slane %v2913_v62, 1  ;;  %v2927_v57 = vadd.f32 %v2926_v3, %v2925_v52  ;;  %v4615_v16 = vsel %vm4601_vm14, nan, %v4614_v11  ;;  %vm10267_vm11 = vmmov %vm10258_vm7 }
  0xdf   :  { %v4899_v50 = vsel %vm10259_vm12, %v6503_v59, %v4897_v61  ;;  %5209 = vrsqrt.f32 %v3040_v48  ;;  %v6735_v27 = vand.u32 2147483647, %v187_v37  ;;  %vm10260_vm15 = vcmp.eq.f32.partialorder %v6498_v60, 0.0 }
  0xe0   :  { %v4902_v58 = vsel %vm4900_vm1, %v4894_v38, %v4899_v50  ;;  %v4616_v45 = vsel %vm10260_vm15, 0.0, %v4615_v16  ;;  %vm10261_vm9 = vcmp.lt.f32.partialorder %v6503_v59, 0.0  ;;  %v2915_v25 = vadd.f32 %v2914_v13, %v2913_v62  ;;  %v267_v38 = vld [vmem:[%s10214_s0 + $0x5a8] sm:$0xff] }
  0xe1   :  { %v4903_v0 = vsel %vm10261_vm9, nan, %v4902_v58  ;;  %v2928_v40 = vrot.slane %v2927_v57, 1  ;;  %v4617_v60 = vsel %vm4603_vm6, inf, %v4616_v45  ;;  %v427_v29 = vand.u32 2147483647, %v203_v8  ;;  %vm10280_vm9 = vmmov %vm10262_vm10 }
  0xe2   :  { %v4904_v28 = vsel %vm4888_vm5, 0.0, %v4903_v0  ;;  %v443_v23 = vand.u32 2147483647, %v219_v44  ;;  %v3021_v31 = vmul.f32 0.5, %v2915_v25  ;;  %v459_v21 = vand.u32 2147483647, %v235_v53 }
  0xe3   :  { %v4905_v7 = vsel %vm4891_vm13, inf, %v4904_v28  ;;  %v2929_v1 = vadd.f32 %v2928_v40, %v2927_v57  ;;  %v475_v2 = vand.u32 2147483647, %v251_v36  ;;  %v491_v39 = vand.u32 2147483647, %v267_v38 }
  0xe4   :  { %v2682_v43 = vsel %vm10262_vm10, %v4905_v7, %v4617_v60  ;;  %v555_v59 = vmul.f32 %v6540_v46, %v6540_v46  ;;  %v3037_v14 = vadd.f32 1e-05, %v3021_v31  ;;  %v651_v26 = vmul.f32 %v427_v29, %v427_v29 }
  0xe5   :  { %2714 = vst [vmem:[#allocation2 + $0x100] sm:$0x3] %v2682_v43  ;;  %v3023_v6 = vmul.f32 0.5, %v2929_v1  ;;  %v667_v10 = vmul.f32 %v443_v23, %v443_v23  ;;  %v3133_v12 = vld [vmem:[#allocation2 + $0x148] sm:$0xff]  ;;  %v507_v42 = vand.u32 2147483647, %v283_v33  ;;  %v571_v9 = vmul.f32 %v6669_v54, %v6669_v54 }
  0xe6   :  { %v6762_v49 = vand.u32 2147483647, %v299_v24  ;;  %v587_v22 = vmul.f32 %v6680_v19, %v6680_v19  ;;  %3496 = vmatmul.mubr.f32.gmra.mxu0 %v3133_v12  ;;  %5211 = vrsqrt.f32 %v3037_v14  ;;  %v603_v52 = vmul.f32 %v6682_v15, %v6682_v15 }
  0xe7   :  { %v3039_v20 = vadd.f32 1e-05, %v3023_v6  ;;  %v683_v51 = vmul.f32 %v459_v21, %v459_v21  ;;  %v6772_v41 = vmul.f32 %v6692_v32, %v6692_v32  ;;  %v699_v30 = vmul.f32 %v475_v2, %v475_v2 }
  0xe8   :  { %v763_v56 = vmul.f32 %v6711_v35, %v6533_v5  ;;  %v779_v17 = vmul.f32 %v555_v59, %v6540_v46  ;;  %v5208_v61 = vpop.eup %5207  ;;  %v715_v62 = vmul.f32 %v491_v39, %v491_v39  ;;  %v875_v3 = vmul.f32 %v651_v26, %v427_v29 }
  0xe9   :  { %5213 = vrsqrt.f32 %v3039_v20  ;;  %v891_v37 = vmul.f32 %v667_v10, %v443_v23  ;;  %v3070_v47 = vmul.f32 %v5208_v61, %v6556_v55  ;;  %v6778_v34 = vmul.f32 %v507_v42, %v507_v42  ;;  %v125_v61 = vld [vmem:[%s10214_s0 + $0x138] sm:$0xff] }
  0xea   :  { %v795_v48 = vmul.f32 %v571_v9, %v6669_v54  ;;  %v1048_v11 = vadd.f32 %v6540_v46, %v6533_v5  ;;  %v811_v50 = vmul.f32 %v587_v22, %v6680_v19  ;;  %v907_v13 = vmul.f32 %v683_v51, %v459_v21 }
  0xeb   :  { %v1256_v57 = vadd.f32 %v443_v23, %v427_v29  ;;  %v1545_v8 = vadd.f32 %v555_v59, %v6711_v35  ;;  %3086 = vst [vmem:[#allocation2 + $0x88] sm:$0x3] %v3070_v47  ;;  %v827_v16 = vmul.f32 %v603_v52, %v6682_v15  ;;  %v1753_v55 = vadd.f32 %v667_v10, %v651_v26 }
  0xec   :  { %v3135_v44 = vld [vmem:[#allocation2 + $0x100] sm:$0xff]  ;;  %v1049_v58 = vadd.f32 %v1048_v11, %v6669_v54  ;;  %v2265_v53 = vadd.f32 %v779_v17, %v763_v56  ;;  %v5210_v45 = vpop.eup %5209  ;;  %v923_v0 = vmul.f32 %v699_v30, %v475_v2  ;;  %v2473_v5 = vadd.f32 %v891_v37, %v875_v3  ;;  %v173_v11 = vld [vmem:[%s10214_s0 + $0x2b8] sm:$0xff] }
  0xed   :  { %3581 = vmatmul.mubr.f32.gmra.mxu1 %v3135_v44  ;;  %v1257_v25 = vadd.f32 %v1256_v57, %v459_v21  ;;  %v1546_v40 = vadd.f32 %v1545_v8, %v571_v9  ;;  %v3072_v46 = vmul.f32 %v5210_v45, %v6576_v63  ;;  %v1754_v38 = vadd.f32 %v1753_v55, %v683_v51  ;;  %v109_v51 = vld [vmem:[%s10214_s0 + $0xb8] sm:$0xff] }
  0xee   :  { %v1050_v36 = vadd.f32 %v1049_v58, %v6680_v19  ;;  %v2266_v35 = vadd.f32 %v2265_v53, %v795_v48  ;;  %v939_v33 = vmul.f32 %v715_v62, %v491_v39  ;;  %v2474_v29 = vadd.f32 %v2473_v5, %v907_v13  ;;  %v205_v13 = vld [vmem:[%s10214_s0 + $0x3b8] sm:$0xff] }
  0xef   :  { %v1258_v60 = vadd.f32 %v1257_v25, %v475_v2  ;;  %v1547_v28 = vadd.f32 %v1546_v40, %v587_v22  ;;  %3088 = vst [vmem:[#allocation2 + $0x1c8] sm:$0x3] %v3072_v46  ;;  %v843_v54 = vmul.f32 %v6772_v41, %v6692_v32  ;;  %v1755_v7 = vadd.f32 %v1754_v38, %v699_v30  ;;  %v253_v58 = vld [vmem:[%s10214_s0 + $0x538] sm:$0xff] }
  0xf0   :  { %v1051_v23 = vadd.f32 %v1050_v36, %v6682_v15  ;;  %v2267_v31 = vadd.f32 %v2266_v35, %v811_v50  ;;  %v955_v1 = vmul.f32 %v6778_v34, %v507_v42  ;;  %vm10263_vm2 = vcmask 1040384   ;;  %v189_v50 = vld [vmem:[%s10214_s0 + $0x338] sm:$0x1] }
  0xf1   :  { %v1053_v63 = vsel %vm10263_vm2, %v6735_v27, 0.0  ;;  %v1259_v19 = vadd.f32 %v1258_v60, %v491_v39  ;;  %v2475_v24 = vadd.f32 %v2474_v29, %v923_v0  ;;  %vm10264_vm3 = vmmov %vm10263_vm2  ;;  %v1548_v2 = vadd.f32 %v1547_v28, %v603_v52  ;;  %v269_v55 = vld [vmem:[%s10214_s0 + $0x5b8] sm:$0xff] }
  0xf2   :  { %v1052_v21 = vadd.f32 %v1051_v23, %v6692_v32  ;;  %v1261_v43 = vsel %vm10264_vm3, %v6762_v49, 0.0  ;;  %v2268_v59 = vadd.f32 %v2267_v31, %v827_v16  ;;  %v3150_v14 = vld [vmem:[#allocation2 + $0x88] sm:$0xff]  ;;  %v1756_v26 = vadd.f32 %v1755_v7, %v715_v62  ;;  %v157_v62 = vld [vmem:[%s10214_s0 + $0x238] sm:$0xff]  ;;  %vm10265_vm0 = vmmov %vm10263_vm2 }
  0xf3   :  { %v1260_v6 = vadd.f32 %v1259_v19, %v507_v42  ;;  %v2476_v15 = vadd.f32 %v2475_v24, %v939_v33  ;;  %v5212_v10 = vpop.eup %5211  ;;  %3500 = vmatprep.mubr.f32.mxu0 %v3150_v14  ;;  %v635_v12 = vmul.f32 %v6735_v27, %v6735_v27  ;;  %v747_v39 = vmul.f32 %v6762_v49, %v6762_v49  ;;  %v93_v42 = vld [vmem:[%s10214_s0 + $0x38] sm:$0xff]  ;;  %vm10266_vm8 = vmmov %vm10265_vm0 }
  0xf4   :  { %v1054_v9 = vadd.f32 %v1053_v63, %v1052_v21  ;;  %v6802_v22 = vadd.f32 %v2268_v59, %v843_v54  ;;  %v3069_v32 = vmul.f32 %v5212_v10, %v6623_v18  ;;  %v1549_v17 = vadd.f32 %v1548_v2, %v6772_v41  ;;  %v141_v18 = vld [vmem:[%s10214_s0 + $0x1b8] sm:$0xff]  ;;  %vm10268_vm13 = vmmov %vm10265_vm0 }
  0xf5   :  { %v1262_v20 = vadd.f32 %v1261_v43, %v1260_v6  ;;  %v6805_v52 = vadd.f32 %v2476_v15, %v955_v1  ;;  %v1550_v48 = vsel %vm10265_vm0, %v635_v12, 0.0  ;;  %v1757_v41 = vadd.f32 %v1756_v26, %v6778_v34  ;;  %v237_v16 = vld [vmem:[%s10214_s0 + $0x4b8] sm:$0xff]  ;;  %vm10269_vm14 = vmmov %vm10265_vm0 }
  0xf6   :  { %v5214_v30 = vpop.eup %5213  ;;  %v1055_v56 = vrot.slane %v1054_v9, 4  ;;  %v3152_v3 = vld [vmem:[#allocation2 + $0x1c8] sm:$0xff]  ;;  %3085 = vst [vmem:[#allocation2 + $0xb8] sm:$0x3] %v3069_v32  ;;  %v6839_v57 = vmul.f32 %v635_v12, %v6735_v27  ;;  %v6842_v34 = vmul.f32 %v747_v39, %v6762_v49  ;;  %v1758_v44 = vsel %vm10266_vm8, %v747_v39, 0.0  ;;  %v285_v5 = vld [vmem:[%s10214_s0 + $0x638] sm:$0xff]  ;;  %vm10270_vm1 = vmmov %vm10265_vm0 }
  0xf7   :  { %v3071_v37 = vmul.f32 %v5214_v30, %v6634_v4  ;;  %v1263_v47 = vrot.slane %v1262_v20, 4  ;;  %v221_v4 = vld [vmem:[%s10214_s0 + $0x438] sm:$0xff]  ;;  %3585 = vmatprep.mubr.f32.mxu1 %v3152_v3  ;;  %v317_v53 = vand.u32 2147483647, %v93_v42  ;;  %v333_v45 = vand.u32 2147483647, %v109_v51  ;;  %vm10271_vm5 = vmmov %vm10265_vm0 }
  0xf8   :  { %v1056_v8 = vadd.f32 %v1055_v56, %v1054_v9  ;;  %v301_v49 = vld [vmem:[%s10214_s0 + $0x6b8] sm:$0x1]  ;;  %v349_v0 = vand.u32 2147483647, %v125_v61  ;;  %v6857_v40 = vadd.f32 %v1550_v48, %v1549_v17  ;;  %v365_v46 = vand.u32 2147483647, %v141_v18  ;;  %vm10274_vm6 = vmmov %vm10265_vm0 }
  0xf9   :  { %3087 = vst [vmem:[#allocation2 + $0xa8] sm:$0x3] %v3071_v37  ;;  %v1264_v27 = vadd.f32 %v1263_v47, %v1262_v20  ;;  %v6862_v36 = vand.u32 2147483647, %v157_v62  ;;  %v6864_v35 = vadd.f32 %v1758_v44, %v1757_v41  ;;  %v6866_v33 = vand.u32 2147483647, %v173_v11  ;;  %vm10275_vm7 = vmmov %vm10265_vm0 }
  0xfa   :  { %v1057_v25 = vrot.slane %v1056_v8, 2  ;;  %v6868_v60 = vand.u32 2147483647, %v189_v50  ;;  %v429_v29 = vand.u32 2147483647, %v205_v13  ;;  %v541_v43 = vmul.f32 %v317_v53, %v317_v53  ;;  %vm10276_vm12 = vmmov %vm10265_vm0 }
  0xfb   :  { %v1265_v38 = vrot.slane %v1264_v27, 2  ;;  %v445_v54 = vand.u32 2147483647, %v221_v4  ;;  %v461_v23 = vand.u32 2147483647, %v237_v16  ;;  %v557_v2 = vmul.f32 %v333_v45, %v333_v45  ;;  %vm10278_vm15 = vmmov %vm10265_vm0 }
  0xfc   :  { %v1058_v28 = vadd.f32 %v1057_v25, %v1056_v8  ;;  %v477_v31 = vand.u32 2147483647, %v253_v58  ;;  %v493_v1 = vand.u32 2147483647, %v269_v55  ;;  %v6870_v63 = vand.u32 2147483647, %v285_v5  ;;  %vm10287_vm10 = vmmov %vm10265_vm0 }
  0xfd   :  { %v1266_v7 = vadd.f32 %v1265_v38, %v1264_v27  ;;  %v3149_v19 = vld [vmem:[#allocation2 + $0xb8] sm:$0xff]  ;;  %v6872_v21 = vand.u32 2147483647, %v301_v49  ;;  %v573_v14 = vmul.f32 %v349_v0, %v349_v0  ;;  %v653_v6 = vmul.f32 %v429_v29, %v429_v29  ;;  %vm10289_vm2 = vmmov %vm10265_vm0 }
  0xfe   :  { %v1059_v24 = vrot.slane %v1058_v28, 1  ;;  %3501 = vmatmul.mubr.f32.gmra.mxu0 %v3149_v19  ;;  %v669_v26 = vmul.f32 %v445_v54, %v445_v54  ;;  %v589_v12 = vmul.f32 %v365_v46, %v365_v46  ;;  %v605_v39 = vmul.f32 %v6862_v36, %v6862_v36  ;;  %vm10290_vm3 = vmmov %vm10265_vm0 }
  0xff   :  { %v1267_v59 = vrot.slane %v1266_v7, 1  ;;  %v621_v9 = vmul.f32 %v6866_v33, %v6866_v33  ;;  %v637_v20 = vmul.f32 %v6868_v60, %v6868_v60  ;;  %v685_v42 = vmul.f32 %v461_v23, %v461_v23  ;;  %vm10302_vm8 = vmmov %vm10265_vm0 }
 0x100   :  { %v3151_v15 = vld [vmem:[#allocation2 + $0xa8] sm:$0xff]  ;;  %v1060_v10 = vadd.f32 %v1059_v24, %v1058_v28  ;;  %v701_v51 = vmul.f32 %v477_v31, %v477_v31  ;;  %v717_v30 = vmul.f32 %v493_v1, %v493_v1  ;;  %v733_v56 = vmul.f32 %v6870_v63, %v6870_v63 }
 0x101   :  { %3586 = vmatmul.mubr.f32.gmra.mxu1 %v3151_v15  ;;  %v1268_v32 = vadd.f32 %v1267_v59, %v1266_v7  ;;  %v765_v17 = vmul.f32 %v541_v43, %v317_v53  ;;  %v781_v61 = vmul.f32 %v557_v2, %v333_v45  ;;  %v749_v62 = vmul.f32 %v6872_v21, %v6872_v21 }
 0x102   :  { %v877_v3 = vmul.f32 %v653_v6, %v429_v29  ;;  %v893_v37 = vmul.f32 %v669_v26, %v445_v54  ;;  %v797_v47 = vmul.f32 %v573_v14, %v349_v0  ;;  %v813_v48 = vmul.f32 %v589_v12, %v365_v46 }
 0x103   :  { %v1437_v18 = vsel %vm10267_vm11, %v1268_v32, %v1060_v10  ;;  %v1074_v41 = vadd.f32 %v333_v45, %v317_v53  ;;  %v1282_v11 = vadd.f32 %v445_v54, %v429_v29  ;;  %v829_v50 = vmul.f32 %v605_v39, %v6862_v36  ;;  %vm10303_vm11 = vmmov %vm10265_vm0 }
 0x104   :  { %1469 = vst [vmem:[#allocation2 + $0x168] sm:$0x3] %v1437_v18  ;;  %v909_v13 = vmul.f32 %v685_v42, %v461_v23  ;;  %v1571_v4 = vadd.f32 %v557_v2, %v541_v43  ;;  %v1779_v8 = vadd.f32 %v669_v26, %v653_v6  ;;  %v845_v44 = vmul.f32 %v621_v9, %v6866_v33 }
 0x105   :  { %v1075_v16 = vadd.f32 %v1074_v41, %v349_v0  ;;  %v1283_v58 = vadd.f32 %v1282_v11, %v461_v23  ;;  %v2291_v55 = vadd.f32 %v781_v61, %v765_v17  ;;  %v925_v27 = vmul.f32 %v701_v51, %v477_v31  ;;  %v154_v11 = vld [vmem:[%s10214_s0 + $0x220] sm:$0xff] }
 0x106   :  { %v1572_v49 = vadd.f32 %v1571_v4, %v573_v14  ;;  %v1780_v25 = vadd.f32 %v1779_v8, %v685_v42  ;;  %v2499_v5 = vadd.f32 %v893_v37, %v877_v3  ;;  %v941_v38 = vmul.f32 %v717_v30, %v493_v1  ;;  %v138_v37 = vld [vmem:[%s10214_s0 + $0x1a0] sm:$0xff] }
 0x107   :  { %v1076_v28 = vadd.f32 %v1075_v16, %v365_v46  ;;  %v1284_v7 = vadd.f32 %v1283_v58, %v477_v31  ;;  %v2292_v19 = vadd.f32 %v2291_v55, %v797_v47  ;;  %v957_v53 = vmul.f32 %v733_v56, %v6870_v63  ;;  %v202_v47 = vld [vmem:[%s10214_s0 + $0x3a0] sm:$0xff] }
 0x108   :  { %v1573_v45 = vadd.f32 %v1572_v49, %v589_v12  ;;  %v1781_v29 = vadd.f32 %v1780_v25, %v701_v51  ;;  %v2500_v54 = vadd.f32 %v2499_v5, %v909_v13  ;;  %v1079_v0 = vsel %vm10268_vm13, %v6868_v60, 0.0  ;;  %v186_v13 = vld [vmem:[%s10214_s0 + $0x320] sm:$0x1]  ;;  %vm10304_vm13 = vmmov %vm10265_vm0 }
 0x109   :  { %v1077_v24 = vadd.f32 %v1076_v28, %v6862_v36  ;;  %v1285_v23 = vadd.f32 %v1284_v7, %v493_v1  ;;  %v2293_v43 = vadd.f32 %v2292_v19, %v813_v48  ;;  %v1287_v59 = vsel %vm10269_vm14, %v6872_v21, 0.0  ;;  %v234_v4 = vld [vmem:[%s10214_s0 + $0x4a0] sm:$0xff]  ;;  %vm10305_vm14 = vmmov %vm10265_vm0 }
 0x10a   :  { %v1574_v14 = vadd.f32 %v1573_v45, %v605_v39  ;;  %v1782_v46 = vadd.f32 %v1781_v29, %v717_v30  ;;  %v2501_v31 = vadd.f32 %v2500_v54, %v925_v27  ;;  %v1552_v6 = vrot.slane %v6857_v40, 4  ;;  %v250_v8 = vld [vmem:[%s10214_s0 + $0x520] sm:$0xff] }
 0x10b   :  { %v3106_v2 = vld [vmem:[#allocation2 + $0x168] sm:$0xff]  ;;  %v1078_v26 = vadd.f32 %v1077_v24, %v6866_v33  ;;  %v1286_v15 = vadd.f32 %v1285_v23, %v6870_v63  ;;  %v2294_v36 = vadd.f32 %v2293_v43, %v829_v50  ;;  %v1576_v12 = vsel %vm10270_vm1, %v637_v20, 0.0  ;;  %v170_v50 = vld [vmem:[%s10214_s0 + $0x2a0] sm:$0xff]  ;;  %vm10306_vm1 = vmmov %vm10280_vm9 }
 0x10c   :  { %3655 = vmatprep.mubr.f32.mxu0 %v3106_v2  ;;  %v1575_v10 = vadd.f32 %v1574_v14, %v621_v9  ;;  %v1783_v1 = vadd.f32 %v1782_v46, %v733_v56  ;;  %v2502_v32 = vadd.f32 %v2501_v31, %v941_v38  ;;  %v1784_v17 = vsel %vm10271_vm5, %v749_v62, 0.0  ;;  %v90_v9 = vld [vmem:[%s10214_s0 + $0x20] sm:$0xff] }
 0x10d   :  { %v1080_v42 = vadd.f32 %v1079_v0, %v1078_v26  ;;  %v1288_v51 = vadd.f32 %v1287_v59, %v1286_v15  ;;  %v6898_v39 = vadd.f32 %v2294_v36, %v845_v44  ;;  %v861_v30 = vmul.f32 %v637_v20, %v6868_v60  ;;  %v106_v56 = vld [vmem:[%s10214_s0 + $0xa0] sm:$0xff] }
 0x10e   :  { %v973_v61 = vmul.f32 %v749_v62, %v6872_v21  ;;  %v6902_v18 = vadd.f32 %v2502_v32, %v957_v53  ;;  %v6912_v3 = vsel %vm10274_vm6, %v6839_v57, 0.0  ;;  %v6916_v60 = vsel %vm10275_vm7, %v6842_v34, 0.0  ;;  %v122_v62 = vld [vmem:[%s10214_s0 + $0x120] sm:$0xff] }
 0x10f   :  { %10272 = vst [vmem:[#allocation9_spill] sm:$0xff] %v6898_v39  ;;  %v1081_v33 = vrot.slane %v1080_v42, 4  ;;  %v1289_v63 = vrot.slane %v1288_v51, 4  ;;  %v1577_v21 = vadd.f32 %v1576_v12, %v1575_v10  ;;  %v1785_v20 = vadd.f32 %v1784_v17, %v1783_v1  ;;  %v266_v58 = vld [vmem:[%s10214_s0 + $0x5a0] sm:$0xff] }
 0x110   :  { %10273 = vst [vmem:[#allocation10_spill] sm:$0xff] %v6902_v18  ;;  %v6928_v57 = vadd.f32 %v1552_v6, %v6857_v40  ;;  %v1760_v34 = vrot.slane %v6864_v35, 4  ;;  %v218_v40 = vld [vmem:[%s10214_s0 + $0x420] sm:$0xff]  ;;  %v6950_v44 = vsel %vm10276_vm12, %v861_v30, 0.0  ;;  %v6953_v16 = vsel %vm10278_vm15, %v973_v61, 0.0  ;;  %vm10307_vm12 = vmmov %vm10306_vm1 }
 0x111   :  { %v1082_v48 = vadd.f32 %v1081_v33, %v1080_v42  ;;  %v1290_v41 = vadd.f32 %v1289_v63, %v1288_v51  ;;  %10277 = vst [vmem:[#allocation11_spill] sm:$0xff] %v6950_v44  ;;  %10279 = vst [vmem:[#allocation12_spill] sm:$0xff] %v6953_v16  ;;  %v282_v55 = vld [vmem:[%s10214_s0 + $0x620] sm:$0xff]  ;;  %v314_v27 = vand.u32 2147483647, %v90_v9  ;;  %v1578_v7 = vrot.slane %v1577_v21, 4 }
 0x112   :  { %v330_v49 = vand.u32 2147483647, %v106_v56  ;;  %v346_v38 = vand.u32 2147483647, %v122_v62  ;;  %v362_v28 = vand.u32 2147483647, %v138_v37  ;;  %v6967_v43 = vadd.f32 %v1760_v34, %v6864_v35 }
 0x113   :  { %v1083_v25 = vrot.slane %v1082_v48, 2  ;;  %v1291_v5 = vrot.slane %v1290_v41, 2  ;;  %v1786_v19 = vrot.slane %v1785_v20, 4  ;;  %v378_v53 = vand.u32 2147483647, %v154_v11 }
 0x114   :  { %v6961_v45 = vand.u32 2147483647, %v170_v50  ;;  %v298_v24 = vld [vmem:[%s10214_s0 + $0x6a0] sm:$0x1]  ;;  %v410_v0 = vand.u32 2147483647, %v186_v13  ;;  %v6977_v15 = vadd.f32 %v1578_v7, %v1577_v21  ;;  %v538_v12 = vmul.f32 %v314_v27, %v314_v27 }
 0x115   :  { %v1084_v29 = vadd.f32 %v1083_v25, %v1082_v48  ;;  %v1292_v54 = vadd.f32 %v1291_v5, %v1290_v41  ;;  %v426_v23 = vand.u32 2147483647, %v202_v47  ;;  %v442_v2 = vand.u32 2147483647, %v218_v40 }
 0x116   :  { %v6969_v59 = vand.u32 2147483647, %v234_v4  ;;  %v6971_v14 = vand.u32 2147483647, %v250_v8  ;;  %v6973_v6 = vand.u32 2147483647, %v266_v58  ;;  %v6979_v36 = vadd.f32 %v1786_v19, %v1785_v20 }
 0x117   :  { %v1085_v46 = vrot.slane %v1084_v29, 1  ;;  %v1293_v31 = vrot.slane %v1292_v54, 1  ;;  %v6975_v26 = vand.u32 2147483647, %v282_v55  ;;  %v6981_v10 = vand.u32 2147483647, %v298_v24 }
 0x118   :  { %v554_v32 = vmul.f32 %v330_v49, %v330_v49  ;;  %v570_v42 = vmul.f32 %v346_v38, %v346_v38  ;;  %v586_v51 = vmul.f32 %v362_v28, %v362_v28  ;;  %v602_v17 = vmul.f32 %v378_v53, %v378_v53 }
 0x119   :  { %v1086_v35 = vadd.f32 %v1085_v46, %v1084_v29  ;;  %v1294_v1 = vadd.f32 %v1293_v31, %v1292_v54  ;;  %v6985_v30 = vmul.f32 %v6961_v45, %v6961_v45  ;;  %v634_v61 = vmul.f32 %v410_v0, %v410_v0  ;;  %v92_v54 = vld [vmem:[%s10214_s0 + $0x30] sm:$0xff] }
 0x11a   :  { %v650_v63 = vmul.f32 %v426_v23, %v426_v23  ;;  %v666_v9 = vmul.f32 %v442_v2, %v442_v2  ;;  %v1035_v56 = vadd.f32 %v330_v49, %v314_v27  ;;  %v6990_v21 = vmul.f32 %v6969_v59, %v6969_v59 }
 0x11b   :  { %v1439_v33 = vsel %vm10280_vm9, %v1294_v1, %v1086_v35  ;;  %v6994_v20 = vmul.f32 %v6971_v14, %v6971_v14  ;;  %v1243_v62 = vadd.f32 %v442_v2, %v426_v23  ;;  %v1532_v37 = vadd.f32 %v554_v32, %v538_v12  ;;  %v140_v35 = vld [vmem:[%s10214_s0 + $0x1b0] sm:$0xff] }
 0x11c   :  { %1471 = vst [vmem:[#allocation2 + $0x48] sm:$0x3] %v1439_v33  ;;  %v6998_v47 = vmul.f32 %v6973_v6, %v6973_v6  ;;  %v7002_v34 = vmul.f32 %v6975_v26, %v6975_v26  ;;  %v1036_v48 = vadd.f32 %v1035_v56, %v346_v38  ;;  %v1740_v41 = vadd.f32 %v666_v9, %v650_v63  ;;  %v156_v1 = vld [vmem:[%s10214_s0 + $0x230] sm:$0xff] }
 0x11d   :  { %v7006_v11 = vmul.f32 %v6981_v10, %v6981_v10  ;;  %v7008_v50 = vmul.f32 %v538_v12, %v314_v27  ;;  %v1244_v13 = vadd.f32 %v1243_v62, %v6969_v59  ;;  %v1533_v40 = vadd.f32 %v1532_v37, %v570_v42  ;;  %v188_v56 = vld [vmem:[%s10214_s0 + $0x330] sm:$0x1] }
 0x11e   :  { %v7011_v4 = vmul.f32 %v554_v32, %v330_v49  ;;  %v7013_v8 = vmul.f32 %v570_v42, %v346_v38  ;;  %v1037_v58 = vadd.f32 %v1036_v48, %v362_v28  ;;  %v1741_v55 = vadd.f32 %v1740_v41, %v6990_v21  ;;  %v268_v37 = vld [vmem:[%s10214_s0 + $0x5b0] sm:$0xff] }
 0x11f   :  { %v7016_v25 = vmul.f32 %v586_v51, %v362_v28  ;;  %v7018_v5 = vmul.f32 %v602_v17, %v378_v53  ;;  %v1245_v7 = vadd.f32 %v1244_v13, %v6971_v14  ;;  %v1534_v19 = vadd.f32 %v1533_v40, %v586_v51  ;;  %v108_v28 = vld [vmem:[%s10214_s0 + $0xb0] sm:$0xff] }
 0x120   :  { %10281 = vst [vmem:[#allocation13_spill] sm:$0xff] %v7013_v8  ;;  %v7023_v27 = vmul.f32 %v6985_v30, %v6961_v45  ;;  %v7025_v29 = vmul.f32 %v634_v61, %v410_v0  ;;  %v1038_v49 = vadd.f32 %v1037_v58, %v378_v53  ;;  %v1742_v38 = vadd.f32 %v1741_v55, %v6994_v20  ;;  %v124_v53 = vld [vmem:[%s10214_s0 + $0x130] sm:$0xff] }
 0x121   :  { %10282 = vst [vmem:[#allocation14_spill] sm:$0xff] %v7016_v25  ;;  %10283 = vst [vmem:[#allocation15_spill] sm:$0xff] %v7018_v5  ;;  %v7034_v24 = vmul.f32 %v650_v63, %v426_v23  ;;  %v1040_v46 = vsel %vm10287_vm10, %v410_v0, 0.0  ;;  %v1246_v31 = vadd.f32 %v1245_v7, %v6973_v6  ;;  %v1535_v12 = vadd.f32 %v1534_v19, %v602_v17  ;;  %v204_v23 = vld [vmem:[%s10214_s0 + $0x3b0] sm:$0xff] }
 0x122   :  { %10284 = vst [vmem:[#allocation16_spill] sm:$0xff] %v7023_v27  ;;  %10285 = vst [vmem:[#allocation17_spill] sm:$0xff] %v7025_v29  ;;  %v220_v0 = vld [vmem:[%s10214_s0 + $0x430] sm:$0xff]  ;;  %v7053_v42 = vmul.f32 %v666_v9, %v442_v2  ;;  %v1039_v51 = vadd.f32 %v1038_v49, %v6961_v45  ;;  %v1248_v17 = vsel %vm10289_vm2, %v6981_v10, 0.0  ;;  %v1743_v33 = vadd.f32 %v1742_v38, %v6998_v47 }
 0x123   :  { %10286 = vst [vmem:[#allocation18_spill] sm:$0xff] %v7034_v24  ;;  %v3108_v32 = vld [vmem:[#allocation2 + $0x48] sm:$0xff]  ;;  %v172_v63 = vld [vmem:[%s10214_s0 + $0x2b0] sm:$0xff]  ;;  %v1247_v9 = vadd.f32 %v1246_v31, %v6975_v26  ;;  %v1537_v62 = vsel %vm10290_vm3, %v634_v61, 0.0  ;;  %v7079_v41 = vand.u32 2147483647, %v92_v54  ;;  %v1536_v19 = vadd.f32 %v1535_v12, %v6985_v30  ;;  %vm10309_vm2 = vmmov %vm10306_vm1 }
 0x124   :  { %10288 = vst [vmem:[#allocation19_spill] sm:$0xff] %v7053_v42  ;;  %v236_v2 = vld [vmem:[%s10214_s0 + $0x4b0] sm:$0xff]  ;;  %3740 = vmatprep.mubr.f32.mxu1 %v3108_v32  ;;  %v7081_v13 = vand.u32 2147483647, %v108_v28  ;;  %v1041_v40 = vadd.f32 %v1040_v46, %v1039_v51  ;;  %v7083_v58 = vand.u32 2147483647, %v124_v53  ;;  %v1744_v46 = vadd.f32 %v1743_v33, %v7002_v34 }
 0x125   :  { %v252_v45 = vld [vmem:[%s10214_s0 + $0x530] sm:$0xff]  ;;  %v7085_v55 = vand.u32 2147483647, %v140_v35  ;;  %v7087_v7 = vand.u32 2147483647, %v156_v1  ;;  %v1249_v61 = vadd.f32 %v1248_v17, %v1247_v9  ;;  %v1745_v1 = vsel %vm10265_vm0, %v7006_v11, 0.0 }
 0x126   :  { %v284_v48 = vld [vmem:[%s10214_s0 + $0x630] sm:$0xff]  ;;  %v7093_v38 = vand.u32 2147483647, %v172_v63  ;;  %v7095_v54 = vand.u32 2147483647, %v188_v56  ;;  %v1042_v28 = vrot.slane %v1041_v40, 4  ;;  %v7120_v56 = vmul.f32 %v7081_v13, %v7081_v13 }
 0x127   :  { %v300_v49 = vld [vmem:[%s10214_s0 + $0x6b0] sm:$0x1]  ;;  %v7098_v31 = vand.u32 2147483647, %v204_v23  ;;  %v7100_v53 = vand.u32 2147483647, %v220_v0  ;;  %v1538_v23 = vadd.f32 %v1537_v62, %v1536_v19  ;;  %v7116_v0 = vmul.f32 %v7079_v41, %v7079_v41 }
 0x128   :  { %10291 = vst [vmem:[#allocation20_spill] sm:$0xff] %v7095_v54  ;;  %v1250_v35 = vrot.slane %v1249_v61, 4  ;;  %v7104_v30 = vand.u32 2147483647, %v236_v2  ;;  %v7106_v12 = vand.u32 2147483647, %v252_v45  ;;  %v1043_v32 = vadd.f32 %v1042_v28, %v1041_v40 }
 0x129   :  { %10292 = vst [vmem:[#allocation21_spill] sm:$0xff] %v7098_v31  ;;  %10293 = vst [vmem:[#allocation22_spill] sm:$0xff] %v7100_v53  ;;  %v7108_v51 = vand.u32 2147483647, %v268_v37  ;;  %v7110_v17 = vand.u32 2147483647, %v284_v48  ;;  %v1746_v45 = vadd.f32 %v1745_v1, %v1744_v46  ;;  %v7124_v9 = vmul.f32 %v7083_v58, %v7083_v58 }
 0x12a   :  { %10294 = vst [vmem:[#allocation23_spill] sm:$0xff] %v7104_v30  ;;  %v7112_v63 = vand.u32 2147483647, %v300_v49  ;;  %v1251_v33 = vadd.f32 %v1250_v35, %v1249_v61  ;;  %v1044_v2 = vrot.slane %v1043_v32, 2  ;;  %v7128_v37 = vmul.f32 %v7085_v55, %v7085_v55 }
 0x12b   :  { %10295 = vst [vmem:[#allocation24_spill] sm:$0xff] %v7110_v17  ;;  %v7132_v62 = vmul.f32 %v7087_v7, %v7087_v7  ;;  %v7136_v40 = vmul.f32 %v7093_v38, %v7093_v38  ;;  %v7140_v61 = vmul.f32 %v7095_v54, %v7095_v54  ;;  %v7144_v49 = vmul.f32 %v7098_v31, %v7098_v31 }
 0x12c   :  { %10296 = vst [vmem:[#allocation25_spill] sm:$0xff] %v7112_v63  ;;  %v1252_v48 = vrot.slane %v1251_v33, 2  ;;  %v1045_v19 = vadd.f32 %v1044_v2, %v1043_v32  ;;  %v7148_v28 = vmul.f32 %v7100_v53, %v7100_v53  ;;  %v7152_v46 = vmul.f32 %v7104_v30, %v7104_v30 }
 0x12d   :  { %10297 = vst [vmem:[#allocation26_spill] sm:$0xff] %v7140_v61  ;;  %v7156_v1 = vmul.f32 %v7106_v12, %v7106_v12  ;;  %v7160_v32 = vmul.f32 %v7108_v51, %v7108_v51  ;;  %v7164_v2 = vmul.f32 %v7110_v17, %v7110_v17  ;;  %v7168_v16 = vmul.f32 %v7112_v63, %v7112_v63 }
 0x12e   :  { %10298 = vst [vmem:[#allocation27_spill] sm:$0xff] %v7148_v28  ;;  %10299 = vst [vmem:[#allocation28_spill] sm:$0xff] %v7152_v46  ;;  %v1253_v35 = vadd.f32 %v1252_v48, %v1251_v33  ;;  %v1046_v27 = vrot.slane %v1045_v19, 1  ;;  %v1061_v33 = vadd.f32 %v7081_v13, %v7079_v41  ;;  %v1066_v48 = vsel %vm10302_vm8, %v7095_v54, 0.0 }
 0x12f   :  { %10300 = vst [vmem:[#allocation29_spill] sm:$0xff] %v7156_v1  ;;  %10301 = vst [vmem:[#allocation30_spill] sm:$0xff] %v7168_v16  ;;  %v1269_v44 = vadd.f32 %v7100_v53, %v7098_v31  ;;  %v1274_v39 = vsel %vm10303_vm11, %v7112_v63, 0.0  ;;  %v1558_v29 = vadd.f32 %v7120_v56, %v7116_v0  ;;  %v1563_v24 = vsel %vm10304_vm13, %v7140_v61, 0.0 }
 0x130   :  { %v1254_v18 = vrot.slane %v1253_v35, 1  ;;  %v1047_v5 = vadd.f32 %v1046_v27, %v1045_v19  ;;  %v1062_v42 = vadd.f32 %v1061_v33, %v7083_v58  ;;  %v1766_v25 = vadd.f32 %v7148_v28, %v7144_v49 }
 0x131   :  { %v1270_v8 = vadd.f32 %v1269_v44, %v7104_v30  ;;  %v1559_v53 = vadd.f32 %v1558_v29, %v7124_v9  ;;  %v1771_v63 = vsel %vm10305_vm14, %v7168_v16, 0.0  ;;  %v1554_v19 = vrot.slane %v6928_v57, 2 }
 0x132   :  { %v1255_v54 = vadd.f32 %v1254_v18, %v1253_v35  ;;  %v1063_v31 = vadd.f32 %v1062_v42, %v7085_v55  ;;  %v1767_v27 = vadd.f32 %v1766_v25, %v7152_v46  ;;  %v1762_v33 = vrot.slane %v6967_v43, 2 }
 0x133   :  { %v1271_v28 = vadd.f32 %v1270_v8, %v7106_v12  ;;  %v1560_v18 = vadd.f32 %v1559_v53, %v7128_v37  ;;  %v1539_v44 = vrot.slane %v1538_v23, 4  ;;  %v1555_v42 = vadd.f32 %v1554_v19, %v6928_v57 }
 0x134   :  { %v1436_v61 = vsel %vm10306_vm1, %v1255_v54, %v1047_v5  ;;  %v1064_v29 = vadd.f32 %v1063_v31, %v7087_v7  ;;  %v1768_v35 = vadd.f32 %v1767_v27, %v7156_v1  ;;  %v1763_v25 = vadd.f32 %v1762_v33, %v6967_v43 }
 0x135   :  { %1468 = vst [vmem:[#allocation2 + $0x50] sm:$0x3] %v1436_v61  ;;  %v1272_v16 = vadd.f32 %v1271_v28, %v7108_v51  ;;  %v1561_v46 = vadd.f32 %v1560_v18, %v7132_v62  ;;  %v1540_v30 = vadd.f32 %v1539_v44, %v1538_v23  ;;  %v1747_v5 = vrot.slane %v1746_v45, 4 }
 0x136   :  { %v1065_v8 = vadd.f32 %v1064_v29, %v7093_v38  ;;  %v1769_v54 = vadd.f32 %v1768_v35, %v7160_v32  ;;  %v1556_v53 = vrot.slane %v1555_v42, 1  ;;  %v1764_v61 = vrot.slane %v1763_v25, 1 }
 0x137   :  { %v1273_v31 = vadd.f32 %v1272_v16, %v7110_v17  ;;  %v1562_v27 = vadd.f32 %v1561_v46, %v7136_v40  ;;  %v1541_v1 = vrot.slane %v1540_v30, 2  ;;  %v1748_v57 = vadd.f32 %v1747_v5, %v1746_v45  ;;  %v3308_v45 = vld [vmem:[%s10215_s1 + $0x478] sm:$0xff] }
 0x138   :  { %v1067_v19 = vadd.f32 %v1066_v48, %v1065_v8  ;;  %v1770_v43 = vadd.f32 %v1769_v54, %v7164_v2  ;;  %v7207_v28 = vadd.f32 %v1556_v53, %v1555_v42  ;;  %v7209_v33 = vadd.f32 %v1764_v61, %v1763_v25  ;;  %v3321_v53 = vld [vmem:[%s10215_s1 + $0x4e0] sm:$0xff] }
 0x139   :  { %v7213_v23 = vmul.f32 %v6990_v21, %v6969_v59  ;;  %v1275_v18 = vadd.f32 %v1274_v39, %v1273_v31  ;;  %v1542_v44 = vadd.f32 %v1541_v1, %v1540_v30  ;;  %v1749_v29 = vrot.slane %v1748_v57, 2 }
 0x13a   :  { %v1068_v35 = vrot.slane %v1067_v19, 4  ;;  %v1564_v16 = vadd.f32 %v1563_v24, %v1562_v27  ;;  %v1772_v17 = vadd.f32 %v1771_v63, %v1770_v43  ;;  %5215 = vrsqrt.f32 %v7207_v28  ;;  %v3323_v24 = vld [vmem:[%s10215_s1 + $0x4f0] sm:$0xff] }
 0x13b   :  { %v7221_v46 = vmul.f32 %v6994_v20, %v6971_v14  ;;  %v7225_v59 = vmul.f32 %v6998_v47, %v6973_v6  ;;  %v1276_v21 = vrot.slane %v1275_v18, 4  ;;  %5217 = vrsqrt.f32 %v7209_v33  ;;  %v3307_v47 = vld [vmem:[%s10215_s1 + $0x470] sm:$0xff] }
 0x13c   :  { %v3105_v39 = vld [vmem:[#allocation2 + $0x50] sm:$0xff]  ;;  %v7233_v30 = vmul.f32 %v7002_v34, %v6975_v26  ;;  %v7237_v14 = vmul.f32 %v7006_v11, %v6981_v10  ;;  %v7241_v6 = vmul.f32 %v7116_v0, %v7079_v41  ;;  %v1069_v20 = vadd.f32 %v1068_v35, %v1067_v19  ;;  %v3322_v26 = vld [vmem:[%s10215_s1 + $0x4e8] sm:$0xff]  ;;  %v3305_v19 = vld [vmem:[%s10215_s1 + $0x460] sm:$0xff] }
 0x13d   :  { %3656 = vmatmul.mubr.f32.vlgmr.msra.gmra.mxu0 %v3105_v39  ;;  %v1277_v63 = vadd.f32 %v1276_v21, %v1275_v18  ;;  %v1543_v34 = vrot.slane %v1542_v44, 1  ;;  %v1750_v1 = vadd.f32 %v1749_v29, %v1748_v57  ;;  %v1580_v10 = vrot.slane %v6977_v15, 2  ;;  %v3306_v41 = vld [vmem:[%s10215_s1 + $0x468] sm:$0xff]  ;;  %v3304_v35 = vld [vmem:[%s10215_s1 + $0x458] sm:$0xff] }
 0x13e   :  { %4389 = vmatpush3.msra.mxu0 %v3308_v45  ;;  %v1070_v11 = vrot.slane %v1069_v20, 2  ;;  %v1788_v0 = vrot.slane %v6979_v36, 2  ;;  %v1565_v48 = vrot.slane %v1564_v16, 4  ;;  %v1773_v42 = vrot.slane %v1772_v17, 4 }
 0x13f   :  { %4390 = vmatprep.subr.mxu0 %v3323_v24  ;;  %v1278_v25 = vrot.slane %v1277_v63, 2  ;;  %v7254_v5 = vadd.f32 %v1543_v34, %v1542_v44  ;;  %v1751_v8 = vrot.slane %v1750_v1, 1  ;;  %v1581_v54 = vadd.f32 %v1580_v10, %v6977_v15  ;;  %v3318_v24 = vld [vmem:[%s10215_s1 + $0x4c8] sm:$0xff] }
 0x140   :  { %4391 = vmatpush3.msra.mxu0 %v3307_v47  ;;  %v7262_v61 = vmul.f32 %v7120_v56, %v7081_v13  ;;  %v1071_v31 = vadd.f32 %v1070_v11, %v1069_v20  ;;  %v1789_v27 = vadd.f32 %v1788_v0, %v6979_v36  ;;  %v1566_v57 = vadd.f32 %v1565_v48, %v1564_v16  ;;  %v3320_v13 = vld [vmem:[%s10215_s1 + $0x4d8] sm:$0xff]  ;;  %v3301_v0 = vld [vmem:[%s10215_s1 + $0x440] sm:$0xff] }
 0x141   :  { %4392 = vmatprep.subr.mxu0 %v3322_v26  ;;  %v1279_v43 = vadd.f32 %v1278_v25, %v1277_v63  ;;  %v7268_v18 = vadd.f32 %v1751_v8, %v1750_v1  ;;  %5219 = vrsqrt.f32 %v7254_v5  ;;  %v1774_v15 = vadd.f32 %v1773_v42, %v1772_v17  ;;  %v3302_v63 = vld [vmem:[%s10215_s1 + $0x448] sm:$0xff]  ;;  %v3317_v1 = vld [vmem:[%s10215_s1 + $0x4c0] sm:$0xff]  ;;  %v3316_v8 = vld [vmem:[%s10215_s1 + $0x4b8] sm:$0xff] }
 0x142   :  { %4393 = vmatpush3.msra.mxu0 %v3306_v41  ;;  %v7276_v56 = vmul.f32 %v7124_v9, %v7083_v58  ;;  %v7280_v36 = vmul.f32 %v7128_v37, %v7085_v55  ;;  %v1072_v44 = vrot.slane %v1071_v31, 1  ;;  %v1582_v29 = vrot.slane %v1581_v54, 1  ;;  %v3319_v58 = vld [vmem:[%s10215_s1 + $0x4d0] sm:$0xff] }
 0x143   :  { %4394 = vmatprep.subr.mxu0 %v3321_v53  ;;  %v7287_v17 = vmul.f32 %v7132_v62, %v7087_v7  ;;  %v1280_v16 = vrot.slane %v1279_v43, 1  ;;  %vm1933_vm5 = vcmp.eq.f32.partialorder %v7207_v28, inf  ;;  %5221 = vrsqrt.f32 %v7268_v18  ;;  %v3303_v7 = vld [vmem:[%s10215_s1 + $0x450] sm:$0xff] }
 0x144   :  { %4395 = vmatpush3.msra.mxu0 %v3305_v19  ;;  %v1073_v55 = vadd.f32 %v1072_v44, %v1071_v31  ;;  %vm1935_vm6 = vcmp.eq.f32.partialorder %v7207_v28, 0.0  ;;  %v7295_v9 = vadd.f32 %v1582_v29, %v1581_v54  ;;  %v1790_v37 = vrot.slane %v1789_v27, 1  ;;  %v3299_v29 = vld [vmem:[%s10215_s1 + $0x430] sm:$0xff] }
 0x145   :  { %4396 = vmatprep.subr.mxu0 %v3320_v13  ;;  %v1281_v62 = vadd.f32 %v1280_v16, %v1279_v43  ;;  %v1567_v45 = vrot.slane %v1566_v57, 2  ;;  %v1775_v39 = vrot.slane %v1774_v15, 2  ;;  %v2271_v21 = vadd.f32 %v6912_v3, %v6802_v22 }
 0x146   :  { %4397 = vmatpush3.msra.mxu0 %v3304_v35  ;;  %v1936_v20 = vand.u32 2147483648, %v7207_v28  ;;  %vm2045_vm7 = vcmp.eq.f32.partialorder %v7209_v33, inf  ;;  %v7307_v47 = vadd.f32 %v1790_v37, %v1789_v27  ;;  %5223 = vrsqrt.f32 %v7295_v9 }
 0x147   :  { %4398 = vmatprep.subr.mxu0 %v3319_v58  ;;  %v5216_v26 = vpop.eup %5215  ;;  %v1438_v22 = vsel %vm10307_vm12, %v1281_v62, %v1073_v55  ;;  %vm2047_vm15 = vcmp.eq.f32.partialorder %v7209_v33, 0.0  ;;  %v1568_v3 = vadd.f32 %v1567_v45, %v1566_v57  ;;  %v1776_v34 = vadd.f32 %v1775_v39, %v1774_v15  ;;  %v3300_v57 = vld [vmem:[%s10215_s1 + $0x438] sm:$0xff]  ;;  %v3355_v45 = vld [vmem:[%s10215_s1 + $0x5f0] sm:$0xff]  ;;  %vm10321_vm12 = vmmov %vm10306_vm1 }
 0x148   :  { %4399 = vmatpush3.msra.mxu0 %v3303_v7  ;;  %v5218_v10 = vpop.eup %5217  ;;  %1470 = vst [vmem:[#allocation2 + $0x130] sm:$0x3] %v1438_v22  ;;  %v1932_v11 = vmul.f32 %v5216_v26, %v7207_v28  ;;  %v2048_v41 = vand.u32 2147483648, %v7209_v33  ;;  %vm1926_vm9 = vcmp.eq.f32.partialorder %v7254_v5, inf  ;;  %5225 = vrsqrt.f32 %v7307_v47  ;;  %v3340_v55 = vld [vmem:[%s10215_s1 + $0x578] sm:$0xff]  ;;  %v3298_v7 = vld [vmem:[%s10215_s1 + $0x428] sm:$0xff] }
 0x149   :  { %4400 = vmatprep.subr.mxu0 %v3318_v24  ;;  %v2044_v48 = vmul.f32 %v5218_v10, %v7209_v33  ;;  %vm1928_vm10 = vcmp.eq.f32.partialorder %v7254_v5, 0.0  ;;  %v1569_v42 = vrot.slane %v1568_v3, 1  ;;  %v1777_v25 = vrot.slane %v1776_v34, 1  ;;  %v10310_v22 = vld [vmem:[#allocation14_spill] sm:$0xff] }
 0x14a   :  { %4401 = vmatpush3.msra.mxu0 %v3302_v63  ;;  %v1934_v54 = vsel %vm1933_vm5, %v7207_v28, %v1932_v11  ;;  %v2272_v53 = vrot.slane %v2271_v21, 4  ;;  %v2479_v31 = vadd.f32 %v6916_v60, %v6805_v52  ;;  %v2252_v27 = vadd.f32 %v7011_v4, %v7008_v50  ;;  %v3315_v52 = vld [vmem:[%s10215_s1 + $0x4b0] sm:$0xff]  ;;  %v10308_v28 = vld [vmem:[#allocation13_spill] sm:$0xff] }
 0x14b   :  { %4402 = vmatprep.subr.mxu0 %v3317_v1  ;;  %v1937_v19 = vsel %vm1935_vm6, %v1936_v20, %v1934_v54  ;;  %v2046_v43 = vsel %vm2045_vm7, %v7209_v33, %v2044_v48  ;;  %v7345_v15 = vadd.f32 %v1569_v42, %v1568_v3  ;;  %v7347_v13 = vadd.f32 %v1777_v25, %v1776_v34  ;;  %v3314_v33 = vld [vmem:[%s10215_s1 + $0x4a8] sm:$0xff]  ;;  %v3339_v63 = vld [vmem:[%s10215_s1 + $0x570] sm:$0xff]  ;;  %v3313_v11 = vld [vmem:[%s10215_s1 + $0x4a0] sm:$0xff] }
 0x14c   :  { %4403 = vmatpush3.msra.mxu0 %v3301_v0  ;;  %v2049_v60 = vsel %vm2047_vm15, %v2048_v41, %v2046_v43  ;;  %v2273_v50 = vadd.f32 %v2272_v53, %v2271_v21  ;;  %v2480_v4 = vrot.slane %v2479_v31, 4  ;;  %v2253_v44 = vadd.f32 %v2252_v27, %v10308_v28  ;;  %v10311_v34 = vld [vmem:[#allocation18_spill] sm:$0xff]  ;;  %v10312_v1 = vld [vmem:[#allocation19_spill] sm:$0xff]  ;;  %v10314_v27 = vld [vmem:[#allocation17_spill] sm:$0xff] }
 0x14d   :  { %4404 = vmatprep.subr.mxu0 %v3316_v8  ;;  %v2157_v35 = vsel %vm10309_vm2, %v2049_v60, %v1937_v19  ;;  %v1929_v16 = vand.u32 2147483648, %v7254_v5  ;;  %vm2038_vm3 = vcmp.eq.f32.partialorder %v7268_v18, inf  ;;  %5227 = vrsqrt.f32 %v7345_v15  ;;  %v3354_v41 = vld [vmem:[%s10215_s1 + $0x5e8] sm:$0xff]  ;;  %v10313_v53 = vld [vmem:[#allocation15_spill] sm:$0xff]  ;;  %v3297_v60 = vld [vmem:[%s10215_s1 + $0x420] sm:$0xff] }
 0x14e   :  { %4405 = vmatpush3.msra.mxu0 %v3300_v57  ;;  %v5220_v58 = vpop.eup %5219  ;;  %2189 = vst [vmem:[#allocation2 + $0x1a8] sm:$0x3] %v2157_v35  ;;  %vm2040_vm0 = vcmp.eq.f32.partialorder %v7268_v18, 0.0  ;;  %v2041_v37 = vand.u32 2147483648, %v7268_v18  ;;  %vm1947_vm8 = vcmp.eq.f32.partialorder %v7295_v9, inf  ;;  %5229 = vrsqrt.f32 %v7347_v13  ;;  %v3338_v54 = vld [vmem:[%s10215_s1 + $0x568] sm:$0xff]  ;;  %vm10327_vm2 = vmmov %vm10306_vm1 }
 0x14f   :  { %4406 = vmatprep.subr.mxu0 %v3315_v52  ;;  %v3107_v62 = vld [vmem:[#allocation2 + $0x130] sm:$0xff]  ;;  %v1925_v39 = vmul.f32 %v5220_v58, %v7254_v5  ;;  %vm1949_vm11 = vcmp.eq.f32.partialorder %v7295_v9, 0.0  ;;  %v2274_v21 = vrot.slane %v2273_v50, 2  ;;  %v2481_v24 = vadd.f32 %v2480_v4, %v2479_v31  ;;  %v10315_v19 = vld [vmem:[#allocation9_spill] sm:$0xff]  ;;  %v10318_v35 = vld [vmem:[#allocation12_spill] sm:$0xff] }
 0x150   :  { %4407 = vmatpush3.msra.mxu0 %v3299_v29  ;;  %v5222_v20 = vpop.eup %5221  ;;  %3741 = vmatmul.mubr.f32.vlgmr.msra.gmra.mxu1 %v3107_v62  ;;  %v1950_v26 = vand.u32 2147483648, %v7295_v9  ;;  %vm2059_vm13 = vcmp.eq.f32.partialorder %v7307_v47, inf  ;;  %v2254_v3 = vadd.f32 %v2253_v44, %v10310_v22  ;;  %v2460_v10 = vadd.f32 %v10312_v1, %v10311_v34  ;;  %v10316_v43 = vld [vmem:[#allocation11_spill] sm:$0xff]  ;;  %v3353_v4 = vld [vmem:[%s10215_s1 + $0x5e0] sm:$0xff]  ;;  %v10317_v29 = vld [vmem:[#allocation10_spill] sm:$0xff] }
 0x151   :  { %4408 = vmatprep.subr.mxu0 %v3314_v33  ;;  %4433 = vmatpush3.msra.mxu1 %v3340_v55  ;;  %v1927_v0 = vsel %vm1926_vm9, %v7254_v5, %v1925_v39  ;;  %v2037_v48 = vmul.f32 %v5222_v20, %v7268_v18  ;;  %v2275_v42 = vadd.f32 %v2274_v21, %v2273_v50  ;;  %v2482_v25 = vrot.slane %v2481_v24, 2  ;;  %v3337_v55 = vld [vmem:[%s10215_s1 + $0x560] sm:$0xff]  ;;  %v3312_v39 = vld [vmem:[%s10215_s1 + $0x498] sm:$0xff] }
 0x152   :  { %4409 = vmatpush3.msra.mxu0 %v3298_v7  ;;  %4434 = vmatprep.subr.mxu1 %v3355_v45  ;;  %v1930_v8 = vsel %vm1928_vm10, %v1929_v16, %v1927_v0  ;;  %v2255_v31 = vadd.f32 %v2254_v3, %v10313_v53  ;;  %v2257_v57 = vsel %vm10305_vm14, %v10314_v27, 0.0  ;;  %v7408_v52 = vadd.f32 %v10316_v43, %v10315_v19  ;;  %v10319_v7 = vld [vmem:[#allocation16_spill] sm:$0xff]  ;;  %v3310_v53 = vld [vmem:[%s10215_s1 + $0x488] sm:$0xff]  ;;  %vm10324_vm10 = vmmov %vm10305_vm14 }
 0x153   :  { %v5224_v50 = vpop.eup %5223  ;;  %4435 = vmatpush3.msra.mxu1 %v3339_v63  ;;  %v2039_v5 = vsel %vm2038_vm3, %v7268_v18, %v2037_v48  ;;  %v2276_v28 = vrot.slane %v2275_v42, 1  ;;  %v2483_v44 = vadd.f32 %v2482_v25, %v2481_v24  ;;  %v7421_v16 = vadd.f32 %v10318_v35, %v10317_v29  ;;  %4410 = vmatprep.subr.mxu0 %v3313_v11  ;;  %v3352_v22 = vld [vmem:[%s10215_s1 + $0x5d8] sm:$0xff]  ;;  %v3311_v11 = vld [vmem:[%s10215_s1 + $0x490] sm:$0xff]  ;;  %v3294_v43 = vld [vmem:[%s10215_s1 + $0x408] sm:$0xff] }
 0x154   :  { %4436 = vmatprep.subr.mxu1 %v3354_v41  ;;  %v2042_v33 = vsel %vm2040_vm0, %v2041_v37, %v2039_v5  ;;  %v1946_v58 = vmul.f32 %v5224_v50, %v7295_v9  ;;  %v2256_v62 = vadd.f32 %v2255_v31, %v10319_v7  ;;  %v2461_v45 = vadd.f32 %v2460_v10, %v7213_v23  ;;  %v3296_v23 = vld [vmem:[%s10215_s1 + $0x418] sm:$0xff]  ;;  %v10320_v41 = vld [vmem:[#allocation21_spill] sm:$0xff]  ;;  %v3351_v25 = vld [vmem:[%s10215_s1 + $0x5d0] sm:$0xff] }
 0x155   :  { %v5226_v21 = vpop.eup %5225  ;;  %v3122_v24 = vld [vmem:[#allocation2 + $0x1a8] sm:$0xff]  ;;  %v2156_v20 = vsel %vm10306_vm1, %v2042_v33, %v1930_v8  ;;  %4437 = vmatpush3.msra.mxu1 %v3338_v54  ;;  %v2062_v18 = vand.u32 2147483648, %v7307_v47  ;;  %v7436_v37 = vadd.f32 %v2276_v28, %v2275_v42  ;;  %v2484_v63 = vrot.slane %v2483_v44, 1  ;;  %4411 = vmatpush3.msra.mxu0 %v3297_v60  ;;  %v3336_v10 = vld [vmem:[%s10215_s1 + $0x558] sm:$0xff]  ;;  %v3295_v8 = vld [vmem:[%s10215_s1 + $0x410] sm:$0xff] }
 0x156   :  { %3660 = vmatprep.mubr.f32.mxu0 %v3122_v24  ;;  %2188 = vst [vmem:[#allocation2 + $0x80] sm:$0x3] %v2156_v20  ;;  %v1948_v3 = vsel %vm1947_vm8, %v7295_v9, %v1946_v58  ;;  %v2058_v34 = vmul.f32 %v5226_v21, %v7307_v47  ;;  %vm2061_vm5 = vcmp.eq.f32.partialorder %v7307_v47, 0.0  ;;  %4438 = vmatprep.subr.mxu1 %v3353_v4  ;;  %vm1940_vm6 = vcmp.eq.f32.partialorder %v7345_v15, inf  ;;  %v3335_v54 = vld [vmem:[%s10215_s1 + $0x550] sm:$0xff]  ;;  %v3334_v4 = vld [vmem:[%s10215_s1 + $0x548] sm:$0xff]  ;;  %vm10331_vm3 = vmmov %vm10324_vm10 }
 0x157   :  { %v2258_v1 = vadd.f32 %v2257_v57, %v2256_v62  ;;  %v7457_v0 = vmul.f32 %v7144_v49, %v10320_v41  ;;  %v1951_v48 = vsel %vm1949_vm11, %v1950_v26, %v1948_v3  ;;  %4439 = vmatpush3.msra.mxu1 %v3337_v55  ;;  %v7462_v42 = vadd.f32 %v2484_v63, %v2483_v44  ;;  %v10322_v35 = vld [vmem:[#allocation22_spill] sm:$0xff]  ;;  %v10323_v33 = vld [vmem:[#allocation27_spill] sm:$0xff]  ;;  %v3349_v62 = vld [vmem:[%s10215_s1 + $0x5c0] sm:$0xff] }
 0x158   :  { %4412 = vmatprep.subr.mxu0 %v3312_v39  ;;  %v2060_v49 = vsel %vm2059_vm13, %v7307_v47, %v2058_v34  ;;  %vm1942_vm7 = vcmp.eq.f32.partialorder %v7345_v15, 0.0  ;;  %v7475_v9 = vand.u32 2147483647, %v7436_v37  ;;  %4440 = vmatprep.subr.mxu1 %v3352_v22  ;;  %v2462_v26 = vadd.f32 %v2461_v45, %v7221_v46  ;;  %v3350_v46 = vld [vmem:[%s10215_s1 + $0x5c8] sm:$0xff]  ;;  %v3309_v45 = vld [vmem:[%s10215_s1 + $0x480] sm:$0xff]  ;;  %v3348_v3 = vld [vmem:[%s10215_s1 + $0x5b8] sm:$0xff] }
 0x159   :  { %4413 = vmatpush3.msra.mxu0 %v3296_v23  ;;  %v2063_v31 = vsel %vm2061_vm5, %v2062_v18, %v2060_v49  ;;  %v7487_v27 = vand.u32 2147483647, %v7462_v42  ;;  %v2259_v57 = vrot.slane %v2258_v1, 4  ;;  %4441 = vmatpush3.msra.mxu1 %v3336_v10  ;;  %v2298_v19 = vrot.slane %v7408_v52, 4  ;;  %v3333_v18 = vld [vmem:[%s10215_s1 + $0x540] sm:$0xff]  ;;  %vm10335_vm8 = vmmov %vm10331_vm3 }
 0x15a   :  { %4414 = vmatprep.subr.mxu0 %v3311_v11  ;;  %v5228_v60 = vpop.eup %5227  ;;  %v2159_v47 = vsel %vm10321_vm12, %v2063_v31, %v1951_v48  ;;  %v1943_v50 = vand.u32 2147483648, %v7345_v15  ;;  %5231 = vlog2.f32 %v7475_v9  ;;  %v2506_v5 = vrot.slane %v7421_v16, 4  ;;  %4442 = vmatprep.subr.mxu1 %v3351_v25  ;;  %v3293_v63 = vld [vmem:[%s10215_s1 + $0x400] sm:$0xff]  ;;  %v3332_v11 = vld [vmem:[%s10215_s1 + $0x538] sm:$0xff] }
 0x15b   :  { %4415 = vmatpush3.msra.mxu0 %v3295_v8  ;;  %v5230_v28 = vpop.eup %5229  ;;  %2191 = vst [vmem:[#allocation2 + $0x28] sm:$0x3] %v2159_v47  ;;  %v1939_v44 = vmul.f32 %v5228_v60, %v7345_v15  ;;  %vm2052_vm15 = vcmp.eq.f32.partialorder %v7347_v13, inf  ;;  %v2055_v29 = vand.u32 2147483648, %v7347_v13  ;;  %5233 = vlog2.f32 %v7487_v27  ;;  %4443 = vmatpush3.msra.mxu1 %v3335_v54  ;;  %v10326_v41 = vld [vmem:[#allocation28_spill] sm:$0xff]  ;;  %v3330_v47 = vld [vmem:[%s10215_s1 + $0x528] sm:$0xff] }
 0x15c   :  { %4416 = vmatprep.subr.mxu0 %v3310_v53  ;;  %v892_v58 = vmul.f32 %v10323_v33, %v10322_v35  ;;  %v2051_v55 = vmul.f32 %v5230_v28, %v7347_v13  ;;  %vm2054_vm9 = vcmp.eq.f32.partialorder %v7347_v13, 0.0  ;;  %v2465_v7 = vsel %vm10324_vm10, %v7237_v14, 0.0  ;;  %4444 = vmatprep.subr.mxu1 %v3350_v46  ;;  %v3331_v53 = vld [vmem:[%s10215_s1 + $0x530] sm:$0xff] }
 0x15d   :  { %4417 = vmatpush3.msra.mxu0 %v3294_v43  ;;  %v3121_v39 = vld [vmem:[#allocation2 + $0x80] sm:$0xff]  ;;  %v1941_v21 = vsel %vm1940_vm6, %v7345_v15, %v1939_v44  ;;  %v2260_v24 = vadd.f32 %v2259_v57, %v2258_v1  ;;  %v2463_v20 = vadd.f32 %v2462_v26, %v7225_v59  ;;  %v2299_v14 = vadd.f32 %v2298_v19, %v7408_v52  ;;  %v3346_v19 = vld [vmem:[%s10215_s1 + $0x5a8] sm:$0xff]  ;;  %v7571_v28 = vld [vmem:[#allocation2 + $0x50] sm:$0x3] }
 0x15e   :  { %4445 = vmatpush3.msra.mxu1 %v3334_v4  ;;  %3661 = vmatmul.mubr.f32.gmra.mxu0 %v3121_v39  ;;  %v1944_v22 = vsel %vm1942_vm7, %v1943_v50, %v1941_v21  ;;  %v2053_v23 = vsel %vm2052_vm15, %v7347_v13, %v2051_v55  ;;  %v2507_v59 = vadd.f32 %v2506_v5, %v7421_v16  ;;  %v10325_v16 = vld [vmem:[#allocation23_spill] sm:$0xff]  ;;  %v7551_v13 = vld [vmem:[#allocation2 + $0x168] sm:$0x3]  ;;  %v3345_v44 = vld [vmem:[%s10215_s1 + $0x5a0] sm:$0xff]  ;;  %vm4655_vm0 = vcmp.lt.f32.partialorder %v7436_v37, 0.0 }
 0x15f   :  { %v2278_v52 = vadd.f32 %v7262_v61, %v7241_v6  ;;  %v2056_v34 = vsel %vm2054_vm9, %v2055_v29, %v2053_v23  ;;  %v2261_v1 = vrot.slane %v2260_v24, 2  ;;  %v2464_v15 = vadd.f32 %v2463_v20, %v7233_v30  ;;  %4446 = vmatprep.subr.mxu1 %v3349_v62  ;;  %4418 = vmatprep.subr.mxu0 %v3309_v45  ;;  %v3347_v30 = vld [vmem:[%s10215_s1 + $0x5b0] sm:$0xff]  ;;  %v10328_v50 = vld [vmem:[#allocation29_spill] sm:$0xff]  ;;  %v3344_v62 = vld [vmem:[%s10215_s1 + $0x598] sm:$0xff] }
 0x160   :  { %v2300_v10 = vrot.slane %v2299_v14, 2  ;;  %v908_v6 = vmul.f32 %v10326_v41, %v10325_v16  ;;  %v2158_v61 = vsel %vm10327_vm2, %v2056_v34, %v1944_v22  ;;  %v2508_v48 = vrot.slane %v2507_v59, 2  ;;  %4447 = vmatpush3.msra.mxu1 %v3333_v18  ;;  %4419 = vmatpush3.msra.mxu0 %v3293_v63  ;;  %v3328_v20 = vld [vmem:[%s10215_s1 + $0x518] sm:$0xff]  ;;  %vm10336_vm9 = vmmov %vm10327_vm2 }
 0x161   :  { %v2279_v25 = vadd.f32 %v2278_v52, %v7276_v56  ;;  %2190 = vst [vmem:[#allocation2 + $0x1b8] sm:$0x3] %v2158_v61  ;;  %v2262_v8 = vadd.f32 %v2261_v1, %v2260_v24  ;;  %v2466_v49 = vadd.f32 %v2465_v7, %v2464_v15  ;;  %v2486_v54 = vadd.f32 %v892_v58, %v7457_v0  ;;  %v3343_v52 = vld [vmem:[%s10215_s1 + $0x590] sm:$0xff]  ;;  %v3341_v61 = vld [vmem:[%s10215_s1 + $0x580] sm:$0xff] }
 0x162   :  { %v2301_v26 = vadd.f32 %v2300_v10, %v2299_v14  ;;  %4448 = vmatprep.subr.mxu1 %v3348_v3  ;;  %v3124_v56 = vld [vmem:[#allocation2 + $0x28] sm:$0xff]  ;;  %v2509_v31 = vadd.f32 %v2508_v48, %v2507_v59  ;;  %v2783_v0 = vsel %vm10232_vm4, %v7551_v13, 0.0  ;;  %v844_v29 = vmul.f32 %v7136_v40, %v7093_v38  ;;  %v10329_v38 = vld [vmem:[#allocation20_spill] sm:$0xff] }
 0x163   :  { %v2280_v57 = vadd.f32 %v2279_v25, %v7280_v36  ;;  %4449 = vmatpush3.msra.mxu1 %v3332_v11  ;;  %3745 = vmatprep.mubr.f32.mxu1 %v3124_v56  ;;  %v2263_v46 = vrot.slane %v2262_v8, 1  ;;  %v2467_v43 = vrot.slane %v2466_v49, 4  ;;  %v924_v36 = vmul.f32 %v10328_v50, %v7106_v12  ;;  %v3329_v12 = vld [vmem:[%s10215_s1 + $0x520] sm:$0xff]  ;;  %v10330_v40 = vld [vmem:[#allocation26_spill] sm:$0xff] }
 0x164   :  { %v2302_v60 = vrot.slane %v2301_v26, 1  ;;  %4450 = vmatprep.subr.mxu1 %v3347_v30  ;;  %v2510_v5 = vrot.slane %v2509_v31, 1  ;;  %v2487_v4 = vadd.f32 %v2486_v54, %v908_v6  ;;  %v2784_v7 = vrot.slane %v2783_v0, 4  ;;  %v3342_v11 = vld [vmem:[%s10215_s1 + $0x588] sm:$0xff]  ;;  %v10332_v48 = vld [vmem:[#allocation24_spill] sm:$0xff] }
 0x165   :  { %4451 = vmatpush3.msra.mxu1 %v3331_v53  ;;  %v7578_v35 = vadd.f32 %v2263_v46, %v2262_v8  ;;  %v2468_v33 = vadd.f32 %v2467_v43, %v2466_v49  ;;  %v2281_v58 = vadd.f32 %v2280_v57, %v7287_v17  ;;  %v860_v39 = vmul.f32 %v10330_v40, %v10329_v38  ;;  %v3326_v6 = vld [vmem:[%s10215_s1 + $0x508] sm:$0xff]  ;;  %v3325_v53 = vld [vmem:[%s10215_s1 + $0x500] sm:$0xff]  ;;  %v7642_v43 = vld [vmem:[#allocation2 + $0x130] sm:$0x3] }
 0x166   :  { %4452 = vmatprep.subr.mxu1 %v3346_v19  ;;  %v7584_v55 = vadd.f32 %v2302_v60, %v2301_v26  ;;  %v2776_v24 = vsel %vm10232_vm4, %v7571_v28, 0.0  ;;  %v940_v18 = vmul.f32 %v7160_v32, %v7108_v51  ;;  %v7601_v23 = vadd.f32 %v2510_v5, %v2509_v31  ;;  %v3327_v51 = vld [vmem:[%s10215_s1 + $0x510] sm:$0xff]  ;;  %v10333_v30 = vld [vmem:[#allocation25_spill] sm:$0xff] }
 0x167   :  { %4453 = vmatpush3.msra.mxu1 %v3330_v47  ;;  %v5232_v45 = vpop.eup %5231  ;;  %v2469_v21 = vrot.slane %v2468_v33, 2  ;;  %v7592_v17 = vand.u32 2147483647, %v7578_v35  ;;  %v2488_v59 = vadd.f32 %v2487_v4, %v924_v36  ;;  %v2282_v1 = vadd.f32 %v2281_v58, %v844_v29  ;;  %v10334_v8 = vld [vmem:[#allocation30_spill] sm:$0xff]  ;;  %v7640_v46 = vld [vmem:[#allocation2 + $0x48] sm:$0x3] }
 0x168   :  { %4454 = vmatprep.subr.mxu1 %v3345_v44  ;;  %v5234_v14 = vpop.eup %5233  ;;  %v3123_v63 = vld [vmem:[#allocation2 + $0x1b8] sm:$0xff]  ;;  %v4661_v22 = vmul.f32 0.33333334, %v5232_v45  ;;  %v7611_v32 = vand.u32 2147483647, %v7584_v55  ;;  %v2785_v15 = vadd.f32 %v2784_v7, %v2783_v0  ;;  %v2777_v10 = vrot.slane %v2776_v24, 4 }
 0x169   :  { %4455 = vmatpush3.msra.mxu1 %v3329_v12  ;;  %v4949_v3 = vmul.f32 0.33333334, %v5234_v14  ;;  %v2470_v34 = vadd.f32 %v2469_v21, %v2468_v33  ;;  %5235 = vlog2.f32 %v7592_v17  ;;  %v2283_v41 = vsel %vm10331_vm3, %v860_v39, 0.0 }
 0x16a   :  { %3746 = vmatmul.mubr.f32.gmra.mxu1 %v3123_v63  ;;  %4456 = vmatprep.subr.mxu1 %v3344_v62  ;;  %5237 = vpow2.f32 %v4661_v22  ;;  %v956_v25 = vmul.f32 %v7164_v2, %v10332_v48  ;;  %v972_v49 = vmul.f32 %v10334_v8, %v10333_v30  ;;  %v7631_v54 = vand.u32 2147483647, %v7601_v23 }
 0x16b   :  { %4457 = vmatpush3.msra.mxu1 %v3328_v20  ;;  %5239 = vpow2.f32 %v4949_v3  ;;  %v2471_v16 = vrot.slane %v2470_v34, 1  ;;  %v2284_v56 = vadd.f32 %v2283_v41, %v2282_v1  ;;  %v2489_v31 = vadd.f32 %v2488_v59, %v940_v18  ;;  %v3420_v20 = vld [vmem:[%s10215_s1 + $0x7f8] sm:$0xff] }
 0x16c   :  { %4458 = vmatprep.subr.mxu1 %v3343_v52  ;;  %5241 = vlog2.f32 %v7611_v32  ;;  %v2786_v57 = vrot.slane %v2785_v15, 2  ;;  %v2778_v19 = vadd.f32 %v2777_v10, %v2776_v24  ;;  %v4660_v60 = vand.u32 2147483648, %v7436_v37  ;;  %v3388_v24 = vld [vmem:[%s10215_s1 + $0x6f8] sm:$0xff] }
 0x16d   :  { %4459 = vmatpush3.msra.mxu1 %v3327_v51  ;;  %v7628_v26 = vadd.f32 %v2471_v16, %v2470_v34  ;;  %5243 = vlog2.f32 %v7631_v54  ;;  %v2491_v0 = vsel %vm10335_vm8, %v972_v49, 0.0  ;;  %vm4654_vm11 = vcmp.eq.f32.partialorder %v7436_v37, 0.0  ;;  %4476 = vmatprep.subr.mxu0 %v3388_v24  ;;  %v111_v24 = vld [vmem:[%s10214_s0 + $0xc8] sm:$0xff] }
 0x16e   :  { %4460 = vmatprep.subr.mxu1 %v3342_v11  ;;  %vm4943_vm13 = vcmp.lt.f32.partialorder %v7462_v42, 0.0  ;;  %v2285_v47 = vrot.slane %v2284_v56, 4  ;;  %v2490_v50 = vadd.f32 %v2489_v31, %v956_v25  ;;  %v2787_v36 = vadd.f32 %v2786_v57, %v2785_v15 }
 0x16f   :  { %4461 = vmatpush3.msra.mxu1 %v3326_v6  ;;  %v7637_v2 = vand.u32 2147483647, %v7628_v26  ;;  %v2779_v5 = vrot.slane %v2778_v19, 2  ;;  %vm4657_vm14 = vcmp.eq.f32.partialorder %v7475_v9, inf  ;;  %vm4664_vm1 = vweird.f32 %v7475_v9 }
 0x170   :  { %4462 = vmatprep.subr.mxu1 %v3341_v61  ;;  %vm4942_vm5 = vcmp.eq.f32.partialorder %v7462_v42, 0.0  ;;  %v2797_v4 = vsel %vm10232_vm4, %v7640_v46, 0.0  ;;  %v2790_v44 = vsel %vm10232_vm4, %v7642_v43, 0.0  ;;  %v2286_v29 = vadd.f32 %v2285_v47, %v2284_v56 }
 0x171   :  { %4463 = vmatpush3.msra.mxu1 %v3325_v53  ;;  %5245 = vlog2.f32 %v7637_v2  ;;  %v2492_v33 = vadd.f32 %v2491_v0, %v2490_v50  ;;  %v2788_v58 = vrot.slane %v2787_v36, 1  ;;  %v2780_v12 = vadd.f32 %v2779_v5, %v2778_v19 }
 0x172   :  { %vm4666_vm6 = vcmp.eq.f32.partialorder %v7475_v9, 0.0  ;;  %vm4945_vm7 = vcmp.eq.f32.partialorder %v7487_v27, inf  ;;  %v4948_v7 = vand.u32 2147483648, %v7462_v42  ;;  %v2798_v62 = vrot.slane %v2797_v4, 4  ;;  %4520 = vmatprep.subr.mxu1 %v3420_v20 }
 0x173   :  { %v2287_v38 = vrot.slane %v2286_v29, 2  ;;  %v2493_v40 = vrot.slane %v2492_v33, 4  ;;  %v2789_v39 = vadd.f32 %v2788_v58, %v2787_v36  ;;  %v2781_v21 = vrot.slane %v2780_v12, 1 }
 0x174   :  { %vm4952_vm12 = vweird.f32 %v7487_v27  ;;  %vm4954_vm15 = vcmp.eq.f32.partialorder %v7487_v27, 0.0  ;;  %v2791_v63 = vrot.slane %v2790_v44, 4  ;;  %v2799_v10 = vadd.f32 %v2798_v62, %v2797_v4 }
 0x175   :  { %v2288_v52 = vadd.f32 %v2287_v38, %v2286_v29  ;;  %v2494_v3 = vadd.f32 %v2493_v40, %v2492_v33  ;;  %v2866_v34 = vmul.f32 0.5, %v2789_v39  ;;  %v2782_v15 = vadd.f32 %v2781_v21, %v2780_v12  ;;  %v95_v40 = vld [vmem:[%s10214_s0 + $0x48] sm:$0xff] }
 0x176   :  { %v5236_v45 = vpop.eup %5235  ;;  %v4642_v50 = vand.u32 2147483648, %v7578_v35  ;;  %v2792_v29 = vadd.f32 %v2791_v63, %v2790_v44  ;;  %vm4637_vm10 = vcmp.lt.f32.partialorder %v7578_v35, 0.0  ;;  %v2800_v58 = vrot.slane %v2799_v10, 2 }
 0x177   :  { %v5238_v14 = vpop.eup %5237  ;;  %v4643_v18 = vmul.f32 0.33333334, %v5236_v45  ;;  %v2289_v41 = vrot.slane %v2288_v52, 1  ;;  %v2495_v6 = vrot.slane %v2494_v3, 2  ;;  %v7677_v25 = vsub.f32 %v7551_v13, %v2866_v34 }
 0x178   :  { %v5240_v22 = vpop.eup %5239  ;;  %v4663_v59 = vor.u32 %v5238_v14, %v4660_v60  ;;  %v2865_v30 = vmul.f32 0.5, %v2782_v15  ;;  %vm4636_vm2 = vcmp.eq.f32.partialorder %v7578_v35, 0.0  ;;  %vm4639_vm3 = vcmp.eq.f32.partialorder %v7592_v17, inf }
 0x179   :  { %v5242_v1 = vpop.eup %5241  ;;  %v4951_v51 = vor.u32 %v5240_v22, %v4948_v7  ;;  %5247 = vpow2.f32 %v4643_v18  ;;  %v7683_v53 = vadd.f32 %v2289_v41, %v2288_v52  ;;  %v2496_v19 = vadd.f32 %v2495_v6, %v2494_v3  ;;  %v143_v52 = vld [vmem:[%s10214_s0 + $0x1c8] sm:$0xff] }
 0x17a   :  { %v4665_v11 = vsel %vm4664_vm1, %v7436_v37, %v4663_v59  ;;  %v4697_v16 = vmul.f32 0.33333334, %v5242_v1  ;;  %v5244_v56 = vpop.eup %5243  ;;  %v2898_v13 = vmul.f32 %v7677_v25, %v7677_v25  ;;  %v7708_v12 = vsub.f32 %v7571_v28, %v2865_v30  ;;  %v127_v59 = vld [vmem:[%s10214_s0 + $0x148] sm:$0xff] }
 0x17b   :  { %v4668_v61 = vsel %vm4666_vm6, %v4660_v60, %v4665_v11  ;;  %v4953_v48 = vsel %vm4952_vm12, %v7462_v42, %v4951_v51  ;;  %v4985_v36 = vmul.f32 0.33333334, %v5244_v56  ;;  %v2497_v4 = vrot.slane %v2496_v19, 1 }
 0x17c   :  { %v4669_v8 = vsel %vm4655_vm0, nan, %v4668_v61  ;;  %v4956_v49 = vsel %vm4954_vm15, %v4948_v7, %v4953_v48  ;;  %5249 = vpow2.f32 %v4697_v16  ;;  %v7701_v9 = vand.u32 2147483647, %v7683_v53  ;;  %v159_v16 = vld [vmem:[%s10214_s0 + $0x248] sm:$0xff] }
 0x17d   :  { %v4670_v31 = vsel %vm4654_vm11, 0.0, %v4669_v8  ;;  %v4957_v57 = vsel %vm4943_vm13, nan, %v4956_v49  ;;  %5251 = vpow2.f32 %v4985_v36  ;;  %v7704_v42 = vadd.f32 %v2497_v4, %v2496_v19 }
 0x17e   :  { %v5246_v60 = vpop.eup %5245  ;;  %v4671_v0 = vsel %vm4657_vm14, inf, %v4670_v31  ;;  %v4958_v47 = vsel %vm4942_vm5, 0.0, %v4957_v57  ;;  %v2944_v27 = vsel %vm10232_vm4, %v2898_v13, 0.0  ;;  %vm4646_vm0 = vweird.f32 %v7592_v17 }
 0x17f   :  { %v4959_v37 = vsel %vm4945_vm7, inf, %v4958_v47  ;;  %v4931_v5 = vmul.f32 0.33333334, %v5246_v60  ;;  %vm4648_vm8 = vcmp.eq.f32.partialorder %v7592_v17, 0.0  ;;  %vm4691_vm11 = vcmp.lt.f32.partialorder %v7584_v55, 0.0 }
 0x180   :  { %v2685_v33 = vsel %vm10336_vm9, %v4959_v37, %v4671_v0  ;;  %v4696_v44 = vand.u32 2147483648, %v7584_v55  ;;  %vm4700_vm13 = vweird.f32 %v7611_v32  ;;  %vm4702_vm14 = vcmp.eq.f32.partialorder %v7611_v32, 0.0 }
 0x181   :  { %2717 = vst [vmem:[#allocation2 + $0x1f8] sm:$0x3] %v2685_v33  ;;  %5253 = vpow2.f32 %v4931_v5  ;;  %v7719_v7 = vand.u32 2147483647, %v7704_v42  ;;  %vm4690_vm1 = vcmp.eq.f32.partialorder %v7584_v55, 0.0  ;;  %v2945_v28 = vrot.slane %v2944_v27, 4 }
 0x182   :  { %5255 = vlog2.f32 %v7701_v9  ;;  %v2897_v62 = vmul.f32 %v7708_v12, %v7708_v12  ;;  %v2801_v45 = vadd.f32 %v2800_v58, %v2799_v10  ;;  %v2793_v38 = vrot.slane %v2792_v29, 2 }
 0x183   :  { %v4930_v39 = vand.u32 2147483648, %v7628_v26  ;;  %vm4693_vm5 = vcmp.eq.f32.partialorder %v7611_v32, inf  ;;  %v4984_v21 = vand.u32 2147483648, %v7601_v23  ;;  %vm4988_vm6 = vweird.f32 %v7631_v54 }
 0x184   :  { %5257 = vlog2.f32 %v7719_v7  ;;  %vm4934_vm7 = vweird.f32 %v7637_v2  ;;  %v2946_v14 = vadd.f32 %v2945_v28, %v2944_v27  ;;  %v2937_v18 = vsel %vm10232_vm4, %v2897_v62, 0.0 }
 0x185   :  { %v2802_v63 = vrot.slane %v2801_v45, 1  ;;  %v2794_v22 = vadd.f32 %v2793_v38, %v2792_v29  ;;  %vm4936_vm15 = vcmp.eq.f32.partialorder %v7637_v2, 0.0  ;;  %v2938_v34 = vrot.slane %v2937_v18, 4 }
 0x186   :  { %v5248_v20 = vpop.eup %5247  ;;  %v7748_v1 = vand.u32 2147483647, %v95_v40  ;;  %v2947_v15 = vrot.slane %v2946_v14, 2  ;;  %v7755_v41 = vand.u32 2147483647, %v111_v24  ;;  %vm4924_vm9 = vcmp.eq.f32.partialorder %v7628_v26, 0.0 }
 0x187   :  { %v4645_v3 = vor.u32 %v5248_v20, %v4642_v50  ;;  %v2803_v10 = vadd.f32 %v2802_v63, %v2801_v45  ;;  %v2795_v11 = vrot.slane %v2794_v22, 1  ;;  %vm4981_vm4 = vcmp.eq.f32.partialorder %v7631_v54, inf }
 0x188   :  { %v3138_v51 = vld [vmem:[#allocation2 + $0x1f8] sm:$0xff]  ;;  %v2939_v48 = vadd.f32 %v2938_v34, %v2937_v18  ;;  %v7762_v30 = vand.u32 2147483647, %v127_v59  ;;  %v7764_v8 = vand.u32 2147483647, %v143_v52  ;;  %vm4927_vm12 = vcmp.eq.f32.partialorder %v7637_v2, inf }
 0x189   :  { %v5250_v6 = vpop.eup %5249  ;;  %3665 = vmatprep.mubr.f32.mxu0 %v3138_v51  ;;  %v4647_v61 = vsel %vm4646_vm0, %v7578_v35, %v4645_v3  ;;  %v2948_v31 = vadd.f32 %v2947_v15, %v2946_v14  ;;  %v2868_v57 = vmul.f32 0.5, %v2803_v10  ;;  %v2796_v60 = vadd.f32 %v2795_v11, %v2794_v22 }
 0x18a   :  { %v4650_v49 = vsel %vm4648_vm8, %v4642_v50, %v4647_v61  ;;  %v4699_v56 = vor.u32 %v5250_v6, %v4696_v44  ;;  %v2940_v13 = vrot.slane %v2939_v48, 2  ;;  %v7773_v0 = vand.u32 2147483647, %v159_v16  ;;  %v5252_v5 = vpop.eup %5251  ;;  %v175_v16 = vld [vmem:[%s10214_s0 + $0x2c8] sm:$0xff] }
 0x18b   :  { %v4651_v19 = vsel %vm4637_vm10, nan, %v4650_v49  ;;  %v2949_v50 = vrot.slane %v2948_v31, 1  ;;  %v7781_v37 = vsub.f32 %v7640_v46, %v2868_v57  ;;  %v2867_v58 = vmul.f32 0.5, %v2796_v60  ;;  %v191_v6 = vld [vmem:[%s10214_s0 + $0x348] sm:$0x1] }
 0x18c   :  { %v4652_v47 = vsel %vm4636_vm2, 0.0, %v4651_v19  ;;  %v4701_v36 = vsel %vm4700_vm13, %v7584_v55, %v4699_v56  ;;  %v2941_v33 = vadd.f32 %v2940_v13, %v2939_v48  ;;  %v4987_v28 = vor.u32 %v5252_v5, %v4984_v21  ;;  %v223_v48 = vld [vmem:[%s10214_s0 + $0x448] sm:$0xff] }
 0x18d   :  { %v4653_v4 = vsel %vm4639_vm3, inf, %v4652_v47  ;;  %v4704_v29 = vsel %vm4702_vm14, %v4696_v44, %v4701_v36  ;;  %v2950_v62 = vadd.f32 %v2949_v50, %v2948_v31  ;;  %v2900_v46 = vmul.f32 %v7781_v37, %v7781_v37  ;;  %v239_v49 = vld [vmem:[%s10214_s0 + $0x4c8] sm:$0xff] }
 0x18e   :  { %v5254_v27 = vpop.eup %5253  ;;  %v4705_v35 = vsel %vm4691_vm11, nan, %v4704_v29  ;;  %v2942_v38 = vrot.slane %v2941_v33, 1  ;;  %v7798_v40 = vsub.f32 %v7642_v43, %v2867_v58  ;;  %v4989_v20 = vsel %vm4988_vm6, %v7601_v23, %v4987_v28  ;;  %v255_v19 = vld [vmem:[%s10214_s0 + $0x548] sm:$0xff] }
 0x18f   :  { %v5256_v45 = vpop.eup %5255  ;;  %v4933_v17 = vor.u32 %v5254_v27, %v4930_v39  ;;  %v4706_v44 = vsel %vm4690_vm1, 0.0, %v4705_v35  ;;  %v3026_v18 = vmul.f32 0.5, %v2950_v62  ;;  %vm10337_vm10 = vcmp.eq.f32.partialorder %v7631_v54, 0.0  ;;  %v207_v54 = vld [vmem:[%s10214_s0 + $0x3c8] sm:$0xff] }
 0x190   :  { %v4707_v24 = vsel %vm4693_vm5, inf, %v4706_v44  ;;  %v4679_v14 = vmul.f32 0.33333334, %v5256_v45  ;;  %v4992_v55 = vsel %vm10337_vm10, %v4984_v21, %v4989_v20  ;;  %v2943_v43 = vadd.f32 %v2942_v38, %v2941_v33  ;;  %v271_v13 = vld [vmem:[%s10214_s0 + $0x5c8] sm:$0xff] }
 0x191   :  { %v4935_v63 = vsel %vm4934_vm7, %v7628_v26, %v4933_v17  ;;  %vm10338_vm2 = vcmask 1041408   ;;  %v5258_v32 = vpop.eup %5257  ;;  %vm10339_vm3 = vcmp.lt.f32.partialorder %v7601_v23, 0.0  ;;  %v3042_v3 = vadd.f32 1e-05, %v3026_v18  ;;  %v287_v60 = vld [vmem:[%s10214_s0 + $0x648] sm:$0xff] }
 0x192   :  { %v2958_v22 = vsel %vm10338_vm2, %v2900_v46, 0.0  ;;  %v4938_v59 = vsel %vm4936_vm15, %v4930_v39, %v4935_v63  ;;  %v4993_v52 = vsel %vm10339_vm3, nan, %v4992_v55  ;;  %5259 = vpow2.f32 %v4679_v14  ;;  %v303_v47 = vld [vmem:[%s10214_s0 + $0x6c8] sm:$0x1]  ;;  %vm10344_vm1 = vmmov %vm10338_vm2 }
 0x193   :  { %vm10340_vm0 = vcmp.lt.f32.partialorder %v7628_v26, 0.0  ;;  %vm10341_vm8 = vcmp.eq.f32.partialorder %v7601_v23, 0.0  ;;  %v4967_v51 = vmul.f32 0.33333334, %v5258_v32  ;;  %v3025_v15 = vmul.f32 0.5, %v2943_v43 }
 0x194   :  { %v4939_v34 = vsel %vm10340_vm0, nan, %v4938_v59  ;;  %v4994_v21 = vsel %vm10341_vm8, 0.0, %v4993_v52  ;;  %5261 = vrsqrt.f32 %v3042_v3  ;;  %v2959_v39 = vrot.slane %v2958_v22, 4 }
 0x195   :  { %v4940_v10 = vsel %vm4924_vm9, 0.0, %v4939_v34  ;;  %v4995_v11 = vsel %vm4981_vm4, inf, %v4994_v21  ;;  %vm10342_vm11 = vcmask 1041409   ;;  %5263 = vpow2.f32 %v4967_v51 }
 0x196   :  { %v4941_v23 = vsel %vm4927_vm12, inf, %v4940_v10  ;;  %v2687_v61 = vsel %vm10342_vm11, %v4995_v11, %v4707_v24  ;;  %v3041_v26 = vadd.f32 1e-05, %v3025_v15  ;;  %vm10343_vm4 = vmmov %vm10342_vm11  ;;  %v4678_v2 = vand.u32 2147483648, %v7683_v53 }
 0x197   :  { %v2684_v56 = vsel %vm10343_vm4, %v4941_v23, %v4653_v4  ;;  %2719 = vst [vmem:[#allocation2 + $0x128] sm:$0x3] %v2687_v61  ;;  %v2960_v31 = vadd.f32 %v2959_v39, %v2958_v22  ;;  %v2899_v57 = vmul.f32 %v7798_v40, %v7798_v40  ;;  %vm4682_vm13 = vweird.f32 %v7701_v9  ;;  %vm10346_vm0 = vmmov %vm10343_vm4 }
 0x198   :  { %2716 = vst [vmem:[#allocation2 + $0x40] sm:$0x3] %v2684_v56  ;;  %5265 = vrsqrt.f32 %v3041_v26  ;;  %v7862_v36 = vand.u32 2147483647, %v175_v16  ;;  %v7864_v50 = vand.u32 2147483647, %v191_v6  ;;  %vm4970_vm7 = vweird.f32 %v7719_v7 }
 0x199   :  { %vm4684_vm14 = vcmp.eq.f32.partialorder %v7701_v9, 0.0  ;;  %v2961_v5 = vrot.slane %v2960_v31, 2  ;;  %v2951_v4 = vsel %vm10344_vm1, %v2899_v57, 0.0  ;;  %v7868_v29 = vand.u32 2147483647, %v207_v54  ;;  %vm10352_vm1 = vmmov %vm10346_vm0 }
 0x19a   :  { %v7870_v33 = vand.u32 2147483647, %v223_v48  ;;  %vm4673_vm5 = vcmp.lt.f32.partialorder %v7683_v53, 0.0  ;;  %v4966_v58 = vand.u32 2147483648, %v7704_v42  ;;  %v2952_v27 = vrot.slane %v2951_v4, 4 }
 0x19b   :  { %v7874_v35 = vand.u32 2147483647, %v239_v49  ;;  %v7876_v28 = vand.u32 2147483647, %v255_v19  ;;  %vm4672_vm6 = vcmp.eq.f32.partialorder %v7683_v53, 0.0  ;;  %v2962_v62 = vadd.f32 %v2961_v5, %v2960_v31 }
 0x19c   :  { %v7880_v46 = vand.u32 2147483647, %v271_v13  ;;  %v7882_v45 = vand.u32 2147483647, %v287_v60  ;;  %v7884_v17 = vand.u32 2147483647, %v303_v47  ;;  %v2953_v44 = vadd.f32 %v2952_v27, %v2951_v4 }
 0x19d   :  { %vm4972_vm12 = vcmp.eq.f32.partialorder %v7719_v7, 0.0  ;;  %v7889_v38 = vmul.f32 %v7748_v1, %v7748_v1  ;;  %v7893_v24 = vmul.f32 %v7755_v41, %v7755_v41  ;;  %v7897_v20 = vmul.f32 %v7762_v30, %v7762_v30 }
 0x19e   :  { %vm4675_vm15 = vcmp.eq.f32.partialorder %v7701_v9, inf  ;;  %vm4961_vm9 = vcmp.lt.f32.partialorder %v7704_v42, 0.0  ;;  %v2963_v14 = vrot.slane %v2962_v62, 1  ;;  %v7903_v18 = vmul.f32 %v7764_v8, %v7764_v8  ;;  %v3140_v43 = vld [vmem:[#allocation2 + $0x128] sm:$0xff] }
 0x19f   :  { %v7907_v63 = vmul.f32 %v7773_v0, %v7773_v0  ;;  %v7911_v55 = vmul.f32 %v7862_v36, %v7862_v36  ;;  %vm4960_vm10 = vcmp.eq.f32.partialorder %v7704_v42, 0.0  ;;  %v2954_v22 = vrot.slane %v2953_v44, 2  ;;  %v3137_v3 = vld [vmem:[#allocation2 + $0x40] sm:$0xff]  ;;  %3750 = vmatprep.mubr.f32.mxu1 %v3140_v43  ;;  %v5260_v10 = vpop.eup %5259 }
 0x1a0   :  { %v7916_v32 = vmul.f32 %v7864_v50, %v7864_v50  ;;  %v655_v59 = vmul.f32 %v7868_v29, %v7868_v29  ;;  %v671_v52 = vmul.f32 %v7870_v33, %v7870_v33  ;;  %vm4963_vm2 = vcmp.eq.f32.partialorder %v7719_v7, inf  ;;  %3666 = vmatmul.mubr.f32.gmra.mxu0 %v3137_v3 }
 0x1a1   :  { %v2964_v34 = vadd.f32 %v2963_v14, %v2962_v62  ;;  %v687_v21 = vmul.f32 %v7874_v35, %v7874_v35  ;;  %v7927_v51 = vmul.f32 %v7876_v28, %v7876_v28  ;;  %v7931_v15 = vmul.f32 %v7880_v46, %v7880_v46  ;;  %v5262_v48 = vpop.eup %5261 }
 0x1a2   :  { %v2955_v11 = vadd.f32 %v2954_v22, %v2953_v44  ;;  %v7935_v39 = vmul.f32 %v7882_v45, %v7882_v45  ;;  %v7939_v16 = vmul.f32 %v7884_v17, %v7884_v17  ;;  %v767_v6 = vmul.f32 %v7889_v38, %v7748_v1  ;;  %v5264_v19 = vpop.eup %5263 }
 0x1a3   :  { %v4681_v23 = vor.u32 %v5260_v10, %v4678_v2  ;;  %v3028_v61 = vmul.f32 0.5, %v2964_v34  ;;  %v783_v26 = vmul.f32 %v7893_v24, %v7755_v41  ;;  %v799_v54 = vmul.f32 %v7897_v20, %v7762_v30 }
 0x1a4   :  { %v2956_v49 = vrot.slane %v2955_v11, 1  ;;  %v7951_v56 = vmul.f32 %v7903_v18, %v7764_v8  ;;  %v879_v31 = vmul.f32 %v655_v59, %v7868_v29  ;;  %v1100_v57 = vadd.f32 %v7755_v41, %v7748_v1 }
 0x1a5   :  { %v4683_v13 = vsel %vm4682_vm13, %v7683_v53, %v4681_v23  ;;  %v3074_v60 = vmul.f32 %v5262_v48, %v7677_v25  ;;  %v3044_v47 = vadd.f32 1e-05, %v3028_v61  ;;  %v895_v5 = vmul.f32 %v671_v52, %v7870_v33  ;;  %v5266_v41 = vpop.eup %5265 }
 0x1a6   :  { %v4686_v4 = vsel %vm4684_vm14, %v4678_v2, %v4683_v13  ;;  %v4969_v27 = vor.u32 %v5264_v19, %v4966_v58  ;;  %v2957_v62 = vadd.f32 %v2956_v49, %v2955_v11  ;;  %v1101_v1 = vadd.f32 %v1100_v57, %v7762_v30 }
 0x1a7   :  { %v4687_v44 = vsel %vm4673_vm5, nan, %v4686_v4  ;;  %3090 = vst [vmem:[#allocation2 + $0x178] sm:$0x3] %v3074_v60  ;;  %5267 = vrsqrt.f32 %v3044_v47  ;;  %v911_v25 = vmul.f32 %v687_v21, %v7874_v35  ;;  %v1308_v14 = vadd.f32 %v7870_v33, %v7868_v29 }
 0x1a8   :  { %v4688_v2 = vsel %vm4672_vm6, 0.0, %v4687_v44  ;;  %v4971_v43 = vsel %vm4970_vm7, %v7704_v42, %v4969_v27  ;;  %v3073_v30 = vmul.f32 %v5266_v41, %v7708_v12  ;;  %v3027_v22 = vmul.f32 0.5, %v2957_v62 }
 0x1a9   :  { %v4974_v3 = vsel %vm4972_vm12, %v4966_v58, %v4971_v43  ;;  %v927_v34 = vmul.f32 %v7927_v51, %v7876_v28  ;;  %v1102_v29 = vadd.f32 %v1101_v1, %v7764_v8  ;;  %v1309_v53 = vadd.f32 %v1308_v14, %v7874_v35 }
 0x1aa   :  { %v4689_v33 = vsel %vm4675_vm15, inf, %v4688_v2  ;;  %v4975_v10 = vsel %vm4961_vm9, nan, %v4974_v3  ;;  %3089 = vst [vmem:[#allocation2 + $0x170] sm:$0x3] %v3073_v30  ;;  %v3043_v12 = vadd.f32 1e-05, %v3027_v22  ;;  %v1597_v11 = vadd.f32 %v7893_v24, %v7889_v38  ;;  %vm10366_vm15 = vmmov %vm10346_vm0 }
 0x1ab   :  { %v4976_v58 = vsel %vm4960_vm10, 0.0, %v4975_v10  ;;  %v1103_v23 = vadd.f32 %v1102_v29, %v7773_v0  ;;  %v1310_v8 = vadd.f32 %v1309_v53, %v7876_v28  ;;  %v1805_v61 = vadd.f32 %v671_v52, %v655_v59  ;;  %v94_v29 = vld [vmem:[%s10214_s0 + $0x40] sm:$0xff] }
 0x1ac   :  { %v4977_v9 = vsel %vm4963_vm2, inf, %v4976_v58  ;;  %5269 = vrsqrt.f32 %v3043_v12  ;;  %vm10345_vm3 = vcmask 1040384   ;;  %v1598_v48 = vadd.f32 %v1597_v11, %v7897_v20  ;;  %v142_v10 = vld [vmem:[%s10214_s0 + $0x1c0] sm:$0xff] }
 0x1ad   :  { %v1105_v35 = vsel %vm10345_vm3, %v7864_v50, 0.0  ;;  %v2686_v49 = vsel %vm10346_vm0, %v4977_v9, %v4689_v33  ;;  %v1104_v38 = vadd.f32 %v1103_v23, %v7862_v36  ;;  %v1311_v42 = vadd.f32 %v1310_v8, %v7880_v46  ;;  %vm10347_vm8 = vmmov %vm10345_vm3  ;;  %v206_v12 = vld [vmem:[%s10214_s0 + $0x3c0] sm:$0xff] }
 0x1ae   :  { %v1806_v24 = vadd.f32 %v1805_v61, %v687_v21  ;;  %2718 = vst [vmem:[#allocation2 + $0x20] sm:$0x3] %v2686_v49  ;;  %v3154_v57 = vld [vmem:[#allocation2 + $0x178] sm:$0xff]  ;;  %v1313_v28 = vsel %vm10347_vm8, %v7884_v17, 0.0  ;;  %v1599_v7 = vadd.f32 %v1598_v48, %v7903_v18  ;;  %v2317_v59 = vadd.f32 %v783_v26, %v767_v6  ;;  %vm10348_vm11 = vmmov %vm10345_vm3  ;;  %v222_v11 = vld [vmem:[%s10214_s0 + $0x440] sm:$0xff] }
 0x1af   :  { %v2525_v52 = vadd.f32 %v895_v5, %v879_v31  ;;  %3670 = vmatprep.mubr.f32.mxu0 %v3154_v57  ;;  %v831_v20 = vmul.f32 %v7907_v63, %v7773_v0  ;;  %v1106_v19 = vadd.f32 %v1105_v35, %v1104_v38  ;;  %v1312_v13 = vadd.f32 %v1311_v42, %v7882_v45  ;;  %vm10349_vm4 = vmmov %vm10345_vm3  ;;  %v158_v9 = vld [vmem:[%s10214_s0 + $0x240] sm:$0xff] }
 0x1b0   :  { %v1807_v60 = vadd.f32 %v1806_v24, %v7927_v51  ;;  %v943_v21 = vmul.f32 %v7931_v15, %v7880_v46  ;;  %v1600_v47 = vadd.f32 %v1599_v7, %v7907_v63  ;;  %v2318_v4 = vadd.f32 %v2317_v59, %v799_v54  ;;  %vm10350_vm13 = vmmov %vm10345_vm3  ;;  %v174_v35 = vld [vmem:[%s10214_s0 + $0x2c0] sm:$0xff] }
 0x1b1   :  { %v2526_v27 = vadd.f32 %v2525_v52, %v911_v25  ;;  %v3153_v62 = vld [vmem:[#allocation2 + $0x170] sm:$0xff]  ;;  %v847_v18 = vmul.f32 %v7911_v55, %v7862_v36  ;;  %v1107_v6 = vrot.slane %v1106_v19, 4  ;;  %v1314_v26 = vadd.f32 %v1313_v28, %v1312_v13  ;;  %v190_v48 = vld [vmem:[%s10214_s0 + $0x340] sm:$0x1]  ;;  %vm10351_vm14 = vmmov %vm10345_vm3 }
 0x1b2   :  { %v1808_v0 = vadd.f32 %v1807_v60, %v7931_v15  ;;  %3671 = vmatmul.mubr.f32.gmra.mxu0 %v3153_v62  ;;  %v959_v31 = vmul.f32 %v7935_v39, %v7882_v45  ;;  %v1601_v51 = vadd.f32 %v1600_v47, %v7911_v55  ;;  %v2319_v46 = vadd.f32 %v2318_v4, %v7951_v56  ;;  %v270_v42 = vld [vmem:[%s10214_s0 + $0x5c0] sm:$0xff]  ;;  %vm10360_vm5 = vmmov %vm10345_vm3 }
 0x1b3   :  { %v2527_v5 = vadd.f32 %v2526_v27, %v927_v34  ;;  %v1108_v63 = vadd.f32 %v1107_v6, %v1106_v19  ;;  %v1315_v54 = vrot.slane %v1314_v26, 4  ;;  %v1602_v1 = vsel %vm10348_vm11, %v7916_v32, 0.0  ;;  %v286_v24 = vld [vmem:[%s10214_s0 + $0x640] sm:$0xff]  ;;  %vm10361_vm6 = vmmov %vm10345_vm3 }
 0x1b4   :  { %v1809_v36 = vadd.f32 %v1808_v0, %v7935_v39  ;;  %v5268_v41 = vpop.eup %5267  ;;  %v1810_v15 = vsel %vm10349_vm4, %v7939_v16, 0.0  ;;  %v2320_v44 = vadd.f32 %v2319_v46, %v831_v20  ;;  %v863_v56 = vmul.f32 %v7916_v32, %v7864_v50  ;;  %v126_v50 = vld [vmem:[%s10214_s0 + $0x140] sm:$0xff]  ;;  %vm10362_vm7 = vmmov %vm10345_vm3 }
 0x1b5   :  { %v2528_v25 = vadd.f32 %v2527_v5, %v943_v21  ;;  %v3139_v14 = vld [vmem:[#allocation2 + $0x20] sm:$0xff]  ;;  %v3076_v45 = vmul.f32 %v5268_v41, %v7781_v37  ;;  %v1109_v55 = vrot.slane %v1108_v63, 2  ;;  %v1316_v2 = vadd.f32 %v1315_v54, %v1314_v26  ;;  %vm10363_vm12 = vmmov %vm10345_vm3 }
 0x1b6   :  { %3751 = vmatmul.mubr.f32.gmra.mxu1 %v3139_v14  ;;  %v1603_v43 = vadd.f32 %v1602_v1, %v1601_v51  ;;  %v8030_v30 = vadd.f32 %v2320_v44, %v847_v18  ;;  %v1811_v34 = vadd.f32 %v1810_v15, %v1809_v36  ;;  %v110_v37 = vld [vmem:[%s10214_s0 + $0xc0] sm:$0xff]  ;;  %v975_v23 = vmul.f32 %v7939_v16, %v7884_v17  ;;  %vm10367_vm9 = vmmov %vm10345_vm3 }
 0x1b7   :  { %v8032_v22 = vadd.f32 %v2528_v25, %v959_v31  ;;  %3092 = vst [vmem:[#allocation2 + $0x190] sm:$0x3] %v3076_v45  ;;  %v1110_v39 = vadd.f32 %v1109_v55, %v1108_v63  ;;  %v1317_v3 = vrot.slane %v1316_v2, 2  ;;  %v8056_v61 = vsel %vm10350_vm13, %v863_v56, 0.0  ;;  %v254_v17 = vld [vmem:[%s10214_s0 + $0x540] sm:$0xff]  ;;  %vm10368_vm10 = vmmov %vm10345_vm3 }
 0x1b8   :  { %v1604_v8 = vrot.slane %v1603_v43, 4  ;;  %v1812_v38 = vrot.slane %v1811_v34, 4  ;;  %v302_v57 = vld [vmem:[%s10214_s0 + $0x6c0] sm:$0x1]  ;;  %v318_v28 = vand.u32 2147483647, %v94_v29  ;;  %vm10369_vm2 = vmmov %vm10345_vm3 }
 0x1b9   :  { %v5270_v32 = vpop.eup %5269  ;;  %v1111_v53 = vrot.slane %v1110_v39, 1  ;;  %v1318_v33 = vadd.f32 %v1317_v3, %v1316_v2  ;;  %v334_v7 = vand.u32 2147483647, %v110_v37  ;;  %v350_v59 = vand.u32 2147483647, %v126_v50  ;;  %vm10370_vm3 = vmmov %vm10369_vm2 }
 0x1ba   :  { %v3075_v58 = vmul.f32 %v5270_v32, %v7798_v40  ;;  %v238_v40 = vld [vmem:[%s10214_s0 + $0x4c0] sm:$0xff]  ;;  %v366_v52 = vand.u32 2147483647, %v142_v10  ;;  %v382_v19 = vand.u32 2147483647, %v158_v9  ;;  %v8084_v47 = vadd.f32 %v1604_v8, %v1603_v43  ;;  %vm10377_vm8 = vmmov %vm10369_vm2 }
 0x1bb   :  { %v1112_v16 = vadd.f32 %v1111_v53, %v1110_v39  ;;  %v1319_v49 = vrot.slane %v1318_v33, 1  ;;  %v8082_v13 = vand.u32 2147483647, %v174_v35  ;;  %v414_v60 = vand.u32 2147483647, %v190_v48  ;;  %vm10378_vm11 = vmmov %vm10369_vm2 }
 0x1bc   :  { %3091 = vst [vmem:[#allocation2 + $0x68] sm:$0x3] %v3075_v58  ;;  %v8087_v4 = vsel %vm10351_vm14, %v975_v23, 0.0  ;;  %v430_v27 = vand.u32 2147483647, %v206_v12  ;;  %v8090_v6 = vadd.f32 %v1812_v38, %v1811_v34  ;;  %v542_v5 = vmul.f32 %v318_v28, %v318_v28  ;;  %vm10379_vm4 = vmmov %vm10369_vm2 }
 0x1bd   :  { %v1320_v20 = vadd.f32 %v1319_v49, %v1318_v33  ;;  %v446_v62 = vand.u32 2147483647, %v222_v11  ;;  %v462_v26 = vand.u32 2147483647, %v238_v40  ;;  %v478_v0 = vand.u32 2147483647, %v254_v17  ;;  %vm10380_vm13 = vmmov %vm10369_vm2 }
 0x1be   :  { %v3156_v21 = vld [vmem:[#allocation2 + $0x190] sm:$0xff]  ;;  %v8092_v31 = vand.u32 2147483647, %v270_v42  ;;  %v8094_v51 = vand.u32 2147483647, %v286_v24  ;;  %v558_v63 = vmul.f32 %v334_v7, %v334_v7  ;;  %v574_v54 = vmul.f32 %v350_v59, %v350_v59  ;;  %v97_v24 = vld [vmem:[%s10214_s0 + $0x58] sm:$0xff]  ;;  %vm10381_vm14 = vmmov %vm10369_vm2 }
 0x1bf   :  { %3755 = vmatprep.mubr.f32.mxu1 %v3156_v21  ;;  %v1441_v18 = vsel %vm10352_vm1, %v1320_v20, %v1112_v16  ;;  %v8096_v46 = vand.u32 2147483647, %v302_v57  ;;  %v590_v1 = vmul.f32 %v366_v52, %v366_v52  ;;  %v8098_v36 = vmul.f32 %v382_v19, %v382_v19  ;;  %v113_v57 = vld [vmem:[%s10214_s0 + $0xd8] sm:$0xff]  ;;  %vm10382_vm1 = vmmov %vm10369_vm2 }
 0x1c0   :  { %1473 = vst [vmem:[#allocation2 + $0x110] sm:$0x3] %v1441_v18  ;;  %v8102_v41 = vmul.f32 %v8082_v13, %v8082_v13  ;;  %v638_v15 = vmul.f32 %v414_v60, %v414_v60  ;;  %v654_v44 = vmul.f32 %v430_v27, %v430_v27  ;;  %v670_v25 = vmul.f32 %v446_v62, %v446_v62  ;;  %v161_v21 = vld [vmem:[%s10214_s0 + $0x258] sm:$0xff] }
 0x1c1   :  { %v686_v45 = vmul.f32 %v462_v26, %v462_v26  ;;  %v702_v55 = vmul.f32 %v478_v0, %v478_v0  ;;  %v1087_v2 = vadd.f32 %v334_v7, %v318_v28  ;;  %v1295_v56 = vadd.f32 %v446_v62, %v430_v27 }
 0x1c2   :  { %v718_v43 = vmul.f32 %v8092_v31, %v8092_v31  ;;  %v8108_v39 = vmul.f32 %v8094_v51, %v8094_v51  ;;  %v1584_v3 = vadd.f32 %v558_v63, %v542_v5  ;;  %v1792_v34 = vadd.f32 %v670_v25, %v654_v44 }
 0x1c3   :  { %v3155_v14 = vld [vmem:[#allocation2 + $0x68] sm:$0xff]  ;;  %v8112_v29 = vmul.f32 %v8096_v46, %v8096_v46  ;;  %v8114_v37 = vmul.f32 %v542_v5, %v318_v28  ;;  %v1088_v50 = vadd.f32 %v1087_v2, %v350_v59  ;;  %v1296_v32 = vadd.f32 %v1295_v56, %v462_v26  ;;  %v129_v28 = vld [vmem:[%s10214_s0 + $0x158] sm:$0xff] }
 0x1c4   :  { %3756 = vmatmul.mubr.f32.gmra.mxu1 %v3155_v14  ;;  %v8116_v53 = vmul.f32 %v558_v63, %v334_v7  ;;  %v8118_v33 = vmul.f32 %v574_v54, %v350_v59  ;;  %v1585_v10 = vadd.f32 %v1584_v3, %v574_v54  ;;  %v1793_v12 = vadd.f32 %v1792_v34, %v686_v45  ;;  %v193_v63 = vld [vmem:[%s10214_s0 + $0x358] sm:$0x1] }
 0x1c5   :  { %v8120_v58 = vmul.f32 %v590_v1, %v366_v52  ;;  %v8123_v23 = vmul.f32 %v8098_v36, %v382_v19  ;;  %v1089_v8 = vadd.f32 %v1088_v50, %v366_v52  ;;  %v1297_v9 = vadd.f32 %v1296_v32, %v478_v0  ;;  %v241_v54 = vld [vmem:[%s10214_s0 + $0x4d8] sm:$0xff] }
 0x1c6   :  { %v8127_v35 = vmul.f32 %v8102_v41, %v8082_v13  ;;  %v8129_v48 = vmul.f32 %v638_v15, %v414_v60  ;;  %v8131_v40 = vmul.f32 %v654_v44, %v430_v27  ;;  %v8133_v17 = vmul.f32 %v670_v25, %v446_v62  ;;  %v177_v27 = vld [vmem:[%s10214_s0 + $0x2d8] sm:$0xff] }
 0x1c7   :  { %v3110_v11 = vld [vmem:[#allocation2 + $0x110] sm:$0xff]  ;;  %10353 = vst [vmem:[#allocation13_spill] sm:$0xff] %v8120_v58  ;;  %10354 = vst [vmem:[#allocation14_spill] sm:$0xff] %v8123_v23  ;;  %v8135_v16 = vmul.f32 %v686_v45, %v462_v26  ;;  %v8137_v49 = vmul.f32 %v702_v55, %v478_v0  ;;  %v1090_v38 = vadd.f32 %v1089_v8, %v382_v19  ;;  %v1092_v7 = vsel %vm10360_vm5, %v414_v60, 0.0  ;;  %v145_v19 = vld [vmem:[%s10214_s0 + $0x1d8] sm:$0xff] }
 0x1c8   :  { %3825 = vmatprep.mubr.f32.mxu0 %v3110_v11  ;;  %10355 = vst [vmem:[#allocation18_spill] sm:$0xff] %v8127_v35  ;;  %10356 = vst [vmem:[#allocation19_spill] sm:$0xff] %v8129_v48  ;;  %v1298_v42 = vadd.f32 %v1297_v9, %v8092_v31  ;;  %v1300_v59 = vsel %vm10361_vm6, %v8096_v46, 0.0  ;;  %v1586_v52 = vadd.f32 %v1585_v10, %v590_v1  ;;  %v209_v60 = vld [vmem:[%s10214_s0 + $0x3d8] sm:$0xff]  ;;  %v8170_v0 = vsel %vm10362_vm7, %v638_v15, 0.0 }
 0x1c9   :  { %10357 = vst [vmem:[#allocation15_spill] sm:$0xff] %v8133_v17  ;;  %10358 = vst [vmem:[#allocation17_spill] sm:$0xff] %v8135_v16  ;;  %v1794_v20 = vadd.f32 %v1793_v12, %v702_v55  ;;  %v225_v62 = vld [vmem:[%s10214_s0 + $0x458] sm:$0xff]  ;;  %v1091_v18 = vadd.f32 %v1090_v38, %v8082_v13  ;;  %v8174_v5 = vsel %vm10363_vm12, %v8112_v29, 0.0  ;;  %v8186_v1 = vmul.f32 %v718_v43, %v8092_v31 }
 0x1ca   :  { %10359 = vst [vmem:[#allocation9_spill] sm:$0xff] %v8137_v49  ;;  %v1299_v26 = vadd.f32 %v1298_v42, %v8094_v51  ;;  %v257_v13 = vld [vmem:[%s10214_s0 + $0x558] sm:$0xff]  ;;  %v321_v15 = vand.u32 2147483647, %v97_v24  ;;  %v337_v44 = vand.u32 2147483647, %v113_v57  ;;  %v1587_v31 = vadd.f32 %v1586_v52, %v8098_v36 }
 0x1cb   :  { %10364 = vst [vmem:[#allocation11_spill] sm:$0xff] %v8186_v1  ;;  %v353_v25 = vand.u32 2147483647, %v129_v28  ;;  %v1093_v14 = vadd.f32 %v1092_v7, %v1091_v18  ;;  %v273_v55 = vld [vmem:[%s10214_s0 + $0x5d8] sm:$0xff]  ;;  %v8194_v56 = vand.u32 2147483647, %v145_v19  ;;  %v1795_v34 = vadd.f32 %v1794_v20, %v718_v43 }
 0x1cc   :  { %v1301_v45 = vadd.f32 %v1300_v59, %v1299_v26  ;;  %v289_v2 = vld [vmem:[%s10214_s0 + $0x658] sm:$0xff]  ;;  %v8196_v3 = vand.u32 2147483647, %v161_v21  ;;  %v8202_v32 = vand.u32 2147483647, %v177_v27  ;;  %v8208_v38 = vmul.f32 %v8108_v39, %v8094_v51 }
 0x1cd   :  { %v305_v50 = vld [vmem:[%s10214_s0 + $0x6d8] sm:$0x1]  ;;  %v8204_v10 = vand.u32 2147483647, %v193_v63  ;;  %v1094_v12 = vrot.slane %v1093_v14, 4  ;;  %v1588_v59 = vadd.f32 %v1587_v31, %v8102_v41  ;;  %v1796_v52 = vadd.f32 %v1795_v34, %v8108_v39 }
 0x1ce   :  { %v1302_v11 = vrot.slane %v1301_v45, 4  ;;  %v433_v8 = vand.u32 2147483647, %v209_v60  ;;  %v449_v9 = vand.u32 2147483647, %v225_v62  ;;  %10365 = vst [vmem:[#allocation10_spill] sm:$0xff] %v8208_v38  ;;  %v545_v20 = vmul.f32 %v321_v15, %v321_v15 }
 0x1cf   :  { %v465_v42 = vand.u32 2147483647, %v241_v54  ;;  %v8210_v24 = vand.u32 2147483647, %v257_v13  ;;  %v8212_v36 = vand.u32 2147483647, %v273_v55  ;;  %v1095_v43 = vadd.f32 %v1094_v12, %v1093_v14 }
 0x1d0   :  { %v1303_v57 = vadd.f32 %v1302_v11, %v1301_v45  ;;  %v8214_v28 = vand.u32 2147483647, %v289_v2  ;;  %v8216_v7 = vand.u32 2147483647, %v305_v50  ;;  %v561_v19 = vmul.f32 %v337_v44, %v337_v44 }
 0x1d1   :  { %v1096_v21 = vrot.slane %v1095_v43, 2  ;;  %v577_v27 = vmul.f32 %v353_v25, %v353_v25  ;;  %v593_v60 = vmul.f32 %v8194_v56, %v8194_v56  ;;  %v609_v62 = vmul.f32 %v8196_v3, %v8196_v3 }
 0x1d2   :  { %v1304_v51 = vrot.slane %v1303_v57, 2  ;;  %v8226_v18 = vmul.f32 %v8202_v32, %v8202_v32  ;;  %v8230_v41 = vmul.f32 %v8204_v10, %v8204_v10  ;;  %v657_v39 = vmul.f32 %v433_v8, %v433_v8 }
 0x1d3   :  { %v1097_v26 = vadd.f32 %v1096_v21, %v1095_v43  ;;  %v673_v54 = vmul.f32 %v449_v9, %v449_v9  ;;  %v689_v13 = vmul.f32 %v465_v42, %v465_v42  ;;  %v705_v14 = vmul.f32 %v8210_v24, %v8210_v24 }
 0x1d4   :  { %v1305_v63 = vadd.f32 %v1304_v51, %v1303_v57  ;;  %v8236_v45 = vmul.f32 %v8212_v36, %v8212_v36  ;;  %v769_v55 = vmul.f32 %v545_v20, %v321_v15  ;;  %v1126_v2 = vadd.f32 %v337_v44, %v321_v15 }
 0x1d5   :  { %v1098_v31 = vrot.slane %v1097_v26, 1  ;;  %v785_v50 = vmul.f32 %v561_v19, %v337_v44  ;;  %v1334_v12 = vadd.f32 %v449_v9, %v433_v8  ;;  %v8240_v11 = vmul.f32 %v8214_v28, %v8214_v28 }
 0x1d6   :  { %v1306_v34 = vrot.slane %v1305_v63, 1  ;;  %v1127_v43 = vadd.f32 %v1126_v2, %v353_v25  ;;  %v1623_v57 = vadd.f32 %v561_v19, %v545_v20  ;;  %v1831_v21 = vadd.f32 %v673_v54, %v657_v39 }
 0x1d7   :  { %v1099_v51 = vadd.f32 %v1098_v31, %v1097_v26  ;;  %v881_v1 = vmul.f32 %v657_v39, %v433_v8  ;;  %v1335_v35 = vadd.f32 %v1334_v12, %v465_v42  ;;  %v897_v49 = vmul.f32 %v673_v54, %v449_v9  ;;  %v96_v12 = vld [vmem:[%s10214_s0 + $0x50] sm:$0xff] }
 0x1d8   :  { %v1307_v38 = vadd.f32 %v1306_v34, %v1305_v63  ;;  %v1128_v48 = vadd.f32 %v1127_v43, %v8194_v56  ;;  %v1624_v23 = vadd.f32 %v1623_v57, %v577_v27  ;;  %v1832_v15 = vadd.f32 %v1831_v21, %v689_v13 }
 0x1d9   :  { %v801_v44 = vmul.f32 %v577_v27, %v353_v25  ;;  %v1336_v58 = vadd.f32 %v1335_v35, %v8210_v24  ;;  %v2343_v17 = vadd.f32 %v785_v50, %v769_v55  ;;  %v753_v20 = vmul.f32 %v8216_v7, %v8216_v7 }
 0x1da   :  { %v1440_v16 = vsel %vm10366_vm15, %v1307_v38, %v1099_v51  ;;  %v1129_v19 = vadd.f32 %v1128_v48, %v8196_v3  ;;  %v1625_v26 = vadd.f32 %v1624_v23, %v593_v60  ;;  %v1833_v8 = vadd.f32 %v1832_v15, %v705_v14  ;;  %v144_v51 = vld [vmem:[%s10214_s0 + $0x1d0] sm:$0xff] }
 0x1db   :  { %1472 = vst [vmem:[#allocation2 + $0x180] sm:$0x3] %v1440_v16  ;;  %v913_v39 = vmul.f32 %v689_v13, %v465_v42  ;;  %v1131_v9 = vsel %vm10367_vm9, %v8204_v10, 0.0  ;;  %v1337_v63 = vadd.f32 %v1336_v58, %v8212_v36  ;;  %v1339_v25 = vsel %vm10368_vm10, %v8216_v7, 0.0  ;;  %v160_v15 = vld [vmem:[%s10214_s0 + $0x250] sm:$0xff]  ;;  %vm10383_vm9 = vmmov %vm10346_vm0 }
 0x1dc   :  { %v1130_v35 = vadd.f32 %v1129_v19, %v8202_v32  ;;  %v1626_v38 = vadd.f32 %v1625_v26, %v609_v62  ;;  %v1834_v16 = vadd.f32 %v1833_v8, %v8236_v45  ;;  %v2551_v27 = vadd.f32 %v897_v49, %v881_v1  ;;  %v192_v19 = vld [vmem:[%s10214_s0 + $0x350] sm:$0x1] }
 0x1dd   :  { %v817_v54 = vmul.f32 %v593_v60, %v8194_v56  ;;  %v1338_v23 = vadd.f32 %v1337_v63, %v8214_v28  ;;  %v1628_v48 = vsel %vm10369_vm2, %v8230_v41, 0.0  ;;  %v2344_v42 = vadd.f32 %v2343_v17, %v801_v44  ;;  %v176_v44 = vld [vmem:[%s10214_s0 + $0x2d0] sm:$0xff] }
 0x1de   :  { %v1132_v13 = vadd.f32 %v1131_v9, %v1130_v35  ;;  %v1627_v58 = vadd.f32 %v1626_v38, %v8226_v18  ;;  %v1835_v55 = vadd.f32 %v1834_v16, %v8240_v11  ;;  %v1836_v2 = vsel %vm10370_vm3, %v753_v20, 0.0  ;;  %v240_v26 = vld [vmem:[%s10214_s0 + $0x4d0] sm:$0xff]  ;;  %vm10384_vm3 = vmmov %vm10346_vm0 }
 0x1df   :  { %v8264_v31 = vmul.f32 %v8112_v29, %v8096_v46  ;;  %v8267_v49 = vadd.f32 %v8170_v0, %v1588_v59  ;;  %v8270_v1 = vadd.f32 %v8174_v5, %v1796_v52  ;;  %v1340_v56 = vadd.f32 %v1339_v25, %v1338_v23  ;;  %v112_v46 = vld [vmem:[%s10214_s0 + $0xd0] sm:$0xff]  ;;  %v3372_v29 = vld [vmem:[%s10215_s1 + $0x678] sm:$0xff]  ;;  %v3370_v25 = vld [vmem:[%s10215_s1 + $0x668] sm:$0xff] }
 0x1e0   :  { %v833_v17 = vmul.f32 %v609_v62, %v8196_v3  ;;  %v929_v60 = vmul.f32 %v705_v14, %v8210_v24  ;;  %v1133_v34 = vrot.slane %v1132_v13, 4  ;;  %v2552_v50 = vadd.f32 %v2551_v27, %v913_v39  ;;  %v128_v24 = vld [vmem:[%s10214_s0 + $0x150] sm:$0xff] }
 0x1e1   :  { %v1341_v5 = vrot.slane %v1340_v56, 4  ;;  %v1629_v59 = vadd.f32 %v1628_v48, %v1627_v58  ;;  %v1837_v3 = vadd.f32 %v1836_v2, %v1835_v55  ;;  %v2345_v52 = vadd.f32 %v2344_v42, %v817_v54  ;;  %v3387_v62 = vld [vmem:[%s10215_s1 + $0x6f0] sm:$0xff]  ;;  %v3385_v48 = vld [vmem:[%s10215_s1 + $0x6e0] sm:$0xff] }
 0x1e2   :  { %v3109_v0 = vld [vmem:[#allocation2 + $0x180] sm:$0xff]  ;;  %v8291_v14 = vmul.f32 %v8226_v18, %v8202_v32  ;;  %v8295_v43 = vmul.f32 %v8230_v41, %v8204_v10  ;;  %v945_v57 = vmul.f32 %v8236_v45, %v8212_v36  ;;  %v1134_v21 = vadd.f32 %v1133_v34, %v1132_v13  ;;  %v208_v32 = vld [vmem:[%s10214_s0 + $0x3d0] sm:$0xff]  ;;  %v3384_v13 = vld [vmem:[%s10215_s1 + $0x6d8] sm:$0xff] }
 0x1e3   :  { %3826 = vmatmul.mubr.f32.vlgmr.msra.gmra.mxu0 %v3109_v0  ;;  %v224_v10 = vld [vmem:[%s10214_s0 + $0x450] sm:$0xff]  ;;  %v8316_v18 = vmul.f32 %v8240_v11, %v8214_v28  ;;  %v8319_v41 = vmul.f32 %v753_v20, %v8216_v7  ;;  %v1342_v45 = vadd.f32 %v1341_v5, %v1340_v56  ;;  %v8333_v11 = vand.u32 2147483647, %v96_v12  ;;  %v3386_v7 = vld [vmem:[%s10215_s1 + $0x6e8] sm:$0xff]  ;;  %v3369_v42 = vld [vmem:[%s10215_s1 + $0x660] sm:$0xff] }
 0x1e4   :  { %v3371_v36 = vld [vmem:[%s10215_s1 + $0x670] sm:$0xff]  ;;  %4477 = vmatpush3.msra.mxu0 %v3372_v29  ;;  %v1135_v20 = vrot.slane %v1134_v21, 2  ;;  %v2553_v8 = vadd.f32 %v2552_v50, %v929_v60  ;;  %v8341_v9 = vand.u32 2147483647, %v112_v46  ;;  %v8343_v63 = vand.u32 2147483647, %v128_v24 }
 0x1e5   :  { %v256_v28 = vld [vmem:[%s10214_s0 + $0x550] sm:$0xff]  ;;  %4478 = vmatprep.subr.mxu0 %v3387_v62  ;;  %v1343_v35 = vrot.slane %v1342_v45, 2  ;;  %v1630_v38 = vrot.slane %v1629_v59, 4  ;;  %v1838_v16 = vrot.slane %v1837_v3, 4  ;;  %v8348_v27 = vadd.f32 %v2345_v52, %v833_v17  ;;  %v3368_v5 = vld [vmem:[%s10215_s1 + $0x658] sm:$0xff] }
 0x1e6   :  { %v272_v39 = vld [vmem:[%s10214_s0 + $0x5d0] sm:$0xff]  ;;  %4479 = vmatpush3.msra.mxu0 %v3371_v36  ;;  %v1136_v58 = vadd.f32 %v1135_v20, %v1134_v21  ;;  %v8365_v55 = vand.u32 2147483647, %v144_v51  ;;  %v8367_v2 = vand.u32 2147483647, %v160_v15  ;;  %v8377_v46 = vadd.f32 %v2553_v8, %v945_v57 }
 0x1e7   :  { %v288_v54 = vld [vmem:[%s10214_s0 + $0x650] sm:$0xff]  ;;  %v8369_v56 = vand.u32 2147483647, %v176_v44  ;;  %4480 = vmatprep.subr.mxu0 %v3386_v7  ;;  %v1344_v17 = vadd.f32 %v1343_v35, %v1342_v45  ;;  %v8371_v60 = vand.u32 2147483647, %v192_v19  ;;  %v8386_v24 = vadd.f32 %v1630_v38, %v1629_v59 }
 0x1e8   :  { %v304_v23 = vld [vmem:[%s10214_s0 + $0x6d0] sm:$0x1]  ;;  %v8373_v34 = vand.u32 2147483647, %v208_v32  ;;  %v8375_v50 = vand.u32 2147483647, %v224_v10  ;;  %4481 = vmatpush3.msra.mxu0 %v3370_v25  ;;  %v8388_v62 = vadd.f32 %v1838_v16, %v1837_v3  ;;  %v8398_v32 = vmul.f32 %v8333_v11, %v8333_v11 }
 0x1e9   :  { %10371 = vst [vmem:[#allocation12_spill] sm:$0xff] %v8371_v60  ;;  %v1137_v12 = vrot.slane %v1136_v58, 1  ;;  %v8379_v29 = vand.u32 2147483647, %v240_v26  ;;  %v8381_v0 = vand.u32 2147483647, %v256_v28  ;;  %4482 = vmatprep.subr.mxu0 %v3385_v48  ;;  %v8402_v59 = vmul.f32 %v8341_v9, %v8341_v9 }
 0x1ea   :  { %v1345_v52 = vrot.slane %v1344_v17, 1  ;;  %v8390_v21 = vand.u32 2147483647, %v272_v39  ;;  %4483 = vmatpush3.msra.mxu0 %v3369_v42  ;;  %v8392_v57 = vand.u32 2147483647, %v288_v54  ;;  %v8406_v3 = vmul.f32 %v8343_v63, %v8343_v63 }
 0x1eb   :  { %10372 = vst [vmem:[#allocation16_spill] sm:$0xff] %v8379_v29  ;;  %v1138_v51 = vadd.f32 %v1137_v12, %v1136_v58  ;;  %v8394_v15 = vand.u32 2147483647, %v304_v23  ;;  %4484 = vmatprep.subr.mxu0 %v3384_v13  ;;  %v8410_v36 = vmul.f32 %v8365_v55, %v8365_v55  ;;  %v8414_v45 = vmul.f32 %v8367_v2, %v8367_v2  ;;  %v3383_v12 = vld [vmem:[%s10215_s1 + $0x6d0] sm:$0xff] }
 0x1ec   :  { %10373 = vst [vmem:[#allocation21_spill] sm:$0xff] %v8390_v21  ;;  %v1346_v10 = vadd.f32 %v1345_v52, %v1344_v17  ;;  %4485 = vmatpush3.msra.mxu0 %v3368_v5  ;;  %v8418_v44 = vmul.f32 %v8369_v56, %v8369_v56  ;;  %v8422_v19 = vmul.f32 %v8371_v60, %v8371_v60  ;;  %v1118_v16 = vsel %vm10377_vm8, %v8371_v60, 0.0 }
 0x1ed   :  { %10374 = vst [vmem:[#allocation22_spill] sm:$0xff] %v8394_v15  ;;  %v8426_v26 = vmul.f32 %v8373_v34, %v8373_v34  ;;  %v8431_v7 = vmul.f32 %v8375_v50, %v8375_v50  ;;  %v8435_v20 = vmul.f32 %v8379_v29, %v8379_v29  ;;  %v8439_v8 = vmul.f32 %v8381_v0, %v8381_v0 }
 0x1ee   :  { %10375 = vst [vmem:[#allocation27_spill] sm:$0xff] %v8422_v19  ;;  %v1443_v28 = vsel %vm10346_vm0, %v1346_v10, %v1138_v51  ;;  %v8443_v39 = vmul.f32 %v8390_v21, %v8390_v21  ;;  %v8447_v25 = vmul.f32 %v8392_v57, %v8392_v57  ;;  %v8451_v35 = vmul.f32 %v8394_v15, %v8394_v15 }
 0x1ef   :  { %10376 = vst [vmem:[#allocation23_spill] sm:$0xff] %v8431_v7  ;;  %1475 = vst [vmem:[#allocation2 + $0x98] sm:$0x3] %v1443_v28  ;;  %v1113_v38 = vadd.f32 %v8341_v9, %v8333_v11  ;;  %v1321_v54 = vadd.f32 %v8375_v50, %v8373_v34  ;;  %v1326_v23 = vsel %vm10378_vm11, %v8394_v15, 0.0  ;;  %v1610_v48 = vadd.f32 %v8402_v59, %v8398_v32  ;;  %v3367_v28 = vld [vmem:[%s10215_s1 + $0x650] sm:$0xff] }
 0x1f0   :  { %v1615_v13 = vsel %vm10379_vm4, %v8422_v19, 0.0  ;;  %v1818_v58 = vadd.f32 %v8431_v7, %v8426_v26  ;;  %v1606_v17 = vrot.slane %v8084_v47, 2  ;;  %v1814_v51 = vrot.slane %v8090_v6, 2  ;;  %4486 = vmatprep.subr.mxu0 %v3383_v12  ;;  %v3382_v7 = vld [vmem:[%s10215_s1 + $0x6c8] sm:$0xff] }
 0x1f1   :  { %v1114_v42 = vadd.f32 %v1113_v38, %v8343_v63  ;;  %v1322_v5 = vadd.f32 %v1321_v54, %v8379_v29  ;;  %v1611_v52 = vadd.f32 %v1610_v48, %v8406_v3  ;;  %v1591_v10 = vrot.slane %v8267_v49, 4  ;;  %4487 = vmatpush3.msra.mxu0 %v3367_v28 }
 0x1f2   :  { %v1819_v15 = vadd.f32 %v1818_v58, %v8435_v20  ;;  %v1607_v19 = vadd.f32 %v1606_v17, %v8084_v47  ;;  %v1799_v60 = vrot.slane %v8270_v1, 4  ;;  %v1815_v29 = vadd.f32 %v1814_v51, %v8090_v6  ;;  %4488 = vmatprep.subr.mxu0 %v3382_v7 }
 0x1f3   :  { %v1115_v38 = vadd.f32 %v1114_v42, %v8365_v55  ;;  %v1323_v54 = vadd.f32 %v1322_v5, %v8381_v0  ;;  %v1612_v48 = vadd.f32 %v1611_v52, %v8410_v36  ;;  %v1592_v12 = vadd.f32 %v1591_v10, %v8267_v49 }
 0x1f4   :  { %v1820_v58 = vadd.f32 %v1819_v15, %v8439_v8  ;;  %v1608_v47 = vrot.slane %v1607_v19, 1  ;;  %v1800_v17 = vadd.f32 %v1799_v60, %v8270_v1  ;;  %v1816_v6 = vrot.slane %v1815_v29, 1 }
 0x1f5   :  { %v1116_v42 = vadd.f32 %v1115_v38, %v8367_v2  ;;  %v1324_v5 = vadd.f32 %v1323_v54, %v8390_v21  ;;  %v1613_v52 = vadd.f32 %v1612_v48, %v8414_v45  ;;  %v1593_v51 = vrot.slane %v1592_v12, 2 }
 0x1f6   :  { %v3112_v28 = vld [vmem:[#allocation2 + $0x98] sm:$0xff]  ;;  %v1821_v10 = vadd.f32 %v1820_v58, %v8443_v39  ;;  %v1823_v38 = vsel %vm10380_vm13, %v8451_v35, 0.0  ;;  %v8499_v15 = vadd.f32 %v1608_v47, %v1607_v19  ;;  %v8503_v7 = vadd.f32 %v1816_v6, %v1815_v29 }
 0x1f7   :  { %3910 = vmatprep.mubr.f32.mxu1 %v3112_v28  ;;  %v1117_v49 = vadd.f32 %v1116_v42, %v8369_v56  ;;  %v1325_v1 = vadd.f32 %v1324_v5, %v8392_v57  ;;  %v1614_v60 = vadd.f32 %v1613_v52, %v8418_v44  ;;  %v1594_v54 = vadd.f32 %v1593_v51, %v1592_v12  ;;  %v3366_v5 = vld [vmem:[%s10215_s1 + $0x648] sm:$0xff] }
 0x1f8   :  { %v1822_v21 = vadd.f32 %v1821_v10, %v8447_v25  ;;  %5271 = vrsqrt.f32 %v8499_v15  ;;  %v1801_v42 = vrot.slane %v1800_v17, 2  ;;  %v8509_v58 = vsel %vm10381_vm14, %v8295_v43, 0.0  ;;  %4489 = vmatpush3.msra.mxu0 %v3366_v5  ;;  %vm10390_vm14 = vmmov %vm10382_vm1 }
 0x1f9   :  { %v1119_v48 = vadd.f32 %v1118_v16, %v1117_v49  ;;  %v8513_v19 = vsel %vm10382_vm1, %v8319_v41, 0.0  ;;  %v1327_v47 = vadd.f32 %v1326_v23, %v1325_v1  ;;  %v1616_v28 = vadd.f32 %v1615_v13, %v1614_v60  ;;  %vm10392_vm1 = vmmov %vm10384_vm3 }
 0x1fa   :  { %v8517_v29 = vadd.f32 %v8348_v27, %v8291_v14  ;;  %v1824_v12 = vadd.f32 %v1823_v38, %v1822_v21  ;;  %5273 = vrsqrt.f32 %v8503_v7  ;;  %v8525_v43 = vadd.f32 %v8377_v46, %v8316_v18 }
 0x1fb   :  { %v1120_v16 = vrot.slane %v1119_v48, 4  ;;  %v8529_v41 = vmul.f32 %v8398_v32, %v8333_v11  ;;  %v1328_v23 = vrot.slane %v1327_v47, 4  ;;  %v1595_v13 = vrot.slane %v1594_v54, 1 }
 0x1fc   :  { %v1802_v27 = vadd.f32 %v1801_v42, %v1800_v17  ;;  %v1632_v21 = vrot.slane %v8386_v24, 2  ;;  %v1840_v52 = vrot.slane %v8388_v62, 2  ;;  %v1617_v49 = vrot.slane %v1616_v28, 4 }
 0x1fd   :  { %v1121_v14 = vadd.f32 %v1120_v16, %v1119_v48  ;;  %v1329_v6 = vadd.f32 %v1328_v23, %v1327_v47  ;;  %v8533_v51 = vadd.f32 %v1595_v13, %v1594_v54  ;;  %v1825_v10 = vrot.slane %v1824_v12, 4  ;;  %v3381_v16 = vld [vmem:[%s10215_s1 + $0x6c0] sm:$0xff] }
 0x1fe   :  { %v1803_v46 = vrot.slane %v1802_v27, 1  ;;  %v1633_v38 = vadd.f32 %v1632_v21, %v8386_v24  ;;  %v1841_v11 = vadd.f32 %v1840_v52, %v8388_v62  ;;  %v8539_v32 = vmul.f32 %v8402_v59, %v8341_v9  ;;  %4490 = vmatprep.subr.mxu0 %v3381_v16  ;;  %v3365_v13 = vld [vmem:[%s10215_s1 + $0x640] sm:$0xff] }
 0x1ff   :  { %v1122_v18 = vrot.slane %v1121_v14, 2  ;;  %v8543_v17 = vmul.f32 %v8406_v3, %v8343_v63  ;;  %v1330_v1 = vrot.slane %v1329_v6, 2  ;;  %5275 = vrsqrt.f32 %v8533_v51  ;;  %4491 = vmatpush3.msra.mxu0 %v3365_v13 }
 0x200   :  { %v8548_v60 = vmul.f32 %v8410_v36, %v8365_v55  ;;  %v8550_v48 = vadd.f32 %v1803_v46, %v1802_v27  ;;  %v1634_v24 = vrot.slane %v1633_v38, 1  ;;  %v1842_v42 = vrot.slane %v1841_v11, 1 }
 0x201   :  { %v1123_v54 = vadd.f32 %v1122_v18, %v1121_v14  ;;  %v1331_v62 = vadd.f32 %v1330_v1, %v1329_v6  ;;  %v1618_v47 = vadd.f32 %v1617_v49, %v1616_v28  ;;  %v1826_v9 = vadd.f32 %v1825_v10, %v1824_v12  ;;  %v3380_v14 = vld [vmem:[%s10215_s1 + $0x6b8] sm:$0xff]  ;;  %v3379_v6 = vld [vmem:[%s10215_s1 + $0x6b0] sm:$0xff] }
 0x202   :  { %vm1961_vm5 = vcmp.eq.f32.partialorder %v8499_v15, inf  ;;  %vm1963_vm6 = vcmp.eq.f32.partialorder %v8499_v15, 0.0  ;;  %5277 = vrsqrt.f32 %v8550_v48  ;;  %v1964_v3 = vand.u32 2147483648, %v8499_v15  ;;  %4492 = vmatprep.subr.mxu0 %v3380_v14  ;;  %v3363_v49 = vld [vmem:[%s10215_s1 + $0x630] sm:$0xff] }
 0x203   :  { %v1124_v59 = vrot.slane %v1123_v54, 1  ;;  %v1332_v63 = vrot.slane %v1331_v62, 1  ;;  %v8556_v55 = vadd.f32 %v1634_v24, %v1633_v38  ;;  %v8558_v36 = vadd.f32 %v1842_v42, %v1841_v11  ;;  %v3378_v11 = vld [vmem:[%s10215_s1 + $0x6a8] sm:$0xff] }
 0x204   :  { %v1619_v12 = vrot.slane %v1618_v47, 2  ;;  %v1827_v5 = vrot.slane %v1826_v9, 2  ;;  %v2323_v23 = vadd.f32 %v8056_v61, %v8030_v30  ;;  %vm2073_vm7 = vcmp.eq.f32.partialorder %v8503_v7, inf  ;;  %v3364_v30 = vld [vmem:[%s10215_s1 + $0x638] sm:$0xff]  ;;  %v3362_v42 = vld [vmem:[%s10215_s1 + $0x628] sm:$0xff] }
 0x205   :  { %v1125_v28 = vadd.f32 %v1124_v59, %v1123_v54  ;;  %v5272_v27 = vpop.eup %5271  ;;  %v1333_v21 = vadd.f32 %v1332_v63, %v1331_v62  ;;  %vm2075_vm12 = vcmp.eq.f32.partialorder %v8503_v7, 0.0  ;;  %5279 = vrsqrt.f32 %v8556_v55  ;;  %4493 = vmatpush3.msra.mxu0 %v3364_v30  ;;  %v3360_v30 = vld [vmem:[%s10215_s1 + $0x618] sm:$0xff] }
 0x206   :  { %v1960_v61 = vmul.f32 %v5272_v27, %v8499_v15  ;;  %v2076_v52 = vand.u32 2147483648, %v8503_v7  ;;  %vm1954_vm15 = vcmp.eq.f32.partialorder %v8533_v51, inf  ;;  %5281 = vrsqrt.f32 %v8558_v36  ;;  %4494 = vmatprep.subr.mxu0 %v3379_v6  ;;  %v3375_v6 = vld [vmem:[%s10215_s1 + $0x690] sm:$0xff] }
 0x207   :  { %v5274_v10 = vpop.eup %5273  ;;  %v1442_v18 = vsel %vm10383_vm9, %v1333_v21, %v1125_v28  ;;  %vm1956_vm10 = vcmp.eq.f32.partialorder %v8533_v51, 0.0  ;;  %v1957_v46 = vand.u32 2147483648, %v8533_v51  ;;  %v1620_v38 = vadd.f32 %v1619_v12, %v1618_v47  ;;  %4495 = vmatpush3.msra.mxu0 %v3363_v49  ;;  %v10385_v21 = vld [vmem:[#allocation15_spill] sm:$0xff] }
 0x208   :  { %1474 = vst [vmem:[#allocation2 + $0x118] sm:$0x3] %v1442_v18  ;;  %v1962_v1 = vsel %vm1961_vm5, %v8499_v15, %v1960_v61  ;;  %v2072_v54 = vmul.f32 %v5274_v10, %v8503_v7  ;;  %v1828_v24 = vadd.f32 %v1827_v5, %v1826_v9  ;;  %v2324_v62 = vrot.slane %v2323_v23, 4  ;;  %v3377_v9 = vld [vmem:[%s10215_s1 + $0x6a0] sm:$0xff]  ;;  %4496 = vmatprep.subr.mxu0 %v3378_v11  ;;  %v3376_v5 = vld [vmem:[%s10215_s1 + $0x698] sm:$0xff]  ;;  %v3419_v18 = vld [vmem:[%s10215_s1 + $0x7f0] sm:$0xff] }
 0x209   :  { %v1965_v47 = vsel %vm1963_vm6, %v1964_v3, %v1962_v1  ;;  %v1621_v59 = vrot.slane %v1620_v38, 1  ;;  %v2531_v63 = vadd.f32 %v8087_v4, %v8032_v22  ;;  %v2304_v16 = vadd.f32 %v8116_v53, %v8114_v37  ;;  %v3361_v22 = vld [vmem:[%s10215_s1 + $0x620] sm:$0xff]  ;;  %4497 = vmatpush3.msra.mxu0 %v3362_v42  ;;  %vm10395_vm5 = vmmov %vm10390_vm14 }
 0x20a   :  { %v2074_v28 = vsel %vm2073_vm7, %v8503_v7, %v2072_v54  ;;  %vm2066_vm2 = vcmp.eq.f32.partialorder %v8550_v48, inf  ;;  %v1829_v15 = vrot.slane %v1828_v24, 1  ;;  %v2325_v3 = vadd.f32 %v2324_v62, %v2323_v23  ;;  %4498 = vmatprep.subr.mxu0 %v3377_v9  ;;  %v3403_v54 = vld [vmem:[%s10215_s1 + $0x770] sm:$0xff]  ;;  %v10386_v62 = vld [vmem:[#allocation13_spill] sm:$0xff]  ;;  %vm10398_vm6 = vmmov %vm10392_vm1 }
 0x20b   :  { %v2077_v4 = vsel %vm2075_vm12, %v2076_v52, %v2074_v28  ;;  %v8618_v37 = vadd.f32 %v1621_v59, %v1620_v38  ;;  %v2532_v53 = vrot.slane %v2531_v63, 4  ;;  %v2305_v12 = vadd.f32 %v2304_v16, %v8118_v33  ;;  %4499 = vmatpush3.msra.mxu0 %v3361_v22  ;;  %v3404_v52 = vld [vmem:[%s10215_s1 + $0x778] sm:$0xff]  ;;  %v3418_v16 = vld [vmem:[%s10215_s1 + $0x7e8] sm:$0xff] }
 0x20c   :  { %v5276_v13 = vpop.eup %5275  ;;  %v2161_v23 = vsel %vm10384_vm3, %v2077_v4, %v1965_v47  ;;  %v8625_v14 = vadd.f32 %v1829_v15, %v1828_v24  ;;  %v2326_v27 = vrot.slane %v2325_v3, 2  ;;  %v2512_v7 = vadd.f32 %v10385_v21, %v8131_v40  ;;  %4500 = vmatprep.subr.mxu0 %v3376_v5  ;;  %v10387_v47 = vld [vmem:[#allocation17_spill] sm:$0xff]  ;;  %vm10405_vm3 = vmmov %vm10395_vm5 }
 0x20d   :  { %2193 = vst [vmem:[#allocation2 + $0xf8] sm:$0x3] %v2161_v23  ;;  %v1953_v33 = vmul.f32 %v5276_v13, %v8533_v51  ;;  %vm2068_vm0 = vcmp.eq.f32.partialorder %v8550_v48, 0.0  ;;  %v2069_v61 = vand.u32 2147483648, %v8550_v48  ;;  %5283 = vrsqrt.f32 %v8618_v37  ;;  %4501 = vmatpush3.msra.mxu0 %v3360_v30  ;;  %v10391_v5 = vld [vmem:[#allocation9_spill] sm:$0xff] }
 0x20e   :  { %vm1975_vm8 = vcmp.eq.f32.partialorder %v8556_v55, inf  ;;  %vm1977_vm11 = vcmp.eq.f32.partialorder %v8556_v55, 0.0  ;;  %v1978_v40 = vand.u32 2147483648, %v8556_v55  ;;  %5285 = vrsqrt.f32 %v8625_v14  ;;  %4502 = vmatprep.subr.mxu0 %v3375_v6 }
 0x20f   :  { %v5278_v49 = vpop.eup %5277  ;;  %v3111_v10 = vld [vmem:[#allocation2 + $0x118] sm:$0xff]  ;;  %v1955_v38 = vsel %vm1954_vm15, %v8533_v51, %v1953_v33  ;;  %vm2087_vm4 = vcmp.eq.f32.partialorder %v8558_v36, inf  ;;  %v2327_v11 = vadd.f32 %v2326_v27, %v2325_v3  ;;  %v2533_v1 = vadd.f32 %v2532_v53, %v2531_v63  ;;  %v3402_v51 = vld [vmem:[%s10215_s1 + $0x768] sm:$0xff] }
 0x210   :  { %3911 = vmatmul.mubr.f32.vlgmr.msra.gmra.mxu1 %v3111_v10  ;;  %v2065_v24 = vmul.f32 %v5278_v49, %v8550_v48  ;;  %vm2089_vm13 = vcmp.eq.f32.partialorder %v8558_v36, 0.0  ;;  %v2306_v42 = vadd.f32 %v2305_v12, %v10386_v62  ;;  %v2513_v59 = vadd.f32 %v2512_v7, %v10387_v47  ;;  %v10389_v53 = vld [vmem:[#allocation19_spill] sm:$0xff]  ;;  %v3417_v7 = vld [vmem:[%s10215_s1 + $0x7e0] sm:$0xff]  ;;  %v10393_v10 = vld [vmem:[#allocation18_spill] sm:$0xff] }
 0x211   :  { %4521 = vmatpush3.msra.mxu1 %v3404_v52  ;;  %v1958_v63 = vsel %vm1956_vm10, %v1957_v46, %v1955_v38  ;;  %v2090_v9 = vand.u32 2147483648, %v8558_v36  ;;  %v2328_v28 = vrot.slane %v2327_v11, 1  ;;  %v2534_v15 = vrot.slane %v2533_v1, 2  ;;  %v10388_v46 = vld [vmem:[#allocation14_spill] sm:$0xff]  ;;  %v10394_v38 = vld [vmem:[#allocation11_spill] sm:$0xff]  ;;  %vm10400_vm10 = vmmov %vm10392_vm1 }
 0x212   :  { %v5280_v3 = vpop.eup %5279  ;;  %4522 = vmatprep.subr.mxu1 %v3419_v18  ;;  %v2067_v22 = vsel %vm2066_vm2, %v8550_v48, %v2065_v24  ;;  %v2307_v4 = vadd.f32 %v2306_v42, %v10388_v46  ;;  %v2309_v12 = vsel %vm10390_vm14, %v10389_v53, 0.0  ;;  %v2514_v13 = vadd.f32 %v2513_v59, %v10391_v5  ;;  %v3359_v52 = vld [vmem:[%s10215_s1 + $0x610] sm:$0xff]  ;;  %v3416_v42 = vld [vmem:[%s10215_s1 + $0x7d8] sm:$0xff] }
 0x213   :  { %v5282_v23 = vpop.eup %5281  ;;  %4523 = vmatpush3.msra.mxu1 %v3403_v54  ;;  %v2070_v27 = vsel %vm2068_vm0, %v2069_v61, %v2067_v22  ;;  %v1974_v21 = vmul.f32 %v5280_v3, %v8556_v55  ;;  %v8684_v30 = vadd.f32 %v2328_v28, %v2327_v11  ;;  %v2535_v33 = vadd.f32 %v2534_v15, %v2533_v1  ;;  %v3401_v61 = vld [vmem:[%s10215_s1 + $0x760] sm:$0xff]  ;;  %v10396_v15 = vld [vmem:[#allocation10_spill] sm:$0xff] }
 0x214   :  { %v3126_v6 = vld [vmem:[#allocation2 + $0xf8] sm:$0xff]  ;;  %v2160_v49 = vsel %vm10392_vm1, %v2070_v27, %v1958_v63  ;;  %4524 = vmatprep.subr.mxu1 %v3418_v16  ;;  %v2086_v48 = vmul.f32 %v5282_v23, %v8558_v36  ;;  %v2308_v18 = vadd.f32 %v2307_v4, %v10393_v10  ;;  %v2515_v11 = vadd.f32 %v2514_v13, %v10394_v38  ;;  %v3399_v46 = vld [vmem:[%s10215_s1 + $0x750] sm:$0xff]  ;;  %v3357_v4 = vld [vmem:[%s10215_s1 + $0x600] sm:$0xff] }
 0x215   :  { %v8698_v1 = vmul.f32 %v8414_v45, %v8367_v2  ;;  %3830 = vmatprep.mubr.f32.mxu0 %v3126_v6  ;;  %2192 = vst [vmem:[#allocation2 + $0x1e8] sm:$0x3] %v2160_v49  ;;  %v1976_v54 = vsel %vm1975_vm8, %v8556_v55, %v1974_v21  ;;  %4525 = vmatpush3.msra.mxu1 %v3402_v51  ;;  %v2536_v24 = vrot.slane %v2535_v33, 1  ;;  %v2517_v62 = vsel %vm10395_vm5, %v8264_v31, 0.0  ;;  %v3374_v2 = vld [vmem:[%s10215_s1 + $0x688] sm:$0xff]  ;;  %v3400_v63 = vld [vmem:[%s10215_s1 + $0x758] sm:$0xff] }
 0x216   :  { %v1979_v45 = vsel %vm1977_vm11, %v1978_v40, %v1976_v54  ;;  %v2088_v47 = vsel %vm2087_vm4, %v8558_v36, %v2086_v48  ;;  %4526 = vmatprep.subr.mxu1 %v3417_v7  ;;  %v8717_v59 = vand.u32 2147483647, %v8684_v30  ;;  %v2349_v31 = vadd.f32 %v8509_v58, %v8517_v29  ;;  %4503 = vmatpush3.msra.mxu0 %v3359_v52  ;;  %v3358_v55 = vld [vmem:[%s10215_s1 + $0x608] sm:$0xff]  ;;  %v3415_v58 = vld [vmem:[%s10215_s1 + $0x7d0] sm:$0xff]  ;;  %v3373_v29 = vld [vmem:[%s10215_s1 + $0x680] sm:$0xff] }
 0x217   :  { %v2091_v40 = vsel %vm2089_vm13, %v2090_v9, %v2088_v47  ;;  %v8729_v16 = vadd.f32 %v2536_v24, %v2535_v33  ;;  %4527 = vmatpush3.msra.mxu1 %v3401_v61  ;;  %v2310_v28 = vadd.f32 %v2309_v12, %v2308_v18  ;;  %v2516_v3 = vadd.f32 %v2515_v11, %v10396_v15  ;;  %v10397_v36 = vld [vmem:[#allocation23_spill] sm:$0xff]  ;;  %v3398_v27 = vld [vmem:[%s10215_s1 + $0x748] sm:$0xff]  ;;  %v3413_v7 = vld [vmem:[%s10215_s1 + $0x7c0] sm:$0xff] }
 0x218   :  { %v8740_v22 = vmul.f32 %v8426_v26, %v8373_v34  ;;  %v8744_v9 = vmul.f32 %v10397_v36, %v8375_v50  ;;  %v2163_v51 = vsel %vm10398_vm6, %v2091_v40, %v1979_v45  ;;  %5287 = vlog2.f32 %v8717_v59  ;;  %4528 = vmatprep.subr.mxu1 %v3416_v42  ;;  %4504 = vmatprep.subr.mxu0 %v3374_v2  ;;  %v3414_v26 = vld [vmem:[%s10215_s1 + $0x7c8] sm:$0xff]  ;;  %v3397_v48 = vld [vmem:[%s10215_s1 + $0x740] sm:$0xff]  ;;  %v3412_v11 = vld [vmem:[%s10215_s1 + $0x7b8] sm:$0xff] }
 0x219   :  { %2195 = vst [vmem:[#allocation2 + $0x30] sm:$0x3] %v2163_v51  ;;  %vm1968_vm7 = vcmp.eq.f32.partialorder %v8618_v37, inf  ;;  %vm1970_vm12 = vcmp.eq.f32.partialorder %v8618_v37, 0.0  ;;  %v8757_v34 = vand.u32 2147483647, %v8729_v16  ;;  %v2557_v50 = vadd.f32 %v8513_v19, %v8525_v43  ;;  %4529 = vmatpush3.msra.mxu1 %v3400_v63  ;;  %4505 = vmatpush3.msra.mxu0 %v3358_v55  ;;  %vm10408_vm11 = vmmov %vm10405_vm3 }
 0x21a   :  { %v5284_v53 = vpop.eup %5283  ;;  %v1971_v12 = vand.u32 2147483648, %v8618_v37  ;;  %v2311_v5 = vrot.slane %v2310_v28, 4  ;;  %v2518_v13 = vadd.f32 %v2517_v62, %v2516_v3  ;;  %v2350_v23 = vrot.slane %v2349_v31, 4  ;;  %4530 = vmatprep.subr.mxu1 %v3415_v58  ;;  %4506 = vmatprep.subr.mxu0 %v3373_v29  ;;  %v3396_v2 = vld [vmem:[%s10215_s1 + $0x738] sm:$0xff] }
 0x21b   :  { %v5286_v21 = vpop.eup %5285  ;;  %v1967_v19 = vmul.f32 %v5284_v53, %v8618_v37  ;;  %vm2080_vm15 = vcmp.eq.f32.partialorder %v8625_v14, inf  ;;  %v2083_v43 = vand.u32 2147483648, %v8625_v14  ;;  %5289 = vlog2.f32 %v8757_v34  ;;  %4531 = vmatpush3.msra.mxu1 %v3399_v46  ;;  %4507 = vmatpush3.msra.mxu0 %v3357_v4  ;;  %v3394_v46 = vld [vmem:[%s10215_s1 + $0x728] sm:$0xff] }
 0x21c   :  { %v3125_v33 = vld [vmem:[#allocation2 + $0x1e8] sm:$0xff]  ;;  %v2079_v52 = vmul.f32 %v5286_v21, %v8625_v14  ;;  %vm2082_vm9 = vcmp.eq.f32.partialorder %v8625_v14, 0.0  ;;  %v2312_v6 = vadd.f32 %v2311_v5, %v2310_v28  ;;  %v2519_v49 = vrot.slane %v2518_v13, 4  ;;  %4532 = vmatprep.subr.mxu1 %v3414_v26  ;;  %v3393_v5 = vld [vmem:[%s10215_s1 + $0x720] sm:$0xff] }
 0x21d   :  { %3831 = vmatmul.mubr.f32.gmra.mxu0 %v3125_v33  ;;  %v1969_v61 = vsel %vm1968_vm7, %v8618_v37, %v1967_v19  ;;  %v2351_v10 = vadd.f32 %v2350_v23, %v2349_v31  ;;  %v2558_v18 = vrot.slane %v2557_v50, 4  ;;  %v2330_v38 = vadd.f32 %v8539_v32, %v8529_v41  ;;  %4533 = vmatpush3.msra.mxu1 %v3398_v27  ;;  %v3411_v37 = vld [vmem:[%s10215_s1 + $0x7b0] sm:$0xff]  ;;  %v10399_v31 = vld [vmem:[#allocation16_spill] sm:$0xff]  ;;  %v10403_v33 = vld [vmem:[#allocation21_spill] sm:$0xff] }
 0x21e   :  { %v1972_v54 = vsel %vm1970_vm12, %v1971_v12, %v1969_v61  ;;  %v2081_v24 = vsel %vm2080_vm15, %v8625_v14, %v2079_v52  ;;  %v2313_v62 = vrot.slane %v2312_v6, 2  ;;  %v2520_v42 = vadd.f32 %v2519_v49, %v2518_v13  ;;  %4534 = vmatprep.subr.mxu1 %v3413_v7  ;;  %v3395_v14 = vld [vmem:[%s10215_s1 + $0x730] sm:$0xff]  ;;  %v3408_v27 = vld [vmem:[%s10215_s1 + $0x798] sm:$0xff] }
 0x21f   :  { %v2084_v41 = vsel %vm2082_vm9, %v2083_v43, %v2081_v24  ;;  %v2352_v32 = vrot.slane %v2351_v10, 2  ;;  %v2559_v45 = vadd.f32 %v2558_v18, %v2557_v50  ;;  %v2331_v47 = vadd.f32 %v2330_v38, %v8543_v17  ;;  %4535 = vmatpush3.msra.mxu1 %v3397_v48  ;;  %v8825_v12 = vld [vmem:[#allocation2 + $0x110] sm:$0x3]  ;;  %v10401_v21 = vld [vmem:[#allocation12_spill] sm:$0xff] }
 0x220   :  { %v912_v63 = vmul.f32 %v8435_v20, %v10399_v31  ;;  %v3128_v55 = vld [vmem:[#allocation2 + $0x30] sm:$0xff]  ;;  %v2162_v40 = vsel %vm10400_vm10, %v2084_v41, %v1972_v54  ;;  %v2314_v28 = vadd.f32 %v2313_v62, %v2312_v6  ;;  %v2521_v15 = vrot.slane %v2520_v42, 2  ;;  %4536 = vmatprep.subr.mxu1 %v3412_v11  ;;  %v3410_v20 = vld [vmem:[%s10215_s1 + $0x7a8] sm:$0xff] }
 0x221   :  { %3915 = vmatprep.mubr.f32.mxu1 %v3128_v55  ;;  %2194 = vst [vmem:[#allocation2 + $0x160] sm:$0x3] %v2162_v40  ;;  %v2353_v17 = vadd.f32 %v2352_v32, %v2351_v10  ;;  %v2560_v3 = vrot.slane %v2559_v45, 2  ;;  %v2332_v58 = vadd.f32 %v2331_v47, %v8548_v60  ;;  %v2538_v29 = vadd.f32 %v8744_v9, %v8740_v22  ;;  %v3409_v60 = vld [vmem:[%s10215_s1 + $0x7a0] sm:$0xff]  ;;  %v3407_v18 = vld [vmem:[%s10215_s1 + $0x790] sm:$0xff] }
 0x222   :  { %4537 = vmatpush3.msra.mxu1 %v3396_v2  ;;  %v2315_v36 = vrot.slane %v2314_v28, 1  ;;  %v2522_v51 = vadd.f32 %v2521_v15, %v2520_v42  ;;  %v848_v4 = vmul.f32 %v8418_v44, %v8369_v56  ;;  %v928_v44 = vmul.f32 %v8439_v8, %v8381_v0  ;;  %v3392_v8 = vld [vmem:[%s10215_s1 + $0x718] sm:$0xff]  ;;  %v3391_v24 = vld [vmem:[%s10215_s1 + $0x710] sm:$0xff]  ;;  %v8865_v42 = vld [vmem:[#allocation2 + $0x180] sm:$0x3] }
 0x223   :  { %4538 = vmatprep.subr.mxu1 %v3411_v37  ;;  %v2561_v50 = vadd.f32 %v2560_v3, %v2559_v45  ;;  %v2354_v26 = vrot.slane %v2353_v17, 1  ;;  %v2333_v53 = vadd.f32 %v2332_v58, %v8698_v1  ;;  %v2539_v23 = vadd.f32 %v2538_v29, %v912_v63  ;;  %v10402_v1 = vld [vmem:[#allocation27_spill] sm:$0xff]  ;;  %v3406_v2 = vld [vmem:[%s10215_s1 + $0x788] sm:$0xff]  ;;  %v3405_v63 = vld [vmem:[%s10215_s1 + $0x780] sm:$0xff] }
 0x224   :  { %4539 = vmatpush3.msra.mxu1 %v3395_v14  ;;  %v8822_v22 = vadd.f32 %v2315_v36, %v2314_v28  ;;  %v2523_v9 = vrot.slane %v2522_v51, 1  ;;  %v864_v19 = vmul.f32 %v10402_v1, %v10401_v21  ;;  %v944_v52 = vmul.f32 %v8443_v39, %v10403_v33  ;;  %v10406_v41 = vld [vmem:[#allocation22_spill] sm:$0xff]  ;;  %v8898_v29 = vld [vmem:[#allocation2 + $0x118] sm:$0x3] }
 0x225   :  { %4540 = vmatprep.subr.mxu1 %v3410_v20  ;;  %v5288_v56 = vpop.eup %5287  ;;  %v2562_v13 = vrot.slane %v2561_v50, 1  ;;  %vm10404_vm2 = vcmask 1041408   ;;  %v8852_v10 = vadd.f32 %v2354_v26, %v2353_v17  ;;  %v2334_v39 = vadd.f32 %v2333_v53, %v848_v4  ;;  %v3390_v45 = vld [vmem:[%s10215_s1 + $0x708] sm:$0xff] }
 0x226   :  { %4541 = vmatpush3.msra.mxu1 %v3394_v46  ;;  %v4733_v43 = vmul.f32 0.33333334, %v5288_v56  ;;  %v8837_v7 = vadd.f32 %v2523_v9, %v2522_v51  ;;  %v8842_v6 = vand.u32 2147483647, %v8822_v22  ;;  %v2811_v0 = vsel %vm10404_vm2, %v8825_v12, 0.0  ;;  %vm10407_vm0 = vmmov %vm10404_vm2 }
 0x227   :  { %4542 = vmatprep.subr.mxu1 %v3409_v60  ;;  %v8858_v11 = vadd.f32 %v2562_v13, %v2561_v50  ;;  %v2540_v54 = vadd.f32 %v2539_v23, %v928_v44  ;;  %v2335_v62 = vsel %vm10405_vm3, %v864_v19, 0.0  ;;  %v976_v32 = vmul.f32 %v8451_v35, %v10406_v41  ;;  %vm10409_vm1 = vmmov %vm10407_vm0 }
 0x228   :  { %4543 = vmatpush3.msra.mxu1 %v3393_v5  ;;  %v5290_v49 = vpop.eup %5289  ;;  %v3127_v48 = vld [vmem:[#allocation2 + $0x160] sm:$0xff]  ;;  %5291 = vpow2.f32 %v4733_v43  ;;  %v8850_v61 = vand.u32 2147483647, %v8837_v7  ;;  %v960_v47 = vmul.f32 %v8447_v25, %v8392_v57  ;;  %v8878_v37 = vand.u32 2147483647, %v8852_v10  ;;  %vm10410_vm12 = vmmov %vm10407_vm0 }
 0x229   :  { %4544 = vmatprep.subr.mxu1 %v3408_v27  ;;  %3916 = vmatmul.mubr.f32.gmra.mxu1 %v3127_v48  ;;  %v5021_v38 = vmul.f32 0.33333334, %v5290_v49  ;;  %5293 = vlog2.f32 %v8842_v6  ;;  %v2812_v31 = vrot.slane %v2811_v0, 4  ;;  %v8884_v35 = vand.u32 2147483647, %v8858_v11  ;;  %v3389_v57 = vld [vmem:[%s10215_s1 + $0x700] sm:$0xff] }
 0x22a   :  { %5295 = vlog2.f32 %v8850_v61  ;;  %4545 = vmatpush3.msra.mxu1 %v3392_v8  ;;  %v2336_v55 = vadd.f32 %v2335_v62, %v2334_v39  ;;  %v2541_v40 = vadd.f32 %v2540_v54, %v944_v52  ;;  %v2804_v28 = vsel %vm10407_vm0, %v8865_v42, 0.0  ;;  %v8892_v25 = vld [vmem:[#allocation2 + $0x98] sm:$0x3] }
 0x22b   :  { %5297 = vpow2.f32 %v5021_v38  ;;  %4546 = vmatprep.subr.mxu1 %v3407_v18  ;;  %vm4727_vm8 = vcmp.lt.f32.partialorder %v8684_v30, 0.0  ;;  %v2543_v15 = vsel %vm10408_vm11, %v976_v32, 0.0  ;;  %vm4726_vm4 = vcmp.eq.f32.partialorder %v8684_v30, 0.0 }
 0x22c   :  { %4547 = vmatpush3.msra.mxu1 %v3391_v24  ;;  %5299 = vlog2.f32 %v8878_v37  ;;  %v2337_v14 = vrot.slane %v2336_v55, 4  ;;  %v2542_v17 = vadd.f32 %v2541_v40, %v960_v47  ;;  %v2813_v3 = vadd.f32 %v2812_v31, %v2811_v0 }
 0x22d   :  { %4548 = vmatprep.subr.mxu1 %v3406_v2  ;;  %5301 = vlog2.f32 %v8884_v35  ;;  %v2805_v58 = vrot.slane %v2804_v28, 4  ;;  %v4732_v20 = vand.u32 2147483648, %v8684_v30  ;;  %vm4736_vm13 = vweird.f32 %v8717_v59 }
 0x22e   :  { %4549 = vmatpush3.msra.mxu1 %v3390_v45  ;;  %vm4738_vm14 = vcmp.eq.f32.partialorder %v8717_v59, 0.0  ;;  %v2825_v36 = vsel %vm10409_vm1, %v8892_v25, 0.0  ;;  %vm4729_vm5 = vcmp.eq.f32.partialorder %v8717_v59, inf  ;;  %v2338_v51 = vadd.f32 %v2337_v14, %v2336_v55 }
 0x22f   :  { %4550 = vmatprep.subr.mxu1 %v3405_v63  ;;  %v2544_v46 = vadd.f32 %v2543_v15, %v2542_v17  ;;  %v2814_v4 = vrot.slane %v2813_v3, 2  ;;  %v2806_v50 = vadd.f32 %v2805_v58, %v2804_v28  ;;  %vm5014_vm6 = vcmp.eq.f32.partialorder %v8729_v16, 0.0 }
 0x230   :  { %4551 = vmatpush3.msra.mxu1 %v3389_v57  ;;  %vm5015_vm7 = vcmp.lt.f32.partialorder %v8729_v16, 0.0  ;;  %v2826_v60 = vrot.slane %v2825_v36, 4  ;;  %v2818_v9 = vsel %vm10410_vm12, %v8898_v29, 0.0  ;;  %v2339_v26 = vrot.slane %v2338_v51, 2 }
 0x231   :  { %v2545_v53 = vrot.slane %v2544_v46, 4  ;;  %v2815_v5 = vadd.f32 %v2814_v4, %v2813_v3  ;;  %v2807_v56 = vrot.slane %v2806_v50, 2  ;;  %vm5017_vm15 = vcmp.eq.f32.partialorder %v8757_v34, inf }
 0x232   :  { %v5020_v13 = vand.u32 2147483648, %v8729_v16  ;;  %vm5024_vm9 = vweird.f32 %v8757_v34  ;;  %vm5026_vm10 = vcmp.eq.f32.partialorder %v8757_v34, 0.0  ;;  %v2340_v21 = vadd.f32 %v2339_v26, %v2338_v51 }
 0x233   :  { %v2546_v1 = vadd.f32 %v2545_v53, %v2544_v46  ;;  %v2816_v19 = vrot.slane %v2815_v5, 1  ;;  %v2808_v52 = vadd.f32 %v2807_v56, %v2806_v50  ;;  %v2827_v0 = vadd.f32 %v2826_v60, %v2825_v36 }
 0x234   :  { %v2819_v8 = vrot.slane %v2818_v9, 4  ;;  %v2341_v18 = vrot.slane %v2340_v21, 1  ;;  %vm10411_vm2 = vcmask 1041409   ;;  %vm4709_vm3 = vcmp.lt.f32.partialorder %v8822_v22, 0.0 }
 0x235   :  { %v5292_v44 = vpop.eup %5291  ;;  %v2547_v38 = vrot.slane %v2546_v1, 2  ;;  %v2817_v62 = vadd.f32 %v2816_v19, %v2815_v5  ;;  %v2828_v14 = vrot.slane %v2827_v0, 2  ;;  %v2809_v58 = vrot.slane %v2808_v52, 1  ;;  %v131_v19 = vld [vmem:[%s10214_s0 + $0x168] sm:$0xff] }
 0x236   :  { %v5294_v23 = vpop.eup %5293  ;;  %v4735_v27 = vor.u32 %v5292_v44, %v4732_v20  ;;  %v8921_v41 = vadd.f32 %v2341_v18, %v2340_v21  ;;  %v2820_v55 = vadd.f32 %v2819_v8, %v2818_v9  ;;  %vm4708_vm0 = vcmp.eq.f32.partialorder %v8822_v22, 0.0  ;;  %v115_v21 = vld [vmem:[%s10214_s0 + $0xe8] sm:$0xff] }
 0x237   :  { %v5296_v43 = vpop.eup %5295  ;;  %v4715_v33 = vmul.f32 0.33333334, %v5294_v23  ;;  %v2548_v32 = vadd.f32 %v2547_v38, %v2546_v1  ;;  %v2870_v63 = vmul.f32 0.5, %v2817_v62  ;;  %vm4720_vm11 = vcmp.eq.f32.partialorder %v8842_v6, 0.0  ;;  %v147_v8 = vld [vmem:[%s10214_s0 + $0x1e8] sm:$0xff] }
 0x238   :  { %v5298_v49 = vpop.eup %5297  ;;  %v4737_v48 = vsel %vm4736_vm13, %v8684_v30, %v4735_v27  ;;  %v5003_v39 = vmul.f32 0.33333334, %v5296_v43  ;;  %v8939_v51 = vand.u32 2147483647, %v8921_v41  ;;  %v2821_v50 = vrot.slane %v2820_v55, 2  ;;  %v99_v27 = vld [vmem:[%s10214_s0 + $0x68] sm:$0xff] }
 0x239   :  { %v4740_v54 = vsel %vm4738_vm14, %v4732_v20, %v4737_v48  ;;  %v5023_v24 = vor.u32 %v5298_v49, %v5020_v13  ;;  %5303 = vpow2.f32 %v4715_v33  ;;  %v5300_v45 = vpop.eup %5299  ;;  %v2549_v15 = vrot.slane %v2548_v32, 1 }
 0x23a   :  { %v4741_v2 = vsel %vm4727_vm8, nan, %v4740_v54  ;;  %5305 = vpow2.f32 %v5003_v39  ;;  %v5302_v40 = vpop.eup %5301  ;;  %v4769_v57 = vmul.f32 0.33333334, %v5300_v45  ;;  %v8944_v59 = vsub.f32 %v8825_v12, %v2870_v63 }
 0x23b   :  { %v4742_v47 = vsel %vm4726_vm4, 0.0, %v4741_v2  ;;  %v5025_v31 = vsel %vm5024_vm9, %v8729_v16, %v5023_v24  ;;  %v5057_v3 = vmul.f32 0.33333334, %v5302_v40  ;;  %v8936_v36 = vadd.f32 %v2549_v15, %v2548_v32 }
 0x23c   :  { %v5028_v28 = vsel %vm5026_vm10, %v5020_v13, %v5025_v31  ;;  %v4743_v17 = vsel %vm4729_vm5, inf, %v4742_v47  ;;  %5307 = vpow2.f32 %v4769_v57  ;;  %v4714_v16 = vand.u32 2147483648, %v8822_v22 }
 0x23d   :  { %v5029_v30 = vsel %vm5015_vm7, nan, %v5028_v28  ;;  %5309 = vpow2.f32 %v5057_v3  ;;  %vm4718_vm8 = vweird.f32 %v8842_v6  ;;  %vm4997_vm4 = vcmp.lt.f32.partialorder %v8837_v7, 0.0  ;;  %vm10412_vm7 = vmmov %vm10410_vm12 }
 0x23e   :  { %v5030_v20 = vsel %vm5014_vm6, 0.0, %v5029_v30  ;;  %5311 = vlog2.f32 %v8939_v51  ;;  %v5002_v34 = vand.u32 2147483648, %v8837_v7  ;;  %v8956_v12 = vand.u32 2147483647, %v8936_v36 }
 0x23f   :  { %v5031_v46 = vsel %vm5017_vm15, inf, %v5030_v20  ;;  %vm4711_vm13 = vcmp.eq.f32.partialorder %v8842_v6, inf  ;;  %vm4996_vm14 = vcmp.eq.f32.partialorder %v8837_v7, 0.0  ;;  %vm5006_vm1 = vweird.f32 %v8850_v61 }
 0x240   :  { %v2689_v4 = vsel %vm10411_vm2, %v5031_v46, %v4743_v17  ;;  %v2902_v60 = vmul.f32 %v8944_v59, %v8944_v59  ;;  %v2810_v9 = vadd.f32 %v2809_v58, %v2808_v52  ;;  %v2829_v26 = vadd.f32 %v2828_v14, %v2827_v0 }
 0x241   :  { %2721 = vst [vmem:[#allocation2 + $0x1f0] sm:$0x3] %v2689_v4  ;;  %vm5008_vm6 = vcmp.eq.f32.partialorder %v8850_v61, 0.0  ;;  %v4768_v53 = vand.u32 2147483648, %v8852_v10  ;;  %v5056_v5 = vand.u32 2147483648, %v8858_v11  ;;  %5313 = vlog2.f32 %v8956_v12 }
 0x242   :  { %v2972_v56 = vsel %vm10412_vm7, %v2902_v60, 0.0  ;;  %v2869_v44 = vmul.f32 0.5, %v2810_v9  ;;  %v2830_v13 = vrot.slane %v2829_v26, 1  ;;  %v2822_v23 = vadd.f32 %v2821_v50, %v2820_v55 }
 0x243   :  { %vm4772_vm15 = vweird.f32 %v8878_v37  ;;  %vm4774_vm9 = vcmp.eq.f32.partialorder %v8878_v37, 0.0  ;;  %v2973_v1 = vrot.slane %v2972_v56, 4  ;;  %vm4762_vm2 = vcmp.eq.f32.partialorder %v8852_v10, 0.0 }
 0x244   :  { %vm5062_vm5 = vcmp.eq.f32.partialorder %v8884_v35, 0.0  ;;  %v8986_v33 = vsub.f32 %v8865_v42, %v2869_v44  ;;  %v2831_v52 = vadd.f32 %v2830_v13, %v2829_v26  ;;  %v2823_v0 = vrot.slane %v2822_v23, 1 }
 0x245   :  { %vm4765_vm12 = vcmp.eq.f32.partialorder %v8878_v37, inf  ;;  %vm5050_vm10 = vcmp.eq.f32.partialorder %v8858_v11, 0.0  ;;  %v2974_v39 = vadd.f32 %v2973_v1, %v2972_v56  ;;  %v8993_v18 = vand.u32 2147483647, %v99_v27  ;;  %v211_v37 = vld [vmem:[%s10214_s0 + $0x3e8] sm:$0xff] }
 0x246   :  { %v5304_v43 = vpop.eup %5303  ;;  %v8995_v38 = vand.u32 2147483647, %v115_v21  ;;  %v2901_v24 = vmul.f32 %v8986_v33, %v8986_v33  ;;  %v2872_v62 = vmul.f32 0.5, %v2831_v52  ;;  %v9000_v2 = vand.u32 2147483647, %v131_v19  ;;  %v163_v52 = vld [vmem:[%s10214_s0 + $0x268] sm:$0xff] }
 0x247   :  { %v5306_v49 = vpop.eup %5305  ;;  %v4717_v48 = vor.u32 %v5304_v43, %v4714_v16  ;;  %v2975_v45 = vrot.slane %v2974_v39, 2  ;;  %v2824_v47 = vadd.f32 %v2823_v0, %v2822_v23  ;;  %v9005_v31 = vand.u32 2147483647, %v147_v8 }
 0x248   :  { %v3142_v54 = vld [vmem:[#allocation2 + $0x1f0] sm:$0xff]  ;;  %v5005_v42 = vor.u32 %v5306_v49, %v5002_v34  ;;  %v2965_v40 = vsel %vm10412_vm7, %v2901_v24, 0.0  ;;  %v9014_v28 = vsub.f32 %v8892_v25, %v2872_v62  ;;  %v195_v62 = vld [vmem:[%s10214_s0 + $0x368] sm:$0x1] }
 0x249   :  { %3835 = vmatprep.mubr.f32.mxu0 %v3142_v54  ;;  %v4719_v32 = vsel %vm4718_vm8, %v8822_v22, %v4717_v48  ;;  %v5308_v57 = vpop.eup %5307  ;;  %v2976_v17 = vadd.f32 %v2975_v45, %v2974_v39  ;;  %v2966_v30 = vrot.slane %v2965_v40, 4  ;;  %vm10415_vm8 = vweird.f32 %v8884_v35 }
 0x24a   :  { %v4722_v63 = vsel %vm4720_vm11, %v4714_v16, %v4719_v32  ;;  %v5007_v55 = vsel %vm5006_vm1, %v8837_v7, %v5005_v42  ;;  %v5310_v3 = vpop.eup %5309  ;;  %v4771_v25 = vor.u32 %v5308_v57, %v4768_v53  ;;  %v2904_v46 = vmul.f32 %v9014_v28, %v9014_v28 }
 0x24b   :  { %v4723_v15 = vsel %vm4709_vm3, nan, %v4722_v63  ;;  %v5010_v14 = vsel %vm5008_vm6, %v5002_v34, %v5007_v55  ;;  %v5312_v4 = vpop.eup %5311  ;;  %v5059_v22 = vor.u32 %v5310_v3, %v5056_v5  ;;  %v2977_v34 = vrot.slane %v2976_v17, 1  ;;  %v227_v63 = vld [vmem:[%s10214_s0 + $0x468] sm:$0xff] }
 0x24c   :  { %v4724_v58 = vsel %vm4708_vm0, 0.0, %v4723_v15  ;;  %v5011_v20 = vsel %vm4997_vm4, nan, %v5010_v14  ;;  %vm10413_vm3 = vcmp.eq.f32.partialorder %v8850_v61, inf  ;;  %v4773_v9 = vsel %vm4772_vm15, %v8852_v10, %v4771_v25  ;;  %v243_v55 = vld [vmem:[%s10214_s0 + $0x4e8] sm:$0xff] }
 0x24d   :  { %v4725_v16 = vsel %vm4711_vm13, inf, %v4724_v58  ;;  %v5012_v50 = vsel %vm4996_vm14, 0.0, %v5011_v20  ;;  %v4751_v26 = vmul.f32 0.33333334, %v5312_v4  ;;  %v2967_v56 = vadd.f32 %v2966_v30, %v2965_v40  ;;  %vm10418_vm13 = vmmov %vm10412_vm7  ;;  %v291_v30 = vld [vmem:[%s10214_s0 + $0x668] sm:$0xff] }
 0x24e   :  { %v5013_v60 = vsel %vm10413_vm3, inf, %v5012_v50  ;;  %vm10414_vm0 = vcmask 1041409   ;;  %v4776_v7 = vsel %vm4774_vm9, %v4768_v53, %v4773_v9  ;;  %v5061_v6 = vsel %vm10415_vm8, %v8858_v11, %v5059_v22  ;;  %v5314_v61 = vpop.eup %5313  ;;  %v307_v3 = vld [vmem:[%s10214_s0 + $0x6e8] sm:$0x1]  ;;  %vm10421_vm3 = vmmov %vm10418_vm13 }
 0x24f   :  { %v2688_v44 = vsel %vm10414_vm0, %v5013_v60, %v4725_v16  ;;  %v2978_v13 = vadd.f32 %v2977_v34, %v2976_v17  ;;  %vm10416_vm11 = vcmp.lt.f32.partialorder %v8852_v10, 0.0  ;;  %v5064_v27 = vsel %vm5062_vm5, %v5056_v5, %v5061_v6  ;;  %v179_v10 = vld [vmem:[%s10214_s0 + $0x2e8] sm:$0xff]  ;;  %vm10420_vm1 = vmmov %vm10414_vm0 }
 0x250   :  { %2720 = vst [vmem:[#allocation2 + $0x1a0] sm:$0x3] %v2688_v44  ;;  %v4777_v23 = vsel %vm10416_vm11, nan, %v4776_v7  ;;  %5315 = vpow2.f32 %v4751_v26  ;;  %v2968_v21 = vrot.slane %v2967_v56, 2  ;;  %vm10417_vm4 = vcmp.lt.f32.partialorder %v8858_v11, 0.0  ;;  %v275_v17 = vld [vmem:[%s10214_s0 + $0x5e8] sm:$0xff] }
 0x251   :  { %v4778_v53 = vsel %vm4762_vm2, 0.0, %v4777_v23  ;;  %v5065_v1 = vsel %vm10417_vm4, nan, %v5064_v27  ;;  %v5039_v19 = vmul.f32 0.33333334, %v5314_v61  ;;  %v3030_v43 = vmul.f32 0.5, %v2978_v13  ;;  %vm10423_vm4 = vmmov %vm10420_vm1 }
 0x252   :  { %v4779_v0 = vsel %vm4765_vm12, inf, %v4778_v53  ;;  %v5066_v5 = vsel %vm5050_vm10, 0.0, %v5065_v1  ;;  %v2969_v8 = vadd.f32 %v2968_v21, %v2967_v56  ;;  %v2986_v49 = vsel %vm10418_vm13, %v2904_v46, 0.0 }
 0x253   :  { %vm10419_vm14 = vcmp.eq.f32.partialorder %v8884_v35, inf  ;;  %5317 = vpow2.f32 %v5039_v19  ;;  %v3046_v39 = vadd.f32 1e-05, %v3030_v43  ;;  %v2987_v54 = vrot.slane %v2986_v49, 4 }
 0x254   :  { %v5067_v48 = vsel %vm10419_vm14, inf, %v5066_v5  ;;  %v2970_v42 = vrot.slane %v2969_v8, 1  ;;  %v2871_v24 = vmul.f32 0.5, %v2824_v47  ;;  %v9077_v32 = vand.u32 2147483647, %v163_v52  ;;  %v259_v47 = vld [vmem:[%s10214_s0 + $0x568] sm:$0xff] }
 0x255   :  { %v2691_v11 = vsel %vm10420_vm1, %v5067_v48, %v4779_v0  ;;  %v4750_v35 = vand.u32 2147483648, %v8921_v41  ;;  %5319 = vrsqrt.f32 %v3046_v39  ;;  %v2988_v45 = vadd.f32 %v2987_v54, %v2986_v49 }
 0x256   :  { %2723 = vst [vmem:[#allocation2 + $0x78] sm:$0x3] %v2691_v11  ;;  %v9089_v40 = vand.u32 2147483647, %v179_v10  ;;  %vm4756_vm5 = vcmp.eq.f32.partialorder %v8939_v51, 0.0  ;;  %v5038_v57 = vand.u32 2147483648, %v8936_v36  ;;  %v2971_v15 = vadd.f32 %v2970_v42, %v2969_v8 }
 0x257   :  { %v9094_v14 = vsub.f32 %v8898_v29, %v2871_v24  ;;  %v3141_v58 = vld [vmem:[#allocation2 + $0x1a0] sm:$0xff]  ;;  %vm4745_vm6 = vcmp.lt.f32.partialorder %v8921_v41, 0.0  ;;  %vm4754_vm12 = vweird.f32 %v8939_v51  ;;  %v2989_v20 = vrot.slane %v2988_v45, 2 }
 0x258   :  { %v9107_v29 = vand.u32 2147483647, %v195_v62  ;;  %v9109_v25 = vand.u32 2147483647, %v211_v37  ;;  %3836 = vmatmul.mubr.f32.gmra.mxu0 %v3141_v58  ;;  %vm4744_vm15 = vcmp.eq.f32.partialorder %v8921_v41, 0.0  ;;  %vm5042_vm9 = vweird.f32 %v8956_v12 }
 0x259   :  { %v3029_v46 = vmul.f32 0.5, %v2971_v15  ;;  %v2903_v4 = vmul.f32 %v9094_v14, %v9094_v14  ;;  %v9115_v16 = vand.u32 2147483647, %v227_v63  ;;  %v9117_v50 = vand.u32 2147483647, %v243_v55 }
 0x25a   :  { %vm5044_vm10 = vcmp.eq.f32.partialorder %v8956_v12, 0.0  ;;  %v2990_v22 = vadd.f32 %v2989_v20, %v2988_v45  ;;  %v9120_v34 = vand.u32 2147483647, %v259_v47  ;;  %v9122_v60 = vand.u32 2147483647, %v275_v17 }
 0x25b   :  { %v9124_v9 = vand.u32 2147483647, %v291_v30  ;;  %vm4747_vm2 = vcmp.eq.f32.partialorder %v8939_v51, inf  ;;  %vm5033_vm7 = vcmp.lt.f32.partialorder %v8936_v36, 0.0  ;;  %v3045_v26 = vadd.f32 1e-05, %v3029_v46 }
 0x25c   :  { %v2979_v56 = vsel %vm10421_vm3, %v2903_v4, 0.0  ;;  %v9129_v44 = vand.u32 2147483647, %v307_v3  ;;  %v547_v7 = vmul.f32 %v8993_v18, %v8993_v18  ;;  %vm5032_vm0 = vcmp.eq.f32.partialorder %v8936_v36, 0.0 }
 0x25d   :  { %v2991_v6 = vrot.slane %v2990_v22, 1  ;;  %v2980_v13 = vrot.slane %v2979_v56, 4  ;;  %v563_v61 = vmul.f32 %v8995_v38, %v8995_v38  ;;  %v579_v23 = vmul.f32 %v9000_v2, %v9000_v2  ;;  %v3144_v27 = vld [vmem:[#allocation2 + $0x78] sm:$0xff]  ;;  %v5316_v19 = vpop.eup %5315 }
 0x25e   :  { %vm5035_vm8 = vcmp.eq.f32.partialorder %v8956_v12, inf  ;;  %5321 = vrsqrt.f32 %v3045_v26  ;;  %v9141_v21 = vmul.f32 %v9005_v31, %v9005_v31  ;;  %v9145_v53 = vmul.f32 %v9077_v32, %v9077_v32  ;;  %3920 = vmatprep.mubr.f32.mxu1 %v3144_v27 }
 0x25f   :  { %v9149_v1 = vmul.f32 %v9089_v40, %v9089_v40  ;;  %v2992_v43 = vadd.f32 %v2991_v6, %v2990_v22  ;;  %v2981_v52 = vadd.f32 %v2980_v13, %v2979_v56  ;;  %v659_v0 = vmul.f32 %v9109_v25, %v9109_v25 }
 0x260   :  { %v675_v5 = vmul.f32 %v9115_v16, %v9115_v16  ;;  %v4753_v8 = vor.u32 %v5316_v19, %v4750_v35  ;;  %v691_v49 = vmul.f32 %v9117_v50, %v9117_v50  ;;  %v9161_v10 = vmul.f32 %v9120_v34, %v9120_v34  ;;  %v5318_v42 = vpop.eup %5317 }
 0x261   :  { %v9165_v48 = vmul.f32 %v9122_v60, %v9122_v60  ;;  %v3032_v39 = vmul.f32 0.5, %v2992_v43  ;;  %v2982_v54 = vrot.slane %v2981_v52, 2  ;;  %v771_v37 = vmul.f32 %v547_v7, %v8993_v18 }
 0x262   :  { %v787_v11 = vmul.f32 %v563_v61, %v8995_v38  ;;  %v4755_v24 = vsel %vm4754_vm12, %v8921_v41, %v4753_v8  ;;  %v803_v62 = vmul.f32 %v579_v23, %v9000_v2  ;;  %v819_v45 = vmul.f32 %v9141_v21, %v9005_v31  ;;  %v5320_v30 = vpop.eup %5319 }
 0x263   :  { %v1152_v63 = vadd.f32 %v8995_v38, %v8993_v18  ;;  %v4758_v55 = vsel %vm4756_vm5, %v4750_v35, %v4755_v24  ;;  %v5041_v47 = vor.u32 %v5318_v42, %v5038_v57  ;;  %v3048_v15 = vadd.f32 1e-05, %v3032_v39 }
 0x264   :  { %v2983_v17 = vadd.f32 %v2982_v54, %v2981_v52  ;;  %v4759_v3 = vsel %vm4745_vm6, nan, %v4758_v55  ;;  %v835_v58 = vmul.f32 %v9145_v53, %v9077_v32  ;;  %v1360_v18 = vadd.f32 %v9115_v16, %v9109_v25 }
 0x265   :  { %v1153_v20 = vadd.f32 %v1152_v63, %v9000_v2  ;;  %v4760_v38 = vsel %vm4744_vm15, 0.0, %v4759_v3  ;;  %v5043_v35 = vsel %vm5042_vm9, %v8936_v36, %v5041_v47  ;;  %v3078_v46 = vmul.f32 %v5320_v30, %v8944_v59 }
 0x266   :  { %5323 = vrsqrt.f32 %v3048_v15  ;;  %v5046_v4 = vsel %vm5044_vm10, %v5038_v57, %v5043_v35  ;;  %v2984_v22 = vrot.slane %v2983_v17, 1  ;;  %v883_v2 = vmul.f32 %v659_v0, %v9109_v25 }
 0x267   :  { %v1154_v26 = vadd.f32 %v1153_v20, %v9005_v31  ;;  %v4761_v41 = vsel %vm4747_vm2, inf, %v4760_v38  ;;  %v5047_v56 = vsel %vm5033_vm7, nan, %v5046_v4  ;;  %3094 = vst [vmem:[#allocation2 + $0x38] sm:$0x3] %v3078_v46  ;;  %v1361_v59 = vadd.f32 %v1360_v18, %v9117_v50 }
 0x268   :  { %v1649_v6 = vadd.f32 %v563_v61, %v547_v7  ;;  %v5048_v13 = vsel %vm5032_vm0, 0.0, %v5047_v56  ;;  %v2985_v27 = vadd.f32 %v2984_v22, %v2983_v17  ;;  %v1857_v19 = vadd.f32 %v675_v5, %v659_v0  ;;  %v213_v56 = vld [vmem:[%s10214_s0 + $0x3f8] sm:$0xff]  ;;  %vm10441_vm0 = vmmov %vm10420_vm1 }
 0x269   :  { %v1155_v57 = vadd.f32 %v1154_v26, %v9077_v32  ;;  %v5049_v31 = vsel %vm5035_vm8, inf, %v5048_v13  ;;  %v899_v51 = vmul.f32 %v675_v5, %v9115_v16  ;;  %vm10422_vm11 = vcmask 1040384  }
 0x26a   :  { %v1157_v25 = vsel %vm10422_vm11, %v9107_v29, 0.0  ;;  %v1362_v43 = vadd.f32 %v1361_v59, %v9120_v34  ;;  %v2690_v52 = vsel %vm10423_vm4, %v5049_v31, %v4761_v41  ;;  %v3031_v7 = vmul.f32 0.5, %v2985_v27  ;;  %vm10424_vm13 = vmmov %vm10422_vm11  ;;  %v165_v27 = vld [vmem:[%s10214_s0 + $0x278] sm:$0xff] }
 0x26b   :  { %v1156_v36 = vadd.f32 %v1155_v57, %v9089_v40  ;;  %v1650_v61 = vadd.f32 %v1649_v6, %v579_v23  ;;  %v5322_v8 = vpop.eup %5321  ;;  %2722 = vst [vmem:[#allocation2 + $0xe8] sm:$0x3] %v2690_v52  ;;  %v915_v32 = vmul.f32 %v691_v49, %v9117_v50  ;;  %v1365_v16 = vsel %vm10424_vm13, %v9129_v44, 0.0  ;;  %v181_v57 = vld [vmem:[%s10214_s0 + $0x2f8] sm:$0xff]  ;;  %vm10425_vm14 = vmmov %vm10422_vm11 }
 0x26c   :  { %v1363_v12 = vadd.f32 %v1362_v43, %v9122_v60  ;;  %v2369_v0 = vadd.f32 %v787_v11, %v771_v37  ;;  %v3077_v5 = vmul.f32 %v5322_v8, %v8986_v33  ;;  %v3047_v39 = vadd.f32 1e-05, %v3031_v7  ;;  %v197_v43 = vld [vmem:[%s10214_s0 + $0x378] sm:$0x1]  ;;  %vm10427_vm5 = vmmov %vm10422_vm11 }
 0x26d   :  { %v1158_v54 = vadd.f32 %v1157_v25, %v1156_v36  ;;  %v1858_v42 = vadd.f32 %v1857_v19, %v691_v49  ;;  %v931_v24 = vmul.f32 %v9161_v10, %v9120_v34  ;;  %v2577_v55 = vadd.f32 %v899_v51, %v883_v2  ;;  %v229_v19 = vld [vmem:[%s10214_s0 + $0x478] sm:$0xff]  ;;  %vm10428_vm6 = vmmov %vm10427_vm5 }
 0x26e   :  { %v1364_v23 = vadd.f32 %v1363_v12, %v9124_v9  ;;  %v2370_v63 = vadd.f32 %v2369_v0, %v803_v62  ;;  %v3158_v47 = vld [vmem:[#allocation2 + $0x38] sm:$0xff]  ;;  %3093 = vst [vmem:[#allocation2 + $0x198] sm:$0x3] %v3077_v5  ;;  %5325 = vrsqrt.f32 %v3047_v39  ;;  %v739_v50 = vmul.f32 %v9124_v9, %v9124_v9  ;;  %vm10429_vm12 = vmmov %vm10427_vm5 }
 0x26f   :  { %v1159_v15 = vrot.slane %v1158_v54, 4  ;;  %v1651_v37 = vadd.f32 %v1650_v61, %v9141_v21  ;;  %3840 = vmatprep.mubr.f32.mxu0 %v3158_v47  ;;  %v851_v33 = vmul.f32 %v9149_v1, %v9089_v40  ;;  %v2578_v34 = vadd.f32 %v2577_v55, %v915_v32  ;;  %v261_v52 = vld [vmem:[%s10214_s0 + $0x578] sm:$0xff]  ;;  %vm10430_vm15 = vmmov %vm10427_vm5 }
 0x270   :  { %v1366_v49 = vadd.f32 %v1365_v16, %v1364_v23  ;;  %v2371_v11 = vadd.f32 %v2370_v63, %v819_v45  ;;  %v643_v62 = vmul.f32 %v9107_v29, %v9107_v29  ;;  %v947_v17 = vmul.f32 %v9165_v48, %v9122_v60  ;;  %v277_v7 = vld [vmem:[%s10214_s0 + $0x5f8] sm:$0xff]  ;;  %vm10432_vm9 = vmmov %vm10427_vm5 }
 0x271   :  { %v1160_v30 = vadd.f32 %v1159_v15, %v1158_v54  ;;  %v1859_v3 = vadd.f32 %v1858_v42, %v9161_v10  ;;  %v9238_v20 = vmul.f32 %v9129_v44, %v9129_v44  ;;  %v2579_v38 = vadd.f32 %v2578_v34, %v931_v24  ;;  %v101_v10 = vld [vmem:[%s10214_s0 + $0x78] sm:$0xff]  ;;  %vm10434_vm10 = vmmov %vm10427_vm5 }
 0x272   :  { %v1367_v21 = vrot.slane %v1366_v49, 4  ;;  %v2372_v18 = vadd.f32 %v2371_v11, %v835_v58  ;;  %v3143_v35 = vld [vmem:[#allocation2 + $0xe8] sm:$0xff]  ;;  %v963_v45 = vmul.f32 %v739_v50, %v9124_v9  ;;  %v1652_v4 = vadd.f32 %v1651_v37, %v9145_v53  ;;  %v117_v58 = vld [vmem:[%s10214_s0 + $0xf8] sm:$0xff]  ;;  %vm10435_vm2 = vmmov %vm10427_vm5 }
 0x273   :  { %v5324_v40 = vpop.eup %5323  ;;  %v1161_v46 = vrot.slane %v1160_v30, 2  ;;  %3921 = vmatmul.mubr.f32.gmra.mxu1 %v3143_v35  ;;  %v1860_v9 = vadd.f32 %v1859_v3, %v9165_v48  ;;  %v2580_v41 = vadd.f32 %v2579_v38, %v947_v17  ;;  %v133_v53 = vld [vmem:[%s10214_s0 + $0x178] sm:$0xff]  ;;  %v9262_v6 = vmul.f32 %v643_v62, %v9107_v29  ;;  %vm10437_vm7 = vmmov %vm10435_vm2 }
 0x274   :  { %v3080_v60 = vmul.f32 %v5324_v40, %v9014_v28  ;;  %v1368_v22 = vadd.f32 %v1367_v21, %v1366_v49  ;;  %v9243_v2 = vadd.f32 %v2372_v18, %v851_v33  ;;  %v149_v28 = vld [vmem:[%s10214_s0 + $0x1f8] sm:$0xff]  ;;  %v9266_v48 = vmul.f32 %v9238_v20, %v9129_v44  ;;  %vm10439_vm3 = vmmov %vm10435_vm2 }
 0x275   :  { %v1162_v26 = vadd.f32 %v1161_v46, %v1160_v30  ;;  %v3157_v59 = vld [vmem:[#allocation2 + $0x198] sm:$0xff]  ;;  %v1653_v31 = vadd.f32 %v1652_v4, %v9149_v1  ;;  %v1654_v51 = vsel %vm10425_vm14, %v643_v62, 0.0  ;;  %v9282_v25 = vadd.f32 %v2580_v41, %v963_v45  ;;  %vm10448_vm8 = vmmov %vm10435_vm2 }
 0x276   :  { %3096 = vst [vmem:[#allocation2 + $0x1c0] sm:$0x3] %v3080_v60  ;;  %v1369_v13 = vrot.slane %v1368_v22, 2  ;;  %v245_v29 = vld [vmem:[%s10214_s0 + $0x4f8] sm:$0xff]  ;;  %3841 = vmatmul.mubr.f32.gmra.mxu0 %v3157_v59  ;;  %v325_v61 = vand.u32 2147483647, %v101_v10  ;;  %v9293_v32 = vadd.f32 %v1860_v9, %v739_v50  ;;  %vm10450_vm11 = vmmov %vm10435_vm2 }
 0x277   :  { %v1163_v44 = vrot.slane %v1162_v26, 1  ;;  %10426 = vst [vmem:[#allocation28_spill] sm:$0xff] %v9282_v25  ;;  %v341_v8 = vand.u32 2147483647, %v117_v58  ;;  %v357_v1 = vand.u32 2147483647, %v133_v53  ;;  %v9304_v23 = vadd.f32 %v1654_v51, %v1653_v31  ;;  %vm10451_vm4 = vmmov %vm10435_vm2 }
 0x278   :  { %v1370_v36 = vadd.f32 %v1369_v13, %v1368_v22  ;;  %v373_v12 = vand.u32 2147483647, %v149_v28  ;;  %v9295_v16 = vand.u32 2147483647, %v165_v27  ;;  %v9297_v0 = vand.u32 2147483647, %v181_v57  ;;  %vm10455_vm13 = vmmov %vm10435_vm2 }
 0x279   :  { %v1164_v5 = vadd.f32 %v1163_v44, %v1162_v26  ;;  %v293_v54 = vld [vmem:[%s10214_s0 + $0x678] sm:$0xff]  ;;  %v9302_v42 = vand.u32 2147483647, %v197_v43  ;;  %v437_v24 = vand.u32 2147483647, %v213_v56  ;;  %v549_v49 = vmul.f32 %v325_v61, %v325_v61  ;;  %vm10464_vm14 = vmmov %vm10435_vm2 }
 0x27a   :  { %v1371_v39 = vrot.slane %v1370_v36, 1  ;;  %v453_v63 = vand.u32 2147483647, %v229_v19  ;;  %v469_v55 = vand.u32 2147483647, %v245_v29  ;;  %v565_v11 = vmul.f32 %v341_v8, %v341_v8 }
 0x27b   :  { %v485_v47 = vand.u32 2147483647, %v261_v52  ;;  %v5326_v50 = vpop.eup %5325  ;;  %v309_v37 = vld [vmem:[%s10214_s0 + $0x6f8] sm:$0x1]  ;;  %v501_v33 = vand.u32 2147483647, %v277_v7  ;;  %v581_v17 = vmul.f32 %v357_v1, %v357_v1  ;;  %v661_v30 = vmul.f32 %v437_v24, %v437_v24 }
 0x27c   :  { %v1372_v15 = vadd.f32 %v1371_v39, %v1370_v36  ;;  %v3079_v62 = vmul.f32 %v5326_v50, %v9094_v14  ;;  %v677_v3 = vmul.f32 %v453_v63, %v453_v63  ;;  %v517_v18 = vand.u32 2147483647, %v293_v54 }
 0x27d   :  { %v3160_v34 = vld [vmem:[#allocation2 + $0x1c0] sm:$0xff]  ;;  %v597_v38 = vmul.f32 %v373_v12, %v373_v12  ;;  %v613_v40 = vmul.f32 %v9295_v16, %v9295_v16  ;;  %v9313_v35 = vand.u32 2147483647, %v309_v37  ;;  %v629_v45 = vmul.f32 %v9297_v0, %v9297_v0 }
 0x27e   :  { %3925 = vmatprep.mubr.f32.mxu1 %v3160_v34  ;;  %v1445_v21 = vsel %vm10420_vm1, %v1372_v15, %v1164_v5  ;;  %3095 = vst [vmem:[#allocation2 + $0xc0] sm:$0x3] %v3079_v62  ;;  %v645_v14 = vmul.f32 %v9302_v42, %v9302_v42  ;;  %v693_v46 = vmul.f32 %v469_v55, %v469_v55  ;;  %v1183_v37 = vsel %vm10428_vm6, %v9302_v42, 0.0  ;;  %vm10465_vm1 = vmmov %vm10435_vm2 }
 0x27f   :  { %1477 = vst [vmem:[#allocation2 + $0x150] sm:$0x3] %v1445_v21  ;;  %v709_v4 = vmul.f32 %v485_v47, %v485_v47  ;;  %v725_v60 = vmul.f32 %v501_v33, %v501_v33  ;;  %v773_v22 = vmul.f32 %v549_v49, %v325_v61  ;;  %v789_v10 = vmul.f32 %v565_v11, %v341_v8  ;;  %vm10467_vm6 = vmmov %vm10465_vm1 }
 0x280   :  { %v741_v58 = vmul.f32 %v517_v18, %v517_v18  ;;  %v805_v26 = vmul.f32 %v581_v17, %v357_v1  ;;  %v885_v9 = vmul.f32 %v661_v30, %v437_v24  ;;  %v901_v41 = vmul.f32 %v677_v3, %v453_v63 }
 0x281   :  { %v821_v53 = vmul.f32 %v597_v38, %v373_v12  ;;  %v837_v28 = vmul.f32 %v613_v40, %v9295_v16  ;;  %v1178_v56 = vadd.f32 %v341_v8, %v325_v61  ;;  %v1386_v59 = vadd.f32 %v453_v63, %v437_v24 }
 0x282   :  { %v853_v13 = vmul.f32 %v629_v45, %v9297_v0  ;;  %v917_v27 = vmul.f32 %v693_v46, %v469_v55  ;;  %v1675_v57 = vadd.f32 %v565_v11, %v549_v49  ;;  %v1883_v19 = vadd.f32 %v677_v3, %v661_v30 }
 0x283   :  { %v933_v29 = vmul.f32 %v709_v4, %v485_v47  ;;  %v1179_v44 = vadd.f32 %v1178_v56, %v357_v1  ;;  %v1387_v31 = vadd.f32 %v1386_v59, %v469_v55  ;;  %v2395_v51 = vadd.f32 %v789_v10, %v773_v22 }
 0x284   :  { %v949_v43 = vmul.f32 %v725_v60, %v501_v33  ;;  %v1676_v52 = vadd.f32 %v1675_v57, %v581_v17  ;;  %v1884_v7 = vadd.f32 %v1883_v19, %v693_v46  ;;  %v2603_v36 = vadd.f32 %v901_v41, %v885_v9 }
 0x285   :  { %v3159_v5 = vld [vmem:[#allocation2 + $0xc0] sm:$0xff]  ;;  %v965_v54 = vmul.f32 %v741_v58, %v517_v18  ;;  %v1180_v50 = vadd.f32 %v1179_v44, %v373_v12  ;;  %v1388_v15 = vadd.f32 %v1387_v31, %v485_v47  ;;  %v2396_v61 = vadd.f32 %v2395_v51, %v805_v26 }
 0x286   :  { %v3114_v39 = vld [vmem:[#allocation2 + $0x150] sm:$0xff]  ;;  %3926 = vmatmul.mubr.f32.gmra.mxu1 %v3159_v5  ;;  %v1862_v8 = vsel %vm10427_vm5, %v9238_v20, 0.0  ;;  %v1677_v24 = vadd.f32 %v1676_v52, %v597_v38  ;;  %v1885_v63 = vadd.f32 %v1884_v7, %v709_v4  ;;  %v2604_v1 = vadd.f32 %v2603_v36, %v917_v27  ;;  %v226_v27 = vld [vmem:[%s10214_s0 + $0x460] sm:$0xff]  ;;  %vm10466_vm5 = vmmov %vm10465_vm1 }
 0x287   :  { %3995 = vmatprep.mubr.f32.mxu0 %v3114_v39  ;;  %v1181_v55 = vadd.f32 %v1180_v50, %v9295_v16  ;;  %v1389_v49 = vadd.f32 %v1388_v15, %v501_v33  ;;  %v2397_v11 = vadd.f32 %v2396_v61, %v821_v53  ;;  %v1391_v12 = vsel %vm10429_vm12, %v9313_v35, 0.0  ;;  %v194_v44 = vld [vmem:[%s10214_s0 + $0x360] sm:$0x1]  ;;  %vm10468_vm12 = vmmov %vm10441_vm0 }
 0x288   :  { %v1678_v47 = vadd.f32 %v1677_v24, %v613_v40  ;;  %v1886_v34 = vadd.f32 %v1885_v63, %v725_v60  ;;  %v2605_v62 = vadd.f32 %v2604_v1, %v933_v29  ;;  %v1863_v17 = vadd.f32 %v1862_v8, %v9293_v32  ;;  %v242_v31 = vld [vmem:[%s10214_s0 + $0x4e0] sm:$0xff] }
 0x289   :  { %v1182_v20 = vadd.f32 %v1181_v55, %v9297_v0  ;;  %v1390_v30 = vadd.f32 %v1389_v49, %v517_v18  ;;  %v2398_v3 = vadd.f32 %v2397_v11, %v837_v28  ;;  %v757_v16 = vmul.f32 %v9313_v35, %v9313_v35  ;;  %v258_v51 = vld [vmem:[%s10214_s0 + $0x560] sm:$0xff] }
 0x28a   :  { %v1679_v21 = vadd.f32 %v1678_v47, %v629_v45  ;;  %v1680_v38 = vsel %vm10430_vm15, %v645_v14, 0.0  ;;  %v2606_v33 = vadd.f32 %v2605_v62, %v949_v43  ;;  %v1887_v22 = vadd.f32 %v1886_v34, %v741_v58  ;;  %v98_v45 = vld [vmem:[%s10214_s0 + $0x60] sm:$0xff] }
 0x28b   :  { %v1184_v46 = vadd.f32 %v1183_v37, %v1182_v20  ;;  %v1392_v4 = vadd.f32 %v1391_v12, %v1390_v30  ;;  %v9333_v10 = vadd.f32 %v2398_v3, %v853_v13  ;;  %v1656_v40 = vrot.slane %v9304_v23, 4  ;;  %v178_v13 = vld [vmem:[%s10214_s0 + $0x2e0] sm:$0xff] }
 0x28c   :  { %v869_v32 = vmul.f32 %v645_v14, %v9302_v42  ;;  %v1888_v0 = vsel %vm10432_vm9, %v757_v16, 0.0  ;;  %v9338_v18 = vadd.f32 %v2606_v33, %v965_v54  ;;  %v9345_v9 = vsel %vm10434_vm10, %v9262_v6, 0.0  ;;  %v114_v42 = vld [vmem:[%s10214_s0 + $0xe0] sm:$0xff] }
 0x28d   :  { %10431 = vst [vmem:[#allocation29_spill] sm:$0xff] %v9333_v10  ;;  %v1185_v60 = vrot.slane %v1184_v46, 4  ;;  %v1393_v26 = vrot.slane %v1392_v4, 4  ;;  %v981_v58 = vmul.f32 %v757_v16, %v9313_v35  ;;  %v1681_v41 = vadd.f32 %v1680_v38, %v1679_v21  ;;  %v130_v14 = vld [vmem:[%s10214_s0 + $0x160] sm:$0xff] }
 0x28e   :  { %10433 = vst [vmem:[#allocation20_spill] sm:$0xff] %v9338_v18  ;;  %v9356_v53 = vsel %vm10435_vm2, %v9266_v48, 0.0  ;;  %v1889_v59 = vadd.f32 %v1888_v0, %v1887_v22  ;;  %v146_v6 = vld [vmem:[%s10214_s0 + $0x1e0] sm:$0xff]  ;;  %v9374_v57 = vadd.f32 %v1656_v40, %v9304_v23  ;;  %v1864_v19 = vrot.slane %v1863_v17, 4 }
 0x28f   :  { %10436 = vst [vmem:[#allocation26_spill] sm:$0xff] %v9356_v53  ;;  %v1186_v28 = vadd.f32 %v1185_v60, %v1184_v46  ;;  %v1394_v56 = vadd.f32 %v1393_v26, %v1392_v4  ;;  %v162_v35 = vld [vmem:[%s10214_s0 + $0x260] sm:$0xff]  ;;  %v9377_v29 = vsel %vm10437_vm7, %v869_v32, 0.0  ;;  %v322_v43 = vand.u32 2147483647, %v98_v45  ;;  %vm10469_vm7 = vmmov %vm10441_vm0 }
 0x290   :  { %v210_v48 = vld [vmem:[%s10214_s0 + $0x3e0] sm:$0xff]  ;;  %10438 = vst [vmem:[#allocation24_spill] sm:$0xff] %v9377_v29  ;;  %v338_v36 = vand.u32 2147483647, %v114_v42  ;;  %v354_v5 = vand.u32 2147483647, %v130_v14  ;;  %v9402_v37 = vadd.f32 %v1864_v19, %v1863_v17 }
 0x291   :  { %v1187_v52 = vrot.slane %v1186_v28, 2  ;;  %v1395_v23 = vrot.slane %v1394_v56, 2  ;;  %v274_v7 = vld [vmem:[%s10214_s0 + $0x5e0] sm:$0xff]  ;;  %v1682_v39 = vrot.slane %v1681_v41, 4  ;;  %v9392_v54 = vsel %vm10439_vm3, %v981_v58, 0.0 }
 0x292   :  { %10440 = vst [vmem:[#allocation25_spill] sm:$0xff] %v9392_v54  ;;  %v370_v50 = vand.u32 2147483647, %v146_v6  ;;  %v386_v15 = vand.u32 2147483647, %v162_v35  ;;  %v1890_v24 = vrot.slane %v1889_v59, 4  ;;  %v546_v46 = vmul.f32 %v322_v43, %v322_v43 }
 0x293   :  { %v1188_v61 = vadd.f32 %v1187_v52, %v1186_v28  ;;  %v1396_v8 = vadd.f32 %v1395_v23, %v1394_v56  ;;  %v290_v63 = vld [vmem:[%s10214_s0 + $0x660] sm:$0xff]  ;;  %v9400_v55 = vand.u32 2147483647, %v178_v13  ;;  %v418_v49 = vand.u32 2147483647, %v194_v44 }
 0x294   :  { %v306_v1 = vld [vmem:[%s10214_s0 + $0x6e0] sm:$0x1]  ;;  %v9404_v11 = vand.u32 2147483647, %v210_v48  ;;  %v9406_v12 = vand.u32 2147483647, %v226_v27  ;;  %v9412_v30 = vadd.f32 %v1682_v39, %v1681_v41  ;;  %v9420_v33 = vadd.f32 %v1890_v24, %v1889_v59 }
 0x295   :  { %v1189_v47 = vrot.slane %v1188_v61, 1  ;;  %v1397_v34 = vrot.slane %v1396_v8, 1  ;;  %v9408_v62 = vand.u32 2147483647, %v242_v31  ;;  %v9410_v20 = vand.u32 2147483647, %v258_v51 }
 0x296   :  { %v9414_v3 = vand.u32 2147483647, %v274_v7  ;;  %v9416_v16 = vand.u32 2147483647, %v290_v63  ;;  %v9418_v21 = vand.u32 2147483647, %v306_v1  ;;  %v562_v4 = vmul.f32 %v338_v36, %v338_v36 }
 0x297   :  { %v1190_v17 = vadd.f32 %v1189_v47, %v1188_v61  ;;  %v1398_v38 = vadd.f32 %v1397_v34, %v1396_v8  ;;  %v578_v22 = vmul.f32 %v354_v5, %v354_v5  ;;  %v594_v40 = vmul.f32 %v370_v50, %v370_v50  ;;  %v148_v34 = vld [vmem:[%s10214_s0 + $0x1f0] sm:$0xff] }
 0x298   :  { %v610_v32 = vmul.f32 %v386_v15, %v386_v15  ;;  %v9425_v60 = vmul.f32 %v9404_v11, %v9404_v11  ;;  %v9429_v26 = vmul.f32 %v9406_v12, %v9406_v12  ;;  %v1139_v45 = vadd.f32 %v338_v36, %v322_v43 }
 0x299   :  { %v1447_v0 = vsel %vm10441_vm0, %v1398_v38, %v1190_v17  ;;  %v626_v58 = vmul.f32 %v9400_v55, %v9400_v55  ;;  %v642_v41 = vmul.f32 %v418_v49, %v418_v49  ;;  %v1347_v42 = vadd.f32 %v9406_v12, %v9404_v11  ;;  %v164_v17 = vld [vmem:[%s10214_s0 + $0x270] sm:$0xff] }
 0x29a   :  { %1479 = vst [vmem:[#allocation2 + $0x60] sm:$0x3] %v1447_v0  ;;  %v1636_v14 = vadd.f32 %v562_v4, %v546_v46  ;;  %v9437_v28 = vmul.f32 %v9408_v62, %v9408_v62  ;;  %v9441_v56 = vmul.f32 %v9410_v20, %v9410_v20  ;;  %v1140_v59 = vadd.f32 %v1139_v45, %v354_v5  ;;  %v212_v38 = vld [vmem:[%s10214_s0 + $0x3f0] sm:$0xff] }
 0x29b   :  { %v1844_v6 = vadd.f32 %v9429_v26, %v9425_v60  ;;  %v9447_v35 = vmul.f32 %v9414_v3, %v9414_v3  ;;  %v9451_v13 = vmul.f32 %v9416_v16, %v9416_v16  ;;  %v1348_v48 = vadd.f32 %v1347_v42, %v9408_v62  ;;  %v180_v45 = vld [vmem:[%s10214_s0 + $0x2f0] sm:$0xff] }
 0x29c   :  { %v1637_v27 = vadd.f32 %v1636_v14, %v578_v22  ;;  %v9456_v19 = vmul.f32 %v9418_v21, %v9418_v21  ;;  %v9458_v44 = vmul.f32 %v546_v46, %v322_v43  ;;  %v1141_v31 = vadd.f32 %v1140_v59, %v370_v50  ;;  %v100_v43 = vld [vmem:[%s10214_s0 + $0x70] sm:$0xff] }
 0x29d   :  { %v1845_v51 = vadd.f32 %v1844_v6, %v9437_v28  ;;  %v9461_v52 = vmul.f32 %v562_v4, %v338_v36  ;;  %v9463_v23 = vmul.f32 %v578_v22, %v354_v5  ;;  %v1349_v7 = vadd.f32 %v1348_v48, %v9410_v20  ;;  %v116_v36 = vld [vmem:[%s10214_s0 + $0xf0] sm:$0xff] }
 0x29e   :  { %10442 = vst [vmem:[#allocation30_spill] sm:$0xff] %v9458_v44  ;;  %v1638_v39 = vadd.f32 %v1637_v27, %v594_v40  ;;  %v9466_v61 = vmul.f32 %v594_v40, %v370_v50  ;;  %v9468_v8 = vmul.f32 %v610_v32, %v386_v15  ;;  %v1142_v24 = vadd.f32 %v1141_v31, %v386_v15  ;;  %v132_v15 = vld [vmem:[%s10214_s0 + $0x170] sm:$0xff] }
 0x29f   :  { %10443 = vst [vmem:[#allocation15_spill] sm:$0xff] %v9461_v52  ;;  %10444 = vst [vmem:[#allocation13_spill] sm:$0xff] %v9463_v23  ;;  %v1846_v63 = vadd.f32 %v1845_v51, %v9441_v56  ;;  %v9478_v5 = vmul.f32 %v626_v58, %v9400_v55  ;;  %v1144_v1 = vsel %vm10448_vm8, %v418_v49, 0.0  ;;  %v1350_v50 = vadd.f32 %v1349_v7, %v9414_v3  ;;  %v228_v46 = vld [vmem:[%s10214_s0 + $0x470] sm:$0xff] }
 0x2a0   :  { %10445 = vst [vmem:[#allocation17_spill] sm:$0xff] %v9466_v61  ;;  %10446 = vst [vmem:[#allocation14_spill] sm:$0xff] %v9468_v8  ;;  %v1639_v47 = vadd.f32 %v1638_v39, %v610_v32  ;;  %v9497_v22 = vmul.f32 %v642_v41, %v418_v49  ;;  %v1143_v40 = vadd.f32 %v1142_v24, %v9400_v55  ;;  %v1352_v32 = vsel %vm10450_vm11, %v9418_v21, 0.0  ;;  %v196_v42 = vld [vmem:[%s10214_s0 + $0x370] sm:$0x1] }
 0x2a1   :  { %10447 = vst [vmem:[#allocation19_spill] sm:$0xff] %v9478_v5  ;;  %v3116_v4 = vld [vmem:[#allocation2 + $0x60] sm:$0xff]  ;;  %v1847_v0 = vadd.f32 %v1846_v63, %v9447_v35  ;;  %v244_v49 = vld [vmem:[%s10214_s0 + $0x4f0] sm:$0xff]  ;;  %v1351_v14 = vadd.f32 %v1350_v50, %v9416_v16  ;;  %v1641_v59 = vsel %vm10451_vm4, %v642_v41, 0.0  ;;  %v9523_v27 = vand.u32 2147483647, %v100_v43  ;;  %vm10475_vm8 = vmmov %vm10469_vm7 }
 0x2a2   :  { %10449 = vst [vmem:[#allocation9_spill] sm:$0xff] %v9497_v22  ;;  %v260_v55 = vld [vmem:[%s10214_s0 + $0x570] sm:$0xff]  ;;  %4080 = vmatprep.mubr.f32.mxu1 %v3116_v4  ;;  %v9525_v31 = vand.u32 2147483647, %v116_v36  ;;  %v1145_v51 = vadd.f32 %v1144_v1, %v1143_v40  ;;  %v9527_v7 = vand.u32 2147483647, %v132_v15  ;;  %v1640_v63 = vadd.f32 %v1639_v47, %v626_v58 }
 0x2a3   :  { %v276_v6 = vld [vmem:[%s10214_s0 + $0x5f0] sm:$0xff]  ;;  %v9529_v39 = vand.u32 2147483647, %v148_v34  ;;  %v9531_v24 = vand.u32 2147483647, %v164_v17  ;;  %v1353_v41 = vadd.f32 %v1352_v32, %v1351_v14  ;;  %v1848_v36 = vadd.f32 %v1847_v0, %v9451_v13 }
 0x2a4   :  { %v292_v48 = vld [vmem:[%s10214_s0 + $0x670] sm:$0xff]  ;;  %v9536_v4 = vand.u32 2147483647, %v180_v45  ;;  %v9538_v5 = vand.u32 2147483647, %v196_v42  ;;  %v1146_v43 = vrot.slane %v1145_v51, 4  ;;  %v9563_v14 = vmul.f32 %v9525_v31, %v9525_v31 }
 0x2a5   :  { %v308_v50 = vld [vmem:[%s10214_s0 + $0x6f0] sm:$0x1]  ;;  %v9541_v1 = vand.u32 2147483647, %v212_v38  ;;  %v9543_v15 = vand.u32 2147483647, %v228_v46  ;;  %v1642_v38 = vadd.f32 %v1641_v59, %v1640_v63  ;;  %v9559_v46 = vmul.f32 %v9523_v27, %v9523_v27 }
 0x2a6   :  { %10452 = vst [vmem:[#allocation18_spill] sm:$0xff] %v9538_v5  ;;  %v1354_v34 = vrot.slane %v1353_v41, 4  ;;  %v1849_v17 = vsel %vm10455_vm13, %v9456_v19, 0.0  ;;  %v9547_v58 = vand.u32 2147483647, %v244_v49  ;;  %v1147_v40 = vadd.f32 %v1146_v43, %v1145_v51  ;;  %s5434_s0 = smov 120  }
 0x2a7   :  { %10453 = vst [vmem:[#allocation11_spill] sm:$0xff] %v9541_v1  ;;  %10454 = vst [vmem:[#allocation10_spill] sm:$0xff] %v9543_v15  ;;  %v9549_v47 = vand.u32 2147483647, %v260_v55  ;;  %v9551_v32 = vand.u32 2147483647, %v276_v6  ;;  %v1850_v55 = vadd.f32 %v1849_v17, %v1848_v36  ;;  %v9567_v6 = vmul.f32 %v9527_v7, %v9527_v7 }
 0x2a8   :  { %10456 = vst [vmem:[#allocation23_spill] sm:$0xff] %v9547_v58  ;;  %v9553_v45 = vand.u32 2147483647, %v292_v48  ;;  %v9555_v42 = vand.u32 2147483647, %v308_v50  ;;  %v1355_v0 = vadd.f32 %v1354_v34, %v1353_v41  ;;  %v1148_v49 = vrot.slane %v1147_v40, 2 }
 0x2a9   :  { %v9571_v48 = vmul.f32 %v9529_v39, %v9529_v39  ;;  %v9575_v59 = vmul.f32 %v9531_v24, %v9531_v24  ;;  %v9579_v41 = vmul.f32 %v9536_v4, %v9536_v4  ;;  %v9583_v63 = vmul.f32 %v9538_v5, %v9538_v5 }
 0x2aa   :  { %10457 = vst [vmem:[#allocation16_spill] sm:$0xff] %v9553_v45  ;;  %10458 = vst [vmem:[#allocation12_spill] sm:$0xff] %v9555_v42  ;;  %v1356_v51 = vrot.slane %v1355_v0, 2  ;;  %v1149_v50 = vadd.f32 %v1148_v49, %v1147_v40  ;;  %v9587_v43 = vmul.f32 %v9541_v1, %v9541_v1  ;;  %v9591_v36 = vmul.f32 %v9543_v15, %v9543_v15 }
 0x2ab   :  { %10459 = vst [vmem:[#allocation27_spill] sm:$0xff] %v9583_v63  ;;  %v9595_v34 = vmul.f32 %v9547_v58, %v9547_v58  ;;  %v9599_v54 = vmul.f32 %v9549_v47, %v9549_v47  ;;  %v9603_v40 = vmul.f32 %v9551_v32, %v9551_v32  ;;  %v9607_v49 = vmul.f32 %v9553_v45, %v9553_v45 }
 0x2ac   :  { %10460 = vst [vmem:[#allocation21_spill] sm:$0xff] %v9591_v36  ;;  %v1357_v17 = vadd.f32 %v1356_v51, %v1355_v0  ;;  %v1150_v18 = vrot.slane %v1149_v50, 1  ;;  %v9611_v29 = vmul.f32 %v9555_v42, %v9555_v42  ;;  %v1165_v0 = vadd.f32 %v9525_v31, %v9523_v27 }
 0x2ad   :  { %10461 = vst [vmem:[#allocation22_spill] sm:$0xff] %v9595_v34  ;;  %10462 = vst [vmem:[#allocation31_spill] sm:$0xff] %v9599_v54  ;;  %v1170_v51 = vsel %vm10464_vm14, %v9538_v5, 0.0  ;;  %v1373_v8 = vadd.f32 %v9543_v15, %v9541_v1  ;;  %v1378_v22 = vsel %vm10465_vm1, %v9555_v42, 0.0  ;;  %v1662_v61 = vadd.f32 %v9563_v14, %v9559_v46 }
 0x2ae   :  { %10463 = vst [vmem:[#allocation32_spill] sm:$0xff] %v9611_v29  ;;  %v1358_v10 = vrot.slane %v1357_v17, 1  ;;  %v1151_v23 = vadd.f32 %v1150_v18, %v1149_v50  ;;  %v1166_v52 = vadd.f32 %v1165_v0, %v9527_v7  ;;  %v1667_v44 = vsel %vm10466_vm5, %v9583_v63, 0.0 }
 0x2af   :  { %v1870_v53 = vadd.f32 %v9591_v36, %v9587_v43  ;;  %v1374_v25 = vadd.f32 %v1373_v8, %v9547_v58  ;;  %v1663_v15 = vadd.f32 %v1662_v61, %v9567_v6  ;;  %v1875_v42 = vsel %vm10467_vm6, %v9611_v29, 0.0  ;;  %vm10484_vm6 = vmmov %vm10469_vm7 }
 0x2b0   :  { %v1359_v5 = vadd.f32 %v1358_v10, %v1357_v17  ;;  %v1167_v1 = vadd.f32 %v1166_v52, %v9529_v39  ;;  %v1658_v50 = vrot.slane %v9374_v57, 2  ;;  %v1866_v0 = vrot.slane %v9402_v37, 2 }
 0x2b1   :  { %v1871_v18 = vadd.f32 %v1870_v53, %v9595_v34  ;;  %v1375_v36 = vadd.f32 %v1374_v25, %v9549_v47  ;;  %v1664_v10 = vadd.f32 %v1663_v15, %v9571_v48  ;;  %v1643_v8 = vrot.slane %v1642_v38, 4 }
 0x2b2   :  { %v1444_v63 = vsel %vm10468_vm12, %v1359_v5, %v1151_v23  ;;  %v1168_v61 = vadd.f32 %v1167_v1, %v9531_v24  ;;  %v1659_v52 = vadd.f32 %v1658_v50, %v9374_v57  ;;  %v1867_v53 = vadd.f32 %v1866_v0, %v9402_v37 }
 0x2b3   :  { %1476 = vst [vmem:[#allocation2 + $0x120] sm:$0x3] %v1444_v63  ;;  %v1872_v17 = vadd.f32 %v1871_v18, %v9599_v54  ;;  %v1376_v29 = vadd.f32 %v1375_v36, %v9551_v32  ;;  %v1665_v34 = vadd.f32 %v1664_v10, %v9575_v59  ;;  %v1644_v58 = vadd.f32 %v1643_v8, %v1642_v38 }
 0x2b4   :  { %v1851_v23 = vrot.slane %v1850_v55, 4  ;;  %v1169_v25 = vadd.f32 %v1168_v61, %v9536_v4  ;;  %v1660_v15 = vrot.slane %v1659_v52, 1  ;;  %v1868_v63 = vrot.slane %v1867_v53, 1 }
 0x2b5   :  { %v1873_v5 = vadd.f32 %v1872_v17, %v9603_v40  ;;  %v1377_v1 = vadd.f32 %v1376_v29, %v9553_v45  ;;  %v1666_v18 = vadd.f32 %v1665_v34, %v9579_v41  ;;  %v1645_v54 = vrot.slane %v1644_v58, 2 }
 0x2b6   :  { %v1852_v57 = vadd.f32 %v1851_v23, %v1850_v55  ;;  %v1171_v50 = vadd.f32 %v1170_v51, %v1169_v25  ;;  %v9650_v36 = vadd.f32 %v1660_v15, %v1659_v52  ;;  %v9652_v0 = vadd.f32 %v1868_v63, %v1867_v53 }
 0x2b7   :  { %v1874_v37 = vadd.f32 %v1873_v5, %v9607_v49  ;;  %v9656_v38 = vmul.f32 %v9425_v60, %v9404_v11  ;;  %v1379_v10 = vadd.f32 %v1378_v22, %v1377_v1  ;;  %v1646_v8 = vadd.f32 %v1645_v54, %v1644_v58 }
 0x2b8   :  { %v1853_v61 = vrot.slane %v1852_v57, 2  ;;  %v1172_v17 = vrot.slane %v1171_v50, 4  ;;  %v1668_v29 = vadd.f32 %v1667_v44, %v1666_v18  ;;  %5327 = vrsqrt.f32 %v9650_v36 }
 0x2b9   :  { %v1876_v45 = vadd.f32 %v1875_v42, %v1874_v37  ;;  %v9661_v55 = vmul.f32 %v9429_v26, %v9406_v12  ;;  %v9665_v34 = vmul.f32 %v9437_v28, %v9408_v62  ;;  %v1380_v52 = vrot.slane %v1379_v10, 4 }
 0x2ba   :  { %v3113_v51 = vld [vmem:[#allocation2 + $0x120] sm:$0xff]  ;;  %5329 = vrsqrt.f32 %v9652_v0  ;;  %v9670_v54 = vmul.f32 %v9441_v56, %v9410_v20  ;;  %v9674_v11 = vmul.f32 %v9447_v35, %v9414_v3  ;;  %v9678_v12 = vmul.f32 %v9451_v13, %v9416_v16 }
 0x2bb   :  { %3996 = vmatmul.mubr.f32.vlgmr.msra.gmra.mxu0 %v3113_v51  ;;  %v1173_v60 = vadd.f32 %v1172_v17, %v1171_v50  ;;  %v1381_v62 = vadd.f32 %v1380_v52, %v1379_v10  ;;  %v1647_v26 = vrot.slane %v1646_v8, 1  ;;  %v1854_v28 = vadd.f32 %v1853_v61, %v1852_v57 }
 0x2bc   :  { %v1684_v44 = vrot.slane %v9412_v30, 2  ;;  %v1892_v58 = vrot.slane %v9420_v33, 2  ;;  %v1669_v20 = vrot.slane %v1668_v29, 4  ;;  %v1877_v56 = vrot.slane %v1876_v45, 4 }
 0x2bd   :  { %v1174_v22 = vrot.slane %v1173_v60, 2  ;;  %v1382_v42 = vrot.slane %v1381_v62, 2  ;;  %v9682_v53 = vadd.f32 %v1647_v26, %v1646_v8  ;;  %v1855_v3 = vrot.slane %v1854_v28, 1 }
 0x2be   :  { %v1685_v35 = vadd.f32 %v1684_v44, %v9412_v30  ;;  %v9687_v16 = vmul.f32 %v9456_v19, %v9418_v21  ;;  %v1893_v23 = vadd.f32 %v1892_v58, %v9420_v33  ;;  %v1670_v25 = vadd.f32 %v1669_v20, %v1668_v29  ;;  %v10470_v44 = vld [vmem:[#allocation28_spill] sm:$0xff]  ;;  %v10472_v20 = vld [vmem:[#allocation30_spill] sm:$0xff] }
 0x2bf   :  { %v1175_v13 = vadd.f32 %v1174_v22, %v1173_v60  ;;  %v1383_v5 = vadd.f32 %v1382_v42, %v1381_v62  ;;  %v9690_v15 = vadd.f32 %v1855_v3, %v1854_v28  ;;  %5331 = vrsqrt.f32 %v9682_v53  ;;  %v10471_v22 = vld [vmem:[#allocation26_spill] sm:$0xff] }
 0x2c0   :  { %v1878_v63 = vadd.f32 %v1877_v56, %v1876_v45  ;;  %v9695_v1 = vmul.f32 %v9559_v46, %v9523_v27  ;;  %v9699_v30 = vmul.f32 %v9563_v14, %v9525_v31  ;;  %v1686_v19 = vrot.slane %v1685_v35, 1  ;;  %v10473_v56 = vld [vmem:[#allocation15_spill] sm:$0xff] }
 0x2c1   :  { %v1176_v21 = vrot.slane %v1175_v13, 1  ;;  %v1384_v18 = vrot.slane %v1383_v5, 1  ;;  %vm1989_vm15 = vcmp.eq.f32.partialorder %v9650_v36, inf  ;;  %vm1991_vm9 = vcmp.eq.f32.partialorder %v9650_v36, 0.0 }
 0x2c2   :  { %5333 = vrsqrt.f32 %v9690_v15  ;;  %v1992_v45 = vand.u32 2147483648, %v9650_v36  ;;  %v9705_v57 = vadd.f32 %v1686_v19, %v1685_v35  ;;  %v1894_v27 = vrot.slane %v1893_v23, 1 }
 0x2c3   :  { %v1177_v33 = vadd.f32 %v1176_v21, %v1175_v13  ;;  %v1385_v46 = vadd.f32 %v1384_v18, %v1383_v5  ;;  %v1671_v50 = vrot.slane %v1670_v25, 2  ;;  %v1879_v37 = vrot.slane %v1878_v63, 2  ;;  %v10474_v21 = vld [vmem:[#allocation13_spill] sm:$0xff] }
 0x2c4   :  { %v2375_v31 = vadd.f32 %v9345_v9, %v9243_v2  ;;  %vm2101_vm10 = vcmp.eq.f32.partialorder %v9652_v0, inf  ;;  %vm2103_vm2 = vcmp.eq.f32.partialorder %v9652_v0, 0.0  ;;  %v9711_v14 = vadd.f32 %v1894_v27, %v1893_v23 }
 0x2c5   :  { %5335 = vrsqrt.f32 %v9705_v57  ;;  %v5328_v10 = vpop.eup %5327  ;;  %v1446_v8 = vsel %vm10469_vm7, %v1385_v46, %v1177_v33  ;;  %v2104_v61 = vand.u32 2147483648, %v9652_v0  ;;  %v1672_v17 = vadd.f32 %v1671_v50, %v1670_v25 }
 0x2c6   :  { %v1880_v29 = vadd.f32 %v1879_v37, %v1878_v63  ;;  %1478 = vst [vmem:[#allocation2 + $0x108] sm:$0x3] %v1446_v8  ;;  %v1988_v52 = vmul.f32 %v5328_v10, %v9650_v36  ;;  %vm1982_vm3 = vcmp.eq.f32.partialorder %v9682_v53, inf  ;;  %vm1984_vm0 = vcmp.eq.f32.partialorder %v9682_v53, 0.0  ;;  %v10477_v8 = vld [vmem:[#allocation9_spill] sm:$0xff] }
 0x2c7   :  { %v5330_v51 = vpop.eup %5329  ;;  %5337 = vrsqrt.f32 %v9711_v14  ;;  %v1985_v9 = vand.u32 2147483648, %v9682_v53  ;;  %v1673_v60 = vrot.slane %v1672_v17, 1  ;;  %v2376_v28 = vrot.slane %v2375_v31, 4 }
 0x2c8   :  { %v2100_v2 = vmul.f32 %v5330_v51, %v9652_v0  ;;  %v1881_v62 = vrot.slane %v1880_v29, 1  ;;  %v1990_v26 = vsel %vm1989_vm15, %v9650_v36, %v1988_v52  ;;  %v2583_v58 = vadd.f32 %v10471_v22, %v10470_v44  ;;  %v10479_v22 = vld [vmem:[#allocation29_spill] sm:$0xff] }
 0x2c9   :  { %v2356_v42 = vadd.f32 %v10473_v56, %v10472_v20  ;;  %v1993_v3 = vsel %vm1991_vm9, %v1992_v45, %v1990_v26  ;;  %v9734_v13 = vadd.f32 %v1673_v60, %v1672_v17  ;;  %v2377_v5 = vadd.f32 %v2376_v28, %v2375_v31  ;;  %v10476_v31 = vld [vmem:[#allocation17_spill] sm:$0xff]  ;;  %v9761_v60 = vpop.f32.mrf.mxu0  ;;  %v10478_v26 = vld [vmem:[#allocation14_spill] sm:$0xff]  ;;  %vm10485_vm9 = vmmov %vm10484_vm6 }
 0x2ca   :  { %v2102_v35 = vsel %vm2101_vm10, %v9652_v0, %v2100_v2  ;;  %v9736_v23 = vadd.f32 %v1881_v62, %v1880_v29  ;;  %v2584_v63 = vrot.slane %v2583_v58, 4  ;;  %vm2094_vm11 = vcmp.eq.f32.partialorder %v9690_v15, inf }
 0x2cb   :  { %v2105_v25 = vsel %vm2103_vm2, %v2104_v61, %v2102_v35  ;;  %v2357_v19 = vadd.f32 %v2356_v42, %v10474_v21  ;;  %vm2096_vm4 = vcmp.eq.f32.partialorder %v9690_v15, 0.0  ;;  %5339 = vrsqrt.f32 %v9734_v13  ;;  %v10482_v35 = vld [vmem:[#allocation25_spill] sm:$0xff] }
 0x2cc   :  { %v2165_v18 = vsel %vm10475_vm8, %v2105_v25, %v1993_v3  ;;  %v5332_v36 = vpop.eup %5331  ;;  %v2097_v33 = vand.u32 2147483648, %v9690_v15  ;;  %vm2003_vm13 = vcmp.eq.f32.partialorder %v9705_v57, inf  ;;  %vm2005_vm14 = vcmp.eq.f32.partialorder %v9705_v57, 0.0  ;;  %v10481_v3 = vld [vmem:[#allocation20_spill] sm:$0xff] }
 0x2cd   :  { %2197 = vst [vmem:[#allocation2] sm:$0x3] %v2165_v18  ;;  %5341 = vrsqrt.f32 %v9736_v23  ;;  %v3115_v0 = vld [vmem:[#allocation2 + $0x108] sm:$0xff]  ;;  %v1981_v45 = vmul.f32 %v5332_v36, %v9682_v53  ;;  %v2006_v27 = vand.u32 2147483648, %v9705_v57  ;;  %v2378_v46 = vrot.slane %v2377_v5, 2 }
 0x2ce   :  { %v2585_v50 = vadd.f32 %v2584_v63, %v2583_v58  ;;  %4081 = vmatmul.mubr.f32.vlgmr.msra.gmra.mxu1 %v3115_v0  ;;  %vm2115_vm1 = vcmp.eq.f32.partialorder %v9711_v14, inf  ;;  %v2358_v10 = vadd.f32 %v2357_v19, %v10476_v31  ;;  %v2361_v61 = vsel %vm10466_vm5, %v10477_v8, 0.0  ;;  %v10480_v58 = vld [vmem:[#allocation24_spill] sm:$0xff] }
 0x2cf   :  { %v5334_v37 = vpop.eup %5333  ;;  %v2564_v17 = vadd.f32 %v9661_v55, %v9656_v38  ;;  %v1983_v29 = vsel %vm1982_vm3, %v9682_v53, %v1981_v45  ;;  %v2379_v52 = vadd.f32 %v2378_v46, %v2377_v5  ;;  %v2401_v38 = vadd.f32 %v10480_v58, %v10479_v22  ;;  %v10483_v5 = vld [vmem:[#allocation19_spill] sm:$0xff]  ;;  %v9785_v46 = vpop.f32.mrf.mxu0  ;;  %vm10487_vm3 = vmmov %vm10466_vm5 }
 0x2d0   :  { %v2093_v51 = vmul.f32 %v5334_v37, %v9690_v15  ;;  %v2586_v2 = vrot.slane %v2585_v50, 2  ;;  %v1986_v62 = vsel %vm1984_vm0, %v1985_v9, %v1983_v29  ;;  %v2359_v28 = vadd.f32 %v2358_v10, %v10478_v26  ;;  %vm10490_vm0 = vmmov %vm10484_vm6 }
 0x2d1   :  { %v2565_v44 = vadd.f32 %v2564_v17, %v9665_v34  ;;  %v2380_v56 = vrot.slane %v2379_v52, 1  ;;  %v9774_v25 = vadd.f32 %v10482_v35, %v10481_v3  ;;  %v2118_v34 = vand.u32 2147483648, %v9711_v14  ;;  %v9802_v8 = vpop.f32.mrf.mxu0 }
 0x2d2   :  { %v5336_v55 = vpop.eup %5335  ;;  %v2095_v20 = vsel %vm2094_vm11, %v9690_v15, %v2093_v51  ;;  %v2587_v42 = vadd.f32 %v2586_v2, %v2585_v50  ;;  %v2360_v63 = vadd.f32 %v2359_v28, %v10483_v5  ;;  %vm2117_vm12 = vcmp.eq.f32.partialorder %v9711_v14, 0.0 }
 0x2d3   :  { %v2098_v53 = vsel %vm2096_vm4, %v2097_v33, %v2095_v20  ;;  %v2002_v9 = vmul.f32 %v5336_v55, %v9705_v57  ;;  %v9782_v36 = vadd.f32 %v2380_v56, %v2379_v52  ;;  %v2566_v45 = vadd.f32 %v2565_v44, %v9670_v54  ;;  %vm10500_vm4 = vmmov %vm10487_vm3 }
 0x2d4   :  { %v5338_v21 = vpop.eup %5337  ;;  %v3130_v19 = vld [vmem:[#allocation2] sm:$0xff]  ;;  %v2164_v18 = vsel %vm10484_vm6, %v2098_v53, %v1986_v62  ;;  %v2588_v0 = vrot.slane %v2587_v42, 1  ;;  %v2362_v50 = vadd.f32 %v2361_v61, %v2360_v63  ;;  %v804_v37 = vmul.f32 %v9567_v6, %v9527_v7  ;;  %v10486_v62 = vld [vmem:[#allocation11_spill] sm:$0xff]  ;;  %v10488_v63 = vld [vmem:[#allocation10_spill] sm:$0xff] }
 0x2d5   :  { %4000 = vmatprep.mubr.f32.mxu0 %v3130_v19  ;;  %2196 = vst [vmem:[#allocation2 + $0x1e0] sm:$0x3] %v2164_v18  ;;  %v2004_v15 = vsel %vm2003_vm13, %v9705_v57, %v2002_v9  ;;  %v2114_v33 = vmul.f32 %v5338_v21, %v9711_v14  ;;  %v9796_v31 = vmul.f32 %v9571_v48, %v9529_v39  ;;  %vm1996_vm15 = vcmp.eq.f32.partialorder %v9734_v13, inf }
 0x2d6   :  { %v2007_v54 = vsel %vm2005_vm14, %v2006_v27, %v2004_v15  ;;  %v9800_v10 = vadd.f32 %v2588_v0, %v2587_v42  ;;  %v9809_v61 = vand.u32 2147483647, %v9782_v36  ;;  %v2402_v7 = vrot.slane %v2401_v38, 4 }
 0x2d7   :  { %v2116_v17 = vsel %vm2115_vm1, %v9711_v14, %v2114_v33  ;;  %v2363_v48 = vrot.slane %v2362_v50, 4  ;;  %v2567_v57 = vadd.f32 %v2566_v45, %v9674_v11  ;;  %vm1998_vm10 = vcmp.eq.f32.partialorder %v9734_v13, 0.0  ;;  %v9823_v11 = vpop.f32.mrf.mxu0 }
 0x2d8   :  { %v2119_v6 = vsel %vm2117_vm12, %v2118_v34, %v2116_v17  ;;  %v9812_v39 = vand.u32 2147483647, %v9800_v10  ;;  %v5340_v27 = vpop.eup %5339  ;;  %v1999_v14 = vand.u32 2147483648, %v9734_v13  ;;  %5343 = vlog2.f32 %v9809_v61  ;;  %v9851_v17 = vld [vmem:[#allocation2 + $0x150] sm:$0x3]  ;;  %vm10502_vm12 = vmmov %vm10487_vm3 }
 0x2d9   :  { %v2167_v29 = vsel %vm10485_vm9, %v2119_v6, %v2007_v54  ;;  %v1995_v52 = vmul.f32 %v5340_v27, %v9734_v13  ;;  %vm2108_vm2 = vcmp.eq.f32.partialorder %v9736_v23, inf  ;;  %v2111_v2 = vand.u32 2147483648, %v9736_v23  ;;  %v9841_v5 = vpop.f32.mrf.mxu0 }
 0x2da   :  { %v5342_v51 = vpop.eup %5341  ;;  %2199 = vst [vmem:[#allocation2 + $0x8] sm:$0x3] %v2167_v29  ;;  %5345 = vlog2.f32 %v9812_v39  ;;  %v884_v26 = vmul.f32 %v9587_v43, %v10486_v62  ;;  %vm2110_vm7 = vcmp.eq.f32.partialorder %v9736_v23, 0.0  ;;  %v2569_v44 = vsel %vm10487_vm3, %v9687_v16, 0.0 }
 0x2db   :  { %v2107_v28 = vmul.f32 %v5342_v51, %v9736_v23  ;;  %v1997_v58 = vsel %vm1996_vm15, %v9734_v13, %v1995_v52  ;;  %v2364_v55 = vadd.f32 %v2363_v48, %v2362_v50  ;;  %v2568_v20 = vadd.f32 %v2567_v57, %v9678_v12  ;;  %v10489_v12 = vld [vmem:[#allocation21_spill] sm:$0xff] }
 0x2dc   :  { %v3129_v22 = vld [vmem:[#allocation2 + $0x1e0] sm:$0xff]  ;;  %v2403_v56 = vadd.f32 %v2402_v7, %v2401_v38  ;;  %v2000_v43 = vsel %vm1998_vm10, %v1999_v14, %v1997_v58  ;;  %v2610_v3 = vrot.slane %v9774_v25, 4  ;;  %v2382_v16 = vadd.f32 %v9699_v30, %v9695_v1  ;;  %v9847_v30 = vpop.f32.mrf.mxu1  ;;  %v9853_v7 = vpop.f32.mrf.mxu0 }
 0x2dd   :  { %4001 = vmatmul.mubr.f32.gmra.mxu0 %v3129_v22  ;;  %v2109_v42 = vsel %vm2108_vm2, %v9736_v23, %v2107_v28  ;;  %v2365_v53 = vrot.slane %v2364_v55, 2  ;;  %v2570_v9 = vadd.f32 %v2569_v44, %v2568_v20  ;;  %v900_v38 = vmul.f32 %v10489_v12, %v10488_v63  ;;  %v10494_v28 = vld [vmem:[#allocation31_spill] sm:$0xff]  ;;  %v9875_v58 = vld [vmem:[#allocation2 + $0x120] sm:$0x3] }
 0x2de   :  { %v2112_v35 = vsel %vm2110_vm7, %v2111_v2, %v2109_v42  ;;  %v2404_v34 = vrot.slane %v2403_v56, 2  ;;  %v2611_v13 = vadd.f32 %v2610_v3, %v9774_v25  ;;  %v2383_v19 = vadd.f32 %v2382_v16, %v804_v37  ;;  %v10491_v25 = vld [vmem:[#allocation23_spill] sm:$0xff]  ;;  %v10492_v37 = vld [vmem:[#allocation22_spill] sm:$0xff]  ;;  %v9860_v51 = vpop.f32.mrf.mxu0  ;;  %v9866_v2 = vpop.f32.mrf.mxu1 }
 0x2df   :  { %v2166_v21 = vsel %vm10490_vm0, %v2112_v35, %v2000_v43  ;;  %v2366_v23 = vadd.f32 %v2365_v53, %v2364_v55  ;;  %v2571_v18 = vrot.slane %v2570_v9, 4  ;;  %v836_v15 = vmul.f32 %v9575_v59, %v9531_v24  ;;  %v10495_v53 = vld [vmem:[#allocation18_spill] sm:$0xff] }
 0x2e0   :  { %2198 = vst [vmem:[#allocation2 + $0xf0] sm:$0x3] %v2166_v21  ;;  %v2405_v0 = vadd.f32 %v2404_v34, %v2403_v56  ;;  %v2612_v1 = vrot.slane %v2611_v13, 2  ;;  %v916_v6 = vmul.f32 %v10492_v37, %v10491_v25  ;;  %v2384_v57 = vadd.f32 %v2383_v19, %v9796_v31  ;;  %v9879_v42 = vpop.f32.mrf.mxu1  ;;  %v9882_v35 = vpop.f32.mrf.mxu0  ;;  %v9912_v37 = vld [vmem:[#allocation2 + $0x60] sm:$0x3] }
 0x2e1   :  { %v3132_v45 = vld [vmem:[#allocation2 + $0x8] sm:$0xff]  ;;  %v2367_v33 = vrot.slane %v2366_v23, 1  ;;  %v2572_v50 = vadd.f32 %v2571_v18, %v2570_v9  ;;  %v2590_v27 = vadd.f32 %v900_v38, %v884_v26  ;;  %v852_v24 = vmul.f32 %v9579_v41, %v9536_v4  ;;  %v10496_v9 = vld [vmem:[#allocation27_spill] sm:$0xff] }
 0x2e2   :  { %4085 = vmatprep.mubr.f32.mxu1 %v3132_v45  ;;  %v2406_v54 = vrot.slane %v2405_v0, 1  ;;  %v2613_v48 = vadd.f32 %v2612_v1, %v2611_v13  ;;  %vm10493_vm8 = vcmask 1041408   ;;  %v932_v44 = vmul.f32 %v10494_v28, %v9549_v47 }
 0x2e3   :  { %v9858_v29 = vadd.f32 %v2367_v33, %v2366_v23  ;;  %v2573_v14 = vrot.slane %v2572_v50, 2  ;;  %v2839_v52 = vsel %vm10493_vm8, %v9851_v17, 0.0  ;;  %v2385_v56 = vadd.f32 %v2384_v57, %v836_v15  ;;  %vm10497_vm11 = vmmov %vm10493_vm8  ;;  %v9898_v23 = vpop.f32.mrf.mxu1  ;;  %v9903_v15 = vpop.f32.mrf.mxu0  ;;  %v10498_v33 = vld [vmem:[#allocation12_spill] sm:$0xff] }
 0x2e4   :  { %v2614_v59 = vrot.slane %v2613_v48, 1  ;;  %v9873_v22 = vadd.f32 %v2406_v54, %v2405_v0  ;;  %v2591_v43 = vadd.f32 %v2590_v27, %v916_v6  ;;  %v2840_v16 = vrot.slane %v2839_v52, 4  ;;  %v9914_v6 = vld [vmem:[#allocation2 + $0x108] sm:$0x3]  ;;  %vm10503_vm15 = vmmov %vm10493_vm8 }
 0x2e5   :  { %v5344_v62 = vpop.eup %5343  ;;  %v2574_v31 = vadd.f32 %v2573_v14, %v2572_v50  ;;  %v9871_v26 = vand.u32 2147483647, %v9858_v29  ;;  %v868_v34 = vmul.f32 %v10496_v9, %v10495_v53  ;;  %v2832_v63 = vsel %vm10497_vm11, %v9875_v58, 0.0  ;;  %v10499_v50 = vld [vmem:[#allocation32_spill] sm:$0xff]  ;;  %v9919_v57 = vpop.f32.mrf.mxu1  ;;  %vm10504_vm9 = vmmov %vm10493_vm8 }
 0x2e6   :  { %v4805_v41 = vmul.f32 0.33333334, %v5344_v62  ;;  %v9877_v20 = vadd.f32 %v2614_v59, %v2613_v48  ;;  %v9891_v38 = vand.u32 2147483647, %v9873_v22  ;;  %v948_v21 = vmul.f32 %v9603_v40, %v9551_v32  ;;  %v10501_v40 = vld [vmem:[#allocation16_spill] sm:$0xff]  ;;  %v9922_v59 = vpop.f32.mrf.mxu0 }
 0x2e7   :  { %v5346_v55 = vpop.eup %5345  ;;  %v3131_v4 = vld [vmem:[#allocation2 + $0xf0] sm:$0xff]  ;;  %v2575_v47 = vrot.slane %v2574_v31, 1  ;;  %5347 = vlog2.f32 %v9871_v26  ;;  %v2592_v19 = vadd.f32 %v2591_v43, %v932_v44  ;;  %v2386_v0 = vadd.f32 %v2385_v56, %v852_v24 }
 0x2e8   :  { %4086 = vmatmul.mubr.f32.gmra.mxu1 %v3131_v4  ;;  %v5093_v3 = vmul.f32 0.33333334, %v5346_v55  ;;  %5349 = vpow2.f32 %v4805_v41  ;;  %v9896_v13 = vand.u32 2147483647, %v9877_v20  ;;  %v2841_v45 = vadd.f32 %v2840_v16, %v2839_v52 }
 0x2e9   :  { %v9888_v12 = vadd.f32 %v2575_v47, %v2574_v31  ;;  %v2833_v1 = vrot.slane %v2832_v63, 4  ;;  %v980_v54 = vmul.f32 %v10499_v50, %v10498_v33  ;;  %v2387_v32 = vsel %vm10500_vm4, %v868_v34, 0.0  ;;  %v9938_v34 = vpop.f32.mrf.mxu0 }
 0x2ea   :  { %5351 = vpow2.f32 %v5093_v3  ;;  %v964_v25 = vmul.f32 %v9607_v49, %v10501_v40  ;;  %v4804_v48 = vand.u32 2147483648, %v9782_v36  ;;  %vm4808_vm13 = vweird.f32 %v9809_v61  ;;  %v9936_v3 = vpop.f32.mrf.mxu1 }
 0x2eb   :  { %v9901_v18 = vand.u32 2147483647, %v9888_v12  ;;  %5353 = vlog2.f32 %v9891_v38  ;;  %vm4799_vm14 = vcmp.lt.f32.partialorder %v9782_v36, 0.0  ;;  %v2388_v27 = vadd.f32 %v2387_v32, %v2386_v0 }
 0x2ec   :  { %v2593_v14 = vadd.f32 %v2592_v19, %v948_v21  ;;  %v2842_v24 = vrot.slane %v2841_v45, 2  ;;  %v2834_v49 = vadd.f32 %v2833_v1, %v2832_v63  ;;  %vm4798_vm1 = vcmp.eq.f32.partialorder %v9782_v36, 0.0  ;;  %v9946_v0 = vpop.f32.mrf.mxu1 }
 0x2ed   :  { %5355 = vlog2.f32 %v9901_v18  ;;  %vm4810_vm5 = vcmp.eq.f32.partialorder %v9809_v61, 0.0  ;;  %vm5087_vm6 = vcmp.lt.f32.partialorder %v9800_v10, 0.0  ;;  %v2595_v52 = vsel %vm10502_vm12, %v980_v54, 0.0 }
 0x2ee   :  { %5357 = vlog2.f32 %v9896_v13  ;;  %v2853_v62 = vsel %vm10503_vm15, %v9912_v37, 0.0  ;;  %v2846_v28 = vsel %vm10504_vm9, %v9914_v6, 0.0  ;;  %vm4801_vm10 = vcmp.eq.f32.partialorder %v9809_v61, inf }
 0x2ef   :  { %vm5086_vm2 = vcmp.eq.f32.partialorder %v9800_v10, 0.0  ;;  %v2389_v44 = vrot.slane %v2388_v27, 4  ;;  %v2594_v31 = vadd.f32 %v2593_v14, %v964_v25  ;;  %v2843_v55 = vadd.f32 %v2842_v24, %v2841_v45 }
 0x2f0   :  { %v2835_v4 = vrot.slane %v2834_v49, 2  ;;  %vm5089_vm7 = vcmp.eq.f32.partialorder %v9812_v39, inf  ;;  %v5092_v41 = vand.u32 2147483648, %v9800_v10  ;;  %v2854_v56 = vrot.slane %v2853_v62, 4 }
 0x2f1   :  { %v2847_v43 = vrot.slane %v2846_v28, 4  ;;  %v2390_v47 = vadd.f32 %v2389_v44, %v2388_v27  ;;  %v2596_v16 = vadd.f32 %v2595_v52, %v2594_v31  ;;  %v2844_v53 = vrot.slane %v2843_v55, 1 }
 0x2f2   :  { %v2836_v9 = vadd.f32 %v2835_v4, %v2834_v49  ;;  %vm5096_vm3 = vweird.f32 %v9812_v39  ;;  %vm5098_vm0 = vcmp.eq.f32.partialorder %v9812_v39, 0.0  ;;  %v2855_v21 = vadd.f32 %v2854_v56, %v2853_v62  ;;  %v9949_v62 = vpop.f32.mrf.mxu0 }
 0x2f3   :  { %v9944_v19 = vadd.f32 %v9853_v7, %v9841_v5  ;;  %v2391_v33 = vrot.slane %v2390_v47, 2  ;;  %v2597_v50 = vrot.slane %v2596_v16, 4  ;;  %v2845_v54 = vadd.f32 %v2844_v53, %v2843_v55  ;;  %v9954_v55 = vpop.f32.mrf.mxu1 }
 0x2f4   :  { %v5348_v63 = vpop.eup %5347  ;;  %v4786_v25 = vand.u32 2147483648, %v9858_v29  ;;  %v2837_v27 = vrot.slane %v2836_v9, 1  ;;  %v2848_v14 = vadd.f32 %v2847_v43, %v2846_v28  ;;  %v2856_v31 = vrot.slane %v2855_v21, 2 }
 0x2f5   :  { %v5350_v45 = vpop.eup %5349  ;;  %v4787_v1 = vmul.f32 0.33333334, %v5348_v63  ;;  %v2392_v49 = vadd.f32 %v2391_v33, %v2390_v47  ;;  %v2598_v52 = vadd.f32 %v2597_v50, %v2596_v16  ;;  %v2874_v7 = vmul.f32 0.5, %v2845_v54 }
 0x2f6   :  { %v4807_v40 = vor.u32 %v5350_v45, %v4804_v48  ;;  %v2838_v44 = vadd.f32 %v2837_v27, %v2836_v9  ;;  %v9980_v27 = vpop.f32.mrf.mxu1  ;;  %vm10505_vm8 = vcmask 1041409   ;;  %vm4781_vm11 = vcmp.lt.f32.partialorder %v9858_v29, 0.0 }
 0x2f7   :  { %v5352_v32 = vpop.eup %5351  ;;  %5359 = vpow2.f32 %v4787_v1  ;;  %v2393_v43 = vrot.slane %v2392_v49, 1  ;;  %v2599_v47 = vrot.slane %v2598_v52, 2  ;;  %v9966_v45 = vsub.f32 %v9851_v17, %v2874_v7 }
 0x2f8   :  { %v5095_v24 = vor.u32 %v5352_v32, %v5092_v41  ;;  %v4809_v5 = vsel %vm4808_vm13, %v9782_v36, %v4807_v40  ;;  %v5354_v4 = vpop.eup %5353  ;;  %v9974_v32 = vpop.f32.mrf.mxu0  ;;  %vm4780_vm4 = vcmp.eq.f32.partialorder %v9858_v29, 0.0  ;;  %vm4790_vm13 = vweird.f32 %v9871_v26 }
 0x2f9   :  { %v4812_v56 = vsel %vm4810_vm5, %v4804_v48, %v4809_v5  ;;  %v4841_v63 = vmul.f32 0.33333334, %v5354_v4  ;;  %v9972_v54 = vadd.f32 %v2393_v43, %v2392_v49  ;;  %v2857_v5 = vadd.f32 %v2856_v31, %v2855_v21  ;;  %vm10506_vm5 = vmmov %vm10504_vm9 }
 0x2fa   :  { %v5097_v28 = vsel %vm5096_vm3, %v9800_v10, %v5095_v24  ;;  %v5356_v16 = vpop.eup %5355  ;;  %v4813_v53 = vsel %vm4799_vm14, nan, %v4812_v56  ;;  %v2600_v24 = vadd.f32 %v2599_v47, %v2598_v52  ;;  %v2849_v10 = vrot.slane %v2848_v14, 2  ;;  %v9993_v21 = vpop.f32.mrf.mxu0 }
 0x2fb   :  { %v5100_v9 = vsel %vm5098_vm0, %v5092_v41, %v5097_v28  ;;  %v5358_v1 = vpop.eup %5357  ;;  %v4814_v48 = vsel %vm4798_vm1, 0.0, %v4813_v53  ;;  %v5075_v50 = vmul.f32 0.33333334, %v5356_v16  ;;  %5361 = vpow2.f32 %v4841_v63  ;;  %v10000_v56 = vpop.f32.mrf.mxu1 }
 0x2fc   :  { %v5101_v33 = vsel %vm5087_vm6, nan, %v5100_v9  ;;  %v4815_v40 = vsel %vm4801_vm10, inf, %v4814_v48  ;;  %v5129_v17 = vmul.f32 0.33333334, %v5358_v1  ;;  %v9987_v61 = vand.u32 2147483647, %v9972_v54  ;;  %v10020_v48 = vpop.f32.mrf.mxu0 }
 0x2fd   :  { %v5102_v41 = vsel %vm5086_vm2, 0.0, %v5101_v33  ;;  %5363 = vpow2.f32 %v5075_v50  ;;  %v2601_v7 = vrot.slane %v2600_v24, 1  ;;  %v2906_v39 = vmul.f32 %v9966_v45, %v9966_v45  ;;  %v10011_v1 = vpop.f32.mrf.mxu1 }
 0x2fe   :  { %v5103_v36 = vsel %vm5089_vm7, inf, %v5102_v41  ;;  %5365 = vpow2.f32 %v5129_v17  ;;  %v2873_v52 = vmul.f32 0.5, %v2838_v44  ;;  %vm4783_vm14 = vcmp.eq.f32.partialorder %v9871_v26, inf }
 0x2ff   :  { %v2693_v49 = vsel %vm10505_vm8, %v5103_v36, %v4815_v40  ;;  %vm4792_vm1 = vcmp.eq.f32.partialorder %v9871_v26, 0.0  ;;  %v4840_v31 = vand.u32 2147483648, %v9873_v22  ;;  %v5128_v4 = vand.u32 2147483648, %v9877_v20 }
 0x300   :  { %2725 = vst [vmem:[#allocation2 + $0x90] sm:$0x3] %v2693_v49  ;;  %5367 = vlog2.f32 %v9987_v61  ;;  %v10002_v28 = vadd.f32 %v2601_v7, %v2600_v24  ;;  %v3000_v43 = vsel %vm10506_vm5, %v2906_v39, 0.0  ;;  %v10006_v44 = vsub.f32 %v9875_v58, %v2873_v52  ;;  %v10047_v52 = vpop.f32.mrf.mxu0 }
 0x301   :  { %v2858_v47 = vrot.slane %v2857_v5, 1  ;;  %v5074_v16 = vand.u32 2147483648, %v9888_v12  ;;  %v3001_v53 = vrot.slane %v3000_v43, 4  ;;  %v2850_v9 = vadd.f32 %v2849_v10, %v2848_v14 }
 0x302   :  { %v4296_v63 = vadd.f32 %v9936_v3, %v9919_v57  ;;  %vm5078_vm6 = vweird.f32 %v9901_v18  ;;  %vm4844_vm15 = vweird.f32 %v9891_v38  ;;  %v10018_v58 = vand.u32 2147483647, %v10002_v28 }
 0x303   :  { %v3002_v57 = vadd.f32 %v3001_v53, %v3000_v43  ;;  %v2905_v3 = vmul.f32 %v10006_v44, %v10006_v44  ;;  %v2859_v14 = vadd.f32 %v2858_v47, %v2857_v5  ;;  %v2851_v50 = vrot.slane %v2850_v9, 1  ;;  %v10038_v5 = vpop.f32.mrf.mxu1 }
 0x304   :  { %v5360_v33 = vpop.eup %5359  ;;  %vm5068_vm7 = vcmp.eq.f32.partialorder %v9888_v12, 0.0  ;;  %vm5080_vm3 = vcmp.eq.f32.partialorder %v9901_v18, 0.0  ;;  %vm4837_vm0 = vcmp.eq.f32.partialorder %v9891_v38, inf  ;;  %vm5132_vm5 = vweird.f32 %v9896_v13 }
 0x305   :  { %v4789_v40 = vor.u32 %v5360_v33, %v4786_v25  ;;  %5369 = vlog2.f32 %v10018_v58  ;;  %vm5071_vm2 = vcmp.eq.f32.partialorder %v9901_v18, inf  ;;  %vm5122_vm10 = vcmp.eq.f32.partialorder %v9877_v20, 0.0 }
 0x306   :  { %vm5134_vm12 = vcmp.eq.f32.partialorder %v9896_v13, 0.0  ;;  %v3003_v17 = vrot.slane %v3002_v57, 2  ;;  %v2993_v36 = vsel %vm10504_vm9, %v2905_v3, 0.0  ;;  %v2876_v24 = vmul.f32 0.5, %v2859_v14 }
 0x307   :  { %v3146_v41 = vld [vmem:[#allocation2 + $0x90] sm:$0xff]  ;;  %v4791_v49 = vsel %vm4790_vm13, %v9858_v29, %v4789_v40  ;;  %vm5125_vm8 = vcmp.eq.f32.partialorder %v9896_v13, inf  ;;  %v2994_v10 = vrot.slane %v2993_v36, 4  ;;  %v2852_v7 = vadd.f32 %v2851_v50, %v2850_v9  ;;  %v10062_v50 = vpop.f32.mrf.mxu0 }
 0x308   :  { %4005 = vmatprep.mubr.f32.mxu0 %v3146_v41  ;;  %v10045_v39 = vadd.f32 %v4296_v63, %v9944_v19  ;;  %v4794_v43 = vsel %vm4792_vm1, %v4786_v25, %v4791_v49  ;;  %v3004_v47 = vadd.f32 %v3003_v17, %v3002_v57  ;;  %v10054_v53 = vsub.f32 %v9912_v37, %v2876_v24  ;;  %v5362_v3 = vpop.eup %5361 }
 0x309   :  { %v4255_v33 = vadd.f32 %v9882_v35, %v9860_v51  ;;  %v4795_v9 = vsel %vm4781_vm11, nan, %v4794_v43  ;;  %v2995_v19 = vadd.f32 %v2994_v10, %v2993_v36  ;;  %v2875_v63 = vmul.f32 0.5, %v2852_v7  ;;  %v4382_v35 = vpop.f32.mrf.mxu1  ;;  %vm10507_vm11 = vmmov %vm10504_vm9 }
 0x30a   :  { %v4299_v14 = vadd.f32 %v9954_v55, %v9946_v0  ;;  %v5364_v40 = vpop.eup %5363  ;;  %v4796_v25 = vsel %vm4780_vm4, 0.0, %v4795_v9  ;;  %v4843_v37 = vor.u32 %v5362_v3, %v4840_v31  ;;  %v3005_v57 = vrot.slane %v3004_v47, 1  ;;  %v10090_v9 = vpop.f32.mrf.mxu0 }
 0x30b   :  { %v2908_v51 = vmul.f32 %v10054_v53, %v10054_v53  ;;  %v5366_v41 = vpop.eup %5365  ;;  %v4797_v17 = vsel %vm4783_vm14, inf, %v4796_v25  ;;  %v5077_v0 = vor.u32 %v5364_v40, %v5074_v16  ;;  %v2996_v55 = vrot.slane %v2995_v19, 2 }
 0x30c   :  { %v10075_v36 = vsub.f32 %v9914_v6, %v2875_v63  ;;  %v4845_v29 = vsel %vm4844_vm15, %v9873_v22, %v4843_v37  ;;  %v5131_v24 = vor.u32 %v5366_v41, %v5128_v4  ;;  %v3006_v49 = vadd.f32 %v3005_v57, %v3004_v47  ;;  %v4383_v37 = vpop.f32.mrf.mxu1 }
 0x30d   :  { %v3014_v10 = vsel %vm10507_vm11, %v2908_v51, 0.0  ;;  %v5368_v7 = vpop.eup %5367  ;;  %v5079_v26 = vsel %vm5078_vm6, %v9888_v12, %v5077_v0  ;;  %vm10508_vm4 = vcmp.eq.f32.partialorder %v9891_v38, 0.0  ;;  %v2997_v43 = vadd.f32 %v2996_v55, %v2995_v19 }
 0x30e   :  { %v4848_v6 = vsel %vm10508_vm4, %v4840_v31, %v4845_v29  ;;  %v3015_v3 = vrot.slane %v3014_v10, 4  ;;  %v5082_v47 = vsel %vm5080_vm3, %v5074_v16, %v5079_v26  ;;  %vm10509_vm13 = vcmp.lt.f32.partialorder %v9873_v22, 0.0 }
 0x30f   :  { %v4849_v63 = vsel %vm10509_vm13, nan, %v4848_v6  ;;  %v5133_v40 = vsel %vm5132_vm5, %v9877_v20, %v5131_v24  ;;  %v4823_v25 = vmul.f32 0.33333334, %v5368_v7  ;;  %vm10510_vm14 = vcmp.lt.f32.partialorder %v9888_v12, 0.0  ;;  %v4385_v6 = vpop.f32.mrf.mxu1 }
 0x310   :  { %v5083_v31 = vsel %vm10510_vm14, nan, %v5082_v47  ;;  %vm10511_vm1 = vcmp.eq.f32.partialorder %v9873_v22, 0.0  ;;  %v5136_v16 = vsel %vm5134_vm12, %v5128_v4, %v5133_v40  ;;  %v3034_v57 = vmul.f32 0.5, %v3006_v49  ;;  %v10119_v4 = vpop.f32.mrf.mxu0 }
 0x311   :  { %v4850_v19 = vsel %vm10511_vm1, 0.0, %v4849_v63  ;;  %v5084_v51 = vsel %vm5068_vm7, 0.0, %v5083_v31  ;;  %vm10512_vm6 = vcmp.lt.f32.partialorder %v9877_v20, 0.0  ;;  %5371 = vpow2.f32 %v4823_v25 }
 0x312   :  { %v4851_v41 = vsel %vm4837_vm0, inf, %v4850_v19  ;;  %v5137_v0 = vsel %vm10512_vm6, nan, %v5136_v16  ;;  %v5085_v22 = vsel %vm5071_vm2, inf, %v5084_v51  ;;  %v3050_v29 = vadd.f32 1e-05, %v3034_v57  ;;  %v5370_v49 = vpop.eup %5369  ;;  %v10128_v31 = vpop.f32.mrf.mxu0 }
 0x313   :  { %v5138_v55 = vsel %vm5122_vm10, 0.0, %v5137_v0  ;;  %v2998_v24 = vrot.slane %v2997_v43, 1  ;;  %vm10513_vm12 = vcmask 1041409   ;;  %v3016_v7 = vadd.f32 %v3015_v3, %v3014_v10  ;;  %v4386_v3 = vpop.f32.mrf.mxu1 }
 0x314   :  { %v2692_v12 = vsel %vm10513_vm12, %v5085_v22, %v4797_v17  ;;  %v5139_v38 = vsel %vm5125_vm8, inf, %v5138_v55  ;;  %v2907_v26 = vmul.f32 %v10075_v36, %v10075_v36  ;;  %vm10514_vm15 = vmmov %vm10513_vm12  ;;  %v5111_v20 = vmul.f32 0.33333334, %v5370_v49 }
 0x315   :  { %2724 = vst [vmem:[#allocation2 + $0x70] sm:$0x3] %v2692_v12  ;;  %v2695_v18 = vsel %vm10514_vm15, %v5139_v38, %v4851_v41  ;;  %5373 = vrsqrt.f32 %v3050_v29  ;;  %v2999_v47 = vadd.f32 %v2998_v24, %v2997_v43  ;;  %v3017_v63 = vrot.slane %v3016_v7, 2  ;;  %vm10515_vm14 = vmmov %vm10513_vm12 }
 0x316   :  { %2727 = vst [vmem:[#allocation2 + $0xd0] sm:$0x3] %v2695_v18  ;;  %v3007_v40 = vsel %vm10504_vm9, %v2907_v26, 0.0  ;;  %v3588_v25 = vadd.f32 %v4299_v14, %v4255_v33  ;;  %5375 = vpow2.f32 %v5111_v20  ;;  %v4340_v57 = vadd.f32 %v9993_v21, %v9974_v32 }
 0x317   :  { %v3033_v17 = vmul.f32 0.5, %v2999_v47  ;;  %v3008_v13 = vrot.slane %v3007_v40, 4  ;;  %v3018_v10 = vadd.f32 %v3017_v63, %v3016_v7  ;;  %v4384_v51 = vadd.f32 %v4383_v37, %v4382_v35 }
 0x318   :  { %v4343_v43 = vadd.f32 %v10047_v52, %v10020_v48  ;;  %v3668_v33 = vadd.f32 %v4340_v57, %v10045_v39  ;;  %v4387_v14 = vadd.f32 %v4386_v3, %v4385_v6  ;;  %v4426_v22 = vpop.f32.mrf.mxu0  ;;  %v4822_v29 = vand.u32 2147483648, %v9972_v54  ;;  %v10146_v3 = vpop.f32.mrf.mxu1 }
 0x319   :  { %v3049_v19 = vadd.f32 1e-05, %v3033_v17  ;;  %v3009_v16 = vadd.f32 %v3008_v13, %v3007_v40  ;;  %v3019_v41 = vrot.slane %v3018_v10, 1  ;;  %vm4826_vm10 = vweird.f32 %v9987_v61 }
 0x31a   :  { %v3673_v49 = vadd.f32 %v4343_v43, %v3588_v25  ;;  %v3753_v32 = vadd.f32 %v4384_v51, %v3668_v33  ;;  %v4427_v21 = vpop.f32.mrf.mxu0  ;;  %vm4828_vm2 = vcmp.eq.f32.partialorder %v9987_v61, 0.0  ;;  %vm4817_vm7 = vcmp.lt.f32.partialorder %v9972_v54, 0.0 }
 0x31b   :  { %5377 = vrsqrt.f32 %v3049_v19  ;;  %v3010_v0 = vrot.slane %v3009_v16, 2  ;;  %v3020_v24 = vadd.f32 %v3019_v41, %v3018_v10  ;;  %v4428_v52 = vadd.f32 %v4427_v21, %v4426_v22  ;;  %v4465_v41 = vpop.f32.mrf.mxu1 }
 0x31c   :  { %v3145_v55 = vld [vmem:[#allocation2 + $0x70] sm:$0xff]  ;;  %v10136_v37 = vadd.f32 %v4387_v14, %v3673_v49  ;;  %v5110_v6 = vand.u32 2147483648, %v10002_v28  ;;  %vm4816_vm3 = vcmp.eq.f32.partialorder %v9972_v54, 0.0  ;;  %vm5114_vm0 = vweird.f32 %v10018_v58 }
 0x31d   :  { %4006 = vmatmul.mubr.f32.gmra.mxu0 %v3145_v55  ;;  %v3148_v12 = vld [vmem:[#allocation2 + $0xd0] sm:$0xff]  ;;  %v3011_v38 = vadd.f32 %v3010_v0, %v3009_v16  ;;  %v3036_v35 = vmul.f32 0.5, %v3020_v24  ;;  %v3838_v20 = vadd.f32 %v4428_v52, %v3753_v32  ;;  %vm5116_vm8 = vcmp.eq.f32.partialorder %v10018_v58, 0.0 }
 0x31e   :  { %4090 = vmatprep.mubr.f32.mxu1 %v3148_v12  ;;  %v5372_v48 = vpop.eup %5371  ;;  %vm4819_vm5 = vcmp.eq.f32.partialorder %v9987_v61, inf  ;;  %vm5105_vm11 = vcmp.lt.f32.partialorder %v10002_v28, 0.0  ;;  %vm5104_vm4 = vcmp.eq.f32.partialorder %v10002_v28, 0.0  ;;  %vm5107_vm13 = vcmp.eq.f32.partialorder %v10018_v58, inf }
 0x31f   :  { %v3012_v39 = vrot.slane %v3011_v38, 1  ;;  %v4825_v7 = vor.u32 %v5372_v48, %v4822_v29  ;;  %v3052_v26 = vadd.f32 1e-05, %v3036_v35  ;;  %vm4102_vm1 = vcmask 58368  }
 0x320   :  { %vm4181_vm6 = vcmask 123904   ;;  %vm4141_vm12 = vcmask 123968  }
 0x321   :  { %v3013_v18 = vadd.f32 %v3012_v39, %v3011_v38  ;;  %v4827_v63 = vsel %vm4826_vm10, %v9972_v54, %v4825_v7  ;;  %5379 = vrsqrt.f32 %v3052_v26 }
 0x322   :  { %v5374_v47 = vpop.eup %5373  ;;  %v4830_v40 = vsel %vm4828_vm2, %v4822_v29, %v4827_v63  ;;  %v10156_v29 = vpop.f32.mrf.mxu1 }
 0x323   :  { %v3082_v25 = vmul.f32 %v5374_v47, %v9966_v45  ;;  %v3035_v17 = vmul.f32 0.5, %v3013_v18  ;;  %v5376_v13 = vpop.eup %5375  ;;  %v4831_v10 = vsel %vm4817_vm7, nan, %v4830_v40 }
 0x324   :  { %v5113_v19 = vor.u32 %v5376_v13, %v5110_v6  ;;  %v4832_v57 = vsel %vm4816_vm3, 0.0, %v4831_v10  ;;  %v4468_v58 = vpop.f32.mrf.mxu1 }
 0x325   :  { %3098 = vst [vmem:[#allocation2 + $0x10] sm:$0x3] %v3082_v25  ;;  %v3051_v16 = vadd.f32 1e-05, %v3035_v17  ;;  %v4833_v43 = vsel %vm4819_vm5, inf, %v4832_v57  ;;  %v4290_v25 = vadd.f32 %v9866_v2, %v9847_v30 }
 0x326   :  { %v5115_v45 = vsel %vm5114_vm0, %v10002_v28, %v5113_v19  ;;  %v4422_v19 = vadd.f32 %v10090_v9, %v10062_v50  ;;  %v4293_v50 = vadd.f32 %v9898_v23, %v9879_v42  ;;  %v4469_v42 = vadd.f32 %v4468_v58, %v10156_v29 }
 0x327   :  { %5381 = vrsqrt.f32 %v3051_v16  ;;  %v5118_v51 = vsel %vm5116_vm8, %v5110_v6, %v5115_v45 }
 0x328   :  { %v5378_v54 = vpop.eup %5377  ;;  %v5119_v0 = vsel %vm5105_vm11, nan, %v5118_v51 }
 0x329   :  { %v3081_v33 = vmul.f32 %v5378_v54, %v10006_v44  ;;  %v5120_v14 = vsel %vm5104_vm4, 0.0, %v5119_v0  ;;  %v4381_v0 = vadd.f32 %v10038_v5, %v10011_v1  ;;  %v4211_v5 = vld [vmem:[%s10216_s2] ss:$0 sm:$0xff]  ;;  %s5436_s2 = smov 104  }
 0x32a   :  { %v5121_v22 = vsel %vm5107_vm13, inf, %v5120_v14  ;;  %v4425_v14 = vadd.f32 %v10128_v31, %v10119_v4 }
 0x32b   :  { %3097 = vst [vmem:[#allocation2 + $0x158] sm:$0x3] %v3081_v33  ;;  %v2694_v61 = vsel %vm10515_vm14, %v5121_v22, %v4833_v43 }
 0x32c   :  { %v3162_v55 = vld [vmem:[#allocation2 + $0x10] sm:$0xff]  ;;  %2726 = vst [vmem:[#allocation2 + $0x1d8] sm:$0x3] %v2694_v61 }
 0x32d   :  { %4010 = vmatprep.mubr.f32.mxu0 %v3162_v55 }
 0x32e   :  { %v5380_v28 = vpop.eup %5379 }
 0x32f   :  { %v3084_v24 = vmul.f32 %v5380_v28, %v10054_v53 }
 0x331   :  { %3100 = vst [vmem:[#allocation2 + $0xa0] sm:$0x3] %v3084_v24 }
 0x332   :  { %v3161_v49 = vld [vmem:[#allocation2 + $0x158] sm:$0xff] }
 0x333   :  { %4011 = vmatmul.mubr.f32.gmra.mxu0 %v3161_v49  ;;  %v3147_v38 = vld [vmem:[#allocation2 + $0x1d8] sm:$0xff]  ;;  %v4470_v44 = vpop.f32.mrf.mxu1 }
 0x334   :  { %v5382_v12 = vpop.eup %5381  ;;  %4091 = vmatmul.mubr.f32.gmra.mxu1 %v3147_v38 }
 0x335   :  { %v3083_v32 = vmul.f32 %v5382_v12, %v10075_v36  ;;  %v4471_v21 = vpop.f32.mrf.mxu1  ;;  %v4246_v36 = vadd.f32 %v9785_v46, %v9761_v60  ;;  %v4466_v60 = vadd.f32 %v4465_v41, %v10146_v3  ;;  %v4337_v3 = vadd.f32 %v9949_v62, %v9938_v34 }
 0x336   :  { %v4429_v35 = vpop.f32.mrf.mxu0  ;;  %v4472_v48 = vadd.f32 %v4471_v21, %v4470_v44 }
 0x337   :  { %3099 = vst [vmem:[#allocation2 + $0x58] sm:$0x3] %v3083_v32  ;;  %v3573_v17 = vadd.f32 %v4290_v25, %v4246_v36 }
 0x338   :  { %v3164_v39 = vld [vmem:[#allocation2 + $0xa0] sm:$0xff]  ;;  %v10160_v52 = vadd.f32 %v4472_v48, %v3838_v20  ;;  %v4430_v7 = vpop.f32.mrf.mxu0  ;;  %v4334_v20 = vadd.f32 %v9922_v59, %v9903_v15 }
 0x339   :  { %4095 = vmatprep.mubr.f32.mxu1 %v3164_v39  ;;  %v4431_v53 = vadd.f32 %v4430_v7, %v4429_v35 }
 0x33a   :  { %v3658_v13 = vadd.f32 %v4334_v20, %v3573_v17 }
 0x33b   :  { %v3843_v26 = vadd.f32 %v4431_v53, %v10136_v37  ;;  %v4378_v37 = vadd.f32 %v10000_v56, %v9980_v27  ;;  %v4249_v56 = vadd.f32 %v9823_v11, %v9802_v8 }
 0x33d   :  { %v3743_v16 = vadd.f32 %v4378_v37, %v3658_v13  ;;  %v3578_v41 = vadd.f32 %v4293_v50, %v4249_v56 }
 0x33e   :  { %v3163_v6 = vld [vmem:[#allocation2 + $0x58] sm:$0xff] }
 0x33f   :  { %4096 = vmatmul.mubr.f32.gmra.mxu1 %v3163_v6  ;;  %v3828_v45 = vadd.f32 %v4422_v19, %v3743_v16  ;;  %v3663_v43 = vadd.f32 %v4337_v3, %v3578_v41 }
 0x341   :  { %v3913_v54 = vadd.f32 %v4466_v60, %v3828_v45  ;;  %v3748_v22 = vadd.f32 %v4381_v0, %v3663_v43 }
 0x343   :  { %v3833_v11 = vadd.f32 %v4425_v14, %v3748_v22 }
 0x345   :  { %v3918_v61 = vadd.f32 %v4469_v42, %v3833_v11 }
 0x346   :  { %v4473_v18 = vpop.f32.mrf.mxu1 }
 0x348   :  { %v4474_v47 = vpop.f32.mrf.mxu1 }
 0x349   :  { %v4475_v63 = vadd.f32 %v4474_v47, %v4473_v18 }
 0x34b   :  { %v3928_v40 = vadd.f32 %v4475_v63, %v3843_v26 }
 0x37b   :  { %v4508_v10 = vpop.f32.mrf.mxu0 }
 0x37d   :  { %v4509_v57 = vpop.f32.mrf.mxu0 }
 0x37e   :  { %v4510_v46 = vadd.f32 %v4509_v57, %v4508_v10 }
 0x380   :  { %v3998_v2 = vadd.f32 %v4510_v46, %v3913_v54 }
 0x38e   :  { %v4552_v30 = vpop.f32.mrf.mxu1 }
 0x390   :  { %v4553_v51 = vpop.f32.mrf.mxu1 }
 0x391   :  { %v4554_v15 = vadd.f32 %v4553_v51, %v4552_v30 }
 0x393   :  { %v10174_v59 = vadd.f32 %v4554_v15, %v3998_v2 }
 0x395   :  { %v4101_v27 = vmul.f32 %v10174_v59, %v10174_v59 }
 0x397   :  { %v4103_v9 = vsel %vm4102_vm1, %v4101_v27, 0.0 }
 0x398   :  { %4104 = vadd.xlane.f32.xlu0 %v4103_v9 }
 0x39d   :  { %v4511_v33 = vpop.f32.mrf.mxu0 }
 0x39f   :  { %v4512_v8 = vpop.f32.mrf.mxu0 }
 0x3a0   :  { %v4513_v23 = vadd.f32 %v4512_v8, %v4511_v33 }
 0x3a2   :  { %v4003_v28 = vadd.f32 %v4513_v23, %v3918_v61 }
 0x3a8   :  { %v4555_v55 = vpop.f32.mrf.mxu1 }
 0x3aa   :  { %v4556_v34 = vpop.f32.mrf.mxu1 }
 0x3ab   :  { %v4557_v62 = vadd.f32 %v4556_v34, %v4555_v55 }
 0x3ad   :  { %v10190_v24 = vadd.f32 %v4557_v62, %v4003_v28 }
 0x3af   :  { %v4120_v1 = vmul.f32 %v10190_v24, %v10190_v24 }
 0x3b1   :  { %4122 = vrot.lane.b32.xlu0 %v4120_v1, %s5434_s0 }
 0x3b5   :  { %4172 = vrot.lane.b32.xlu0 %v4211_v5, %s5435_s10 }
 0x3dd   :  { %v4514_v4 = vpop.f32.mrf.mxu0 }
 0x3df   :  { %v4515_v31 = vpop.f32.mrf.mxu0 }
 0x3e0   :  { %v4516_v36 = vadd.f32 %v4515_v31, %v4514_v4 }
 0x3e2   :  { %v4008_v10 = vadd.f32 %v4516_v36, %v10160_v52 }
 0x3f3   :  { %v4517_v58 = vpop.f32.mrf.mxu0 }
 0x3f4   :  { %v4558_v29 = vpop.f32.mrf.mxu1 }
 0x3f5   :  { %v4518_v12 = vpop.f32.mrf.mxu0 }
 0x3f6   :  { %v4559_v49 = vpop.f32.mrf.mxu1  ;;  %v4519_v44 = vadd.f32 %v4518_v12, %v4517_v58 }
 0x3f7   :  { %v4560_v37 = vadd.f32 %v4559_v49, %v4558_v29 }
 0x3f8   :  { %v4013_v48 = vadd.f32 %v4519_v44, %v3928_v40 }
 0x3f9   :  { %v10199_v40 = vadd.f32 %v4560_v37, %v4008_v10 }
 0x3fb   :  { %v4143_v19 = vmul.f32 %v10199_v40, %v10199_v40 }
 0x3ff   :  { %v4561_v38 = vpop.f32.mrf.mxu1 }
 0x401   :  { %v4562_v32 = vpop.f32.mrf.mxu1 }
 0x402   :  { %v4563_v39 = vadd.f32 %v4562_v32, %v4561_v38 }
 0x404   :  { %v4098_v18 = vadd.f32 %v4563_v39, %v4013_v48 }
 0x421   :  { %v4105_v21 = vpop.xlane.xlu0 %4104 }
 0x422   :  { %v4106_v35 = vrot.slane %v4105_v21, 4 }
 0x424   :  { %v4107_v7 = vadd.f32 %v4106_v35, %v4105_v21 }
 0x425   :  { %v4123_v53 = vpop.permute.xlu0 %4122 }
 0x426   :  { %v4108_v26 = vrot.slane %v4107_v7, 2  ;;  %v4125_v6 = vsel %vm4102_vm1, %v4123_v53, 0.0 }
 0x427   :  { %4126 = vadd.xlane.f32.xlu1 %v4125_v6 }
 0x428   :  { %v4109_v47 = vadd.f32 %v4108_v26, %v4107_v7 }
 0x429   :  { %v4173_v63 = vpop.permute.xlu0 %4172 }
 0x42a   :  { %v4175_v25 = vadd.f32 %v4173_v63, %v4098_v18  ;;  %v4110_v20 = vrot.slane %v4109_v47, 1 }
 0x42c   :  { %v4176_v17 = vmul.f32 0.5, %v4175_v25  ;;  %v4111_v13 = vadd.f32 %v4110_v20, %v4109_v47 }
 0x42e   :  { %5140 = vpush %v4111_v13  ;;  %4178 = vrot.lane.b32.xlu0 %v4176_v17, %s5436_s2 }
 0x438   :  { %4145 = vrot.lane.b32.xlu1 %v4143_v19, %s5437_s11 }
 0x45f   :  { %s5141_s12 = spop %5140 }
 0x460   :  { %v4113_v16 = vstv %s5141_s12 }
 0x461   :  { %5383 = vrsqrt.f32 %v4113_v16 }
 0x46e   :  { %v5384_v57 = vpop.eup %5383 }
 0x46f   :  { %5142 = vpush %v5384_v57 }
 0x4a0   :  { %s5143_s13 = spop %5142  ;;  %v4179_v45 = vpop.permute.xlu0 %4178 }
 0x4a1   :  { %s4116_s14 = smul.f32 0.57735026, %s5143_s13  ;;  %4182 = vst.msk [vmem:[#allocation3] sm:$0x3] %vm4181_vm6, %v4179_v45 }
 0x4a3   :  { %v4117_v52 = vstv %s4116_s14 }
 0x4a4   :  { %v4118_v60 = vmul.f32 %v4117_v52, %v10174_v59 }
 0x4a6   :  { %4119 = vst.msk [vmem:[#allocation5] sm:$0x3] %vm4102_vm1, %v4118_v60 }
 0x4b0   :  { %v4127_v46 = vpop.xlane.xlu1 %4126 }
 0x4b1   :  { %v4128_v54 = vrot.slane %v4127_v46, 4 }
 0x4b3   :  { %v4129_v30 = vadd.f32 %v4128_v54, %v4127_v46 }
 0x4b4   :  { %v4146_v2 = vpop.permute.xlu1 %4145 }
 0x4b5   :  { %v4130_v51 = vrot.slane %v4129_v30, 2  ;;  %v4148_v15 = vsel %vm4102_vm1, %v4146_v2, 0.0 }
 0x4b6   :  { %4149 = vadd.xlane.f32.xlu1 %v4148_v15 }
 0x4b7   :  { %v4131_v27 = vadd.f32 %v4130_v51, %v4129_v30 }
 0x4b9   :  { %v4132_v56 = vrot.slane %v4131_v27, 1 }
 0x4bb   :  { %v4133_v50 = vadd.f32 %v4132_v56, %v4131_v27 }
 0x4bd   :  { %5144 = vpush %v4133_v50 }
 0x4ee   :  { %s5145_s15 = spop %5144 }
 0x4ef   :  { %v4135_v9 = vstv %s5145_s15 }
 0x4f0   :  { %5385 = vrsqrt.f32 %v4135_v9 }
 0x4fd   :  { %v5386_v3 = vpop.eup %5385 }
 0x4fe   :  { %5146 = vpush %v5386_v3 }
 0x52f   :  { %s5147_s16 = spop %5146 }
 0x530   :  { %s4138_s17 = smul.f32 0.57735026, %s5147_s16 }
 0x532   :  { %v4139_v59 = vstv %s4138_s17 }
 0x533   :  { %v4140_v41 = vmul.f32 %v4139_v59, %v10190_v24 }
 0x535   :  { %4142 = vst.msk [vmem:[#allocation5] sm:$0x3] %vm4141_vm12, %v4140_v41 }
 0x53f   :  { %v4150_v43 = vpop.xlane.xlu1 %4149 }
 0x540   :  { %v4151_v0 = vrot.slane %v4150_v43, 4 }
 0x542   :  { %v4152_v33 = vadd.f32 %v4151_v0, %v4150_v43 }
 0x544   :  { %v4153_v14 = vrot.slane %v4152_v33, 2 }
 0x545   :  { %5400 = shalt.err (!%p5397_p4)
}
 0x546   :  { %4192 = dma.vmem_to_hbm [thread:$0]  %s4190_s19, 32, %s10217_s3, [#allocation4]   ;;  %v4154_v22 = vadd.f32 %v4153_v14, %v4152_v33  ;;  %vm4164_vm15 = vcmask 189568  }
 0x547   :  { %s5439_s26 = smov [#allocation5]  }
 0x548   :  { %v4155_v8 = vrot.slane %v4154_v22, 1  ;;  %s4199_s27 = sshll.u32 %s5439_s26, 4  ;;  %s4200_s27 = int_to_ptr.vmem [resolvable:$true] %s4199_s27 }
 0x549   :  { %s5409_s3 = scalar_lea.vmem %s4200_s27, 32  ;;  %p5414_p6 = scmp.lt.s32.totalorder %s4200_s27, %s4200_s27 }
 0x54a   :  { %v4156_v11 = vadd.f32 %v4155_v8, %v4154_v22  ;;  %p5410_p5 = scmp.ne.s32.totalorder %s4200_s27, %s5409_s3  ;;  %p5415_p7 = scmp.lt.s32.totalorder %s5409_s3, %s5409_s3 }
 0x54c   :  { %5148 = vpush %v4156_v11  ;;  %p5416_p8 = por %p5415_p7, %p5414_p6 }
 0x54e   :  { %p5417_p9 = pnand %p5416_p8, %p5410_p5 }
 0x57d   :  { %s5149_s23 = spop %5148 }
 0x57e   :  { %v4158_v42 = vstv %s5149_s23 }
 0x57f   :  { %5387 = vrsqrt.f32 %v4158_v42 }
 0x58c   :  { %v5388_v23 = vpop.eup %5387 }
 0x58d   :  { %5150 = vpush %v5388_v23 }
 0x5be   :  { %s5151_s24 = spop %5150 }
 0x5bf   :  { %s4161_s25 = smul.f32 0.57735026, %s5151_s24 }
 0x5c1   :  { %v4162_v61 = vstv %s4161_s25 }
 0x5c2   :  { %v4163_v55 = vmul.f32 %v4162_v61, %v10199_v40 }
 0x5c4   :  { %4165 = vst.msk [vmem:[#allocation5] sm:$0x3] %vm4164_vm15, %v4163_v55 }
 0x5c5   :  { %5420 = shalt.err (!%p5417_p9)
}
 0x5c6   :  { %4202 = dma.vmem_to_hbm [thread:$0]  %s4200_s27, 32, %s10218_s4, [#allocation6]  }
 0x5c7   :  { %5429 = dma.done.wait [#allocation4], 32  }
 0x5c8   :  { %5430 = vsyncadd [#allocation4], 4294967264 }
 0x5c9   :  { %5431 = dma.done.wait [#allocation6], 32  }
 0x5ca   :  { %5432 = vsyncadd [#allocation6], 4294967264 }
 0x5cb   :  { %4209 = vsyncpa [#allocation4], 1 }
 0x5cc   :  { %4210 = vsyncpa [#allocation6], 1 }

</bundles_post_ra>
